<compile_context>
chip_gen: v7x
topology: tpu7x:2x2x1
jax: 0.10.0
libtpu: 0.0.40
codegen_flags: <defaults>
</compile_context>

<pallas_src>
import math

import jax
import jax.numpy as jnp
from jax.experimental import pallas as pl
from jax.experimental.pallas import tpu as pltpu


def _round_up(x, m):
    return ((x + m - 1) // m) * m


def _conv_batch_block(n):
    # ~8 images per grid step amortizes per-step overhead; for small batches
    # keep >= 2 grid steps so both TensorCores get work on megacore parts.
    if n >= 16:
        return 8
    return max(1, (n + 1) // 2)


def _fc_batch_block(n):
    if n <= 8:
        return 8
    # at least two row tiles, at most 512 rows per tile
    return min(512, _round_up((n + 1) // 2, 8))


# ----------------------------------------------------------------------------
# Kernel 1: fused conv1 -> conv2 -> conv3 -> 2x2 maxpool  (B images / grid step)
# ----------------------------------------------------------------------------
def _fused_conv_kernel(p1_ref, w1_ref, b1_ref, w2_ref, b2_ref, w3_ref, b3_ref,
                       out_ref, pad_ref, stage_ref):
    f32 = jnp.float32
    B = p1_ref.shape[0]
    M = B * 256

    # One bf16 zero-fill per grid step (covers all B image slots).  The halo
    # ring is never written afterwards: interior stores cover rows/cols 1..16
    # only and the maxpool stages through a separate scratch.
    pad_ref[...] = jnp.zeros_like(pad_ref)

    def store_interior(x):
        # x: (M, 64) f32, row order b*256 + h*16 + w -> bf16 interior of pad.
        pad_ref[:, pl.ds(1, 16), pl.ds(1, 16), :] = (
            x.reshape(B, 16, 16, 64).astype(pad_ref.dtype))

    def conv3x3_relu(w_ref, b_ref):
        # 3 matmuls with K = 3*64 = 192: the kw = 0/1/2 shifted windows are
        # concatenated along the lane dim ("kw-concat"); weights are laid out
        # as (kh, kw*cin, cout).  Clean acc += dot(...) chain (MRB-friendly).
        acc = jnp.zeros((M, 64), f32)
        for kh in range(3):
            win = jnp.concatenate(
                [pad_ref[:, pl.ds(kh, 16), pl.ds(kw, 16), :] for kw in range(3)],
                axis=-1)                                    # (B, 16, 16, 192) bf16
            acc = acc + jnp.dot(win.reshape(M, 192), w_ref[kh],
                                preferred_element_type=f32)
        return jnp.maximum(acc + b_ref[...], 0.0)

    # conv1 (3->64, k=2, s=2): one (B*256, 12) x (12, 64) matmul over patches.
    h = jnp.dot(p1_ref[...].reshape(M, 12), w1_ref[...],
                preferred_element_type=f32)
    h = jnp.maximum(h + b1_ref[...], 0.0)                   # (M, 64) f32

    store_interior(h)
    h = conv3x3_relu(w2_ref, b2_ref)                        # conv2 + ReLU
    store_interior(h)
    h = conv3x3_relu(w3_ref, b3_ref)                        # conv3 + ReLU

    # 2x2 / stride-2 max pool.
    h4 = h.reshape(B, 8, 2, 16, 64)
    hH = jnp.maximum(h4[:, :, 0], h4[:, :, 1])              # H-pool: (B, 8, 16, 64)
    stage_ref[...] = hH.reshape(B * 8, 16, 64)
    even = stage_ref[:, pl.ds(0, 8, stride=2), :]           # w = 0, 2, ..., 14
    odd = stage_ref[:, pl.ds(1, 8, stride=2), :]            # w = 1, 3, ..., 15
    out_ref[...] = (jnp.maximum(even, odd)
                    .reshape(B, 8, 8, 64).astype(out_ref.dtype))


def fused_conv(p1, w1, b1, w2, b2, w3, b3):
    """p1: (N, 256, 12) bf16 conv1 patches -> (N, 8, 8, 64) bf16 pooled features."""
    N = p1.shape[0]
    B = _conv_batch_block(N)
    Npad = _round_up(N, B)
    if Npad != N:
        p1 = jnp.pad(p1, ((0, Npad - N), (0, 0), (0, 0)))
    out = pl.pallas_call(
        _fused_conv_kernel,
        out_shape=jax.ShapeDtypeStruct((Npad, 8, 8, 64), jnp.bfloat16),
        grid_spec=pltpu.PrefetchScalarGridSpec(
            num_scalar_prefetch=0,
            grid=(Npad // B,),
            in_specs=[
                pl.BlockSpec((B, 256, 12), lambda i: (i, 0, 0)),
                pl.BlockSpec((12, 64), lambda i: (0, 0)),
                pl.BlockSpec((1, 64), lambda i: (0, 0)),
                pl.BlockSpec((3, 192, 64), lambda i: (0, 0, 0)),
                pl.BlockSpec((1, 64), lambda i: (0, 0)),
                pl.BlockSpec((3, 192, 64), lambda i: (0, 0, 0)),
                pl.BlockSpec((1, 64), lambda i: (0, 0)),
            ],
            out_specs=pl.BlockSpec((B, 8, 8, 64), lambda i: (i, 0, 0, 0)),
            scratch_shapes=[
                pltpu.VMEM((B, 18, 18, 64), jnp.bfloat16),   # zero-padded maps
                pltpu.VMEM((B * 8, 16, 64), jnp.float32),    # maxpool staging
            ],
        ),
        compiler_params=pltpu.CompilerParams(
            dimension_semantics=("parallel",)),
    )(p1, w1, b1.reshape(1, 64), w2, b2.reshape(1, 64), w3, b3.reshape(1, 64))
    return out[:N]


# ----------------------------------------------------------------------------
# Kernel 2: fused fc1 + ReLU + fc2 (batched rows)
# ----------------------------------------------------------------------------
def _fc_kernel(x_ref, w1_ref, b1_ref, w2_ref, b2_ref, o_ref):
    h = jnp.dot(x_ref[...], w1_ref[...], preferred_element_type=jnp.float32)
    h = jnp.maximum(h + b1_ref[...], 0.0)
    o = jnp.dot(h.astype(jnp.bfloat16), w2_ref[...],
                preferred_element_type=jnp.float32)
    o_ref[...] = o + b2_ref[...]


def fc_fused(feat, wf1, bf1, wf2, bf2):
    """feat: (N, 4096) bf16 -> (N, 128) f32 logits (only cols [:10] meaningful)."""
    N, K = feat.shape
    Nh = wf1.shape[1]
    No = wf2.shape[1]
    bm = _fc_batch_block(N)
    Npad = _round_up(N, bm)
    if Npad != N:
        feat = jnp.pad(feat, ((0, Npad - N), (0, 0)))
    out = pl.pallas_call(
        _fc_kernel,
        out_shape=jax.ShapeDtypeStruct((Npad, No), jnp.float32),
        grid_spec=pltpu.PrefetchScalarGridSpec(
            num_scalar_prefetch=0,
            grid=(Npad // bm,),
            in_specs=[
                pl.BlockSpec((bm, K), lambda i: (i, 0)),
                pl.BlockSpec((K, Nh), lambda i: (0, 0)),
                pl.BlockSpec((1, Nh), lambda i: (0, 0)),
                pl.BlockSpec((Nh, No), lambda i: (0, 0)),
                pl.BlockSpec((1, No), lambda i: (0, 0)),
            ],
            out_specs=pl.BlockSpec((bm, No), lambda i: (i, 0)),
        ),
        compiler_params=pltpu.CompilerParams(
            dimension_semantics=("parallel",)),
    )(feat, wf1, bf1.reshape(1, Nh), wf2, bf2.reshape(1, No))
    return out[:N]


# ----------------------------------------------------------------------------
# Glue: conv1 patch extraction + parameter setup (plain JAX, one-time / tiny)
# ----------------------------------------------------------------------------
def patches_2x2_stride2(x_nhwc):
    """Non-overlapping 2x2 patches (conv1 k=2, s=2); cols ordered (kh, kw, c)."""
    N, H, W, C = x_nhwc.shape
    xr = x_nhwc.reshape(N, H // 2, 2, W // 2, 2, C).transpose(0, 1, 3, 2, 4, 5)
    return xr.reshape(N, (H // 2) * (W // 2), 4 * C)


def kaiming_uniform(key, shape, fan_in):
    # PyTorch kaiming_uniform_(nonlinearity='relu'): bound = sqrt(6 / fan_in)
    bound = math.sqrt(6.0 / fan_in)
    return jax.random.uniform(key, shape, jnp.float32, -bound, bound)


def init_params(key):
    ks = jax.random.split(key, 5)
    # PyTorch-layout weights (module re-inits with relu kaiming + zero biases).
    w1 = kaiming_uniform(ks[0], (64, 3, 2, 2), fan_in=3 * 2 * 2)
    w2 = kaiming_uniform(ks[1], (64, 64, 3, 3), fan_in=64 * 3 * 3)
    w3 = kaiming_uniform(ks[2], (64, 64, 3, 3), fan_in=64 * 3 * 3)
    wf1 = kaiming_uniform(ks[3], (128, 64 * 8 * 8), fan_in=64 * 8 * 8)  # [out, in]
    wf2 = kaiming_uniform(ks[4], (10, 128), fan_in=128)                 # [out, in]

    # conv1: OIHW -> (kh*kw*cin, cout), matching patch column order (kh, kw, c).
    w1m = jnp.transpose(w1, (2, 3, 1, 0)).reshape(12, 64)
    # conv2/3: OIHW -> (kh, kw*cin, cout) for the kw-concatenated K=192 matmuls.
    w2t = jnp.transpose(w2, (2, 3, 1, 0)).reshape(3, 192, 64)
    w3t = jnp.transpose(w3, (2, 3, 1, 0)).reshape(3, 192, 64)

    # fc1: PyTorch flatten order (c*64 + h*8 + w) -> kernel order (h*512 + w*64 + c).
    wf1k = jnp.transpose(wf1.reshape(128, 64, 8, 8), (2, 3, 1, 0)).reshape(4096, 128)

    # fc2: (10, 128) -> (128, 128) lane-dense padded.
    wf2p = jnp.zeros((128, 128), jnp.float32).at[:, :10].set(wf2.T)

    bf16 = jnp.bfloat16
    return {
        "w1": w1m.astype(bf16), "b1": jnp.zeros((64,), jnp.float32),
        "w2": w2t.astype(bf16), "b2": jnp.zeros((64,), jnp.float32),
        "w3": w3t.astype(bf16), "b3": jnp.zeros((64,), jnp.float32),
        "wf1": wf1k.astype(bf16), "bf1": jnp.zeros((128,), jnp.float32),
        "wf2": wf2p.astype(bf16), "bf2": jnp.zeros((128,), jnp.float32),
    }


# ----------------------------------------------------------------------------
# Forward pass (matches VGG1Block.forward semantics)
# ----------------------------------------------------------------------------
def vgg1block_forward(x_nchw, params):
    N = x_nchw.shape[0]
    x = jnp.transpose(x_nchw, (0, 2, 3, 1)).astype(jnp.float32)   # NCHW -> NHWC
    p1 = patches_2x2_stride2(x).astype(jnp.bfloat16)              # (N, 256, 12)

    feat = fused_conv(p1, params["w1"], params["b1"],
                      params["w2"], params["b2"],
                      params["w3"], params["b3"])                 # (N, 8, 8, 64) bf16
    feat = feat.reshape(N, 8 * 8 * 64)                            # free HBM reshape

    logits = fc_fused(feat, params["wf1"], params["bf1"],
                      params["wf2"], params["bf2"])               # (N, 128) f32
    return logits[:, :10]


if __name__ == "__main__":
    key = jax.random.PRNGKey(0)
    k_param, k_input = jax.random.split(key)
    params = init_params(k_param)

    # fc1 = Linear(64*8*8, 128) implies a 3x32x32 input; batch = 2.
    x = jax.random.normal(k_input, (2, 3, 32, 32), dtype=jnp.float32)

    fwd = jax.jit(vgg1block_forward)
    y = fwd(x, params)
    jax.block_until_ready(y)
    assert y.shape == (2, 10)
    print("KERNEL_OK")
</pallas_src>

<mosaic_0001>
module attributes {stable_mosaic.version = 11 : i64} {
  func.func @_fused_conv_kernel(%arg0: i32, %arg1: memref<1x256x12xbf16, #tpu.memory_space<vmem>>, %arg2: memref<12x64xbf16, #tpu.memory_space<vmem>>, %arg3: memref<1x64xf32, #tpu.memory_space<vmem>>, %arg4: memref<3x192x64xbf16, #tpu.memory_space<vmem>>, %arg5: memref<1x64xf32, #tpu.memory_space<vmem>>, %arg6: memref<3x192x64xbf16, #tpu.memory_space<vmem>>, %arg7: memref<1x64xf32, #tpu.memory_space<vmem>>, %arg8: memref<1x8x8x64xbf16, #tpu.memory_space<vmem>>, %arg9: memref<1x18x18x64xbf16, #tpu.memory_space<vmem>>, %arg10: memref<8x16x64xf32, #tpu.memory_space<vmem>>) attributes {dimension_semantics = [#tpu.dimension_semantics<parallel>], iteration_bounds = array<i64: 2>, scalar_prefetch = 0 : i64, scratch_operands = 2 : i64, tpu.core_type = #tpu.core_type<tc>, window_params = [{transform_indices = @transform_0, window_bounds = array<i64: 1, 256, 12>}, {pipeline_mode = #tpu.pipeline_mode<synchronous>, transform_indices = @transform_1, window_bounds = array<i64: 12, 64>}, {pipeline_mode = #tpu.pipeline_mode<synchronous>, transform_indices = @transform_2, window_bounds = array<i64: 1, 64>}, {pipeline_mode = #tpu.pipeline_mode<synchronous>, transform_indices = @transform_3, window_bounds = array<i64: 3, 192, 64>}, {pipeline_mode = #tpu.pipeline_mode<synchronous>, transform_indices = @transform_4, window_bounds = array<i64: 1, 64>}, {pipeline_mode = #tpu.pipeline_mode<synchronous>, transform_indices = @transform_5, window_bounds = array<i64: 3, 192, 64>}, {pipeline_mode = #tpu.pipeline_mode<synchronous>, transform_indices = @transform_6, window_bounds = array<i64: 1, 64>}, {transform_indices = @transform_7, window_bounds = array<i64: 1, 8, 8, 64>}]} {
    %cst = arith.constant 0.000000e+00 : bf16
    %0 = vector.broadcast %cst : bf16 to vector<1x18x18x64xbf16>
    %c0 = arith.constant 0 : index
    %c0_0 = arith.constant 0 : index
    %c0_1 = arith.constant 0 : index
    %c0_2 = arith.constant 0 : index
    %1 = vector.load %arg9[%c0, %c0_0, %c0_1, %c0_2] : memref<1x18x18x64xbf16, #tpu.memory_space<vmem>>, vector<1x18x18x64xbf16>
    tpu.vector_store %arg9[%c0, %c0_0, %c0_1, %c0_2], %0 {strides = array<i32>} : memref<1x18x18x64xbf16, #tpu.memory_space<vmem>>, vector<1x18x18x64xbf16>,
    %c0_3 = arith.constant 0 : index
    %c0_4 = arith.constant 0 : index
    %c0_5 = arith.constant 0 : index
    %2 = vector.load %arg1[%c0_3, %c0_4, %c0_5] : memref<1x256x12xbf16, #tpu.memory_space<vmem>>, vector<1x256x12xbf16>
    %3 = vector.shape_cast %2 : vector<1x256x12xbf16> to vector<256x12xbf16>
    %c0_6 = arith.constant 0 : index
    %c0_7 = arith.constant 0 : index
    %4 = vector.load %arg2[%c0_6, %c0_7] : memref<12x64xbf16, #tpu.memory_space<vmem>>, vector<12x64xbf16>
    %cst_8 = arith.constant dense<0.000000e+00> : vector<256x64xf32>
    %5 = tpu.matmul %3, %4, %cst_8 {dimension_numbers = #tpu.dot_dimension_numbers<[1], [0], [0], [1], [0, 0, 1, 1], [], []>} : vector<256x12xbf16>, vector<12x64xbf16>, vector<256x64xf32> -> vector<256x64xf32>
    %c0_9 = arith.constant 0 : index
    %c0_10 = arith.constant 0 : index
    %6 = vector.load %arg3[%c0_9, %c0_10] : memref<1x64xf32, #tpu.memory_space<vmem>>, vector<1x64xf32>
    %7 = vector.broadcast %6 : vector<1x64xf32> to vector<256x64xf32>
    %8 = arith.addf %5, %7 : vector<256x64xf32>
    %cst_11 = arith.constant 0.000000e+00 : f32
    %9 = vector.broadcast %cst_11 : f32 to vector<256x64xf32>
    %10 = arith.maximumf %8, %9 : vector<256x64xf32>
    %11 = vector.shape_cast %10 : vector<256x64xf32> to vector<1x16x16x64xf32>
    %12 = arith.truncf %11 : vector<1x16x16x64xf32> to vector<1x16x16x64xbf16>
    %c0_12 = arith.constant 0 : index
    %c1 = arith.constant 1 : index
    %c1_13 = arith.constant 1 : index
    %c0_14 = arith.constant 0 : index
    %13 = vector.load %arg9[%c0_12, %c1, %c1_13, %c0_14] : memref<1x18x18x64xbf16, #tpu.memory_space<vmem>>, vector<1x16x16x64xbf16>
    tpu.vector_store %arg9[%c0_12, %c1, %c1_13, %c0_14], %12 {strides = array<i32>} : memref<1x18x18x64xbf16, #tpu.memory_space<vmem>>, vector<1x16x16x64xbf16>,
    %cst_15 = arith.constant 0.000000e+00 : f32
    %14 = vector.broadcast %cst_15 : f32 to vector<256x64xf32>
    %c0_16 = arith.constant 0 : index
    %c0_17 = arith.constant 0 : index
    %c0_18 = arith.constant 0 : index
    %c0_19 = arith.constant 0 : index
    %15 = vector.load %arg9[%c0_16, %c0_17, %c0_18, %c0_19] : memref<1x18x18x64xbf16, #tpu.memory_space<vmem>>, vector<1x16x16x64xbf16>
    %c0_20 = arith.constant 0 : index
    %c0_21 = arith.constant 0 : index
    %c1_22 = arith.constant 1 : index
    %c0_23 = arith.constant 0 : index
    %16 = vector.load %arg9[%c0_20, %c0_21, %c1_22, %c0_23] : memref<1x18x18x64xbf16, #tpu.memory_space<vmem>>, vector<1x16x16x64xbf16>
    %c0_24 = arith.constant 0 : index
    %c0_25 = arith.constant 0 : index
    %c2 = arith.constant 2 : index
    %c0_26 = arith.constant 0 : index
    %17 = vector.load %arg9[%c0_24, %c0_25, %c2, %c0_26] : memref<1x18x18x64xbf16, #tpu.memory_space<vmem>>, vector<1x16x16x64xbf16>
    %18 = tpu.concatenate %15, %16, %17 in 3 : vector<1x16x16x64xbf16>, vector<1x16x16x64xbf16>, vector<1x16x16x64xbf16> -> vector<1x16x16x192xbf16>
    %19 = vector.shape_cast %18 : vector<1x16x16x192xbf16> to vector<256x192xbf16>
    %c0_27 = arith.constant 0 : index
    %c0_28 = arith.constant 0 : index
    %c0_29 = arith.constant 0 : index
    %20 = vector.load %arg4[%c0_27, %c0_28, %c0_29] : memref<3x192x64xbf16, #tpu.memory_space<vmem>>, vector<1x192x64xbf16>
    %21 = vector.shape_cast %20 : vector<1x192x64xbf16> to vector<192x64xbf16>
    %cst_30 = arith.constant dense<0.000000e+00> : vector<256x64xf32>
    %22 = tpu.matmul %19, %21, %cst_30 {dimension_numbers = #tpu.dot_dimension_numbers<[1], [0], [0], [1], [0, 0, 1, 1], [], []>} : vector<256x192xbf16>, vector<192x64xbf16>, vector<256x64xf32> -> vector<256x64xf32>
    %23 = arith.addf %14, %22 : vector<256x64xf32>
    %c0_31 = arith.constant 0 : index
    %c1_32 = arith.constant 1 : index
    %c0_33 = arith.constant 0 : index
    %c0_34 = arith.constant 0 : index
    %24 = vector.load %arg9[%c0_31, %c1_32, %c0_33, %c0_34] : memref<1x18x18x64xbf16, #tpu.memory_space<vmem>>, vector<1x16x16x64xbf16>
    %c0_35 = arith.constant 0 : index
    %c1_36 = arith.constant 1 : index
    %c1_37 = arith.constant 1 : index
    %c0_38 = arith.constant 0 : index
    %25 = vector.load %arg9[%c0_35, %c1_36, %c1_37, %c0_38] : memref<1x18x18x64xbf16, #tpu.memory_space<vmem>>, vector<1x16x16x64xbf16>
    %c0_39 = arith.constant 0 : index
    %c1_40 = arith.constant 1 : index
    %c2_41 = arith.constant 2 : index
    %c0_42 = arith.constant 0 : index
    %26 = vector.load %arg9[%c0_39, %c1_40, %c2_41, %c0_42] : memref<1x18x18x64xbf16, #tpu.memory_space<vmem>>, vector<1x16x16x64xbf16>
    %27 = tpu.concatenate %24, %25, %26 in 3 : vector<1x16x16x64xbf16>, vector<1x16x16x64xbf16>, vector<1x16x16x64xbf16> -> vector<1x16x16x192xbf16>
    %28 = vector.shape_cast %27 : vector<1x16x16x192xbf16> to vector<256x192xbf16>
    %c1_43 = arith.constant 1 : index
    %c0_44 = arith.constant 0 : index
    %c0_45 = arith.constant 0 : index
    %29 = vector.load %arg4[%c1_43, %c0_44, %c0_45] : memref<3x192x64xbf16, #tpu.memory_space<vmem>>, vector<1x192x64xbf16>
    %30 = vector.shape_cast %29 : vector<1x192x64xbf16> to vector<192x64xbf16>
    %cst_46 = arith.constant dense<0.000000e+00> : vector<256x64xf32>
    %31 = tpu.matmul %28, %30, %cst_46 {dimension_numbers = #tpu.dot_dimension_numbers<[1], [0], [0], [1], [0, 0, 1, 1], [], []>} : vector<256x192xbf16>, vector<192x64xbf16>, vector<256x64xf32> -> vector<256x64xf32>
    %32 = arith.addf %23, %31 : vector<256x64xf32>
    %c0_47 = arith.constant 0 : index
    %c2_48 = arith.constant 2 : index
    %c0_49 = arith.constant 0 : index
    %c0_50 = arith.constant 0 : index
    %33 = vector.load %arg9[%c0_47, %c2_48, %c0_49, %c0_50] : memref<1x18x18x64xbf16, #tpu.memory_space<vmem>>, vector<1x16x16x64xbf16>
    %c0_51 = arith.constant 0 : index
    %c2_52 = arith.constant 2 : index
    %c1_53 = arith.constant 1 : index
    %c0_54 = arith.constant 0 : index
    %34 = vector.load %arg9[%c0_51, %c2_52, %c1_53, %c0_54] : memref<1x18x18x64xbf16, #tpu.memory_space<vmem>>, vector<1x16x16x64xbf16>
    %c0_55 = arith.constant 0 : index
    %c2_56 = arith.constant 2 : index
    %c2_57 = arith.constant 2 : index
    %c0_58 = arith.constant 0 : index
    %35 = vector.load %arg9[%c0_55, %c2_56, %c2_57, %c0_58] : memref<1x18x18x64xbf16, #tpu.memory_space<vmem>>, vector<1x16x16x64xbf16>
    %36 = tpu.concatenate %33, %34, %35 in 3 : vector<1x16x16x64xbf16>, vector<1x16x16x64xbf16>, vector<1x16x16x64xbf16> -> vector<1x16x16x192xbf16>
    %37 = vector.shape_cast %36 : vector<1x16x16x192xbf16> to vector<256x192xbf16>
    %c2_59 = arith.constant 2 : index
    %c0_60 = arith.constant 0 : index
    %c0_61 = arith.constant 0 : index
    %38 = vector.load %arg4[%c2_59, %c0_60, %c0_61] : memref<3x192x64xbf16, #tpu.memory_space<vmem>>, vector<1x192x64xbf16>
    %39 = vector.shape_cast %38 : vector<1x192x64xbf16> to vector<192x64xbf16>
    %cst_62 = arith.constant dense<0.000000e+00> : vector<256x64xf32>
    %40 = tpu.matmul %37, %39, %cst_62 {dimension_numbers = #tpu.dot_dimension_numbers<[1], [0], [0], [1], [0, 0, 1, 1], [], []>} : vector<256x192xbf16>, vector<192x64xbf16>, vector<256x64xf32> -> vector<256x64xf32>
    %41 = arith.addf %32, %40 : vector<256x64xf32>
    %c0_63 = arith.constant 0 : index
    %c0_64 = arith.constant 0 : index
    %42 = vector.load %arg5[%c0_63, %c0_64] : memref<1x64xf32, #tpu.memory_space<vmem>>, vector<1x64xf32>
    %43 = vector.broadcast %42 : vector<1x64xf32> to vector<256x64xf32>
    %44 = arith.addf %41, %43 : vector<256x64xf32>
    %cst_65 = arith.constant 0.000000e+00 : f32
    %45 = vector.broadcast %cst_65 : f32 to vector<256x64xf32>
    %46 = arith.maximumf %44, %45 : vector<256x64xf32>
    %47 = vector.shape_cast %46 : vector<256x64xf32> to vector<1x16x16x64xf32>
    %48 = arith.truncf %47 : vector<1x16x16x64xf32> to vector<1x16x16x64xbf16>
    %c0_66 = arith.constant 0 : index
    %c1_67 = arith.constant 1 : index
    %c1_68 = arith.constant 1 : index
    %c0_69 = arith.constant 0 : index
    %49 = vector.load %arg9[%c0_66, %c1_67, %c1_68, %c0_69] : memref<1x18x18x64xbf16, #tpu.memory_space<vmem>>, vector<1x16x16x64xbf16>
    tpu.vector_store %arg9[%c0_66, %c1_67, %c1_68, %c0_69], %48 {strides = array<i32>} : memref<1x18x18x64xbf16, #tpu.memory_space<vmem>>, vector<1x16x16x64xbf16>,
    %cst_70 = arith.constant 0.000000e+00 : f32
    %50 = vector.broadcast %cst_70 : f32 to vector<256x64xf32>
    %c0_71 = arith.constant 0 : index
    %c0_72 = arith.constant 0 : index
    %c0_73 = arith.constant 0 : index
    %c0_74 = arith.constant 0 : index
    %51 = vector.load %arg9[%c0_71, %c0_72, %c0_73, %c0_74] : memref<1x18x18x64xbf16, #tpu.memory_space<vmem>>, vector<1x16x16x64xbf16>
    %c0_75 = arith.constant 0 : index
    %c0_76 = arith.constant 0 : index
    %c1_77 = arith.constant 1 : index
    %c0_78 = arith.constant 0 : index
    %52 = vector.load %arg9[%c0_75, %c0_76, %c1_77, %c0_78] : memref<1x18x18x64xbf16, #tpu.memory_space<vmem>>, vector<1x16x16x64xbf16>
    %c0_79 = arith.constant 0 : index
    %c0_80 = arith.constant 0 : index
    %c2_81 = arith.constant 2 : index
    %c0_82 = arith.constant 0 : index
    %53 = vector.load %arg9[%c0_79, %c0_80, %c2_81, %c0_82] : memref<1x18x18x64xbf16, #tpu.memory_space<vmem>>, vector<1x16x16x64xbf16>
    %54 = tpu.concatenate %51, %52, %53 in 3 : vector<1x16x16x64xbf16>, vector<1x16x16x64xbf16>, vector<1x16x16x64xbf16> -> vector<1x16x16x192xbf16>
    %55 = vector.shape_cast %54 : vector<1x16x16x192xbf16> to vector<256x192xbf16>
    %c0_83 = arith.constant 0 : index
    %c0_84 = arith.constant 0 : index
    %c0_85 = arith.constant 0 : index
    %56 = vector.load %arg6[%c0_83, %c0_84, %c0_85] : memref<3x192x64xbf16, #tpu.memory_space<vmem>>, vector<1x192x64xbf16>
    %57 = vector.shape_cast %56 : vector<1x192x64xbf16> to vector<192x64xbf16>
    %cst_86 = arith.constant dense<0.000000e+00> : vector<256x64xf32>
    %58 = tpu.matmul %55, %57, %cst_86 {dimension_numbers = #tpu.dot_dimension_numbers<[1], [0], [0], [1], [0, 0, 1, 1], [], []>} : vector<256x192xbf16>, vector<192x64xbf16>, vector<256x64xf32> -> vector<256x64xf32>
    %59 = arith.addf %50, %58 : vector<256x64xf32>
    %c0_87 = arith.constant 0 : index
    %c1_88 = arith.constant 1 : index
    %c0_89 = arith.constant 0 : index
    %c0_90 = arith.constant 0 : index
    %60 = vector.load %arg9[%c0_87, %c1_88, %c0_89, %c0_90] : memref<1x18x18x64xbf16, #tpu.memory_space<vmem>>, vector<1x16x16x64xbf16>
    %c0_91 = arith.constant 0 : index
    %c1_92 = arith.constant 1 : index
    %c1_93 = arith.constant 1 : index
    %c0_94 = arith.constant 0 : index
    %61 = vector.load %arg9[%c0_91, %c1_92, %c1_93, %c0_94] : memref<1x18x18x64xbf16, #tpu.memory_space<vmem>>, vector<1x16x16x64xbf16>
    %c0_95 = arith.constant 0 : index
    %c1_96 = arith.constant 1 : index
    %c2_97 = arith.constant 2 : index
    %c0_98 = arith.constant 0 : index
    %62 = vector.load %arg9[%c0_95, %c1_96, %c2_97, %c0_98] : memref<1x18x18x64xbf16, #tpu.memory_space<vmem>>, vector<1x16x16x64xbf16>
    %63 = tpu.concatenate %60, %61, %62 in 3 : vector<1x16x16x64xbf16>, vector<1x16x16x64xbf16>, vector<1x16x16x64xbf16> -> vector<1x16x16x192xbf16>
    %64 = vector.shape_cast %63 : vector<1x16x16x192xbf16> to vector<256x192xbf16>
    %c1_99 = arith.constant 1 : index
    %c0_100 = arith.constant 0 : index
    %c0_101 = arith.constant 0 : index
    %65 = vector.load %arg6[%c1_99, %c0_100, %c0_101] : memref<3x192x64xbf16, #tpu.memory_space<vmem>>, vector<1x192x64xbf16>
    %66 = vector.shape_cast %65 : vector<1x192x64xbf16> to vector<192x64xbf16>
    %cst_102 = arith.constant dense<0.000000e+00> : vector<256x64xf32>
    %67 = tpu.matmul %64, %66, %cst_102 {dimension_numbers = #tpu.dot_dimension_numbers<[1], [0], [0], [1], [0, 0, 1, 1], [], []>} : vector<256x192xbf16>, vector<192x64xbf16>, vector<256x64xf32> -> vector<256x64xf32>
    %68 = arith.addf %59, %67 : vector<256x64xf32>
    %c0_103 = arith.constant 0 : index
    %c2_104 = arith.constant 2 : index
    %c0_105 = arith.constant 0 : index
    %c0_106 = arith.constant 0 : index
    %69 = vector.load %arg9[%c0_103, %c2_104, %c0_105, %c0_106] : memref<1x18x18x64xbf16, #tpu.memory_space<vmem>>, vector<1x16x16x64xbf16>
    %c0_107 = arith.constant 0 : index
    %c2_108 = arith.constant 2 : index
    %c1_109 = arith.constant 1 : index
    %c0_110 = arith.constant 0 : index
    %70 = vector.load %arg9[%c0_107, %c2_108, %c1_109, %c0_110] : memref<1x18x18x64xbf16, #tpu.memory_space<vmem>>, vector<1x16x16x64xbf16>
    %c0_111 = arith.constant 0 : index
    %c2_112 = arith.constant 2 : index
    %c2_113 = arith.constant 2 : index
    %c0_114 = arith.constant 0 : index
    %71 = vector.load %arg9[%c0_111, %c2_112, %c2_113, %c0_114] : memref<1x18x18x64xbf16, #tpu.memory_space<vmem>>, vector<1x16x16x64xbf16>
    %72 = tpu.concatenate %69, %70, %71 in 3 : vector<1x16x16x64xbf16>, vector<1x16x16x64xbf16>, vector<1x16x16x64xbf16> -> vector<1x16x16x192xbf16>
    %73 = vector.shape_cast %72 : vector<1x16x16x192xbf16> to vector<256x192xbf16>
    %c2_115 = arith.constant 2 : index
    %c0_116 = arith.constant 0 : index
    %c0_117 = arith.constant 0 : index
    %74 = vector.load %arg6[%c2_115, %c0_116, %c0_117] : memref<3x192x64xbf16, #tpu.memory_space<vmem>>, vector<1x192x64xbf16>
    %75 = vector.shape_cast %74 : vector<1x192x64xbf16> to vector<192x64xbf16>
    %cst_118 = arith.constant dense<0.000000e+00> : vector<256x64xf32>
    %76 = tpu.matmul %73, %75, %cst_118 {dimension_numbers = #tpu.dot_dimension_numbers<[1], [0], [0], [1], [0, 0, 1, 1], [], []>} : vector<256x192xbf16>, vector<192x64xbf16>, vector<256x64xf32> -> vector<256x64xf32>
    %77 = arith.addf %68, %76 : vector<256x64xf32>
    %c0_119 = arith.constant 0 : index
    %c0_120 = arith.constant 0 : index
    %78 = vector.load %arg7[%c0_119, %c0_120] : memref<1x64xf32, #tpu.memory_space<vmem>>, vector<1x64xf32>
    %79 = vector.broadcast %78 : vector<1x64xf32> to vector<256x64xf32>
    %80 = arith.addf %77, %79 : vector<256x64xf32>
    %cst_121 = arith.constant 0.000000e+00 : f32
    %81 = vector.broadcast %cst_121 : f32 to vector<256x64xf32>
    %82 = arith.maximumf %80, %81 : vector<256x64xf32>
    %83 = vector.shape_cast %82 : vector<256x64xf32> to vector<1x8x2x16x64xf32>
    %84 = vector.extract_strided_slice %83 {offsets = [0, 0, 0, 0, 0], sizes = [1, 8, 1, 16, 64], strides = [1, 1, 1, 1, 1]} : vector<1x8x2x16x64xf32> to vector<1x8x1x16x64xf32>
    %85 = vector.shape_cast %84 : vector<1x8x1x16x64xf32> to vector<1x8x16x64xf32>
    %86 = vector.extract_strided_slice %83 {offsets = [0, 0, 1, 0, 0], sizes = [1, 8, 1, 16, 64], strides = [1, 1, 1, 1, 1]} : vector<1x8x2x16x64xf32> to vector<1x8x1x16x64xf32>
    %87 = vector.shape_cast %86 : vector<1x8x1x16x64xf32> to vector<1x8x16x64xf32>
    %88 = arith.maximumf %85, %87 : vector<1x8x16x64xf32>
    %89 = vector.shape_cast %88 : vector<1x8x16x64xf32> to vector<8x16x64xf32>
    %c0_122 = arith.constant 0 : index
    %c0_123 = arith.constant 0 : index
    %c0_124 = arith.constant 0 : index
    %90 = vector.load %arg10[%c0_122, %c0_123, %c0_124] : memref<8x16x64xf32, #tpu.memory_space<vmem>>, vector<8x16x64xf32>
    tpu.vector_store %arg10[%c0_122, %c0_123, %c0_124], %89 {strides = array<i32>} : memref<8x16x64xf32, #tpu.memory_space<vmem>>, vector<8x16x64xf32>,
    %c0_125 = arith.constant 0 : index
    %c0_126 = arith.constant 0 : index
    %c0_127 = arith.constant 0 : index
    %91 = tpu.strided_load %arg10[%c0_125, %c0_126, %c0_127] {strides = array<i32: 1, 2, 1>} : memref<8x16x64xf32, #tpu.memory_space<vmem>>, vector<8x8x64xf32>
    %c0_128 = arith.constant 0 : index
    %c1_129 = arith.constant 1 : index
    %c0_130 = arith.constant 0 : index
    %92 = tpu.strided_load %arg10[%c0_128, %c1_129, %c0_130] {strides = array<i32: 1, 2, 1>} : memref<8x16x64xf32, #tpu.memory_space<vmem>>, vector<8x8x64xf32>
    %93 = arith.maximumf %91, %92 : vector<8x8x64xf32>
    %94 = vector.shape_cast %93 : vector<8x8x64xf32> to vector<1x8x8x64xf32>
    %95 = arith.truncf %94 : vector<1x8x8x64xf32> to vector<1x8x8x64xbf16>
    %c0_131 = arith.constant 0 : index
    %c0_132 = arith.constant 0 : index
    %c0_133 = arith.constant 0 : index
    %c0_134 = arith.constant 0 : index
    %96 = vector.load %arg8[%c0_131, %c0_132, %c0_133, %c0_134] : memref<1x8x8x64xbf16, #tpu.memory_space<vmem>>, vector<1x8x8x64xbf16>
    tpu.vector_store %arg8[%c0_131, %c0_132, %c0_133, %c0_134], %95 {strides = array<i32>} : memref<1x8x8x64xbf16, #tpu.memory_space<vmem>>, vector<1x8x8x64xbf16>,
    return
  }
  func.func @transform_0(%arg0: i32) -> (i32, i32, i32) {
    %c0_i32 = arith.constant 0 : i32
    %c0_i32_0 = arith.constant 0 : i32
    %c0_i32_1 = arith.constant 0 : i32
    return %arg0, %c0_i32, %c0_i32_0 : i32, i32, i32
  }
  func.func @transform_1(%arg0: i32) -> (i32, i32) {
    %c0_i32 = arith.constant 0 : i32
    %c0_i32_0 = arith.constant 0 : i32
    %c0_i32_1 = arith.constant 0 : i32
    return %c0_i32, %c0_i32_0 : i32, i32
  }
  func.func @transform_2(%arg0: i32) -> (i32, i32) {
    %c0_i32 = arith.constant 0 : i32
    %c0_i32_0 = arith.constant 0 : i32
    %c0_i32_1 = arith.constant 0 : i32
    return %c0_i32, %c0_i32_0 : i32, i32
  }
  func.func @transform_3(%arg0: i32) -> (i32, i32, i32) {
    %c0_i32 = arith.constant 0 : i32
    %c0_i32_0 = arith.constant 0 : i32
    %c0_i32_1 = arith.constant 0 : i32
    %c0_i32_2 = arith.constant 0 : i32
    return %c0_i32, %c0_i32_0, %c0_i32_1 : i32, i32, i32
  }
  func.func @transform_4(%arg0: i32) -> (i32, i32) {
    %c0_i32 = arith.constant 0 : i32
    %c0_i32_0 = arith.constant 0 : i32
    %c0_i32_1 = arith.constant 0 : i32
    return %c0_i32, %c0_i32_0 : i32, i32
  }
  func.func @transform_5(%arg0: i32) -> (i32, i32, i32) {
    %c0_i32 = arith.constant 0 : i32
    %c0_i32_0 = arith.constant 0 : i32
    %c0_i32_1 = arith.constant 0 : i32
    %c0_i32_2 = arith.constant 0 : i32
    return %c0_i32, %c0_i32_0, %c0_i32_1 : i32, i32, i32
  }
  func.func @transform_6(%arg0: i32) -> (i32, i32) {
    %c0_i32 = arith.constant 0 : i32
    %c0_i32_0 = arith.constant 0 : i32
    %c0_i32_1 = arith.constant 0 : i32
    return %c0_i32, %c0_i32_0 : i32, i32
  }
  func.func @transform_7(%arg0: i32) -> (i32, i32, i32, i32) {
    %c0_i32 = arith.constant 0 : i32
    %c0_i32_0 = arith.constant 0 : i32
    %c0_i32_1 = arith.constant 0 : i32
    %c0_i32_2 = arith.constant 0 : i32
    return %arg0, %c0_i32, %c0_i32_0, %c0_i32_1 : i32, i32, i32, i32
  }
}

module attributes {stable_mosaic.version = 11 : i64} {
  func.func @_fc_kernel(%arg0: i32, %arg1: memref<8x4096xbf16, #tpu.memory_space<vmem>>, %arg2: memref<4096x128xbf16, #tpu.memory_space<vmem>>, %arg3: memref<1x128xf32, #tpu.memory_space<vmem>>, %arg4: memref<128x128xbf16, #tpu.memory_space<vmem>>, %arg5: memref<1x128xf32, #tpu.memory_space<vmem>>, %arg6: memref<8x128xf32, #tpu.memory_space<vmem>>) attributes {dimension_semantics = [#tpu.dimension_semantics<parallel>], iteration_bounds = array<i64: 1>, scalar_prefetch = 0 : i64, scratch_operands = 0 : i64, tpu.core_type = #tpu.core_type<tc>, window_params = [{transform_indices = @transform_0, window_bounds = array<i64: 8, 4096>}, {pipeline_mode = #tpu.pipeline_mode<synchronous>, transform_indices = @transform_1, window_bounds = array<i64: 4096, 128>}, {pipeline_mode = #tpu.pipeline_mode<synchronous>, transform_indices = @transform_2, window_bounds = array<i64: 1, 128>}, {pipeline_mode = #tpu.pipeline_mode<synchronous>, transform_indices = @transform_3, window_bounds = array<i64: 128, 128>}, {pipeline_mode = #tpu.pipeline_mode<synchronous>, transform_indices = @transform_4, window_bounds = array<i64: 1, 128>}, {transform_indices = @transform_5, window_bounds = array<i64: 8, 128>}]} {
    %c0 = arith.constant 0 : index
    %c0_0 = arith.constant 0 : index
    %0 = vector.load %arg1[%c0, %c0_0] : memref<8x4096xbf16, #tpu.memory_space<vmem>>, vector<8x4096xbf16>
    %c0_1 = arith.constant 0 : index
    %c0_2 = arith.constant 0 : index
    %1 = vector.load %arg2[%c0_1, %c0_2] : memref<4096x128xbf16, #tpu.memory_space<vmem>>, vector<4096x128xbf16>
    %cst = arith.constant dense<0.000000e+00> : vector<8x128xf32>
    %2 = tpu.matmul %0, %1, %cst {dimension_numbers = #tpu.dot_dimension_numbers<[1], [0], [0], [1], [0, 0, 1, 1], [], []>} : vector<8x4096xbf16>, vector<4096x128xbf16>, vector<8x128xf32> -> vector<8x128xf32>
    %c0_3 = arith.constant 0 : index
    %c0_4 = arith.constant 0 : index
    %3 = vector.load %arg3[%c0_3, %c0_4] : memref<1x128xf32, #tpu.memory_space<vmem>>, vector<1x128xf32>
    %4 = vector.broadcast %3 : vector<1x128xf32> to vector<8x128xf32>
    %5 = arith.addf %2, %4 : vector<8x128xf32>
    %cst_5 = arith.constant 0.000000e+00 : f32
    %6 = vector.broadcast %cst_5 : f32 to vector<8x128xf32>
    %7 = arith.maximumf %5, %6 : vector<8x128xf32>
    %8 = arith.truncf %7 : vector<8x128xf32> to vector<8x128xbf16>
    %c0_6 = arith.constant 0 : index
    %c0_7 = arith.constant 0 : index
    %9 = vector.load %arg4[%c0_6, %c0_7] : memref<128x128xbf16, #tpu.memory_space<vmem>>, vector<128x128xbf16>
    %cst_8 = arith.constant dense<0.000000e+00> : vector<8x128xf32>
    %10 = tpu.matmul %8, %9, %cst_8 {dimension_numbers = #tpu.dot_dimension_numbers<[1], [0], [0], [1], [0, 0, 1, 1], [], []>} : vector<8x128xbf16>, vector<128x128xbf16>, vector<8x128xf32> -> vector<8x128xf32>
    %c0_9 = arith.constant 0 : index
    %c0_10 = arith.constant 0 : index
    %11 = vector.load %arg5[%c0_9, %c0_10] : memref<1x128xf32, #tpu.memory_space<vmem>>, vector<1x128xf32>
    %12 = vector.broadcast %11 : vector<1x128xf32> to vector<8x128xf32>
    %13 = arith.addf %10, %12 : vector<8x128xf32>
    %c0_11 = arith.constant 0 : index
    %c0_12 = arith.constant 0 : index
    %14 = vector.load %arg6[%c0_11, %c0_12] : memref<8x128xf32, #tpu.memory_space<vmem>>, vector<8x128xf32>
    tpu.vector_store %arg6[%c0_11, %c0_12], %13 {strides = array<i32>} : memref<8x128xf32, #tpu.memory_space<vmem>>, vector<8x128xf32>,
    return
  }
  func.func @transform_0(%arg0: i32) -> (i32, i32) {
    %c0_i32 = arith.constant 0 : i32
    %c0_i32_0 = arith.constant 0 : i32
    return %arg0, %c0_i32 : i32, i32
  }
  func.func @transform_1(%arg0: i32) -> (i32, i32) {
    %c0_i32 = arith.constant 0 : i32
    %c0_i32_0 = arith.constant 0 : i32
    %c0_i32_1 = arith.constant 0 : i32
    return %c0_i32, %c0_i32_0 : i32, i32
  }
  func.func @transform_2(%arg0: i32) -> (i32, i32) {
    %c0_i32 = arith.constant 0 : i32
    %c0_i32_0 = arith.constant 0 : i32
    %c0_i32_1 = arith.constant 0 : i32
    return %c0_i32, %c0_i32_0 : i32, i32
  }
  func.func @transform_3(%arg0: i32) -> (i32, i32) {
    %c0_i32 = arith.constant 0 : i32
    %c0_i32_0 = arith.constant 0 : i32
    %c0_i32_1 = arith.constant 0 : i32
    return %c0_i32, %c0_i32_0 : i32, i32
  }
  func.func @transform_4(%arg0: i32) -> (i32, i32) {
    %c0_i32 = arith.constant 0 : i32
    %c0_i32_0 = arith.constant 0 : i32
    %c0_i32_1 = arith.constant 0 : i32
    return %c0_i32, %c0_i32_0 : i32, i32
  }
  func.func @transform_5(%arg0: i32) -> (i32, i32) {
    %c0_i32 = arith.constant 0 : i32
    %c0_i32_0 = arith.constant 0 : i32
    return %arg0, %c0_i32 : i32, i32
  }
}

</mosaic_0001>

<bundles_post_ra>
// kernel: vgg1block_forward.3
= control target key start
LH: loop header
LB: loop body
LE: loop exit
PB: predicated region body
PF: predicated region fallthrough
CT: control target
= control target key end

     0   :  { %vm3940_vm0 = vmmov 0   ;;  %s4820_s1 = inlined_call_operand.vmem [shape: bf16[4096,128], index: 1, kind: input, shape index: {}]   ;;  %s4821_s0 = inlined_call_operand.vmem [shape: bf16[8,4096], index: 0, kind: input, shape index: {}]   ;;  %s4822_s2 = inlined_call_operand.vmem [shape: f32[1,128], index: 2, kind: input, shape index: {}]   ;;  %s4823_s3 = inlined_call_operand.vmem [shape: bf16[128,128], index: 3, kind: input, shape index: {}]   ;;  %s4824_s4 = inlined_call_operand.vmem [shape: f32[1,128], index: 4, kind: input, shape index: {}]   ;;  %s4825_s5 = inlined_call_operand.vmem [shape: f32[8,128], index: 5, kind: output, shape index: {}]  }
   0x1   :  { %v3643_v0 = vld [vmem:[%s4820_s1 + $0x40] sm:$0xff]   ;;  %v3647_v4 = vld [vmem:[%s4820_s1 + $0x48] sm:$0xff]   ;;  %v3651_v8 = vld [vmem:[%s4820_s1 + $0x50] sm:$0xff]  }
   0x2   :  { %v3644_v1 = vld [vmem:[%s4820_s1 + $0xc0] sm:$0xff]   ;;  %3260 = vmatprep.subr.bf16.mxu0 %v3643_v0  ;;  %v3648_v5 = vld [vmem:[%s4820_s1 + $0xc8] sm:$0xff]   ;;  %v3652_v9 = vld [vmem:[%s4820_s1 + $0xd0] sm:$0xff]  }
   0x3   :  { %v3645_v2 = vld [vmem:[%s4820_s1] sm:$0xff]   ;;  %3282 = vmatprep.subr.bf16.mxu1 %v3644_v1  ;;  %v3649_v6 = vld [vmem:[%s4820_s1 + $0x8] sm:$0xff]   ;;  %v3653_v10 = vld [vmem:[%s4820_s1 + $0x10] sm:$0xff]  }
   0x4   :  { %v3646_v3 = vld [vmem:[%s4820_s1 + $0x80] sm:$0xff]   ;;  %3261 = vmatpush3.bf16.msra.mxu0 %v3645_v2  ;;  %v3650_v7 = vld [vmem:[%s4820_s1 + $0x88] sm:$0xff]   ;;  %v3654_v11 = vld [vmem:[%s4820_s1 + $0x90] sm:$0xff]  }
   0x5   :  { %3283 = vmatpush3.bf16.msra.mxu1 %v3646_v3  ;;  %3262 = vmatprep.subr.bf16.mxu0 %v3647_v4  ;;  %v3655_v12 = vld [vmem:[%s4820_s1 + $0x58] sm:$0xff]   ;;  %v3659_v16 = vld [vmem:[%s4820_s1 + $0x60] sm:$0xff]   ;;  %v3663_v20 = vld [vmem:[%s4820_s1 + $0x68] sm:$0xff]  }
   0x6   :  { %3284 = vmatprep.subr.bf16.mxu1 %v3648_v5  ;;  %v3656_v13 = vld [vmem:[%s4820_s1 + $0xd8] sm:$0xff]   ;;  %v3660_v17 = vld [vmem:[%s4820_s1 + $0xe0] sm:$0xff]   ;;  %v3664_v21 = vld [vmem:[%s4820_s1 + $0xe8] sm:$0xff]  }
   0x7   :  { %v3657_v14 = vld [vmem:[%s4820_s1 + $0x18] sm:$0xff]   ;;  %v3661_v18 = vld [vmem:[%s4820_s1 + $0x20] sm:$0xff]   ;;  %v3665_v22 = vld [vmem:[%s4820_s1 + $0x28] sm:$0xff]  }
   0x8   :  { %3263 = vmatpush3.bf16.msra.mxu0 %v3649_v6  ;;  %v3658_v15 = vld [vmem:[%s4820_s1 + $0x98] sm:$0xff]   ;;  %v3662_v19 = vld [vmem:[%s4820_s1 + $0xa0] sm:$0xff]   ;;  %v3666_v23 = vld [vmem:[%s4820_s1 + $0xa8] sm:$0xff]  }
   0x9   :  { %3285 = vmatpush3.bf16.msra.mxu1 %v3650_v7  ;;  %3264 = vmatprep.subr.bf16.mxu0 %v3651_v8  ;;  %v3667_v24 = vld [vmem:[%s4820_s1 + $0x70] sm:$0xff]   ;;  %v3671_v28 = vld [vmem:[%s4820_s1 + $0x78] sm:$0xff]   ;;  %v21_v32 = vld [vmem:[%s4821_s0] sm:$0xff] }
   0xa   :  { %3286 = vmatprep.subr.bf16.mxu1 %v3652_v9  ;;  %v3668_v25 = vld [vmem:[%s4820_s1 + $0xf0] sm:$0xff]   ;;  %v3672_v29 = vld [vmem:[%s4820_s1 + $0xf8] sm:$0xff]   ;;  %v22_v33 = vld [vmem:[%s4821_s0 + $0x8] sm:$0xff]  ;;  %v2963_v34 = vcombine.low %v21_v32, %v21_v32  ;;  %v2964_v35 = vcombine.high %v21_v32, %v21_v32 }
   0xb   :  { %v3669_v26 = vld [vmem:[%s4820_s1 + $0x30] sm:$0xff]   ;;  %v3673_v30 = vld [vmem:[%s4820_s1 + $0x38] sm:$0xff]   ;;  %v2965_v36 = vcombine.low %v22_v33, %v22_v33  ;;  %v2966_v37 = vcombine.high %v22_v33, %v22_v33  ;;  %v3679_v38 = vld [vmem:[%s4820_s1 + $0x140] sm:$0xff]  }
   0xc   :  { %3265 = vmatpush3.bf16.msra.mxu0 %v3653_v10  ;;  %v3670_v27 = vld [vmem:[%s4820_s1 + $0xb0] sm:$0xff]   ;;  %v3674_v31 = vld [vmem:[%s4820_s1 + $0xb8] sm:$0xff]   ;;  %v3680_v39 = vld [vmem:[%s4820_s1 + $0x1c0] sm:$0xff]   ;;  %2236 = vmatprep.mubr.bf16.mxu0 %v2964_v35 }
   0xd   :  { %3287 = vmatpush3.bf16.msra.mxu1 %v3654_v11  ;;  %3266 = vmatprep.subr.bf16.mxu0 %v3655_v12  ;;  %v3681_v40 = vld [vmem:[%s4820_s1 + $0x100] sm:$0xff]   ;;  %v3683_v42 = vld [vmem:[%s4820_s1 + $0x148] sm:$0xff]   ;;  %v3687_v46 = vld [vmem:[%s4820_s1 + $0x150] sm:$0xff]  }
   0xe   :  { %3288 = vmatprep.subr.bf16.mxu1 %v3656_v13  ;;  %2276 = vmatprep.mubr.bf16.mxu1 %v2966_v37  ;;  %v3682_v41 = vld [vmem:[%s4820_s1 + $0x180] sm:$0xff]   ;;  %v3684_v43 = vld [vmem:[%s4820_s1 + $0x1c8] sm:$0xff]   ;;  %v3688_v47 = vld [vmem:[%s4820_s1 + $0x1d0] sm:$0xff]  }
   0xf   :  { %v3685_v44 = vld [vmem:[%s4820_s1 + $0x108] sm:$0xff]   ;;  %v3689_v48 = vld [vmem:[%s4820_s1 + $0x110] sm:$0xff]   ;;  %v3691_v50 = vld [vmem:[%s4820_s1 + $0x158] sm:$0xff]  }
  0x10   :  { %3267 = vmatpush3.bf16.msra.mxu0 %v3657_v14  ;;  %v3686_v45 = vld [vmem:[%s4820_s1 + $0x188] sm:$0xff]   ;;  %v3690_v49 = vld [vmem:[%s4820_s1 + $0x190] sm:$0xff]   ;;  %v3692_v51 = vld [vmem:[%s4820_s1 + $0x1d8] sm:$0xff]  }
  0x11   :  { %3289 = vmatpush3.bf16.msra.mxu1 %v3658_v15  ;;  %3268 = vmatprep.subr.bf16.mxu0 %v3659_v16  ;;  %v3693_v52 = vld [vmem:[%s4820_s1 + $0x118] sm:$0xff]   ;;  %v3695_v54 = vld [vmem:[%s4820_s1 + $0x160] sm:$0xff]   ;;  %v3699_v58 = vld [vmem:[%s4820_s1 + $0x168] sm:$0xff]  }
  0x12   :  { %3290 = vmatprep.subr.bf16.mxu1 %v3660_v17  ;;  %v3694_v53 = vld [vmem:[%s4820_s1 + $0x198] sm:$0xff]   ;;  %v3696_v55 = vld [vmem:[%s4820_s1 + $0x1e0] sm:$0xff]   ;;  %v3700_v59 = vld [vmem:[%s4820_s1 + $0x1e8] sm:$0xff]  }
  0x13   :  { %v3697_v56 = vld [vmem:[%s4820_s1 + $0x120] sm:$0xff]   ;;  %v3701_v60 = vld [vmem:[%s4820_s1 + $0x128] sm:$0xff]   ;;  %v3703_v62 = vld [vmem:[%s4820_s1 + $0x170] sm:$0xff]  }
  0x14   :  { %3269 = vmatpush3.bf16.msra.mxu0 %v3661_v18  ;;  %v3698_v57 = vld [vmem:[%s4820_s1 + $0x1a0] sm:$0xff]   ;;  %v3702_v61 = vld [vmem:[%s4820_s1 + $0x1a8] sm:$0xff]   ;;  %v3704_v63 = vld [vmem:[%s4820_s1 + $0x1f0] sm:$0xff]  }
  0x15   :  { %3291 = vmatpush3.bf16.msra.mxu1 %v3662_v19  ;;  %3270 = vmatprep.subr.bf16.mxu0 %v3663_v20  ;;  %v3705_v0 = vld [vmem:[%s4820_s1 + $0x130] sm:$0xff]   ;;  %v3707_v2 = vld [vmem:[%s4820_s1 + $0x178] sm:$0xff]   ;;  %v3715_v12 = vld [vmem:[%s4820_s1 + $0x240] sm:$0xff]  }
  0x16   :  { %3292 = vmatprep.subr.bf16.mxu1 %v3664_v21  ;;  %v3706_v1 = vld [vmem:[%s4820_s1 + $0x1b0] sm:$0xff]   ;;  %v3708_v3 = vld [vmem:[%s4820_s1 + $0x1f8] sm:$0xff]   ;;  %v3716_v13 = vld [vmem:[%s4820_s1 + $0x2c0] sm:$0xff]  }
  0x17   :  { %v3709_v4 = vld [vmem:[%s4820_s1 + $0x138] sm:$0xff]   ;;  %v23_v6 = vld [vmem:[%s4821_s0 + $0x10] sm:$0xff]  ;;  %v3717_v14 = vld [vmem:[%s4820_s1 + $0x200] sm:$0xff]  }
  0x18   :  { %3271 = vmatpush3.bf16.msra.mxu0 %v3665_v22  ;;  %v3710_v5 = vld [vmem:[%s4820_s1 + $0x1b8] sm:$0xff]   ;;  %v2967_v7 = vcombine.low %v23_v6, %v23_v6  ;;  %v2968_v8 = vcombine.high %v23_v6, %v23_v6  ;;  %v3718_v15 = vld [vmem:[%s4820_s1 + $0x280] sm:$0xff]   ;;  %v3719_v16 = vld [vmem:[%s4820_s1 + $0x248] sm:$0xff]  }
  0x19   :  { %3293 = vmatpush3.bf16.msra.mxu1 %v3666_v23  ;;  %3272 = vmatprep.subr.bf16.mxu0 %v3667_v24  ;;  %v24_v9 = vld [vmem:[%s4821_s0 + $0x18] sm:$0xff]  ;;  %v3720_v17 = vld [vmem:[%s4820_s1 + $0x2c8] sm:$0xff]   ;;  %v3723_v20 = vld [vmem:[%s4820_s1 + $0x250] sm:$0xff]  }
  0x1a   :  { %3294 = vmatprep.subr.bf16.mxu1 %v3668_v25  ;;  %v2969_v10 = vcombine.low %v24_v9, %v24_v9  ;;  %v2970_v11 = vcombine.high %v24_v9, %v24_v9  ;;  %v3721_v18 = vld [vmem:[%s4820_s1 + $0x208] sm:$0xff]   ;;  %v3724_v21 = vld [vmem:[%s4820_s1 + $0x2d0] sm:$0xff]   ;;  %v3727_v24 = vld [vmem:[%s4820_s1 + $0x258] sm:$0xff]  }
  0x1b   :  { %v3722_v19 = vld [vmem:[%s4820_s1 + $0x288] sm:$0xff]   ;;  %v3725_v22 = vld [vmem:[%s4820_s1 + $0x210] sm:$0xff]   ;;  %v3728_v25 = vld [vmem:[%s4820_s1 + $0x2d8] sm:$0xff]  }
  0x1c   :  { %3273 = vmatpush3.bf16.msra.mxu0 %v3669_v26  ;;  %v3726_v23 = vld [vmem:[%s4820_s1 + $0x290] sm:$0xff]   ;;  %v3729_v26 = vld [vmem:[%s4820_s1 + $0x218] sm:$0xff]   ;;  %v3735_v32 = vld [vmem:[%s4820_s1 + $0x268] sm:$0xff]  }
  0x1d   :  { %3295 = vmatpush3.bf16.msra.mxu1 %v3670_v27  ;;  %3274 = vmatprep.subr.bf16.mxu0 %v3671_v28  ;;  %v3730_v27 = vld [vmem:[%s4820_s1 + $0x298] sm:$0xff]   ;;  %v3731_v28 = vld [vmem:[%s4820_s1 + $0x260] sm:$0xff]   ;;  %v3736_v33 = vld [vmem:[%s4820_s1 + $0x2e8] sm:$0xff]  }
  0x1e   :  { %3296 = vmatprep.subr.bf16.mxu1 %v3672_v29  ;;  %v3732_v29 = vld [vmem:[%s4820_s1 + $0x2e0] sm:$0xff]   ;;  %v3738_v35 = vld [vmem:[%s4820_s1 + $0x2a8] sm:$0xff]   ;;  %v3740_v37 = vld [vmem:[%s4820_s1 + $0x2f0] sm:$0xff]  }
  0x1f   :  { %v3771_v6 = vld [vmem:[%s4820_s1 + $0x368] sm:$0xff]  }
  0x20   :  { %3275 = vmatpush3.bf16.msra.mxu0 %v3673_v30  ;;  %v3733_v30 = vld [vmem:[%s4820_s1 + $0x220] sm:$0xff]   ;;  %v3774_v9 = vld [vmem:[%s4820_s1 + $0x3a8] sm:$0xff]  }
  0x21   :  { %3297 = vmatpush3.bf16.msra.mxu1 %v3674_v31  ;;  %3304 = vmatprep.subr.bf16.mxu0 %v3679_v38  ;;  %v3734_v31 = vld [vmem:[%s4820_s1 + $0x2a0] sm:$0xff]   ;;  %v3741_v38 = vld [vmem:[%s4820_s1 + $0x230] sm:$0xff]  }
  0x22   :  { %3326 = vmatprep.subr.bf16.mxu1 %v3680_v39  ;;  %v3742_v39 = vld [vmem:[%s4820_s1 + $0x2b0] sm:$0xff]  }
  0x23   :  { %2237 = vmatmul.mubr.bf16.vlgmr.msra.gmra.mrb[0].mxu0 %v2963_v34  ;;  %v3737_v34 = vld [vmem:[%s4820_s1 + $0x228] sm:$0xff]  }
  0x24   :  { %2277 = vmatmul.mubr.bf16.vlgmr.msra.gmra.mrb[0].mxu1 %v2965_v36  ;;  %3305 = vmatpush3.bf16.msra.mxu0 %v3681_v40  ;;  %v3739_v36 = vld [vmem:[%s4820_s1 + $0x270] sm:$0xff]   ;;  %v3743_v40 = vld [vmem:[%s4820_s1 + $0x278] sm:$0xff]  }
  0x25   :  { %3327 = vmatpush3.bf16.msra.mxu1 %v3682_v41  ;;  %3306 = vmatprep.subr.bf16.mxu0 %v3683_v42  ;;  %v3744_v41 = vld [vmem:[%s4820_s1 + $0x2f8] sm:$0xff]  }
  0x26   :  { %3328 = vmatprep.subr.bf16.mxu1 %v3684_v43  ;;  %2316 = vmatprep.mubr.bf16.mxu0 %v2968_v8  ;;  %v3745_v42 = vld [vmem:[%s4820_s1 + $0x238] sm:$0xff]   ;;  %v3773_v8 = vld [vmem:[%s4820_s1 + $0x328] sm:$0xff]  }
  0x27   :  { %2356 = vmatprep.mubr.bf16.mxu1 %v2970_v11  ;;  %v3746_v43 = vld [vmem:[%s4820_s1 + $0x2b8] sm:$0xff]   ;;  %v3776_v11 = vld [vmem:[%s4820_s1 + $0x3f0] sm:$0xff]  }
  0x28   :  { %3307 = vmatpush3.bf16.msra.mxu0 %v3685_v44  ;;  %v25_v44 = vld [vmem:[%s4821_s0 + $0x20] sm:$0xff] }
  0x29   :  { %3329 = vmatpush3.bf16.msra.mxu1 %v3686_v45  ;;  %3308 = vmatprep.subr.bf16.mxu0 %v3687_v46  ;;  %v26_v45 = vld [vmem:[%s4821_s0 + $0x28] sm:$0xff]  ;;  %v2971_v46 = vcombine.low %v25_v44, %v25_v44 }
  0x2a   :  { %3330 = vmatprep.subr.bf16.mxu1 %v3688_v47  ;;  %v2972_v47 = vcombine.high %v25_v44, %v25_v44  ;;  %v3807_v44 = vld [vmem:[%s4820_s1 + $0x468] sm:$0xff]  }
  0x2c   :  { %3309 = vmatpush3.bf16.msra.mxu0 %v3689_v48  ;;  %v2973_v48 = vcombine.low %v26_v45, %v26_v45 }
  0x2d   :  { %3331 = vmatpush3.bf16.msra.mxu1 %v3690_v49  ;;  %3310 = vmatprep.subr.bf16.mxu0 %v3691_v50  ;;  %v2974_v49 = vcombine.high %v26_v45, %v26_v45  ;;  %v3751_v50 = vld [vmem:[%s4820_s1 + $0x340] sm:$0xff]   ;;  %v3808_v45 = vld [vmem:[%s4820_s1 + $0x4e8] sm:$0xff]  }
  0x2e   :  { %3332 = vmatprep.subr.bf16.mxu1 %v3692_v51  ;;  %v3752_v51 = vld [vmem:[%s4820_s1 + $0x3c0] sm:$0xff]  }
  0x30   :  { %3311 = vmatpush3.bf16.msra.mxu0 %v3693_v52  ;;  %v3753_v52 = vld [vmem:[%s4820_s1 + $0x300] sm:$0xff]  }
  0x31   :  { %3333 = vmatpush3.bf16.msra.mxu1 %v3694_v53  ;;  %3312 = vmatprep.subr.bf16.mxu0 %v3695_v54  ;;  %v3754_v53 = vld [vmem:[%s4820_s1 + $0x380] sm:$0xff]   ;;  %v3755_v54 = vld [vmem:[%s4820_s1 + $0x348] sm:$0xff]  }
  0x32   :  { %3334 = vmatprep.subr.bf16.mxu1 %v3696_v55  ;;  %v3756_v55 = vld [vmem:[%s4820_s1 + $0x3c8] sm:$0xff]  }
  0x34   :  { %3313 = vmatpush3.bf16.msra.mxu0 %v3697_v56  ;;  %v3757_v56 = vld [vmem:[%s4820_s1 + $0x308] sm:$0xff]  }
  0x35   :  { %3335 = vmatpush3.bf16.msra.mxu1 %v3698_v57  ;;  %3314 = vmatprep.subr.bf16.mxu0 %v3699_v58  ;;  %v3758_v57 = vld [vmem:[%s4820_s1 + $0x388] sm:$0xff]   ;;  %v3759_v58 = vld [vmem:[%s4820_s1 + $0x350] sm:$0xff]  }
  0x36   :  { %3336 = vmatprep.subr.bf16.mxu1 %v3700_v59  ;;  %v3760_v59 = vld [vmem:[%s4820_s1 + $0x3d0] sm:$0xff]  }
  0x38   :  { %3315 = vmatpush3.bf16.msra.mxu0 %v3701_v60  ;;  %v3761_v60 = vld [vmem:[%s4820_s1 + $0x310] sm:$0xff]  }
  0x39   :  { %3337 = vmatpush3.bf16.msra.mxu1 %v3702_v61  ;;  %3316 = vmatprep.subr.bf16.mxu0 %v3703_v62  ;;  %v3762_v61 = vld [vmem:[%s4820_s1 + $0x390] sm:$0xff]   ;;  %v3763_v62 = vld [vmem:[%s4820_s1 + $0x358] sm:$0xff]  }
  0x3a   :  { %3338 = vmatprep.subr.bf16.mxu1 %v3704_v63  ;;  %v3764_v63 = vld [vmem:[%s4820_s1 + $0x3d8] sm:$0xff]  }
  0x3c   :  { %3317 = vmatpush3.bf16.msra.mxu0 %v3705_v0  ;;  %v3765_v0 = vld [vmem:[%s4820_s1 + $0x318] sm:$0xff]  }
  0x3d   :  { %3339 = vmatpush3.bf16.msra.mxu1 %v3706_v1  ;;  %3318 = vmatprep.subr.bf16.mxu0 %v3707_v2  ;;  %v3766_v1 = vld [vmem:[%s4820_s1 + $0x398] sm:$0xff]   ;;  %v3767_v2 = vld [vmem:[%s4820_s1 + $0x360] sm:$0xff]  }
  0x3e   :  { %3340 = vmatprep.subr.bf16.mxu1 %v3708_v3  ;;  %v3768_v3 = vld [vmem:[%s4820_s1 + $0x3e0] sm:$0xff]  }
  0x40   :  { %3319 = vmatpush3.bf16.msra.mxu0 %v3709_v4  ;;  %v3769_v4 = vld [vmem:[%s4820_s1 + $0x320] sm:$0xff]  }
  0x41   :  { %3341 = vmatpush3.bf16.msra.mxu1 %v3710_v5  ;;  %3348 = vmatprep.subr.bf16.mxu0 %v3715_v12  ;;  %v3770_v5 = vld [vmem:[%s4820_s1 + $0x3a0] sm:$0xff]   ;;  %v3777_v12 = vld [vmem:[%s4820_s1 + $0x330] sm:$0xff]  }
  0x42   :  { %3370 = vmatprep.subr.bf16.mxu1 %v3716_v13  ;;  %v3778_v13 = vld [vmem:[%s4820_s1 + $0x3b0] sm:$0xff]  }
  0x43   :  { %2317 = vmatmul.mubr.bf16.vlgmr.msra.gmra.mrb[4].mxu0 %v2967_v7  ;;  %v3772_v7 = vld [vmem:[%s4820_s1 + $0x3e8] sm:$0xff]  }
  0x44   :  { %2357 = vmatmul.mubr.bf16.vlgmr.msra.gmra.mrb[4].mxu1 %v2969_v10  ;;  %3349 = vmatpush3.bf16.msra.mxu0 %v3717_v14  ;;  %v3775_v10 = vld [vmem:[%s4820_s1 + $0x370] sm:$0xff]   ;;  %v3779_v14 = vld [vmem:[%s4820_s1 + $0x378] sm:$0xff]  }
  0x45   :  { %3371 = vmatpush3.bf16.msra.mxu1 %v3718_v15  ;;  %3350 = vmatprep.subr.bf16.mxu0 %v3719_v16  ;;  %v3780_v15 = vld [vmem:[%s4820_s1 + $0x3f8] sm:$0xff]  }
  0x46   :  { %3372 = vmatprep.subr.bf16.mxu1 %v3720_v17  ;;  %2396 = vmatprep.mubr.bf16.mxu0 %v2972_v47  ;;  %v3781_v16 = vld [vmem:[%s4820_s1 + $0x338] sm:$0xff]   ;;  %v3810_v47 = vld [vmem:[%s4820_s1 + $0x4a8] sm:$0xff]  }
  0x47   :  { %2436 = vmatprep.mubr.bf16.mxu1 %v2974_v49  ;;  %v3782_v17 = vld [vmem:[%s4820_s1 + $0x3b8] sm:$0xff]   ;;  %v3812_v49 = vld [vmem:[%s4820_s1 + $0x4f0] sm:$0xff]  }
  0x48   :  { %3351 = vmatpush3.bf16.msra.mxu0 %v3721_v18  ;;  %v27_v18 = vld [vmem:[%s4821_s0 + $0x30] sm:$0xff] }
  0x49   :  { %3373 = vmatpush3.bf16.msra.mxu1 %v3722_v19  ;;  %3352 = vmatprep.subr.bf16.mxu0 %v3723_v20  ;;  %v28_v19 = vld [vmem:[%s4821_s0 + $0x38] sm:$0xff]  ;;  %v2975_v20 = vcombine.low %v27_v18, %v27_v18 }
  0x4a   :  { %3374 = vmatprep.subr.bf16.mxu1 %v3724_v21  ;;  %v2976_v21 = vcombine.high %v27_v18, %v27_v18  ;;  %v3843_v18 = vld [vmem:[%s4820_s1 + $0x568] sm:$0xff]  }
  0x4c   :  { %3353 = vmatpush3.bf16.msra.mxu0 %v3725_v22  ;;  %v2977_v22 = vcombine.low %v28_v19, %v28_v19 }
  0x4d   :  { %3375 = vmatpush3.bf16.msra.mxu1 %v3726_v23  ;;  %3354 = vmatprep.subr.bf16.mxu0 %v3727_v24  ;;  %v3787_v23 = vld [vmem:[%s4820_s1 + $0x440] sm:$0xff]   ;;  %v2978_v24 = vcombine.high %v28_v19, %v28_v19  ;;  %v3844_v19 = vld [vmem:[%s4820_s1 + $0x5e8] sm:$0xff]  }
  0x4e   :  { %3376 = vmatprep.subr.bf16.mxu1 %v3728_v25  ;;  %v3788_v25 = vld [vmem:[%s4820_s1 + $0x4c0] sm:$0xff]  }
  0x50   :  { %3355 = vmatpush3.bf16.msra.mxu0 %v3729_v26  ;;  %v3789_v26 = vld [vmem:[%s4820_s1 + $0x400] sm:$0xff]  }
  0x51   :  { %3377 = vmatpush3.bf16.msra.mxu1 %v3730_v27  ;;  %3356 = vmatprep.subr.bf16.mxu0 %v3731_v28  ;;  %v3790_v27 = vld [vmem:[%s4820_s1 + $0x480] sm:$0xff]   ;;  %v3791_v28 = vld [vmem:[%s4820_s1 + $0x448] sm:$0xff]  }
  0x52   :  { %3378 = vmatprep.subr.bf16.mxu1 %v3732_v29  ;;  %v3792_v29 = vld [vmem:[%s4820_s1 + $0x4c8] sm:$0xff]  }
  0x54   :  { %3357 = vmatpush3.bf16.msra.mxu0 %v3733_v30  ;;  %v3793_v30 = vld [vmem:[%s4820_s1 + $0x408] sm:$0xff]  }
  0x55   :  { %3379 = vmatpush3.bf16.msra.mxu1 %v3734_v31  ;;  %3358 = vmatprep.subr.bf16.mxu0 %v3735_v32  ;;  %v3794_v31 = vld [vmem:[%s4820_s1 + $0x488] sm:$0xff]   ;;  %v3795_v32 = vld [vmem:[%s4820_s1 + $0x450] sm:$0xff]  }
  0x56   :  { %3380 = vmatprep.subr.bf16.mxu1 %v3736_v33  ;;  %v3796_v33 = vld [vmem:[%s4820_s1 + $0x4d0] sm:$0xff]  }
  0x58   :  { %3359 = vmatpush3.bf16.msra.mxu0 %v3737_v34  ;;  %v3797_v34 = vld [vmem:[%s4820_s1 + $0x410] sm:$0xff]  }
  0x59   :  { %3381 = vmatpush3.bf16.msra.mxu1 %v3738_v35  ;;  %3360 = vmatprep.subr.bf16.mxu0 %v3739_v36  ;;  %v3798_v35 = vld [vmem:[%s4820_s1 + $0x490] sm:$0xff]   ;;  %v3799_v36 = vld [vmem:[%s4820_s1 + $0x458] sm:$0xff]  }
  0x5a   :  { %3382 = vmatprep.subr.bf16.mxu1 %v3740_v37  ;;  %v3800_v37 = vld [vmem:[%s4820_s1 + $0x4d8] sm:$0xff]  }
  0x5c   :  { %3361 = vmatpush3.bf16.msra.mxu0 %v3741_v38  ;;  %v3801_v38 = vld [vmem:[%s4820_s1 + $0x418] sm:$0xff]  }
  0x5d   :  { %3383 = vmatpush3.bf16.msra.mxu1 %v3742_v39  ;;  %3362 = vmatprep.subr.bf16.mxu0 %v3743_v40  ;;  %v3802_v39 = vld [vmem:[%s4820_s1 + $0x498] sm:$0xff]   ;;  %v3803_v40 = vld [vmem:[%s4820_s1 + $0x460] sm:$0xff]  }
  0x5e   :  { %3384 = vmatprep.subr.bf16.mxu1 %v3744_v41  ;;  %v3804_v41 = vld [vmem:[%s4820_s1 + $0x4e0] sm:$0xff]  }
  0x60   :  { %3363 = vmatpush3.bf16.msra.mxu0 %v3745_v42  ;;  %v3805_v42 = vld [vmem:[%s4820_s1 + $0x420] sm:$0xff]  }
  0x61   :  { %3385 = vmatpush3.bf16.msra.mxu1 %v3746_v43  ;;  %3392 = vmatprep.subr.bf16.mxu0 %v3751_v50  ;;  %v3806_v43 = vld [vmem:[%s4820_s1 + $0x4a0] sm:$0xff]   ;;  %v3813_v50 = vld [vmem:[%s4820_s1 + $0x430] sm:$0xff]  }
  0x62   :  { %3414 = vmatprep.subr.bf16.mxu1 %v3752_v51  ;;  %v3814_v51 = vld [vmem:[%s4820_s1 + $0x4b0] sm:$0xff]  }
  0x63   :  { %2397 = vmatmul.mubr.bf16.vlgmr.msra.gmra.mrb[8].mxu0 %v2971_v46  ;;  %v3809_v46 = vld [vmem:[%s4820_s1 + $0x428] sm:$0xff]  }
  0x64   :  { %2437 = vmatmul.mubr.bf16.vlgmr.msra.gmra.mrb[8].mxu1 %v2973_v48  ;;  %3393 = vmatpush3.bf16.msra.mxu0 %v3753_v52  ;;  %v3811_v48 = vld [vmem:[%s4820_s1 + $0x470] sm:$0xff]   ;;  %v3815_v52 = vld [vmem:[%s4820_s1 + $0x478] sm:$0xff]  }
  0x65   :  { %3415 = vmatpush3.bf16.msra.mxu1 %v3754_v53  ;;  %3394 = vmatprep.subr.bf16.mxu0 %v3755_v54  ;;  %v3816_v53 = vld [vmem:[%s4820_s1 + $0x4f8] sm:$0xff]  }
  0x66   :  { %3416 = vmatprep.subr.bf16.mxu1 %v3756_v55  ;;  %2476 = vmatprep.mubr.bf16.mxu0 %v2976_v21  ;;  %v3817_v54 = vld [vmem:[%s4820_s1 + $0x438] sm:$0xff]   ;;  %v3846_v21 = vld [vmem:[%s4820_s1 + $0x5a8] sm:$0xff]  }
  0x67   :  { %2516 = vmatprep.mubr.bf16.mxu1 %v2978_v24  ;;  %v3818_v55 = vld [vmem:[%s4820_s1 + $0x4b8] sm:$0xff]   ;;  %v3849_v24 = vld [vmem:[%s4820_s1 + $0x530] sm:$0xff]  }
  0x68   :  { %3395 = vmatpush3.bf16.msra.mxu0 %v3757_v56  ;;  %v29_v56 = vld [vmem:[%s4821_s0 + $0x40] sm:$0xff] }
  0x69   :  { %3417 = vmatpush3.bf16.msra.mxu1 %v3758_v57  ;;  %3396 = vmatprep.subr.bf16.mxu0 %v3759_v58  ;;  %v2979_v57 = vcombine.low %v29_v56, %v29_v56  ;;  %v2980_v58 = vcombine.high %v29_v56, %v29_v56  ;;  %v3879_v56 = vld [vmem:[%s4820_s1 + $0x668] sm:$0xff]  }
  0x6a   :  { %3418 = vmatprep.subr.bf16.mxu1 %v3760_v59  ;;  %v30_v59 = vld [vmem:[%s4821_s0 + $0x48] sm:$0xff] }
  0x6c   :  { %3397 = vmatpush3.bf16.msra.mxu0 %v3761_v60  ;;  %v2981_v60 = vcombine.low %v30_v59, %v30_v59 }
  0x6d   :  { %3419 = vmatpush3.bf16.msra.mxu1 %v3762_v61  ;;  %3398 = vmatprep.subr.bf16.mxu0 %v3763_v62  ;;  %v2982_v61 = vcombine.high %v30_v59, %v30_v59  ;;  %v3823_v62 = vld [vmem:[%s4820_s1 + $0x540] sm:$0xff]   ;;  %v3882_v59 = vld [vmem:[%s4820_s1 + $0x6a8] sm:$0xff]  }
  0x6e   :  { %3420 = vmatprep.subr.bf16.mxu1 %v3764_v63  ;;  %v3824_v63 = vld [vmem:[%s4820_s1 + $0x5c0] sm:$0xff]  }
  0x70   :  { %3399 = vmatpush3.bf16.msra.mxu0 %v3765_v0  ;;  %v3825_v0 = vld [vmem:[%s4820_s1 + $0x500] sm:$0xff]  }
  0x71   :  { %3421 = vmatpush3.bf16.msra.mxu1 %v3766_v1  ;;  %3400 = vmatprep.subr.bf16.mxu0 %v3767_v2  ;;  %v3826_v1 = vld [vmem:[%s4820_s1 + $0x580] sm:$0xff]   ;;  %v3827_v2 = vld [vmem:[%s4820_s1 + $0x548] sm:$0xff]  }
  0x72   :  { %3422 = vmatprep.subr.bf16.mxu1 %v3768_v3  ;;  %v3828_v3 = vld [vmem:[%s4820_s1 + $0x5c8] sm:$0xff]  }
  0x74   :  { %3401 = vmatpush3.bf16.msra.mxu0 %v3769_v4  ;;  %v3829_v4 = vld [vmem:[%s4820_s1 + $0x508] sm:$0xff]  }
  0x75   :  { %3423 = vmatpush3.bf16.msra.mxu1 %v3770_v5  ;;  %3402 = vmatprep.subr.bf16.mxu0 %v3771_v6  ;;  %v3830_v5 = vld [vmem:[%s4820_s1 + $0x588] sm:$0xff]   ;;  %v3831_v6 = vld [vmem:[%s4820_s1 + $0x550] sm:$0xff]  }
  0x76   :  { %3424 = vmatprep.subr.bf16.mxu1 %v3772_v7  ;;  %v3832_v7 = vld [vmem:[%s4820_s1 + $0x5d0] sm:$0xff]  }
  0x78   :  { %3403 = vmatpush3.bf16.msra.mxu0 %v3773_v8  ;;  %v3833_v8 = vld [vmem:[%s4820_s1 + $0x510] sm:$0xff]  }
  0x79   :  { %3425 = vmatpush3.bf16.msra.mxu1 %v3774_v9  ;;  %3404 = vmatprep.subr.bf16.mxu0 %v3775_v10  ;;  %v3834_v9 = vld [vmem:[%s4820_s1 + $0x590] sm:$0xff]   ;;  %v3835_v10 = vld [vmem:[%s4820_s1 + $0x558] sm:$0xff]  }
  0x7a   :  { %3426 = vmatprep.subr.bf16.mxu1 %v3776_v11  ;;  %v3836_v11 = vld [vmem:[%s4820_s1 + $0x5d8] sm:$0xff]  }
  0x7c   :  { %3405 = vmatpush3.bf16.msra.mxu0 %v3777_v12  ;;  %v3837_v12 = vld [vmem:[%s4820_s1 + $0x518] sm:$0xff]  }
  0x7d   :  { %3427 = vmatpush3.bf16.msra.mxu1 %v3778_v13  ;;  %3406 = vmatprep.subr.bf16.mxu0 %v3779_v14  ;;  %v3838_v13 = vld [vmem:[%s4820_s1 + $0x598] sm:$0xff]   ;;  %v3839_v14 = vld [vmem:[%s4820_s1 + $0x560] sm:$0xff]  }
  0x7e   :  { %3428 = vmatprep.subr.bf16.mxu1 %v3780_v15  ;;  %v3840_v15 = vld [vmem:[%s4820_s1 + $0x5e0] sm:$0xff]  }
  0x80   :  { %3407 = vmatpush3.bf16.msra.mxu0 %v3781_v16  ;;  %v3841_v16 = vld [vmem:[%s4820_s1 + $0x520] sm:$0xff]  }
  0x81   :  { %3429 = vmatpush3.bf16.msra.mxu1 %v3782_v17  ;;  %3436 = vmatprep.subr.bf16.mxu0 %v3787_v23  ;;  %v3842_v17 = vld [vmem:[%s4820_s1 + $0x5a0] sm:$0xff]   ;;  %v3848_v23 = vld [vmem:[%s4820_s1 + $0x5f0] sm:$0xff]  }
  0x82   :  { %3458 = vmatprep.subr.bf16.mxu1 %v3788_v25  ;;  %v3850_v25 = vld [vmem:[%s4820_s1 + $0x5b0] sm:$0xff]  }
  0x83   :  { %2477 = vmatmul.mubr.bf16.vlgmr.msra.gmra.mrb[12].mxu0 %v2975_v20  ;;  %v3845_v20 = vld [vmem:[%s4820_s1 + $0x528] sm:$0xff]  }
  0x84   :  { %2517 = vmatmul.mubr.bf16.vlgmr.msra.gmra.mrb[12].mxu1 %v2977_v22  ;;  %3437 = vmatpush3.bf16.msra.mxu0 %v3789_v26  ;;  %v3847_v22 = vld [vmem:[%s4820_s1 + $0x570] sm:$0xff]   ;;  %v3851_v26 = vld [vmem:[%s4820_s1 + $0x578] sm:$0xff]  }
  0x85   :  { %3459 = vmatpush3.bf16.msra.mxu1 %v3790_v27  ;;  %3438 = vmatprep.subr.bf16.mxu0 %v3791_v28  ;;  %v3852_v27 = vld [vmem:[%s4820_s1 + $0x5f8] sm:$0xff]  }
  0x86   :  { %3460 = vmatprep.subr.bf16.mxu1 %v3792_v29  ;;  %2556 = vmatprep.mubr.bf16.mxu0 %v2980_v58  ;;  %v3853_v28 = vld [vmem:[%s4820_s1 + $0x538] sm:$0xff]   ;;  %v3881_v58 = vld [vmem:[%s4820_s1 + $0x628] sm:$0xff]  }
  0x87   :  { %2596 = vmatprep.mubr.bf16.mxu1 %v2982_v61  ;;  %v3854_v29 = vld [vmem:[%s4820_s1 + $0x5b8] sm:$0xff]   ;;  %v3884_v61 = vld [vmem:[%s4820_s1 + $0x6f0] sm:$0xff]  }
  0x88   :  { %3439 = vmatpush3.bf16.msra.mxu0 %v3793_v30  ;;  %v31_v30 = vld [vmem:[%s4821_s0 + $0x50] sm:$0xff] }
  0x89   :  { %3461 = vmatpush3.bf16.msra.mxu1 %v3794_v31  ;;  %3440 = vmatprep.subr.bf16.mxu0 %v3795_v32  ;;  %v32_v31 = vld [vmem:[%s4821_s0 + $0x58] sm:$0xff]  ;;  %v2983_v32 = vcombine.low %v31_v30, %v31_v30 }
  0x8a   :  { %3462 = vmatprep.subr.bf16.mxu1 %v3796_v33  ;;  %v2984_v33 = vcombine.high %v31_v30, %v31_v30  ;;  %v3914_v30 = vld [vmem:[%s4820_s1 + $0x7a0] sm:$0xff]  }
  0x8c   :  { %3441 = vmatpush3.bf16.msra.mxu0 %v3797_v34  ;;  %v2985_v34 = vcombine.low %v32_v31, %v32_v31 }
  0x8d   :  { %3463 = vmatpush3.bf16.msra.mxu1 %v3798_v35  ;;  %3442 = vmatprep.subr.bf16.mxu0 %v3799_v36  ;;  %v2986_v35 = vcombine.high %v32_v31, %v32_v31  ;;  %v3859_v36 = vld [vmem:[%s4820_s1 + $0x640] sm:$0xff]  }
  0x8e   :  { %3464 = vmatprep.subr.bf16.mxu1 %v3800_v37  ;;  %v3860_v37 = vld [vmem:[%s4820_s1 + $0x6c0] sm:$0xff]  }
  0x90   :  { %3443 = vmatpush3.bf16.msra.mxu0 %v3801_v38  ;;  %v3861_v38 = vld [vmem:[%s4820_s1 + $0x600] sm:$0xff]  }
  0x91   :  { %3465 = vmatpush3.bf16.msra.mxu1 %v3802_v39  ;;  %3444 = vmatprep.subr.bf16.mxu0 %v3803_v40  ;;  %v3862_v39 = vld [vmem:[%s4820_s1 + $0x680] sm:$0xff]   ;;  %v3863_v40 = vld [vmem:[%s4820_s1 + $0x648] sm:$0xff]  }
  0x92   :  { %3466 = vmatprep.subr.bf16.mxu1 %v3804_v41  ;;  %v3864_v41 = vld [vmem:[%s4820_s1 + $0x6c8] sm:$0xff]  }
  0x94   :  { %3445 = vmatpush3.bf16.msra.mxu0 %v3805_v42  ;;  %v3865_v42 = vld [vmem:[%s4820_s1 + $0x608] sm:$0xff]  }
  0x95   :  { %3467 = vmatpush3.bf16.msra.mxu1 %v3806_v43  ;;  %3446 = vmatprep.subr.bf16.mxu0 %v3807_v44  ;;  %v3866_v43 = vld [vmem:[%s4820_s1 + $0x688] sm:$0xff]   ;;  %v3867_v44 = vld [vmem:[%s4820_s1 + $0x650] sm:$0xff]  }
  0x96   :  { %3468 = vmatprep.subr.bf16.mxu1 %v3808_v45  ;;  %v3868_v45 = vld [vmem:[%s4820_s1 + $0x6d0] sm:$0xff]  }
  0x98   :  { %3447 = vmatpush3.bf16.msra.mxu0 %v3809_v46  ;;  %v3869_v46 = vld [vmem:[%s4820_s1 + $0x610] sm:$0xff]  }
  0x99   :  { %3469 = vmatpush3.bf16.msra.mxu1 %v3810_v47  ;;  %3448 = vmatprep.subr.bf16.mxu0 %v3811_v48  ;;  %v3870_v47 = vld [vmem:[%s4820_s1 + $0x690] sm:$0xff]   ;;  %v3871_v48 = vld [vmem:[%s4820_s1 + $0x658] sm:$0xff]  }
  0x9a   :  { %3470 = vmatprep.subr.bf16.mxu1 %v3812_v49  ;;  %v3872_v49 = vld [vmem:[%s4820_s1 + $0x6d8] sm:$0xff]  }
  0x9c   :  { %3449 = vmatpush3.bf16.msra.mxu0 %v3813_v50  ;;  %v3873_v50 = vld [vmem:[%s4820_s1 + $0x618] sm:$0xff]  }
  0x9d   :  { %3471 = vmatpush3.bf16.msra.mxu1 %v3814_v51  ;;  %3450 = vmatprep.subr.bf16.mxu0 %v3815_v52  ;;  %v3874_v51 = vld [vmem:[%s4820_s1 + $0x698] sm:$0xff]   ;;  %v3875_v52 = vld [vmem:[%s4820_s1 + $0x660] sm:$0xff]  }
  0x9e   :  { %3472 = vmatprep.subr.bf16.mxu1 %v3816_v53  ;;  %v3876_v53 = vld [vmem:[%s4820_s1 + $0x6e0] sm:$0xff]  }
  0xa0   :  { %3451 = vmatpush3.bf16.msra.mxu0 %v3817_v54  ;;  %v3877_v54 = vld [vmem:[%s4820_s1 + $0x620] sm:$0xff]  }
  0xa1   :  { %3473 = vmatpush3.bf16.msra.mxu1 %v3818_v55  ;;  %3480 = vmatprep.subr.bf16.mxu0 %v3823_v62  ;;  %v3878_v55 = vld [vmem:[%s4820_s1 + $0x6a0] sm:$0xff]   ;;  %v3885_v62 = vld [vmem:[%s4820_s1 + $0x630] sm:$0xff]  }
  0xa2   :  { %3502 = vmatprep.subr.bf16.mxu1 %v3824_v63  ;;  %v3886_v63 = vld [vmem:[%s4820_s1 + $0x6b0] sm:$0xff]  }
  0xa3   :  { %2557 = vmatmul.mubr.bf16.vlgmr.msra.gmra.mrb[16].mxu0 %v2979_v57  ;;  %v3880_v57 = vld [vmem:[%s4820_s1 + $0x6e8] sm:$0xff]  }
  0xa4   :  { %2597 = vmatmul.mubr.bf16.vlgmr.msra.gmra.mrb[16].mxu1 %v2981_v60  ;;  %3481 = vmatpush3.bf16.msra.mxu0 %v3825_v0  ;;  %v3883_v60 = vld [vmem:[%s4820_s1 + $0x670] sm:$0xff]   ;;  %v3887_v0 = vld [vmem:[%s4820_s1 + $0x678] sm:$0xff]  }
  0xa5   :  { %3503 = vmatpush3.bf16.msra.mxu1 %v3826_v1  ;;  %3482 = vmatprep.subr.bf16.mxu0 %v3827_v2  ;;  %v3888_v1 = vld [vmem:[%s4820_s1 + $0x6f8] sm:$0xff]  }
  0xa6   :  { %3504 = vmatprep.subr.bf16.mxu1 %v3828_v3  ;;  %2636 = vmatprep.mubr.bf16.mxu0 %v2984_v33  ;;  %v3889_v2 = vld [vmem:[%s4820_s1 + $0x638] sm:$0xff]  }
  0xa7   :  { %2676 = vmatprep.mubr.bf16.mxu1 %v2986_v35  ;;  %v3890_v3 = vld [vmem:[%s4820_s1 + $0x6b8] sm:$0xff]  }
  0xa8   :  { %3483 = vmatpush3.bf16.msra.mxu0 %v3829_v4  ;;  %v33_v4 = vld [vmem:[%s4821_s0 + $0x60] sm:$0xff] }
  0xa9   :  { %3505 = vmatpush3.bf16.msra.mxu1 %v3830_v5  ;;  %3484 = vmatprep.subr.bf16.mxu0 %v3831_v6  ;;  %v34_v5 = vld [vmem:[%s4821_s0 + $0x68] sm:$0xff]  ;;  %v2987_v6 = vcombine.low %v33_v4, %v33_v4 }
  0xaa   :  { %3506 = vmatprep.subr.bf16.mxu1 %v3832_v7  ;;  %v2988_v7 = vcombine.high %v33_v4, %v33_v4 }
  0xac   :  { %3485 = vmatpush3.bf16.msra.mxu0 %v3833_v8  ;;  %v2989_v8 = vcombine.low %v34_v5, %v34_v5 }
  0xad   :  { %3507 = vmatpush3.bf16.msra.mxu1 %v3834_v9  ;;  %3486 = vmatprep.subr.bf16.mxu0 %v3835_v10  ;;  %v3895_v9 = vld [vmem:[%s4820_s1 + $0x740] sm:$0xff]   ;;  %v2990_v10 = vcombine.high %v34_v5, %v34_v5 }
  0xae   :  { %3508 = vmatprep.subr.bf16.mxu1 %v3836_v11  ;;  %v3896_v11 = vld [vmem:[%s4820_s1 + $0x7c0] sm:$0xff]  }
  0xb0   :  { %3487 = vmatpush3.bf16.msra.mxu0 %v3837_v12  ;;  %v3897_v12 = vld [vmem:[%s4820_s1 + $0x700] sm:$0xff]  }
  0xb1   :  { %3509 = vmatpush3.bf16.msra.mxu1 %v3838_v13  ;;  %3488 = vmatprep.subr.bf16.mxu0 %v3839_v14  ;;  %v3898_v13 = vld [vmem:[%s4820_s1 + $0x780] sm:$0xff]   ;;  %v3899_v14 = vld [vmem:[%s4820_s1 + $0x748] sm:$0xff]  }
  0xb2   :  { %3510 = vmatprep.subr.bf16.mxu1 %v3840_v15  ;;  %v3900_v15 = vld [vmem:[%s4820_s1 + $0x7c8] sm:$0xff]  }
  0xb4   :  { %3489 = vmatpush3.bf16.msra.mxu0 %v3841_v16  ;;  %v3901_v16 = vld [vmem:[%s4820_s1 + $0x708] sm:$0xff]  }
  0xb5   :  { %3511 = vmatpush3.bf16.msra.mxu1 %v3842_v17  ;;  %3490 = vmatprep.subr.bf16.mxu0 %v3843_v18  ;;  %v3902_v17 = vld [vmem:[%s4820_s1 + $0x788] sm:$0xff]   ;;  %v3903_v18 = vld [vmem:[%s4820_s1 + $0x750] sm:$0xff]  }
  0xb6   :  { %3512 = vmatprep.subr.bf16.mxu1 %v3844_v19  ;;  %v3904_v19 = vld [vmem:[%s4820_s1 + $0x7d0] sm:$0xff]  }
  0xb8   :  { %3491 = vmatpush3.bf16.msra.mxu0 %v3845_v20  ;;  %v3905_v20 = vld [vmem:[%s4820_s1 + $0x710] sm:$0xff]  }
  0xb9   :  { %3513 = vmatpush3.bf16.msra.mxu1 %v3846_v21  ;;  %3492 = vmatprep.subr.bf16.mxu0 %v3847_v22  ;;  %v3906_v21 = vld [vmem:[%s4820_s1 + $0x790] sm:$0xff]   ;;  %v3907_v22 = vld [vmem:[%s4820_s1 + $0x758] sm:$0xff]  }
  0xba   :  { %3514 = vmatprep.subr.bf16.mxu1 %v3848_v23  ;;  %v3908_v23 = vld [vmem:[%s4820_s1 + $0x7d8] sm:$0xff]  }
  0xbc   :  { %3493 = vmatpush3.bf16.msra.mxu0 %v3849_v24  ;;  %v3909_v24 = vld [vmem:[%s4820_s1 + $0x718] sm:$0xff]  }
  0xbd   :  { %3515 = vmatpush3.bf16.msra.mxu1 %v3850_v25  ;;  %3494 = vmatprep.subr.bf16.mxu0 %v3851_v26  ;;  %v3910_v25 = vld [vmem:[%s4820_s1 + $0x798] sm:$0xff]   ;;  %v3911_v26 = vld [vmem:[%s4820_s1 + $0x760] sm:$0xff]  }
  0xbe   :  { %3516 = vmatprep.subr.bf16.mxu1 %v3852_v27  ;;  %v3912_v27 = vld [vmem:[%s4820_s1 + $0x7e0] sm:$0xff]  }
  0xc0   :  { %3495 = vmatpush3.bf16.msra.mxu0 %v3853_v28  ;;  %v3913_v28 = vld [vmem:[%s4820_s1 + $0x720] sm:$0xff]  }
  0xc1   :  { %3517 = vmatpush3.bf16.msra.mxu1 %v3854_v29  ;;  %3524 = vmatprep.subr.bf16.mxu0 %v3859_v36 }
  0xc2   :  { %3546 = vmatprep.subr.bf16.mxu1 %v3860_v37  ;;  %v3915_v37 = vld [vmem:[%s4820_s1 + $0x768] sm:$0xff]  }
  0xc3   :  { %2637 = vmatmul.mubr.bf16.vlgmr.msra.gmra.mrb[20].mxu0 %v2983_v32  ;;  %v2962_v32 = vld [vmem:[%s4822_s2] ss:$0 sm:$0xff] }
  0xc4   :  { %2677 = vmatmul.mubr.bf16.vlgmr.msra.gmra.mrb[20].mxu1 %v2985_v34  ;;  %3525 = vmatpush3.bf16.msra.mxu0 %v3861_v38 }
  0xc5   :  { %3547 = vmatpush3.bf16.msra.mxu1 %v3862_v39  ;;  %3526 = vmatprep.subr.bf16.mxu0 %v3863_v40  ;;  %v3916_v39 = vld [vmem:[%s4820_s1 + $0x7e8] sm:$0xff]  }
  0xc6   :  { %3548 = vmatprep.subr.bf16.mxu1 %v3864_v41  ;;  %2716 = vmatprep.mubr.bf16.mxu0 %v2988_v7 }
  0xc7   :  { %2756 = vmatprep.mubr.bf16.mxu1 %v2990_v10 }
  0xc8   :  { %3527 = vmatpush3.bf16.msra.mxu0 %v3865_v42  ;;  %v3917_v42 = vld [vmem:[%s4820_s1 + $0x728] sm:$0xff]  }
  0xc9   :  { %3549 = vmatpush3.bf16.msra.mxu1 %v3866_v43  ;;  %3528 = vmatprep.subr.bf16.mxu0 %v3867_v44  ;;  %v3918_v44 = vld [vmem:[%s4820_s1 + $0x7a8] sm:$0xff]  }
  0xca   :  { %3550 = vmatprep.subr.bf16.mxu1 %v3868_v45 }
  0xcc   :  { %3529 = vmatpush3.bf16.msra.mxu0 %v3869_v46 }
  0xcd   :  { %3551 = vmatpush3.bf16.msra.mxu1 %v3870_v47  ;;  %3530 = vmatprep.subr.bf16.mxu0 %v3871_v48  ;;  %v3919_v47 = vld [vmem:[%s4820_s1 + $0x770] sm:$0xff]  }
  0xce   :  { %3552 = vmatprep.subr.bf16.mxu1 %v3872_v49  ;;  %v3920_v48 = vld [vmem:[%s4820_s1 + $0x7f0] sm:$0xff]  }
  0xcf   :  { %v3921_v49 = vld [vmem:[%s4820_s1 + $0x730] sm:$0xff]  }
  0xd0   :  { %3531 = vmatpush3.bf16.msra.mxu0 %v3873_v50  ;;  %v3922_v50 = vld [vmem:[%s4820_s1 + $0x7b0] sm:$0xff]  }
  0xd1   :  { %3553 = vmatpush3.bf16.msra.mxu1 %v3874_v51  ;;  %3532 = vmatprep.subr.bf16.mxu0 %v3875_v52  ;;  %v3923_v51 = vld [vmem:[%s4820_s1 + $0x778] sm:$0xff]  }
  0xd2   :  { %3554 = vmatprep.subr.bf16.mxu1 %v3876_v53  ;;  %v3924_v52 = vld [vmem:[%s4820_s1 + $0x7f8] sm:$0xff]  }
  0xd3   :  { %v3925_v53 = vld [vmem:[%s4820_s1 + $0x738] sm:$0xff]  }
  0xd4   :  { %3533 = vmatpush3.bf16.msra.mxu0 %v3877_v54  ;;  %v3926_v54 = vld [vmem:[%s4820_s1 + $0x7b8] sm:$0xff]  }
  0xd5   :  { %3555 = vmatpush3.bf16.msra.mxu1 %v3878_v55  ;;  %3534 = vmatprep.subr.bf16.mxu0 %v3879_v56  ;;  %v35_v55 = vld [vmem:[%s4821_s0 + $0x70] sm:$0xff]  ;;  %v36_v56 = vld [vmem:[%s4821_s0 + $0x78] sm:$0xff] }
  0xd6   :  { %3556 = vmatprep.subr.bf16.mxu1 %v3880_v57  ;;  %v2991_v57 = vcombine.low %v35_v55, %v35_v55 }
  0xd8   :  { %3535 = vmatpush3.bf16.msra.mxu0 %v3881_v58  ;;  %v2992_v58 = vcombine.high %v35_v55, %v35_v55 }
  0xd9   :  { %3557 = vmatpush3.bf16.msra.mxu1 %v3882_v59  ;;  %3536 = vmatprep.subr.bf16.mxu0 %v3883_v60  ;;  %v2993_v59 = vcombine.low %v36_v56, %v36_v56  ;;  %v2994_v60 = vcombine.high %v36_v56, %v36_v56 }
  0xda   :  { %3558 = vmatprep.subr.bf16.mxu1 %v3884_v61 }
  0xdc   :  { %3537 = vmatpush3.bf16.msra.mxu0 %v3885_v62 }
  0xdd   :  { %3559 = vmatpush3.bf16.msra.mxu1 %v3886_v63  ;;  %3538 = vmatprep.subr.bf16.mxu0 %v3887_v0 }
  0xde   :  { %3560 = vmatprep.subr.bf16.mxu1 %v3888_v1 }
  0xe0   :  { %3539 = vmatpush3.bf16.msra.mxu0 %v3889_v2 }
  0xe1   :  { %3561 = vmatpush3.bf16.msra.mxu1 %v3890_v3  ;;  %3568 = vmatprep.subr.bf16.mxu0 %v3895_v9 }
  0xe2   :  { %3590 = vmatprep.subr.bf16.mxu1 %v3896_v11 }
  0xe3   :  { %2717 = vmatmul.mubr.bf16.vlgmr.msra.gmra.mrb[24].mxu0 %v2987_v6 }
  0xe4   :  { %2757 = vmatmul.mubr.bf16.vlgmr.msra.gmra.mrb[24].mxu1 %v2989_v8  ;;  %3569 = vmatpush3.bf16.msra.mxu0 %v3897_v12 }
  0xe5   :  { %3591 = vmatpush3.bf16.msra.mxu1 %v3898_v13  ;;  %3570 = vmatprep.subr.bf16.mxu0 %v3899_v14 }
  0xe6   :  { %3592 = vmatprep.subr.bf16.mxu1 %v3900_v15  ;;  %2796 = vmatprep.mubr.bf16.mxu0 %v2992_v58 }
  0xe7   :  { %2836 = vmatprep.mubr.bf16.mxu1 %v2994_v60 }
  0xe8   :  { %3571 = vmatpush3.bf16.msra.mxu0 %v3901_v16 }
  0xe9   :  { %3593 = vmatpush3.bf16.msra.mxu1 %v3902_v17  ;;  %3572 = vmatprep.subr.bf16.mxu0 %v3903_v18 }
  0xea   :  { %3594 = vmatprep.subr.bf16.mxu1 %v3904_v19 }
  0xec   :  { %3573 = vmatpush3.bf16.msra.mxu0 %v3905_v20 }
  0xed   :  { %3595 = vmatpush3.bf16.msra.mxu1 %v3906_v21  ;;  %3574 = vmatprep.subr.bf16.mxu0 %v3907_v22  ;;  %v3939_v21 = vmov 0.0   ;;  %v3931_v22 = vld [vmem:[%s4823_s3] sm:$0xff]  }
  0xee   :  { %3596 = vmatprep.subr.bf16.mxu1 %v3908_v23  ;;  %v3932_v23 = vld [vmem:[%s4823_s3 + $0x8] sm:$0xff]  }
  0xf0   :  { %3575 = vmatpush3.bf16.msra.mxu0 %v3909_v24  ;;  %v3933_v24 = vld [vmem:[%s4823_s3 + $0x10] sm:$0xff]  }
  0xf1   :  { %3597 = vmatpush3.bf16.msra.mxu1 %v3910_v25  ;;  %3576 = vmatprep.subr.bf16.mxu0 %v3911_v26  ;;  %v3934_v25 = vld [vmem:[%s4823_s3 + $0x18] sm:$0xff]   ;;  %v3935_v26 = vld [vmem:[%s4823_s3 + $0x20] sm:$0xff]  }
  0xf2   :  { %3598 = vmatprep.subr.bf16.mxu1 %v3912_v27 }
  0xf4   :  { %3577 = vmatpush3.bf16.msra.mxu0 %v3913_v28 }
  0xf5   :  { %3599 = vmatpush3.bf16.msra.mxu1 %v3914_v30  ;;  %3578 = vmatprep.subr.bf16.mxu0 %v3915_v37 }
  0xf6   :  { %v3276_v29 = vpop.f32.mrb[0].mxu0  ;;  %3600 = vmatprep.subr.bf16.mxu1 %v3916_v39 }
  0xf7   :  { %v3298_v31 = vpop.f32.mrb[0].mxu1  ;;  %v3277_v33 = vpop.f32.mrb[1].mxu0 }
  0xf8   :  { %v3299_v34 = vpop.f32.mrb[1].mxu1  ;;  %v3278_v35 = vadd.f32 %v3277_v33, %v3276_v29  ;;  %v3279_v38 = vpop.f32.mrb[2].mxu0  ;;  %3579 = vmatpush3.bf16.msra.mxu0 %v3917_v42 }
  0xf9   :  { %v3300_v36 = vadd.f32 %v3299_v34, %v3298_v31  ;;  %v3301_v40 = vpop.f32.mrb[2].mxu1  ;;  %v3280_v43 = vpop.f32.mrb[3].mxu0  ;;  %3601 = vmatpush3.bf16.msra.mxu1 %v3918_v44  ;;  %3580 = vmatprep.subr.bf16.mxu0 %v3919_v47 }
  0xfa   :  { %v2239_v41 = vadd.f32 %v3278_v35, %v2962_v32  ;;  %v3302_v45 = vpop.f32.mrb[3].mxu1  ;;  %3602 = vmatprep.subr.bf16.mxu1 %v3920_v48  ;;  %v3937_v40 = vld [vmem:[%s4823_s3 + $0x30] sm:$0xff]  }
  0xfc   :  { %v2279_v46 = vadd.f32 %v3300_v36, %v2239_v41  ;;  %3581 = vmatpush3.bf16.msra.mxu0 %v3921_v49  ;;  %v3936_v36 = vld [vmem:[%s4823_s3 + $0x28] sm:$0xff]   ;;  %v3938_v41 = vld [vmem:[%s4823_s3 + $0x38] sm:$0xff]  }
  0xfd   :  { %3603 = vmatpush3.bf16.msra.mxu1 %v3922_v50  ;;  %3582 = vmatprep.subr.bf16.mxu0 %v3923_v51 }
  0xfe   :  { %3604 = vmatprep.subr.bf16.mxu1 %v3924_v52 }
 0x100   :  { %3583 = vmatpush3.bf16.msra.mxu0 %v3925_v53 }
 0x101   :  { %3605 = vmatpush3.bf16.msra.mxu1 %v3926_v54  ;;  %3621 = vmatprep.subr.bf16.mxu0 %v3939_v21 }
 0x103   :  { %2797 = vmatmul.mubr.bf16.vlgmr.msra.gmra.mrb[28].mxu0 %v2991_v57 }
 0x104   :  { %2837 = vmatmul.mubr.bf16.vlgmr.msra.gmra.mrb[28].mxu1 %v2993_v59  ;;  %3622 = vmatpush3.bf16.msra.mxu0 %v3931_v22 }
 0x105   :  { %3623 = vmatprep.subr.bf16.mxu0 %v3939_v21  ;;  %3637 = vmatprep.mubr.msk.bf16.mxu0 %vm3940_vm0, %v3939_v21 }
 0x108   :  { %3624 = vmatpush3.bf16.msra.mxu0 %v3932_v23 }
 0x109   :  { %3625 = vmatprep.subr.bf16.mxu0 %v3939_v21 }
 0x10c   :  { %3626 = vmatpush3.bf16.msra.mxu0 %v3933_v24 }
 0x10d   :  { %3627 = vmatprep.subr.bf16.mxu0 %v3939_v21 }
 0x110   :  { %3628 = vmatpush3.bf16.msra.mxu0 %v3934_v25 }
 0x111   :  { %3629 = vmatprep.subr.bf16.mxu0 %v3939_v21 }
 0x114   :  { %3630 = vmatpush3.bf16.msra.mxu0 %v3935_v26 }
 0x115   :  { %3631 = vmatprep.subr.bf16.mxu0 %v3939_v21 }
 0x116   :  { %v3320_v61 = vpop.f32.mrb[4].mxu0 }
 0x117   :  { %v3342_v62 = vpop.f32.mrb[4].mxu1  ;;  %v3321_v63 = vpop.f32.mrb[5].mxu0 }
 0x118   :  { %v3343_v0 = vpop.f32.mrb[5].mxu1  ;;  %v3322_v1 = vadd.f32 %v3321_v63, %v3320_v61  ;;  %v3323_v3 = vpop.f32.mrb[6].mxu0  ;;  %3632 = vmatpush3.bf16.msra.mxu0 %v3936_v36 }
 0x119   :  { %v3344_v2 = vadd.f32 %v3343_v0, %v3342_v62  ;;  %v3345_v4 = vpop.f32.mrb[6].mxu1  ;;  %v3324_v5 = vpop.f32.mrb[7].mxu0  ;;  %3633 = vmatprep.subr.bf16.mxu0 %v3939_v21 }
 0x11a   :  { %v3346_v6 = vpop.f32.mrb[7].mxu1  ;;  %v2319_v7 = vadd.f32 %v3322_v1, %v2279_v46 }
 0x11c   :  { %v2359_v8 = vadd.f32 %v3344_v2, %v2319_v7  ;;  %3634 = vmatpush3.bf16.msra.mxu0 %v3937_v40 }
 0x11d   :  { %3635 = vmatprep.subr.bf16.mxu0 %v3939_v21 }
 0x120   :  { %3636 = vmatpush3.bf16.msra.mxu0 %v3938_v41 }
 0x136   :  { %v3364_v9 = vpop.f32.mrb[8].mxu0 }
 0x137   :  { %v3386_v10 = vpop.f32.mrb[8].mxu1  ;;  %v3365_v11 = vpop.f32.mrb[9].mxu0 }
 0x138   :  { %v3366_v12 = vadd.f32 %v3365_v11, %v3364_v9  ;;  %v3387_v13 = vpop.f32.mrb[9].mxu1  ;;  %v3367_v14 = vpop.f32.mrb[10].mxu0 }
 0x139   :  { %v3388_v15 = vadd.f32 %v3387_v13, %v3386_v10  ;;  %v3389_v16 = vpop.f32.mrb[10].mxu1  ;;  %v3368_v17 = vpop.f32.mrb[11].mxu0 }
 0x13a   :  { %v2399_v18 = vadd.f32 %v3366_v12, %v2359_v8  ;;  %v3390_v19 = vpop.f32.mrb[11].mxu1 }
 0x13c   :  { %v2439_v20 = vadd.f32 %v3388_v15, %v2399_v18 }
 0x156   :  { %v3408_v27 = vpop.f32.mrb[12].mxu0 }
 0x157   :  { %v3430_v28 = vpop.f32.mrb[12].mxu1  ;;  %v3409_v29 = vpop.f32.mrb[13].mxu0 }
 0x158   :  { %v3410_v30 = vadd.f32 %v3409_v29, %v3408_v27  ;;  %v3431_v31 = vpop.f32.mrb[13].mxu1  ;;  %v3411_v32 = vpop.f32.mrb[14].mxu0 }
 0x159   :  { %v3432_v33 = vadd.f32 %v3431_v31, %v3430_v28  ;;  %v3433_v34 = vpop.f32.mrb[14].mxu1  ;;  %v3412_v35 = vpop.f32.mrb[15].mxu0  ;;  %v3251_v28 = vld [vmem:[%s4824_s4] ss:$0 sm:$0xff] }
 0x15a   :  { %v2479_v37 = vadd.f32 %v3410_v30, %v2439_v20  ;;  %v3434_v38 = vpop.f32.mrb[15].mxu1 }
 0x15c   :  { %v2519_v39 = vadd.f32 %v3432_v33, %v2479_v37 }
 0x176   :  { %v3452_v42 = vpop.f32.mrb[16].mxu0 }
 0x177   :  { %v3474_v43 = vpop.f32.mrb[16].mxu1  ;;  %v3453_v44 = vpop.f32.mrb[17].mxu0 }
 0x178   :  { %v3475_v45 = vpop.f32.mrb[17].mxu1  ;;  %v3454_v46 = vadd.f32 %v3453_v44, %v3452_v42  ;;  %v3455_v48 = vpop.f32.mrb[18].mxu0 }
 0x179   :  { %v3476_v47 = vadd.f32 %v3475_v45, %v3474_v43  ;;  %v3477_v49 = vpop.f32.mrb[18].mxu1  ;;  %v3456_v50 = vpop.f32.mrb[19].mxu0 }
 0x17a   :  { %v3478_v51 = vpop.f32.mrb[19].mxu1  ;;  %v2559_v52 = vadd.f32 %v3454_v46, %v2519_v39 }
 0x17c   :  { %v2599_v53 = vadd.f32 %v3476_v47, %v2559_v52 }
 0x196   :  { %v3496_v54 = vpop.f32.mrb[20].mxu0 }
 0x197   :  { %v3518_v55 = vpop.f32.mrb[20].mxu1  ;;  %v3497_v56 = vpop.f32.mrb[21].mxu0 }
 0x198   :  { %v3498_v57 = vadd.f32 %v3497_v56, %v3496_v54  ;;  %v3519_v58 = vpop.f32.mrb[21].mxu1  ;;  %v3499_v59 = vpop.f32.mrb[22].mxu0 }
 0x199   :  { %v3520_v60 = vadd.f32 %v3519_v58, %v3518_v55  ;;  %v3521_v61 = vpop.f32.mrb[22].mxu1  ;;  %v3500_v62 = vpop.f32.mrb[23].mxu0 }
 0x19a   :  { %v2639_v63 = vadd.f32 %v3498_v57, %v2599_v53  ;;  %v3522_v0 = vpop.f32.mrb[23].mxu1 }
 0x19c   :  { %v2679_v1 = vadd.f32 %v3520_v60, %v2639_v63 }
 0x1b6   :  { %v3540_v2 = vpop.f32.mrb[24].mxu0 }
 0x1b7   :  { %v3562_v3 = vpop.f32.mrb[24].mxu1  ;;  %v3541_v4 = vpop.f32.mrb[25].mxu0 }
 0x1b8   :  { %v3542_v5 = vadd.f32 %v3541_v4, %v3540_v2  ;;  %v3563_v6 = vpop.f32.mrb[25].mxu1  ;;  %v3543_v7 = vpop.f32.mrb[26].mxu0 }
 0x1b9   :  { %v3564_v8 = vadd.f32 %v3563_v6, %v3562_v3  ;;  %v3565_v9 = vpop.f32.mrb[26].mxu1  ;;  %v3544_v10 = vpop.f32.mrb[27].mxu0 }
 0x1ba   :  { %v2719_v11 = vadd.f32 %v3542_v5, %v2679_v1  ;;  %v3566_v12 = vpop.f32.mrb[27].mxu1 }
 0x1bc   :  { %v2759_v13 = vadd.f32 %v3564_v8, %v2719_v11 }
 0x1d6   :  { %v3584_v14 = vpop.f32.mrb[28].mxu0 }
 0x1d7   :  { %v3606_v15 = vpop.f32.mrb[28].mxu1  ;;  %v3585_v16 = vpop.f32.mrb[29].mxu0 }
 0x1d8   :  { %v3586_v17 = vadd.f32 %v3585_v16, %v3584_v14  ;;  %v3607_v18 = vpop.f32.mrb[29].mxu1  ;;  %v3587_v19 = vpop.f32.mrb[30].mxu0 }
 0x1d9   :  { %v3608_v20 = vadd.f32 %v3607_v18, %v3606_v15  ;;  %v3609_v21 = vpop.f32.mrb[30].mxu1  ;;  %v3588_v22 = vpop.f32.mrb[31].mxu0 }
 0x1da   :  { %v2799_v23 = vadd.f32 %v3586_v17, %v2759_v13  ;;  %v3610_v24 = vpop.f32.mrb[31].mxu1 }
 0x1dc   :  { %v2839_v25 = vadd.f32 %v3608_v20, %v2799_v23 }
 0x1de   :  { %v2844_v26 = vmax.f32 %v2839_v25, 0.0 }
 0x1e0   :  { %v2845_v27 = vpack.c.bf16 %v2844_v26, %v2844_v26 }
 0x1e2   :  { %3638 = vmatmul.mubr.bf16.vlgmr.msra.gmra.mrb[32].mxu0 %v2845_v27 }
 0x2b5   :  { %v2951_v29 = vpop.f32.mrb[32].mxu0 }
 0x2b6   :  { %v2952_v30 = vadd.f32 %v3251_v28, %v2951_v29  ;;  %v3639_v31 = vpop.f32.mrb[33].mxu0 }
 0x2b7   :  { %v2954_v32 = vpop.f32.mrb[34].mxu0 }
 0x2b8   :  { %2957 = vst [vmem:[%s4825_s5] sm:$0xff] %v2952_v30  ;;  %v3640_v33 = vpop.f32.mrb[35].mxu0 }

// kernel: vgg1block_forward.2
= control target key start
LH: loop header
LB: loop body
LE: loop exit
PB: predicated region body
PF: predicated region fallthrough
CT: control target
= control target key end

     0   :  { %s8646_s24 = smov 0   ;;  %s11276_s0 = inlined_call_operand.vmem [shape: bf16[2,256,12], index: 0, kind: input, shape index: {}]   ;;  %s11277_s1 = inlined_call_operand.vmem [shape: bf16[12,64], index: 1, kind: input, shape index: {}]   ;;  %s11278_s2 = inlined_call_operand.vmem [shape: f32[1,64], index: 2, kind: input, shape index: {}]   ;;  %s11279_s3 = inlined_call_operand.vmem [shape: bf16[3,192,64], index: 3, kind: input, shape index: {}]   ;;  %s11280_s4 = inlined_call_operand.vmem [shape: f32[1,64], index: 4, kind: input, shape index: {}]   ;;  %s11281_s5 = inlined_call_operand.vmem [shape: bf16[3,192,64], index: 5, kind: input, shape index: {}]   ;;  %s11282_s6 = inlined_call_operand.vmem [shape: f32[1,64], index: 6, kind: input, shape index: {}]   ;;  %s11283_s7 = inlined_call_operand.vmem [shape: bf16[2,8,8,64], index: 7, kind: output, shape index: {}]  }
   0x1 LB: > { %s7318_s25 = sadd.s32 4294967295, %s8602_s24   ;;  %p7322_p0 = scmp.ge.s32.totalorder %s8602_s24, 1  ;;  %s8602_s24 = sphi %s8646_s24, %s17_s24  }
   0x2   : > { %p237_p1 = scmp.lt.s32.totalorder %s8602_s24, 3 }
   0x4   : > { %p238_p2 = pnand %p7322_p0, %p237_p1 }
   0x6   : > { %241 = sbr.rel (%p238_p2) target bundleno = 1398 (0x576), region = 48 }
   0xd   : > { %v8112_v0 = vld [vmem:[%s11277_s1] sm:$0x3f]   ;;  %vm511_vm0 = vcmask 1045504   ;;  %p8659_p3 = scmp.lt.s32.totalorder %s7318_s25, 1  ;;  %vm280_vm1 = vcmask 519168   ;;  %v11284_v2 = vmov 0  }
   0xe   : > { %8100 = vmatprep.subr.msk.bf16.mxu0 %vm511_vm0, %v8112_v0  ;;  %v513_v1 = vsel %vm511_vm0, %v8112_v0, 0  ;;  %8101 = vmatprep.subr.msk.bf16.mxu1 %vm511_vm0, %v8112_v0  ;;  %288 = vst.msk [vmem:[#allocation2 + $0x18] sm:$0xf] %vm280_vm1, %v11284_v2  ;;  %281 = vst.msk [vmem:[#allocation2] sm:$0xf] %vm280_vm1, %v11284_v2  ;;  %vm462_vm2 = vcmask 97280  }
   0xf   : > { %282 = vst.msk [vmem:[#allocation2 + $0x4] sm:$0xf] %vm280_vm1, %v11284_v2  ;;  %285 = vst.msk [vmem:[#allocation2 + $0xc] sm:$0xf] %vm280_vm1, %v11284_v2  ;;  %8065 = vmatpush3.bf16.msra.mxu0 %v513_v1  ;;  %s11520_s25 = smov (!%p8659_p3, %s7318_s25), 1  ;;  %8099 = vmatpush3.bf16.msra.mxu1 %v513_v1  ;;  %vm283_vm3 = vcmask 516096  }
  0x10   : > { %286 = vst.msk [vmem:[#allocation2 + $0x10] sm:$0xf] %vm280_vm1, %v11284_v2  ;;  %289 = vst.msk [vmem:[#allocation2 + $0x1c] sm:$0xf] %vm280_vm1, %v11284_v2  ;;  %2537 = vmatprep.subr.bf16.mxu1 %v11284_v2  ;;  %2818 = vmatprep.subr.bf16.mxu0 %v11284_v2  ;;  %s7981_s29 = sshll.u32 %s11520_s25, 7  ;;  %v8179_v51 = vld [vmem:[%s11279_s3 + $0x60] sm:$0xff]  }
  0x11   : > { %291 = vst.msk [vmem:[#allocation2 + $0x24] sm:$0xf] %vm280_vm1, %v11284_v2  ;;  %292 = vst.msk [vmem:[#allocation2 + $0x28] sm:$0xf] %vm280_vm1, %v11284_v2  ;;  %s8747_s9 = scalar_lea.vmem %s11276_s0, %s7981_s29  ;;  %v8822_v22 = vld [vmem:[%s11278_s2] ss:$0 sm:$0xff] }
  0x12   : > { %294 = vst.msk [vmem:[#allocation2 + $0x30] sm:$0xf] %vm280_vm1, %v11284_v2  ;;  %295 = vst.msk [vmem:[#allocation2 + $0x34] sm:$0xf] %vm280_vm1, %v11284_v2  ;;  %v8113_v3 = vld [vmem:[%s8747_s9] sm:$0xff]   ;;  %v8114_v4 = vld [vmem:[%s8747_s9 + $0x8] sm:$0xff]  }
  0x13   : > { %297 = vst.msk [vmem:[#allocation2 + $0x3c] sm:$0xf] %vm280_vm1, %v11284_v2  ;;  %298 = vst.msk [vmem:[#allocation2 + $0x40] sm:$0xf] %vm280_vm1, %v11284_v2  ;;  %8066 = vmatprep.mubr.msk.bf16.mxu0 %vm462_vm2, %v8113_v3  ;;  %v8115_v5 = vld [vmem:[%s8747_s9 + $0x10] sm:$0xff]   ;;  %v8116_v6 = vld [vmem:[%s8747_s9 + $0x18] sm:$0xff]  }
  0x14   : > { %300 = vst.msk [vmem:[#allocation2 + $0x48] sm:$0xf] %vm280_vm1, %v11284_v2  ;;  %301 = vst.msk [vmem:[#allocation2 + $0x4c] sm:$0xf] %vm280_vm1, %v11284_v2  ;;  %8067 = vmatmul.mubr.msk.bf16.vlgmr.msra.gmra.mrb[0].mxu0 %vm462_vm2, %v8114_v4  ;;  %v8117_v7 = vld [vmem:[%s8747_s9 + $0x20] sm:$0xff]   ;;  %v8118_v9 = vld [vmem:[%s8747_s9 + $0x28] sm:$0xff]  }
  0x15   : > { %303 = vst.msk [vmem:[#allocation2 + $0x54] sm:$0xf] %vm280_vm1, %v11284_v2  ;;  %304 = vst.msk [vmem:[#allocation2 + $0x58] sm:$0xf] %vm280_vm1, %v11284_v2  ;;  %8070 = vmatprep.mubr.msk.bf16.mxu0 %vm462_vm2, %v8115_v5  ;;  %v8124_v8 = vld [vmem:[%s8747_s9 + $0x60] sm:$0xff]   ;;  %v8126_v10 = vld [vmem:[%s8747_s9 + $0x68] sm:$0xff]  }
  0x16   : > { %306 = vst.msk [vmem:[#allocation2 + $0x60] sm:$0xf] %vm280_vm1, %v11284_v2  ;;  %307 = vst.msk [vmem:[#allocation2 + $0x64] sm:$0xf] %vm280_vm1, %v11284_v2  ;;  %8090 = vmatprep.mubr.msk.bf16.mxu1 %vm462_vm2, %v8124_v8  ;;  %v8127_v11 = vld [vmem:[%s8747_s9 + $0x70] sm:$0xff]   ;;  %v8128_v13 = vld [vmem:[%s8747_s9 + $0x78] sm:$0xff]  }
  0x17   : > { %309 = vst.msk [vmem:[#allocation2 + $0x6c] sm:$0xf] %vm280_vm1, %v11284_v2  ;;  %310 = vst.msk [vmem:[#allocation2 + $0x70] sm:$0xf] %vm280_vm1, %v11284_v2  ;;  %v8119_v12 = vld [vmem:[%s8747_s9 + $0x30] sm:$0xff]   ;;  %8091 = vmatmul.mubr.msk.bf16.vlgmr.msra.gmra.mrb[0].mxu1 %vm462_vm2, %v8126_v10  ;;  %v8120_v14 = vld [vmem:[%s8747_s9 + $0x38] sm:$0xff]  }
  0x18   : > { %312 = vst.msk [vmem:[#allocation2 + $0x78] sm:$0xf] %vm280_vm1, %v11284_v2  ;;  %313 = vst.msk [vmem:[#allocation2 + $0x7c] sm:$0xf] %vm280_vm1, %v11284_v2  ;;  %8094 = vmatprep.mubr.msk.bf16.mxu1 %vm462_vm2, %v8127_v11  ;;  %v8121_v15 = vld [vmem:[%s8747_s9 + $0x40] sm:$0xff]   ;;  %v8122_v16 = vld [vmem:[%s8747_s9 + $0x48] sm:$0xff]   ;;  %2538 = vmatpush1.bf16.msra.mxu1 %v8179_v51 }
  0x19   : > { %315 = vst.msk [vmem:[#allocation2 + $0x84] sm:$0xf] %vm280_vm1, %v11284_v2  ;;  %316 = vst.msk [vmem:[#allocation2 + $0x88] sm:$0xf] %vm280_vm1, %v11284_v2  ;;  %v8123_v17 = vld [vmem:[%s8747_s9 + $0x50] sm:$0xff]   ;;  %v8125_v18 = vld [vmem:[%s8747_s9 + $0x58] sm:$0xff]   ;;  %2539 = vmatprep.subr.bf16.mxu1 %v11284_v2 }
  0x1a   : > { %318 = vst.msk [vmem:[#allocation2 + $0x90] sm:$0xf] %vm280_vm1, %v11284_v2  ;;  %319 = vst.msk [vmem:[#allocation2 + $0x94] sm:$0xf] %vm280_vm1, %v11284_v2  ;;  %v1245_v19 = vld [vmem:[#allocation2] sm:$0xf] }
  0x1b   : > { %321 = vst.msk [vmem:[#allocation2 + $0x9c] sm:$0xf] %vm280_vm1, %v11284_v2  ;;  %322 = vst.msk [vmem:[#allocation2 + $0xa0] sm:$0xf] %vm280_vm1, %v11284_v2  ;;  %v1246_v20 = vld [vmem:[#allocation2 + $0x4] sm:$0xf] }
  0x1c   : > { %324 = vst.msk [vmem:[#allocation2 + $0xa8] sm:$0xf] %vm280_vm1, %v11284_v2  ;;  %325 = vst.msk [vmem:[#allocation2 + $0xac] sm:$0xf] %vm280_vm1, %v11284_v2  ;;  %8071 = vmatmul.mubr.msk.bf16.gmra.mrb[4].mxu0 %vm462_vm2, %v8116_v6  ;;  %v8817_v21 = vcombine.low %v1245_v19, %v1246_v20  ;;  %vm1129_vm4 = vsmask.f32 7938 }
  0x1d   : > { %327 = vst.msk [vmem:[#allocation2 + $0xb4] sm:$0xf] %vm280_vm1, %v11284_v2  ;;  %328 = vst.msk [vmem:[#allocation2 + $0xb8] sm:$0xf] %vm280_vm1, %v11284_v2  ;;  %8074 = vmatprep.mubr.msk.bf16.mxu0 %vm462_vm2, %v8117_v7  ;;  %vm804_vm5 = vsmask.f32 256 }
  0x1e   : > { %330 = vst.msk [vmem:[#allocation2 + $0xc0] sm:$0xf] %vm280_vm1, %v11284_v2  ;;  %331 = vst.msk [vmem:[#allocation2 + $0xc4] sm:$0xf] %vm280_vm1, %v11284_v2  ;;  %v1441_v24 = vshll.u32 %v8817_v21, 16  ;;  %v1439_v30 = vshrl.u32 %v8817_v21, 16 }
  0x1f   : > { %333 = vst.msk [vmem:[#allocation2 + $0xcc] sm:$0xf] %vm280_vm1, %v11284_v2  ;;  %334 = vst.msk [vmem:[#allocation2 + $0xd0] sm:$0xf] %vm280_vm1, %v11284_v2  ;;  %8095 = vmatmul.mubr.msk.bf16.gmra.mrb[4].mxu1 %vm462_vm2, %v8128_v13  ;;  %vm805_vm6 = vsmask.f32 4368 }
  0x20   : > { %290 = vst.msk [vmem:[#allocation2 + $0x20] sm:$0x1] %vm283_vm3, %v11284_v2  ;;  %284 = vst.msk [vmem:[#allocation2 + $0x8] sm:$0x1] %vm283_vm3, %v11284_v2  ;;  %v1443_v34 = vrot.slane %v1441_v24, 1  ;;  %v11364_v58 = vmov 0 }
  0x21   : > { %287 = vst.msk [vmem:[#allocation2 + $0x14] sm:$0x1] %vm283_vm3, %v11284_v2  ;;  %293 = vst.msk [vmem:[#allocation2 + $0x2c] sm:$0x1] %vm283_vm3, %v11284_v2  ;;  %v1140_v53 = vld [vmem:[#allocation2 + $0x18] sm:$0xf] }
  0x22   : > { %296 = vst.msk [vmem:[#allocation2 + $0x38] sm:$0x1] %vm283_vm3, %v11284_v2  ;;  %299 = vst.msk [vmem:[#allocation2 + $0x44] sm:$0x1] %vm283_vm3, %v11284_v2  ;;  %v8830_v44 = vor.u32 %v1443_v34, %v1439_v30  ;;  %v1131_v60 = vld [vmem:[#allocation2 + $0xc] sm:$0xf] }
  0x23   : > { %302 = vst.msk [vmem:[#allocation2 + $0x50] sm:$0x1] %vm283_vm3, %v11284_v2  ;;  %305 = vst.msk [vmem:[#allocation2 + $0x5c] sm:$0x1] %vm283_vm3, %v11284_v2  ;;  %v11367_v4 = vmov 0  ;;  %v11370_v11 = vmov 0 }
  0x24   : > { %8075 = vmatmul.mubr.msk.bf16.gmra.mrb[8].mxu0 %vm462_vm2, %v8118_v9  ;;  %308 = vst.msk [vmem:[#allocation2 + $0x68] sm:$0x1] %vm283_vm3, %v11284_v2  ;;  %311 = vst.msk [vmem:[#allocation2 + $0x74] sm:$0x1] %vm283_vm3, %v11284_v2  ;;  %vm1710_vm10 = vcmask 1046528   ;;  %vm1759_vm11 = vcmask 523264  }
  0x25   : > { %8078 = vmatprep.mubr.msk.bf16.mxu0 %vm462_vm2, %v8119_v12  ;;  %314 = vst.msk [vmem:[#allocation2 + $0x80] sm:$0x1] %vm283_vm3, %v11284_v2  ;;  %317 = vst.msk [vmem:[#allocation2 + $0x8c] sm:$0x1] %vm283_vm3, %v11284_v2  ;;  %vm1437_vm12 = vsmask.f32 7424 }
  0x26   : > { %320 = vst.msk [vmem:[#allocation2 + $0x98] sm:$0x1] %vm283_vm3, %v11284_v2  ;;  %323 = vst.msk [vmem:[#allocation2 + $0xa4] sm:$0x1] %vm283_vm3, %v11284_v2  ;;  %s8605_s15 = smov 64   ;;  %s7982_s23 = sshll.u32 %s11520_s25, 5 }
  0x27   : > { %326 = vst.msk [vmem:[#allocation2 + $0xb0] sm:$0x1] %vm283_vm3, %v11284_v2  ;;  %329 = vst.msk [vmem:[#allocation2 + $0xbc] sm:$0x1] %vm283_vm3, %v11284_v2  ;;  %v1144_v6 = vld [vmem:[#allocation2 + $0x20] sm:$0x1]  ;;  %s11196_s27 = scalar_lea.vmem %s11283_s7, %s7982_s23 }
  0x28   : > { %332 = vst.msk [vmem:[#allocation2 + $0xc8] sm:$0x1] %vm283_vm3, %v11284_v2  ;;  %335 = vst.msk [vmem:[#allocation2 + $0xd4] sm:$0x1] %vm283_vm3, %v11284_v2  ;;  %v1137_v19 = vld [vmem:[#allocation2 + $0x14] sm:$0x1] }
  0x29   : > { %v8164_v23 = vld [vmem:[#allocation2 + $0x8] ss:$0 sps:$4 sm:$0x11]   ;;  %vm8840_vm7 = vmand %vm280_vm1, %vm1129_vm4 }
  0x2a   : > { %v1446_v35 = vshll.u32 %v8164_v23, 16  ;;  %v11365_v58 = vsel %vm8840_vm7, 4294967295, %v11364_v58  ;;  %vm8847_vm8 = vmor %vm804_vm5, %vm805_vm6 }
  0x2b   : > { %11366 = vst [vmem:[#allocation4_spill] sm:$0xff] %v11365_v58  ;;  %v11368_v4 = vsel %vm8847_vm8, 4294967295, %v11367_v4  ;;  %vm8854_vm9 = vmand %vm283_vm3, %vm804_vm5 }
  0x2c   : > { %8079 = vmatmul.mubr.msk.bf16.gmra.mrb[12].mxu0 %vm462_vm2, %v8120_v14  ;;  %v8832_v45 = vrot.slane %v1446_v35, 1  ;;  %11369 = vst [vmem:[#allocation5_spill] sm:$0xff] %v11368_v4  ;;  %v11371_v11 = vsel %vm8854_vm9, 4294967295, %v11370_v11 }
  0x2d   : > { %8082 = vmatprep.mubr.msk.bf16.mxu0 %vm462_vm2, %v8121_v15  ;;  %11372 = vst [vmem:[#allocation6_spill] sm:$0xff] %v11371_v11  ;;  %v8184_v15 = vld [vmem:[%s11279_s3 + $0x68] sm:$0xff]  }
  0x2e   : > { %2540 = vmatpush1.bf16.msra.mxu1 %v8184_v15 }
  0x2f   : > { %2541 = vmatprep.subr.bf16.mxu1 %v11284_v2 }
  0x34   : > { %8083 = vmatmul.mubr.msk.bf16.gmra.mrb[16].mxu0 %vm462_vm2, %v8122_v16 }
  0x35   : > { %8086 = vmatprep.mubr.msk.bf16.mxu0 %vm462_vm2, %v8123_v17 }
  0x3c   : > { %8087 = vmatmul.mubr.msk.bf16.gmra.mrb[20].mxu0 %vm462_vm2, %v8125_v18 }
  0xe7   : > { %v8068_v25 = vpop.f32.mrb[0].mxu0 }
  0xe8   : > { %v558_v26 = vadd.f32 %v8068_v25, %v8822_v22  ;;  %v549_v27 = vpop.f32.mrb[1].mxu0 }
  0xe9   : > { %v550_v28 = vadd.f32 %v8822_v22, %v549_v27  ;;  %v8069_v29 = vpop.f32.mrb[2].mxu0 }
  0xea   : > { %v678_v31 = vmax.f32 %v558_v26, 0.0  ;;  %v561_v32 = vadd.f32 %v8069_v29, %v8822_v22  ;;  %v552_v33 = vpop.f32.mrb[3].mxu0  ;;  %v8092_v14 = vpop.f32.mrb[0].mxu1 }
  0xeb   : > { %v676_v36 = vmax.f32 %v550_v28, 0.0  ;;  %v553_v37 = vadd.f32 %v8822_v22, %v552_v33  ;;  %v645_v23 = vpop.f32.mrb[1].mxu1  ;;  %v8892_v51 = vadd.f32 %v8092_v14, %v8822_v22 }
  0xec   : > { %v7985_v38 = vpack.c.bf16 %v678_v31, %v678_v31  ;;  %v679_v39 = vmax.f32 %v561_v32, 0.0  ;;  %v8865_v28 = vpop.f32.mrb[2].mxu1 }
  0xed   : > { %v7983_v40 = vpack.c.bf16 %v676_v36, %v676_v36  ;;  %v677_v41 = vmax.f32 %v553_v37, 0.0  ;;  %v8871_v33 = vpop.f32.mrb[3].mxu1 }
  0xee   : > { %v825_v42 = vshrl.u32 %v7985_v38, 16  ;;  %v7986_v43 = vpack.c.bf16 %v679_v39, %v679_v39  ;;  %v828_v46 = vshll.u32 %v7985_v38, 16  ;;  %v8189_v39 = vld [vmem:[%s11279_s3 + $0x70] sm:$0xff]  }
  0xef   : > { %v808_v47 = vshrl.u32 %v7983_v40, 16  ;;  %v811_v48 = vshll.u32 %v7983_v40, 16  ;;  %v7984_v49 = vpack.c.bf16 %v677_v41, %v677_v41  ;;  %v8072_v50 = vpop.f32.mrb[4].mxu0  ;;  %2542 = vmatpush1.bf16.msra.mxu1 %v8189_v39 }
  0xf0   : > { %v827_v52 = vrot.slane %v825_v42, 7  ;;  %v833_v54 = vshrl.u32 %v7986_v43, 16  ;;  %v836_v55 = vshll.u32 %v7986_v43, 16  ;;  %v574_v56 = vadd.f32 %v8072_v50, %v8822_v22  ;;  %v565_v57 = vpop.f32.mrb[5].mxu0  ;;  %2543 = vmatprep.subr.bf16.mxu1 %v11284_v2 }
  0xf1   : > { %v810_v59 = vrot.slane %v808_v47, 7  ;;  %v816_v61 = vshrl.u32 %v7984_v49, 16  ;;  %v819_v62 = vshll.u32 %v7984_v49, 16  ;;  %v566_v63 = vadd.f32 %v8822_v22, %v565_v57  ;;  %v8073_v0 = vpop.f32.mrb[6].mxu0  ;;  %v1154_v47 = vld [vmem:[#allocation2 + $0x30] sm:$0xf] }
  0xf2   : > { %v830_v1 = vor.u32 %v828_v46, %v827_v52  ;;  %v831_v3 = vrot.slane %v827_v52, 4  ;;  %v835_v5 = vrot.slane %v833_v54, 7  ;;  %v682_v7 = vmax.f32 %v574_v56, 0.0  ;;  %v568_v8 = vpop.f32.mrb[7].mxu0 }
  0xf3   : > { %v813_v9 = vor.u32 %v811_v48, %v810_v59  ;;  %v814_v10 = vrot.slane %v810_v59, 4  ;;  %v818_v12 = vrot.slane %v816_v61, 7  ;;  %v680_v13 = vmax.f32 %v566_v63, 0.0 }
  0xf4   : > { %v1141_v16 = vsel %vm8840_vm7, %v830_v1, %v1140_v53  ;;  %v838_v17 = vor.u32 %v836_v55, %v835_v5  ;;  %v840_v18 = vrot.slane %v835_v5, 4  ;;  %v7989_v20 = vpack.c.bf16 %v682_v7, %v682_v7  ;;  %v1147_v55 = vld [vmem:[#allocation2 + $0x24] sm:$0xf]  ;;  %v8194_v1 = vld [vmem:[%s11279_s3 + $0x78] sm:$0xff]  }
  0xf5   : > { %1142 = vst [vmem:[#allocation2 + $0x18] sm:$0xf] %v1141_v16  ;;  %v1132_v24 = vsel %vm8840_vm7, %v813_v9, %v1131_v60  ;;  %v821_v25 = vor.u32 %v819_v62, %v818_v12  ;;  %v823_v26 = vrot.slane %v818_v12, 4  ;;  %v7987_v27 = vpack.c.bf16 %v680_v13, %v680_v13  ;;  %2544 = vmatpush1.bf16.msra.mxu1 %v8194_v1 }
  0xf6   : > { %1133 = vst [vmem:[#allocation2 + $0xc] sm:$0xf] %v1132_v24  ;;  %v839_v29 = vsel %vm8847_vm8, %v831_v3, %v838_v17  ;;  %v1145_v30 = vsel %vm8854_vm9, %v840_v18, %v1144_v6  ;;  %v859_v31 = vshrl.u32 %v7989_v20, 16  ;;  %v862_v32 = vshll.u32 %v7989_v20, 16  ;;  %2545 = vmatprep.subr.bf16.mxu1 %v11284_v2  ;;  %v1151_v20 = vld [vmem:[#allocation2 + $0x2c] sm:$0x1] }
  0xf7   : > { %1143 = vst.msk [vmem:[#allocation2 + $0x1c] sm:$0xf] %vm280_vm1, %v839_v29  ;;  %1146 = vst [vmem:[#allocation2 + $0x20] sm:$0x1] %v1145_v30  ;;  %v822_v34 = vsel %vm8847_vm8, %v814_v10, %v821_v25  ;;  %v1138_v35 = vsel %vm8854_vm9, %v823_v26, %v1137_v19  ;;  %v842_v36 = vshrl.u32 %v7987_v27, 16  ;;  %v845_v37 = vshll.u32 %v7987_v27, 16 }
  0xf8   : > { %v8076_v38 = vpop.f32.mrb[8].mxu0  ;;  %1134 = vst.msk [vmem:[#allocation2 + $0x10] sm:$0xf] %vm280_vm1, %v822_v34  ;;  %1139 = vst [vmem:[#allocation2 + $0x14] sm:$0x1] %v1138_v35  ;;  %v8883_v40 = vrot.slane %v859_v31, 7  ;;  %v577_v41 = vadd.f32 %v8073_v0, %v8822_v22  ;;  %v569_v42 = vadd.f32 %v8822_v22, %v568_v8  ;;  %v8895_v52 = vadd.f32 %v8822_v22, %v645_v23 }
  0xf9   : > { %v590_v43 = vadd.f32 %v8076_v38, %v8822_v22  ;;  %v581_v46 = vpop.f32.mrb[9].mxu0  ;;  %v8888_v48 = vrot.slane %v842_v36, 7  ;;  %v8902_v0 = vpop.f32.mrb[4].mxu1  ;;  %v1158_v19 = vld [vmem:[#allocation2 + $0x38] sm:$0x1] }
  0xfa   : > { %v582_v49 = vadd.f32 %v8822_v22, %v581_v46  ;;  %v8077_v50 = vpop.f32.mrb[10].mxu0  ;;  %v864_v53 = vor.u32 %v862_v32, %v8883_v40  ;;  %v865_v54 = vrot.slane %v8883_v40, 4  ;;  %v683_v56 = vmax.f32 %v577_v41, 0.0  ;;  %v8910_v8 = vpop.f32.mrb[5].mxu1  ;;  %v1168_v32 = vld [vmem:[#allocation2 + $0x48] sm:$0xf] }
  0xfb   : > { %v681_v57 = vmax.f32 %v569_v42, 0.0  ;;  %v584_v59 = vpop.f32.mrb[11].mxu0  ;;  %v847_v60 = vor.u32 %v845_v37, %v8888_v48  ;;  %v848_v61 = vrot.slane %v8888_v48, 4  ;;  %v686_v62 = vmax.f32 %v590_v43, 0.0  ;;  %v8915_v14 = vpop.f32.mrb[6].mxu1  ;;  %v8199_v37 = vld [vmem:[%s11279_s3 + $0x80] sm:$0xff]  }
  0xfc   : > { %v684_v63 = vmax.f32 %v582_v49, 0.0  ;;  %v1155_v3 = vsel %vm8840_vm7, %v864_v53, %v1154_v47  ;;  %v7990_v5 = vpack.c.bf16 %v683_v56, %v683_v56  ;;  %v593_v7 = vadd.f32 %v8077_v50, %v8822_v22  ;;  %v8918_v29 = vpop.f32.mrb[7].mxu1  ;;  %v1161_v41 = vld [vmem:[#allocation2 + $0x3c] sm:$0xf]  ;;  %2546 = vmatpush1.bf16.msra.mxu1 %v8199_v37 }
  0xfd   : > { %v7988_v6 = vpack.c.bf16 %v681_v57, %v681_v57  ;;  %1156 = vst [vmem:[#allocation2 + $0x30] sm:$0xf] %v1155_v3  ;;  %v1148_v9 = vsel %vm8840_vm7, %v847_v60, %v1147_v55  ;;  %v7993_v10 = vpack.c.bf16 %v686_v62, %v686_v62  ;;  %v585_v13 = vadd.f32 %v8822_v22, %v584_v59  ;;  %v8204_v60 = vld [vmem:[%s11279_s3 + $0x88] sm:$0xff]  }
  0xfe   : > { %v7991_v12 = vpack.c.bf16 %v684_v63, %v684_v63  ;;  %1149 = vst [vmem:[#allocation2 + $0x24] sm:$0xf] %v1148_v9  ;;  %v867_v15 = vshrl.u32 %v7990_v5, 16  ;;  %v870_v16 = vshll.u32 %v7990_v5, 16  ;;  %v687_v34 = vmax.f32 %v593_v7, 0.0  ;;  %2547 = vmatprep.subr.bf16.mxu1 %v11284_v2 }
  0xff   : > { %v850_v17 = vshrl.u32 %v7988_v6, 16  ;;  %v853_v18 = vshll.u32 %v7988_v6, 16  ;;  %v893_v23 = vshrl.u32 %v7993_v10, 16  ;;  %v896_v24 = vshll.u32 %v7993_v10, 16  ;;  %v8080_v27 = vpop.f32.mrb[12].mxu0 }
 0x100   : > { %v876_v25 = vshrl.u32 %v7991_v12, 16  ;;  %v879_v26 = vshll.u32 %v7991_v12, 16  ;;  %v869_v30 = vrot.slane %v867_v15, 7  ;;  %v685_v35 = vmax.f32 %v585_v13, 0.0  ;;  %v597_v36 = vpop.f32.mrb[13].mxu0  ;;  %2548 = vmatpush1.bf16.msra.mxu1 %v8204_v60 }
 0x101   : > { %v852_v31 = vrot.slane %v850_v17, 7  ;;  %v8923_v38 = vrot.slane %v893_v23, 7  ;;  %v606_v42 = vadd.f32 %v8080_v27, %v8822_v22  ;;  %v598_v43 = vadd.f32 %v8822_v22, %v597_v36  ;;  %v8081_v46 = vpop.f32.mrb[14].mxu0  ;;  %v8953_v7 = vld [vmem:[#allocation2 + $0x14] ss:$0 sps:$4 sm:$0x11]   ;;  %2549 = vmatprep.subr.bf16.mxu1 %v11284_v2 }
 0x102   : > { %v8925_v39 = vrot.slane %v876_v25, 7  ;;  %v872_v47 = vor.u32 %v870_v16, %v869_v30  ;;  %v874_v48 = vrot.slane %v869_v30, 4  ;;  %v600_v53 = vpop.f32.mrb[15].mxu0  ;;  %v7994_v5 = vpack.c.bf16 %v687_v34, %v687_v34  ;;  %v8957_v13 = vld [vmem:[#allocation2 + $0x10] sm:$0xf] }
 0x103   : > { %v855_v49 = vor.u32 %v853_v18, %v852_v31  ;;  %v857_v50 = vrot.slane %v852_v31, 4  ;;  %v898_v55 = vor.u32 %v896_v24, %v8923_v38  ;;  %v899_v56 = vrot.slane %v8923_v38, 4  ;;  %v1172_v23 = vld [vmem:[#allocation2 + $0x50] sm:$0x1]  ;;  %v1880_v30 = vld [vmem:[#allocation2 + $0xc] sm:$0xe] }
 0x104   : > { %v881_v57 = vor.u32 %v879_v26, %v8925_v39  ;;  %v882_v59 = vrot.slane %v8925_v39, 4  ;;  %v873_v62 = vsel %vm8847_vm8, %v865_v54, %v872_v47  ;;  %v1159_v63 = vsel %vm8854_vm9, %v874_v48, %v1158_v19  ;;  %v8214_v38 = vld [vmem:[%s11279_s3 + $0x98] sm:$0xff]  }
 0x105   : > { %v856_v1 = vsel %vm8847_vm8, %v848_v61, %v855_v49  ;;  %v1152_v3 = vsel %vm8854_vm9, %v857_v50, %v1151_v20  ;;  %1157 = vst.msk [vmem:[#allocation2 + $0x34] sm:$0xf] %vm280_vm1, %v873_v62  ;;  %1160 = vst [vmem:[#allocation2 + $0x38] sm:$0x1] %v1159_v63  ;;  %v1169_v40 = vsel %vm8840_vm7, %v898_v55, %v1168_v32  ;;  %v690_v61 = vmax.f32 %v606_v42, 0.0  ;;  %v8209_v20 = vld [vmem:[%s11279_s3 + $0x90] sm:$0xff]  }
 0x106   : > { %1150 = vst.msk [vmem:[#allocation2 + $0x28] sm:$0xf] %vm280_vm1, %v856_v1  ;;  %1153 = vst [vmem:[#allocation2 + $0x2c] sm:$0x1] %v1152_v3  ;;  %v1162_v54 = vsel %vm8840_vm7, %v881_v57, %v1161_v41  ;;  %v7992_v6 = vpack.c.bf16 %v685_v35, %v685_v35  ;;  %v688_v9 = vmax.f32 %v598_v43, 0.0  ;;  %v609_v10 = vadd.f32 %v8081_v46, %v8822_v22 }
 0x107   : > { %1170 = vst [vmem:[#allocation2 + $0x48] sm:$0xf] %v1169_v40  ;;  %1163 = vst [vmem:[#allocation2 + $0x3c] sm:$0xf] %v1162_v54  ;;  %v601_v12 = vadd.f32 %v8822_v22, %v600_v53  ;;  %v901_v15 = vshrl.u32 %v7994_v5, 16  ;;  %v904_v16 = vshll.u32 %v7994_v5, 16  ;;  %v7997_v24 = vpack.c.bf16 %v690_v61, %v690_v61  ;;  %2550 = vmatpush1.bf16.msra.mxu1 %v8209_v20 }
 0x108   : > { %v884_v17 = vshrl.u32 %v7992_v6, 16  ;;  %v887_v18 = vshll.u32 %v7992_v6, 16  ;;  %v8084_v19 = vpop.f32.mrb[16].mxu0  ;;  %v7995_v25 = vpack.c.bf16 %v688_v9, %v688_v9  ;;  %v691_v26 = vmax.f32 %v609_v10, 0.0  ;;  %v1165_v35 = vld [vmem:[#allocation2 + $0x44] sm:$0x1]  ;;  %2551 = vmatprep.subr.bf16.mxu1 %v11284_v2 }
 0x109   : > { %v689_v27 = vmax.f32 %v601_v12, 0.0  ;;  %v613_v31 = vpop.f32.mrb[17].mxu0  ;;  %v903_v32 = vrot.slane %v901_v15, 7  ;;  %v7473_v36 = vcombine.low %v1880_v30, %v8957_v13  ;;  %v2297_v37 = vrot.slane %v8953_v7, 1  ;;  %v1182_v5 = vld [vmem:[#allocation2 + $0x60] sm:$0xf] }
 0x10a   : > { %v886_v34 = vrot.slane %v884_v17, 7  ;;  %v8085_v41 = vpop.f32.mrb[18].mxu0  ;;  %v927_v42 = vshrl.u32 %v7997_v24, 16  ;;  %v930_v43 = vshll.u32 %v7997_v24, 16  ;;  %v910_v46 = vshrl.u32 %v7995_v25, 16  ;;  %v8219_v17 = vld [vmem:[%s11279_s3 + $0xa0] sm:$0xff]  }
 0x10b   : > { %v913_v47 = vshll.u32 %v7995_v25, 16  ;;  %v8965_v48 = vpop.f32.mrb[19].mxu0  ;;  %v906_v49 = vor.u32 %v904_v16, %v903_v32  ;;  %v908_v50 = vrot.slane %v903_v32, 4  ;;  %v7998_v62 = vpack.c.bf16 %v691_v26, %v691_v26  ;;  %v1175_v6 = vld [vmem:[#allocation2 + $0x54] sm:$0xf]  ;;  %2552 = vmatpush1.bf16.msra.mxu1 %v8214_v38 }
 0x10c   : > { %v889_v53 = vor.u32 %v887_v18, %v886_v34  ;;  %v891_v55 = vrot.slane %v886_v34, 4  ;;  %v929_v57 = vrot.slane %v927_v42, 7  ;;  %v8968_v60 = vrot.slane %v910_v46, 7  ;;  %2553 = vmatprep.subr.bf16.mxu1 %v11284_v2  ;;  %v8132_v38 = vld [vmem:[#allocation2 + $0x20] ss:$0 sps:$4 sm:$0x11]  }
 0x10d   : > { %v7996_v63 = vpack.c.bf16 %v689_v27, %v689_v27  ;;  %v907_v1 = vsel %vm8847_vm8, %v899_v56, %v906_v49  ;;  %v1173_v3 = vsel %vm8854_vm9, %v908_v50, %v1172_v23  ;;  %v935_v9 = vshrl.u32 %v7998_v62, 16  ;;  %v1186_v23 = vld [vmem:[#allocation2 + $0x68] sm:$0x1] }
 0x10e   : > { %v890_v40 = vsel %vm8847_vm8, %v882_v59, %v889_v53  ;;  %v1166_v54 = vsel %vm8854_vm9, %v891_v55, %v1165_v35  ;;  %1171 = vst.msk [vmem:[#allocation2 + $0x4c] sm:$0xf] %vm280_vm1, %v907_v1  ;;  %1174 = vst [vmem:[#allocation2 + $0x50] sm:$0x1] %v1173_v3  ;;  %v932_v56 = vor.u32 %v930_v43, %v929_v57  ;;  %v933_v39 = vrot.slane %v929_v57, 4 }
 0x10f   : > { %1164 = vst.msk [vmem:[#allocation2 + $0x40] sm:$0xf] %vm280_vm1, %v890_v40  ;;  %1167 = vst [vmem:[#allocation2 + $0x44] sm:$0x1] %v1166_v54  ;;  %v915_v61 = vor.u32 %v913_v47, %v8968_v60  ;;  %v916_v59 = vrot.slane %v8968_v60, 4  ;;  %v938_v10 = vshll.u32 %v7998_v62, 16  ;;  %v622_v25 = vadd.f32 %v8084_v19, %v8822_v22  ;;  %2554 = vmatpush1.bf16.msra.mxu1 %v8219_v17 }
 0x110   : > { %v918_v12 = vshrl.u32 %v7996_v63, 16  ;;  %v921_v15 = vshll.u32 %v7996_v63, 16  ;;  %v8989_v16 = vpop.f32.mrb[20].mxu0  ;;  %v1183_v18 = vsel %vm8840_vm7, %v932_v56, %v1182_v5  ;;  %v2296_v24 = vrot.slane %v7473_v36, 1  ;;  %v1832_v35 = vld [vmem:[#allocation2 + $0xc] sm:$0xf]  ;;  %2555 = vmatprep.subr.bf16.mxu1 %v11284_v2 }
 0x111   : > { %v1176_v20 = vsel %vm8840_vm7, %v915_v61, %v1175_v6  ;;  %v8999_v26 = vpop.f32.mrb[21].mxu0  ;;  %1184 = vst [vmem:[#allocation2 + $0x60] sm:$0xf] %v1183_v18  ;;  %v937_v27 = vrot.slane %v935_v9, 7  ;;  %v614_v32 = vadd.f32 %v8822_v22, %v613_v31  ;;  %v625_v34 = vadd.f32 %v8085_v41, %v8822_v22  ;;  %v1179_v43 = vld [vmem:[#allocation2 + $0x5c] sm:$0x1] }
 0x112   : > { %1177 = vst [vmem:[#allocation2 + $0x54] sm:$0xf] %v1176_v20  ;;  %v920_v30 = vrot.slane %v918_v12, 7  ;;  %v9004_v42 = vpop.f32.mrb[22].mxu0  ;;  %v2298_v36 = vsel %vm1710_vm10, %v2296_v24, %v2297_v37  ;;  %v694_v46 = vmax.f32 %v622_v25, 0.0  ;;  %v9008_v19 = vcombine.low %v1832_v35, %v8957_v13  ;;  %v8224_v56 = vld [vmem:[%s11279_s3 + $0xa8] sm:$0xff]  }
 0x113   : > { %v2032_v47 = vshll.u32 %v8953_v7, 16  ;;  %v9011_v49 = vpop.f32.mrb[23].mxu0  ;;  %v940_v50 = vor.u32 %v938_v10, %v937_v27  ;;  %v942_v53 = vrot.slane %v937_v27, 4  ;;  %7525 = vmatprep.mubr.msk.bf16.mxu1 %vm1759_vm11, %v2298_v36  ;;  %v692_v57 = vmax.f32 %v614_v32, 0.0  ;;  %v1835_v62 = vld [vmem:[#allocation2 + $0x1c] sm:$0xf]  ;;  %2556 = vmatpush1.bf16.msra.mxu1 %v8224_v56 }
 0x114   : > { %v923_v31 = vor.u32 %v921_v15, %v920_v30  ;;  %v925_v55 = vrot.slane %v920_v30, 4  ;;  %v8001_v41 = vpack.c.bf16 %v694_v46, %v694_v46  ;;  %v695_v60 = vmax.f32 %v625_v34, 0.0  ;;  %v1834_v3 = vld [vmem:[#allocation2 + $0x18] sm:$0xf]  ;;  %v1189_v20 = vld [vmem:[#allocation2 + $0x6c] sm:$0xf]  ;;  %2557 = vmatprep.subr.bf16.mxu1 %v11284_v2 }
 0x115   : > { %v2025_v37 = vshrl.u32 %v9008_v19, 16  ;;  %v941_v7 = vsel %vm8847_vm8, %v933_v39, %v940_v50  ;;  %v1187_v13 = vsel %vm8854_vm9, %v942_v53, %v1186_v23  ;;  %v7999_v5 = vpack.c.bf16 %v692_v57, %v692_v57  ;;  %v1196_v12 = vld [vmem:[#allocation2 + $0x78] sm:$0xf]  ;;  %v1200_v35 = vld [vmem:[#allocation2 + $0x80] sm:$0x1]  ;;  %v8229_v53 = vld [vmem:[%s11279_s3 + $0xb0] sm:$0xff]  }
 0x116   : > { %v924_v63 = vsel %vm8847_vm8, %v916_v59, %v923_v31  ;;  %v1180_v1 = vsel %vm8854_vm9, %v925_v55, %v1179_v43  ;;  %1185 = vst.msk [vmem:[#allocation2 + $0x64] sm:$0xf] %vm280_vm1, %v941_v7  ;;  %1188 = vst [vmem:[#allocation2 + $0x68] sm:$0x1] %v1187_v13  ;;  %v961_v40 = vshrl.u32 %v8001_v41, 16  ;;  %v964_v54 = vshll.u32 %v8001_v41, 16 }
 0x117   : > { %1178 = vst.msk [vmem:[#allocation2 + $0x58] sm:$0xf] %vm280_vm1, %v924_v63  ;;  %1181 = vst [vmem:[#allocation2 + $0x5c] sm:$0x1] %v1180_v1  ;;  %v8002_v6 = vpack.c.bf16 %v695_v60, %v695_v60  ;;  %v2027_v39 = vshll.u32 %v9008_v19, 16  ;;  %v2034_v61 = vrot.slane %v2032_v47, 1  ;;  %v617_v59 = vadd.f32 %v8822_v22, %v8965_v48  ;;  %2558 = vmatpush1.bf16.msra.mxu1 %v8229_v53 }
 0x118   : > { %v9032_v9 = vcombine.low %v1834_v3, %v1835_v62  ;;  %v963_v10 = vrot.slane %v961_v40, 7  ;;  %v944_v15 = vshrl.u32 %v7999_v5, 16  ;;  %v947_v17 = vshll.u32 %v7999_v5, 16  ;;  %v1836_v50 = vld [vmem:[#allocation2 + $0x24] sm:$0xf]  ;;  %v8232_v1 = vld [vmem:[%s11279_s3 + $0xb8] sm:$0xff]   ;;  %2559 = vmatprep.subr.bf16.mxu1 %v11284_v2 }
 0x119   : > { %v969_v18 = vshrl.u32 %v8002_v6, 16  ;;  %v972_v23 = vshll.u32 %v8002_v6, 16  ;;  %v2029_v24 = vrot.slane %v2027_v39, 1  ;;  %v693_v25 = vmax.f32 %v617_v59, 0.0  ;;  %v1837_v63 = vld [vmem:[#allocation2 + $0x28] sm:$0xf] }
 0x11a   : > { %v2037_v27 = vshrl.u32 %v9032_v9, 16  ;;  %v966_v30 = vor.u32 %v964_v54, %v963_v10  ;;  %v967_v32 = vrot.slane %v963_v10, 4  ;;  %v946_v34 = vrot.slane %v944_v15, 7  ;;  %v8134_v60 = vld [vmem:[#allocation2 + $0x2c] ss:$0 sps:$4 sm:$0x11]  }
 0x11b   : > { %v971_v48 = vrot.slane %v969_v18, 7  ;;  %v2030_v43 = vor.u32 %v2029_v24, %v2025_v37  ;;  %v8000_v36 = vpack.c.bf16 %v693_v25, %v693_v25  ;;  %v2039_v46 = vshll.u32 %v9032_v9, 16  ;;  %2560 = vmatpush1.bf16.msra.mxu1 %v8232_v1 }
 0x11c   : > { %v2044_v47 = vshll.u32 %v8132_v38, 16  ;;  %v1197_v31 = vsel %vm8840_vm7, %v966_v30, %v1196_v12  ;;  %v949_v55 = vor.u32 %v947_v17, %v946_v34  ;;  %v950_v41 = vrot.slane %v946_v34, 4  ;;  %3685 = vmatprep.subr.bf16.mxu1 %v11284_v2 }
 0x11d   : > { %v974_v57 = vor.u32 %v972_v23, %v971_v48  ;;  %1198 = vst [vmem:[#allocation2 + $0x78] sm:$0xf] %v1197_v31  ;;  %v976_v62 = vrot.slane %v971_v48, 4  ;;  %v2035_v37 = vsel %vm1437_vm12, %v2030_v43, %v2034_v61  ;;  %v952_v7 = vshrl.u32 %v8000_v36, 16  ;;  %v1193_v61 = vld [vmem:[#allocation2 + $0x74] sm:$0x1] }
 0x11e   : > { %v955_v13 = vshll.u32 %v8000_v36, 16  ;;  %v1190_v3 = vsel %vm8840_vm7, %v949_v55, %v1189_v20  ;;  %2216 = vrot.lane.b32.xlu0 %v2035_v37, %s8605_s15  ;;  %v2041_v54 = vrot.slane %v2039_v46, 1  ;;  %v2046_v5 = vrot.slane %v2044_v47, 1  ;;  %v8237_v46 = vld [vmem:[%s11279_s3 + $0x8] sm:$0xff]  }
 0x11f   : > { %v975_v40 = vsel %vm8847_vm8, %v967_v32, %v974_v57  ;;  %1191 = vst [vmem:[#allocation2 + $0x6c] sm:$0xf] %v1190_v3  ;;  %v1201_v6 = vsel %vm8854_vm9, %v976_v62, %v1200_v35  ;;  %v954_v38 = vrot.slane %v952_v7, 7  ;;  %v638_v56 = vadd.f32 %v8989_v16, %v8822_v22 }
 0x120   : > { %1199 = vst.msk [vmem:[#allocation2 + $0x7c] sm:$0xf] %vm280_vm1, %v975_v40  ;;  %v630_v39 = vadd.f32 %v8822_v22, %v8999_v26  ;;  %1202 = vst [vmem:[#allocation2 + $0x80] sm:$0x1] %v1201_v6  ;;  %v2042_v59 = vor.u32 %v2041_v54, %v2037_v27  ;;  %v641_v10 = vadd.f32 %v9004_v42, %v8822_v22  ;;  %v2056_v15 = vshll.u32 %v8134_v60, 16  ;;  %v8236_v42 = vld [vmem:[%s11279_s3] sm:$0xff]  }
 0x121   : > { %v9061_v12 = vcombine.low %v1836_v50, %v1837_v63  ;;  %v957_v17 = vor.u32 %v955_v13, %v954_v38  ;;  %v959_v18 = vrot.slane %v954_v38, 4  ;;  %v698_v20 = vmax.f32 %v638_v56, 0.0  ;;  %2819 = vmatpush1.bf16.msra.mxu0 %v8236_v42  ;;  %v1210_v13 = vld [vmem:[#allocation2 + $0x90] sm:$0xf]  ;;  %v1203_v63 = vld [vmem:[#allocation2 + $0x84] sm:$0xf] }
 0x122   : > { %v696_v23 = vmax.f32 %v630_v39, 0.0  ;;  %v2047_v24 = vsel %vm1437_vm12, %v2042_v59, %v2046_v5  ;;  %v699_v16 = vmax.f32 %v641_v10, 0.0  ;;  %v2058_v43 = vrot.slane %v2056_v15, 1  ;;  %2820 = vmatprep.subr.bf16.mxu0 %v11284_v2  ;;  %v1214_v39 = vld [vmem:[#allocation2 + $0x98] sm:$0x1] }
 0x123   : > { %v2049_v25 = vshrl.u32 %v9061_v12, 16  ;;  %v2051_v26 = vshll.u32 %v9061_v12, 16  ;;  %v958_v27 = vsel %vm8847_vm8, %v950_v41, %v957_v17  ;;  %v1194_v30 = vsel %vm8854_vm9, %v959_v18, %v1193_v61  ;;  %2218 = vrot.lane.b32.xlu0 %v2047_v24, %s8605_s15  ;;  %v1839_v15 = vld [vmem:[#allocation2 + $0x34] sm:$0xf] }
 0x124   : > { %v8005_v32 = vpack.c.bf16 %v698_v20, %v698_v20  ;;  %v8003_v34 = vpack.c.bf16 %v696_v23, %v696_v23  ;;  %1192 = vst.msk [vmem:[#allocation2 + $0x70] sm:$0xf] %vm280_vm1, %v958_v27  ;;  %1195 = vst [vmem:[#allocation2 + $0x74] sm:$0x1] %v1194_v30  ;;  %v8006_v48 = vpack.c.bf16 %v699_v16, %v699_v16  ;;  %v702_v7 = vmax.f32 %v8892_v51, 0.0 }
 0x125   : > { %v2053_v35 = vrot.slane %v2051_v26, 1  ;;  %v633_v36 = vadd.f32 %v8822_v22, %v9011_v49  ;;  %v700_v49 = vmax.f32 %v8895_v52, 0.0  ;;  %v657_v54 = vadd.f32 %v8865_v28, %v8822_v22  ;;  %2821 = vmatpush1.bf16.msra.mxu0 %v8237_v46  ;;  %v1838_v51 = vld [vmem:[#allocation2 + $0x30] sm:$0xf]  ;;  %v1207_v26 = vld [vmem:[#allocation2 + $0x8c] sm:$0x1] }
 0x126   : > { %v995_v47 = vshrl.u32 %v8005_v32, 16  ;;  %v998_v50 = vshll.u32 %v8005_v32, 16  ;;  %v978_v53 = vshrl.u32 %v8003_v34, 16  ;;  %v981_v31 = vshll.u32 %v8003_v34, 16  ;;  %2822 = vmatprep.subr.bf16.mxu0 %v11284_v2 }
 0x127   : > { %v1003_v55 = vshrl.u32 %v8006_v48, 16  ;;  %v1006_v41 = vshll.u32 %v8006_v48, 16  ;;  %v2054_v57 = vor.u32 %v2053_v35, %v2049_v25  ;;  %v697_v60 = vmax.f32 %v633_v36, 0.0  ;;  %v8136_v23 = vld [vmem:[#allocation2 + $0x38] ss:$0 sps:$4 sm:$0x11]  }
 0x128   : > { %v997_v62 = vrot.slane %v995_v47, 7  ;;  %v980_v37 = vrot.slane %v978_v53, 7  ;;  %v8009_v18 = vpack.c.bf16 %v702_v7, %v702_v7  ;;  %v8007_v20 = vpack.c.bf16 %v700_v49, %v700_v49  ;;  %v1224_v47 = vld [vmem:[#allocation2 + $0xa8] sm:$0xf] }
 0x129   : > { %v1005_v1 = vrot.slane %v1003_v55, 7  ;;  %v2059_v3 = vsel %vm1437_vm12, %v2054_v57, %v2058_v43  ;;  %v8004_v40 = vpack.c.bf16 %v697_v60, %v697_v60  ;;  %v703_v42 = vmax.f32 %v657_v54, 0.0  ;;  %v8239_v55 = vld [vmem:[%s11279_s3 + $0x10] sm:$0xff]   ;;  %v1217_v60 = vld [vmem:[#allocation2 + $0x9c] sm:$0xf] }
 0x12a   : > { %v1000_v5 = vor.u32 %v998_v50, %v997_v62  ;;  %v1001_v6 = vrot.slane %v997_v62, 4  ;;  %v983_v38 = vor.u32 %v981_v31, %v980_v37  ;;  %v984_v56 = vrot.slane %v980_v37, 4  ;;  %2220 = vrot.lane.b32.xlu1 %v2059_v3, %s8605_s15  ;;  %2823 = vmatpush1.bf16.msra.mxu0 %v8239_v55 }
 0x12b   : > { %v1008_v52 = vor.u32 %v1006_v41, %v1005_v1  ;;  %v1010_v61 = vrot.slane %v1005_v1, 4  ;;  %v986_v59 = vshrl.u32 %v8004_v40, 16  ;;  %v989_v10 = vshll.u32 %v8004_v40, 16  ;;  %2824 = vmatprep.subr.bf16.mxu0 %v11284_v2 }
 0x12c   : > { %v1211_v17 = vsel %vm8840_vm7, %v1000_v5, %v1210_v13  ;;  %v1204_v28 = vsel %vm8840_vm7, %v983_v38, %v1203_v63  ;;  %v1029_v27 = vshrl.u32 %v8009_v18, 16  ;;  %v1032_v30 = vshll.u32 %v8009_v18, 16  ;;  %v1842_v63 = vld [vmem:[#allocation2 + $0x48] sm:$0xf]  ;;  %v1843_v5 = vld [vmem:[#allocation2 + $0x4c] sm:$0xf] }
 0x12d   : > { %1212 = vst [vmem:[#allocation2 + $0x90] sm:$0xf] %v1211_v17  ;;  %1205 = vst [vmem:[#allocation2 + $0x84] sm:$0xf] %v1204_v28  ;;  %v1009_v24 = vsel %vm8847_vm8, %v1001_v6, %v1008_v52  ;;  %v1215_v16 = vsel %vm8854_vm9, %v1010_v61, %v1214_v39  ;;  %v988_v25 = vrot.slane %v986_v59, 7  ;;  %v1012_v32 = vshrl.u32 %v8007_v20, 16 }
 0x12e   : > { %1213 = vst.msk [vmem:[#allocation2 + $0x94] sm:$0xf] %vm280_vm1, %v1009_v24  ;;  %1216 = vst [vmem:[#allocation2 + $0x98] sm:$0x1] %v1215_v16  ;;  %v1015_v34 = vshll.u32 %v8007_v20, 16  ;;  %v8010_v43 = vpack.c.bf16 %v703_v42, %v703_v42  ;;  %v9098_v36 = vcombine.low %v1838_v51, %v1839_v15  ;;  %v1031_v46 = vrot.slane %v1029_v27, 7 }
 0x12f   : > { %v991_v48 = vor.u32 %v989_v10, %v988_v25  ;;  %v993_v35 = vrot.slane %v988_v25, 4  ;;  %v9100_v50 = vrot.slane %v1012_v32, 7  ;;  %v2068_v53 = vshll.u32 %v8136_v23, 16  ;;  %v8138_v16 = vld [vmem:[#allocation2 + $0x50] ss:$0 sps:$4 sm:$0x11]  }
 0x130   : > { %v649_v31 = vadd.f32 %v8822_v22, %v8871_v33  ;;  %v1037_v62 = vshrl.u32 %v8010_v43, 16  ;;  %v1040_v37 = vshll.u32 %v8010_v43, 16  ;;  %v1034_v7 = vor.u32 %v1032_v30, %v1031_v46 }
 0x131   : > { %v992_v41 = vsel %vm8847_vm8, %v984_v56, %v991_v48  ;;  %v1208_v57 = vsel %vm8854_vm9, %v993_v35, %v1207_v26  ;;  %v1035_v49 = vrot.slane %v1031_v46, 4  ;;  %v1017_v33 = vor.u32 %v1015_v34, %v9100_v50  ;;  %v1228_v56 = vld [vmem:[#allocation2 + $0xb0] sm:$0x1]  ;;  %v8140_v46 = vld [vmem:[#allocation2 + $0x44] ss:$0 sps:$4 sm:$0x11]  }
 0x132   : > { %1206 = vst.msk [vmem:[#allocation2 + $0x88] sm:$0xf] %vm280_vm1, %v992_v41  ;;  %1209 = vst [vmem:[#allocation2 + $0x8c] sm:$0x1] %v1208_v57  ;;  %v1018_v13 = vrot.slane %v9100_v50, 4  ;;  %v1039_v1 = vrot.slane %v1037_v62, 7  ;;  %v1225_v6 = vsel %vm8840_vm7, %v1034_v7, %v1224_v47  ;;  %v670_v51 = vadd.f32 %v8902_v0, %v8822_v22 }
 0x133   : > { %v2061_v3 = vshrl.u32 %v9098_v36, 16  ;;  %v2063_v40 = vshll.u32 %v9098_v36, 16  ;;  %v2070_v54 = vrot.slane %v2068_v53, 1  ;;  %v1218_v38 = vsel %vm8840_vm7, %v1017_v33, %v1217_v60  ;;  %1226 = vst [vmem:[#allocation2 + $0xa8] sm:$0xf] %v1225_v6 }
 0x134   : > { %v701_v39 = vmax.f32 %v649_v31, 0.0  ;;  %1219 = vst [vmem:[#allocation2 + $0x9c] sm:$0xf] %v1218_v38  ;;  %v1042_v52 = vor.u32 %v1040_v37, %v1039_v1  ;;  %v1044_v61 = vrot.slane %v1039_v1, 4  ;;  %v662_v10 = vadd.f32 %v8822_v22, %v8910_v8  ;;  %v1238_v47 = vld [vmem:[#allocation2 + $0xc0] sm:$0xf] }
 0x135   : > { %v2065_v59 = vrot.slane %v2063_v40, 1  ;;  %v706_v17 = vmax.f32 %v670_v51, 0.0  ;;  %v673_v28 = vadd.f32 %v8915_v14, %v8822_v22  ;;  %v9127_v18 = vcombine.low %v1842_v63, %v1843_v5  ;;  %v1221_v14 = vld [vmem:[#allocation2 + $0xa4] sm:$0x1]  ;;  %v1840_v57 = vld [vmem:[#allocation2 + $0x3c] sm:$0xf] }
 0x136   : > { %v8008_v15 = vpack.c.bf16 %v701_v39, %v701_v39  ;;  %v1043_v20 = vsel %vm8847_vm8, %v1035_v49, %v1042_v52  ;;  %v1229_v0 = vsel %vm8854_vm9, %v1044_v61, %v1228_v56  ;;  %v704_v24 = vmax.f32 %v662_v10, 0.0  ;;  %v1841_v60 = vld [vmem:[#allocation2 + $0x40] sm:$0xf]  ;;  %v1231_v49 = vld [vmem:[#allocation2 + $0xb4] sm:$0xf]  ;;  %v8240_v1 = vld [vmem:[%s11279_s3 + $0x18] sm:$0xff]  }
 0x137   : > { %v2066_v23 = vor.u32 %v2065_v59, %v2061_v3  ;;  %1227 = vst.msk [vmem:[#allocation2 + $0xac] sm:$0xf] %vm280_vm1, %v1043_v20  ;;  %1230 = vst [vmem:[#allocation2 + $0xb0] sm:$0x1] %v1229_v0  ;;  %v8013_v26 = vpack.c.bf16 %v706_v17, %v706_v17  ;;  %v707_v42 = vmax.f32 %v673_v28, 0.0  ;;  %v2085_v30 = vshrl.u32 %v9127_v18, 16  ;;  %2825 = vmatpush1.bf16.msra.mxu0 %v8240_v1 }
 0x138   : > { %v1020_v8 = vshrl.u32 %v8008_v15, 16  ;;  %v1023_v25 = vshll.u32 %v8008_v15, 16  ;;  %v8011_v27 = vpack.c.bf16 %v704_v24, %v704_v24  ;;  %v2087_v32 = vshll.u32 %v9127_v18, 16  ;;  %v1846_v63 = vld [vmem:[#allocation2 + $0x60] sm:$0xf]  ;;  %2826 = vmatprep.subr.bf16.mxu0 %v11284_v2 }
 0x139   : > { %v2071_v22 = vsel %vm1437_vm12, %v2066_v23, %v2070_v54  ;;  %v1063_v48 = vshrl.u32 %v8013_v26, 16  ;;  %v1066_v35 = vshll.u32 %v8013_v26, 16  ;;  %v8014_v43 = vpack.c.bf16 %v707_v42, %v707_v42  ;;  %v1847_v6 = vld [vmem:[#allocation2 + $0x64] sm:$0xf]  ;;  %v1242_v52 = vld [vmem:[#allocation2 + $0xc8] sm:$0x1] }
 0x13a   : > { %2222 = vrot.lane.b32.xlu1 %v2071_v22, %s8605_s15  ;;  %v1022_v34 = vrot.slane %v1020_v8, 7  ;;  %v1046_v53 = vshrl.u32 %v8011_v27, 16  ;;  %v1049_v31 = vshll.u32 %v8011_v27, 16  ;;  %v2089_v55 = vrot.slane %v2087_v32, 1  ;;  %v8241_v59 = vld [vmem:[%s11279_s3 + $0x20] sm:$0xff]  }
 0x13b   : > { %v2092_v41 = vshll.u32 %v8138_v16, 16  ;;  %v1065_v7 = vrot.slane %v1063_v48, 7  ;;  %v1071_v33 = vshrl.u32 %v8014_v43, 16  ;;  %v1074_v40 = vshll.u32 %v8014_v43, 16  ;;  %v1844_v17 = vld [vmem:[#allocation2 + $0x54] sm:$0xf]  ;;  %2827 = vmatpush1.bf16.msra.mxu0 %v8241_v59 }
 0x13c   : > { %v1025_v62 = vor.u32 %v1023_v25, %v1022_v34  ;;  %v1027_v37 = vrot.slane %v1022_v34, 4  ;;  %v9141_v3 = vrot.slane %v1046_v53, 7  ;;  %v2090_v54 = vor.u32 %v2089_v55, %v2085_v30  ;;  %v8142_v61 = vld [vmem:[#allocation2 + $0x68] ss:$0 sps:$4 sm:$0x11]   ;;  %2828 = vmatprep.subr.bf16.mxu0 %v11284_v2  ;;  %v8244_v59 = vld [vmem:[%s11279_s3 + $0x30] sm:$0xff]  }
 0x13d   : > { %v2094_v5 = vrot.slane %v2092_v41, 1  ;;  %v1068_v39 = vor.u32 %v1066_v35, %v1065_v7  ;;  %v1069_v51 = vrot.slane %v1065_v7, 4  ;;  %v1845_v28 = vld [vmem:[#allocation2 + $0x58] sm:$0xf]  ;;  %v9160_v0 = vcombine.low %v1840_v57, %v1841_v60  ;;  %v8473_v24 = vld [vmem:[%s11278_s2] ss:$0 sm:$0xff] }
 0x13e   : > { %v1026_v38 = vsel %vm8847_vm8, %v1018_v13, %v1025_v62  ;;  %v1222_v56 = vsel %vm8854_vm9, %v1027_v37, %v1221_v14  ;;  %v1051_v50 = vor.u32 %v1049_v31, %v9141_v3  ;;  %v1052_v10 = vrot.slane %v9141_v3, 4  ;;  %v8144_v8 = vld [vmem:[#allocation2 + $0x5c] ss:$0 sps:$4 sm:$0x11]   ;;  %v1850_v25 = vld [vmem:[#allocation2 + $0x78] sm:$0xf] }
 0x13f   : > { %1220 = vst.msk [vmem:[#allocation2 + $0xa0] sm:$0xf] %vm280_vm1, %v1026_v38  ;;  %1223 = vst [vmem:[#allocation2 + $0xa4] sm:$0x1] %v1222_v56  ;;  %v1073_v13 = vrot.slane %v1071_v33, 7  ;;  %v2095_v15 = vsel %vm1437_vm12, %v2090_v54, %v2094_v5  ;;  %v1239_v20 = vsel %vm8840_vm7, %v1068_v39, %v1238_v47  ;;  %v2080_v23 = vshll.u32 %v8140_v46, 16 }
 0x140   : > { %2226 = vrot.lane.b32.xlu1 %v2095_v15, %s8605_s15  ;;  %v665_v16 = vadd.f32 %v8473_v24, %v8918_v29  ;;  %1240 = vst [vmem:[#allocation2 + $0xc0] sm:$0xf] %v1239_v20  ;;  %v1232_v26 = vsel %vm8840_vm7, %v1051_v50, %v1231_v49  ;;  %v9168_v14 = vcombine.low %v1846_v63, %v1847_v6  ;;  %v8146_v27 = vld [vmem:[#allocation2 + $0x80] ss:$0 sps:$4 sm:$0x11]   ;;  %v2073_v30 = vshrl.u32 %v9160_v0, 16 }
 0x141   : > { %v1076_v42 = vor.u32 %v1074_v40, %v1073_v13  ;;  %v1078_v22 = vrot.slane %v1073_v13, 4  ;;  %1233 = vst [vmem:[#allocation2 + $0xb4] sm:$0xf] %v1232_v26  ;;  %v2075_v32 = vshll.u32 %v9160_v0, 16  ;;  %v2082_v34 = vrot.slane %v2080_v23, 1  ;;  %v8243_v63 = vld [vmem:[%s11279_s3 + $0x28] sm:$0xff]  }
 0x142   : > { %v705_v48 = vmax.f32 %v665_v16, 0.0  ;;  %v1851_v35 = vld [vmem:[#allocation2 + $0x7c] sm:$0xf]  ;;  %v2109_v46 = vshrl.u32 %v9168_v14, 16  ;;  %v2111_v47 = vshll.u32 %v9168_v14, 16  ;;  %v2116_v55 = vshll.u32 %v8142_v61, 16  ;;  %2829 = vmatpush1.bf16.msra.mxu0 %v8243_v63 }
 0x143   : > { %v1077_v29 = vsel %vm8847_vm8, %v1069_v51, %v1076_v42  ;;  %v1243_v43 = vsel %vm8854_vm9, %v1078_v22, %v1242_v52  ;;  %v2077_v53 = vrot.slane %v2075_v32, 1  ;;  %v9180_v41 = vcombine.low %v1844_v17, %v1845_v28  ;;  %v1848_v57 = vld [vmem:[#allocation2 + $0x6c] sm:$0xf]  ;;  %v8148_v60 = vld [vmem:[#allocation2 + $0x74] ss:$0 sps:$4 sm:$0x11]   ;;  %2830 = vmatprep.subr.bf16.mxu0 %v11284_v2 }
 0x144   : > { %1241 = vst.msk [vmem:[#allocation2 + $0xc4] sm:$0xf] %vm280_vm1, %v1077_v29  ;;  %1244 = vst [vmem:[#allocation2 + $0xc8] sm:$0x1] %v1243_v43  ;;  %v8012_v31 = vpack.c.bf16 %v705_v48, %v705_v48  ;;  %v2113_v62 = vrot.slane %v2111_v47, 1  ;;  %v2104_v37 = vshll.u32 %v8144_v8, 16  ;;  %v9182_v7 = vcombine.low %v1850_v25, %v1851_v35 }
 0x145   : > { %v2140_v49 = vshll.u32 %v8146_v27, 16  ;;  %v1849_v33 = vld [vmem:[#allocation2 + $0x70] sm:$0xf]  ;;  %v2078_v1 = vor.u32 %v2077_v53, %v2073_v30  ;;  %v2118_v5 = vrot.slane %v2116_v55, 1  ;;  %v1855_v38 = vld [vmem:[#allocation2 + $0x94] sm:$0xf] }
 0x146   : > { %v1054_v40 = vshrl.u32 %v8012_v31, 16  ;;  %v1057_v54 = vshll.u32 %v8012_v31, 16  ;;  %v1854_v6 = vld [vmem:[#allocation2 + $0x90] sm:$0xf]  ;;  %v1235_v56 = vld [vmem:[#allocation2 + $0xbc] sm:$0x1]  ;;  %v2114_v39 = vor.u32 %v2113_v62, %v2109_v46  ;;  %v9198_v16 = vcombine.low %v1848_v57, %v1849_v33  ;;  %2831 = vmatpush1.bf16.msra.mxu0 %v8244_v59 }
 0x147   : > { %v2097_v51 = vshrl.u32 %v9180_v41, 16  ;;  %v2099_v52 = vshll.u32 %v9180_v41, 16  ;;  %v2106_v61 = vrot.slane %v2104_v37, 1  ;;  %v2083_v50 = vsel %vm1437_vm12, %v2078_v1, %v2082_v34  ;;  %v8150_v28 = vld [vmem:[#allocation2 + $0x98] ss:$0 sps:$4 sm:$0x11]   ;;  %2832 = vmatprep.subr.bf16.mxu0 %v11284_v2 }
 0x148   : > { %v1056_v13 = vrot.slane %v1054_v40, 7  ;;  %v2133_v15 = vshrl.u32 %v9182_v7, 16  ;;  %v2135_v17 = vshll.u32 %v9182_v7, 16  ;;  %2224 = vrot.lane.b32.xlu0 %v2083_v50, %s8605_s15  ;;  %v2119_v20 = vsel %vm1437_vm12, %v2114_v39, %v2118_v5  ;;  %v1852_v8 = vld [vmem:[#allocation2 + $0x84] sm:$0xf]  ;;  %v8246_v46 = vld [vmem:[%s11279_s3 + $0x38] sm:$0xff]  }
 0x149   : > { %v2101_v23 = vrot.slane %v2099_v52, 1  ;;  %v2142_v24 = vrot.slane %v2140_v49, 1  ;;  %v1853_v25 = vld [vmem:[#allocation2 + $0x88] sm:$0xf]  ;;  %2230 = vrot.lane.b32.xlu1 %v2119_v20, %s8605_s15  ;;  %v2128_v30 = vshll.u32 %v8148_v60, 16  ;;  %v2121_v35 = vshrl.u32 %v9198_v16, 16 }
 0x14a   : > { %v8152_v26 = vld [vmem:[#allocation2 + $0x8c] ss:$0 sps:$4 sm:$0x11]   ;;  %v1059_v42 = vor.u32 %v1057_v54, %v1056_v13  ;;  %v1061_v22 = vrot.slane %v1056_v13, 4  ;;  %v2137_v27 = vrot.slane %v2135_v17, 1  ;;  %v2123_v29 = vshll.u32 %v9198_v16, 16  ;;  %2833 = vmatpush1.bf16.msra.mxu0 %v8246_v46 }
 0x14b   : > { %v1858_v32 = vld [vmem:[#allocation2 + $0xa8] sm:$0xf]  ;;  %v8154_v34 = vld [vmem:[#allocation2 + $0xb0] ss:$0 sps:$4 sm:$0x11]   ;;  %v2102_v48 = vor.u32 %v2101_v23, %v2097_v51  ;;  %v9203_v43 = vcombine.low %v1854_v6, %v1855_v38  ;;  %v2130_v55 = vrot.slane %v2128_v30, 1  ;;  %v9221_v40 = vcombine.low %v1852_v8, %v1853_v25  ;;  %2834 = vmatprep.subr.bf16.mxu0 %v11284_v2 }
 0x14c   : > { %v1060_v47 = vsel %vm8847_vm8, %v1052_v10, %v1059_v42  ;;  %v1236_v53 = vsel %vm8854_vm9, %v1061_v22, %v1235_v56  ;;  %v2138_v31 = vor.u32 %v2137_v27, %v2133_v15  ;;  %v1859_v57 = vld [vmem:[#allocation2 + $0xac] sm:$0xf]  ;;  %v2125_v62 = vrot.slane %v2123_v29, 1  ;;  %v1856_v49 = vld [vmem:[#allocation2 + $0x9c] sm:$0xf] }
 0x14d   : > { %1234 = vst.msk [vmem:[#allocation2 + $0xb8] sm:$0xf] %vm280_vm1, %v1060_v47  ;;  %1237 = vst [vmem:[#allocation2 + $0xbc] sm:$0x1] %v1236_v53  ;;  %v2107_v60 = vsel %vm1437_vm12, %v2102_v48, %v2106_v61  ;;  %v2157_v37 = vshrl.u32 %v9203_v43, 16  ;;  %v2159_v3 = vshll.u32 %v9203_v43, 16  ;;  %v9224_v56 = vcombine.low %v1858_v32, %v1859_v57 }
 0x14e   : > { %v1857_v10 = vld [vmem:[#allocation2 + $0xa0] sm:$0xf]  ;;  %v8156_v33 = vld [vmem:[#allocation2 + $0xa4] ss:$0 sps:$4 sm:$0x11]   ;;  %2228 = vrot.lane.b32.xlu0 %v2107_v60, %s8605_s15  ;;  %v2143_v63 = vsel %vm1437_vm12, %v2138_v31, %v2142_v24  ;;  %v2164_v1 = vshll.u32 %v8150_v28, 16  ;;  %v2126_v6 = vor.u32 %v2125_v62, %v2121_v35  ;;  %v9252_v57 = vsel %vm1437_vm12, %v8830_v44, %v8832_v45 }
 0x14f   : > { %v2152_v54 = vshll.u32 %v8152_v26, 16  ;;  %v8158_v5 = vld [vmem:[#allocation2 + $0xc8] ss:$0 sps:$4 sm:$0x11]   ;;  %2234 = vrot.lane.b32.xlu1 %v2143_v63, %s8605_s15  ;;  %v2161_v38 = vrot.slane %v2159_v3, 1  ;;  %11373 = vst [vmem:[#allocation7_spill] sm:$0xff] %v9224_v56  ;;  %v9236_v26 = vcombine.low %v1856_v49, %v1857_v10 }
 0x150   : > { %v2188_v39 = vshll.u32 %v8154_v34, 16  ;;  %v1862_v51 = vld [vmem:[#allocation2 + $0xc0] sm:$0xf]  ;;  %v2166_v52 = vrot.slane %v2164_v1, 1  ;;  %v2145_v61 = vshrl.u32 %v9221_v40, 16  ;;  %v2147_v59 = vshll.u32 %v9221_v40, 16 }
 0x151   : > { %v2154_v50 = vrot.slane %v2152_v54, 1  ;;  %v1863_v13 = vld [vmem:[#allocation2 + $0xc4] sm:$0xf]  ;;  %v2131_v15 = vsel %vm1437_vm12, %v2126_v6, %v2130_v55  ;;  %v2162_v17 = vor.u32 %v2161_v38, %v2157_v37  ;;  %v2181_v28 = vshrl.u32 %v9224_v56, 16  ;;  %v2981_v23 = vld [vmem:[#allocation2 + $0x1c] sm:$0xf] }
 0x152   : > { %v2183_v20 = vshll.u32 %v9224_v56, 16  ;;  %v8247_v24 = vld [vmem:[%s11279_s3 + $0x40] sm:$0xff]   ;;  %2232 = vrot.lane.b32.xlu0 %v2131_v15, %s8605_s15  ;;  %v2149_v8 = vrot.slane %v2147_v59, 1  ;;  %v2190_v25 = vrot.slane %v2188_v39, 1  ;;  %v2176_v42 = vshll.u32 %v8156_v33, 16  ;;  %v8248_v46 = vld [vmem:[%s11279_s3 + $0x48] sm:$0xff]  }
 0x153   : > { %v2982_v22 = vld [vmem:[#allocation2 + $0x24] sm:$0xf]  ;;  %v2167_v27 = vsel %vm1437_vm12, %v2162_v17, %v2166_v52  ;;  %v9239_v32 = vcombine.low %v1862_v51, %v1863_v13  ;;  %v2212_v34 = vshll.u32 %v8158_v5, 16  ;;  %v1860_v48 = vld [vmem:[#allocation2 + $0xb4] sm:$0xf]  ;;  %2835 = vmatpush1.bf16.msra.mxu0 %v8247_v24  ;;  %v2169_v53 = vshrl.u32 %v9236_v26, 16 }
 0x154   : > { %v2185_v30 = vrot.slane %v2183_v20, 1  ;;  %v2980_v35 = vld [vmem:[#allocation2 + $0x18] sm:$0xf]  ;;  %v9241_v29 = vld [vmem:[#allocation2 + $0x20] ss:$0 sps:$4 sm:$0x11]   ;;  %2238 = vrot.lane.b32.xlu1 %v2167_v27, %s8605_s15  ;;  %v2150_v47 = vor.u32 %v2149_v8, %v2145_v61  ;;  %2836 = vmatprep.subr.bf16.mxu0 %v11284_v2 }
 0x155   : > { %11374 = vst [vmem:[#allocation8_spill] sm:$0xff] %v9239_v32  ;;  %v2171_v31 = vshll.u32 %v9236_v26, 16  ;;  %v1861_v55 = vld [vmem:[#allocation2 + $0xb8] sm:$0xf]  ;;  %v2983_v60 = vld [vmem:[#allocation2 + $0x28] sm:$0xf]  ;;  %v9260_v5 = vcombine.low %v2980_v35, %v2981_v23 }
 0x156   : > { %v2186_v62 = vor.u32 %v2185_v30, %v2181_v28  ;;  %v2178_v37 = vrot.slane %v2176_v42, 1  ;;  %v2205_v3 = vshrl.u32 %v9239_v32, 16  ;;  %v2207_v49 = vshll.u32 %v9239_v32, 16  ;;  %v8166_v10 = vld [vmem:[#allocation2 + $0x2c] ss:$0 sps:$4 sm:$0x11]  }
 0x157   : > { %v2155_v33 = vsel %vm1437_vm12, %v2150_v47, %v2154_v50  ;;  %v2173_v63 = vrot.slane %v2171_v31, 1  ;;  %v9258_v1 = vcombine.low %v1860_v48, %v1861_v55  ;;  %v8160_v54 = vld [vmem:[#allocation2 + $0xbc] ss:$0 sps:$4 sm:$0x11]   ;;  %11376 = vst [vmem:[#allocation10_spill] sm:$0xff] %v9260_v5  ;;  %v2214_v6 = vrot.slane %v2212_v34, 1  ;;  %2837 = vmatpush1.bf16.msra.mxu0 %v8248_v46 }
 0x158   : > { %2236 = vrot.lane.b32.xlu0 %v2155_v33, %s8605_s15  ;;  %v2191_v44 = vsel %vm1437_vm12, %v2186_v62, %v2190_v25  ;;  %v2209_v45 = vrot.slane %v2207_v49, 1  ;;  %v9264_v38 = vcombine.low %v2982_v22, %v2983_v60  ;;  %v1248_v39 = vld [vmem:[#allocation2 + $0x10] sm:$0xf]  ;;  %v2985_v52 = vld [vmem:[#allocation2 + $0x34] sm:$0xf]  ;;  %v2200_v15 = vshll.u32 %v8160_v54, 16  ;;  %2838 = vmatprep.subr.bf16.mxu0 %v11284_v2 }
 0x159   : > { %11375 = vst [vmem:[#allocation9_spill] sm:$0xff] %v9258_v1  ;;  %v2984_v51 = vld [vmem:[#allocation2 + $0x30] sm:$0xf]  ;;  %2242 = vrot.lane.b32.xlu1 %v2191_v44, %s8605_s15  ;;  %v2174_v59 = vor.u32 %v2173_v63, %v2169_v53  ;;  %v2193_v50 = vshrl.u32 %v9258_v1, 16  ;;  %v2195_v13 = vshll.u32 %v9258_v1, 16  ;;  %v3173_v20 = vshrl.u32 %v9260_v5, 16 }
 0x15a   : > { %11377 = vst [vmem:[#allocation11_spill] sm:$0xff] %v9264_v38  ;;  %v8251_v61 = vld [vmem:[%s11279_s3 + $0x50] sm:$0xff]   ;;  %v2210_v28 = vor.u32 %v2209_v45, %v2205_v3  ;;  %v3175_v23 = vshll.u32 %v9260_v5, 16  ;;  %v3180_v24 = vshll.u32 %v9241_v29, 16  ;;  %v1247_v8 = vld [vmem:[#allocation2 + $0xc] sm:$0xf]  ;;  %v9289_v55 = vcombine.low %v2984_v51, %v2985_v52 }
 0x15b   : > { %v9272_v17 = vld [vmem:[#allocation2 + $0x14] ss:$0 sps:$4 sm:$0x11]   ;;  %v8170_v25 = vld [vmem:[#allocation2 + $0x38] ss:$0 sps:$4 sm:$0x11]   ;;  %v2179_v42 = vsel %vm1437_vm12, %v2174_v59, %v2178_v37  ;;  %2839 = vmatpush1.bf16.msra.mxu0 %v8251_v61  ;;  %v9287_v31 = vcombine.low %v1247_v8, %v1248_v39 }
 0x15c   : > { %v2197_v22 = vrot.slane %v2195_v13, 1  ;;  %v2202_v27 = vrot.slane %v2200_v15, 1  ;;  %v3185_v30 = vshrl.u32 %v9264_v38, 16  ;;  %v8172_v34 = vld [vmem:[#allocation2 + $0x20] ss:$0 sps:$4 sm:$0x11]   ;;  %2240 = vrot.lane.b32.xlu0 %v2179_v42, %s8605_s15  ;;  %v2215_v48 = vsel %vm1437_vm12, %v2210_v28, %v2214_v6  ;;  %2840 = vmatprep.subr.bf16.mxu0 %v11284_v2 }
 0x15d   : > { %v3177_v35 = vrot.slane %v3175_v23, 1  ;;  %v3187_v46 = vshll.u32 %v9264_v38, 16  ;;  %v3192_v47 = vshll.u32 %v8166_v10, 16  ;;  %v8252_v29 = vld [vmem:[%s11279_s3 + $0x58] sm:$0xff]   ;;  %2246 = vrot.lane.b32.xlu1 %v2215_v48, %s8605_s15  ;;  %11378 = vst [vmem:[#allocation12_spill] sm:$0xff] %v9289_v55  ;;  %v3182_v49 = vrot.slane %v3180_v24, 1 }
 0x15e   : > { %v2198_v53 = vor.u32 %v2197_v22, %v2193_v50  ;;  %v9291_v60 = vld [vmem:[#allocation2 + $0x1c] sm:$0xf]  ;;  %v2987_v37 = vld [vmem:[#allocation2 + $0x40] sm:$0xf]  ;;  %v1458_v33 = vshll.u32 %v9272_v17, 16  ;;  %v1453_v6 = vshll.u32 %v9287_v31, 16 }
 0x15f   : > { %v2986_v62 = vld [vmem:[#allocation2 + $0x3c] sm:$0xf]  ;;  %v3178_v3 = vor.u32 %v3177_v35, %v3173_v20  ;;  %v3189_v10 = vrot.slane %v3187_v46, 1  ;;  %v1249_v63 = vld [vmem:[#allocation2 + $0x18] sm:$0xf]  ;;  %v3194_v45 = vrot.slane %v3192_v47, 1  ;;  %2841 = vmatpush1.bf16.msra.mxu0 %v8252_v29 }
 0x160   : > { %v8174_v54 = vld [vmem:[#allocation2 + $0x44] ss:$0 sps:$4 sm:$0x11]   ;;  %v2203_v44 = vsel %vm1437_vm12, %v2198_v53, %v2202_v27  ;;  %v3204_v39 = vshll.u32 %v8170_v25, 16  ;;  %v3197_v61 = vshrl.u32 %v9289_v55, 16  ;;  %v3199_v59 = vshll.u32 %v9289_v55, 16  ;;  %5765 = vmatprep.subr.bf16.mxu0 %v11284_v2 }
 0x161   : > { %2244 = vrot.lane.b32.xlu0 %v2203_v44, %s8605_s15  ;;  %v3183_v51 = vsel %vm1437_vm12, %v3178_v3, %v3182_v49  ;;  %v3190_v52 = vor.u32 %v3189_v10, %v3185_v30  ;;  %v1251_v50 = vld [vmem:[#allocation2 + $0x24] sm:$0xf]  ;;  %v9301_v13 = vld [vmem:[#allocation2 + $0x28] sm:$0xf]  ;;  %v1451_v28 = vshrl.u32 %v9287_v31, 16  ;;  %v1455_v20 = vrot.slane %v1453_v6, 1 }
 0x162   : > { %v9303_v15 = vld [vmem:[#allocation2 + $0x2c] ss:$0 sps:$4 sm:$0x11]   ;;  %3364 = vrot.lane.b32.xlu1 %v3183_v51, %s8605_s15  ;;  %v9308_v23 = vcombine.low %v1249_v63, %v9291_v60  ;;  %v1470_v24 = vshll.u32 %v8172_v34, 16  ;;  %v1460_v25 = vrot.slane %v1458_v33, 1  ;;  %v3201_v42 = vrot.slane %v3199_v59, 1 }
 0x163   : > { %v8178_v8 = vld [vmem:[#allocation2 + $0x50] ss:$0 sps:$4 sm:$0x11]   ;;  %v9311_v22 = vcombine.low %v2986_v62, %v2987_v37  ;;  %v3216_v27 = vshll.u32 %v8174_v54, 16  ;;  %v3195_v30 = vsel %vm1437_vm12, %v3190_v52, %v3194_v45  ;;  %v1456_v48 = vor.u32 %v1455_v20, %v1451_v28  ;;  %v2988_v47 = vld [vmem:[#allocation2 + $0x48] sm:$0xf] }
 0x164   : > { %v3206_v35 = vrot.slane %v3204_v39, 1  ;;  %v1465_v46 = vshll.u32 %v9308_v23, 16  ;;  %v2989_v29 = vld [vmem:[#allocation2 + $0x4c] sm:$0xf]  ;;  %v3202_v34 = vor.u32 %v3201_v42, %v3197_v61  ;;  %v1463_v53 = vshrl.u32 %v9308_v23, 16 }
 0x165   : > { %11379 = vst [vmem:[#allocation13_spill] sm:$0xff] %v9311_v22  ;;  %1630 = vrot.lane.b32.xlu0 %v9252_v57, %s8605_s15  ;;  %v3209_v3 = vshrl.u32 %v9311_v22, 16  ;;  %v3211_v62 = vshll.u32 %v9311_v22, 16  ;;  %v1253_v37 = vld [vmem:[#allocation2 + $0x30] sm:$0xf]  ;;  %v1472_v63 = vrot.slane %v1470_v24, 1  ;;  %v9326_v54 = vcombine.low %v1251_v50, %v9301_v13 }
 0x166   : > { %v9320_v49 = vld [vmem:[#allocation2 + $0x34] sm:$0xf]  ;;  %v9322_v10 = vld [vmem:[#allocation2 + $0x38] ss:$0 sps:$4 sm:$0x11]   ;;  %3366 = vrot.lane.b32.xlu1 %v3195_v30, %s8605_s15  ;;  %v1467_v33 = vrot.slane %v1465_v46, 1  ;;  %v9329_v6 = vcombine.low %v2988_v47, %v2989_v29  ;;  %v1461_v52 = vsel %vm1437_vm12, %v1456_v48, %v1460_v25  ;;  %v3207_v50 = vsel %vm1437_vm12, %v3202_v34, %v3206_v35 }
 0x167   : > { %v1482_v57 = vshll.u32 %v9303_v15, 16  ;;  %v3213_v44 = vrot.slane %v3211_v62, 1  ;;  %v3218_v45 = vrot.slane %v3216_v27, 1  ;;  %v3228_v39 = vshll.u32 %v8178_v8, 16  ;;  %v2990_v20 = vld [vmem:[#allocation2 + $0x54] sm:$0xf] }
 0x168   : > { %11380 = vst [vmem:[#allocation14_spill] sm:$0xff] %v9329_v6  ;;  %v8183_v51 = vld [vmem:[#allocation2 + $0x5c] ss:$0 sps:$4 sm:$0x11]   ;;  %v1468_v61 = vor.u32 %v1467_v33, %v1463_v53  ;;  %v1475_v59 = vshrl.u32 %v9326_v54, 16  ;;  %v1477_v28 = vshll.u32 %v9326_v54, 16  ;;  %v9344_v29 = vcombine.low %v1253_v37, %v9320_v49 }
 0x169   : > { %v2991_v24 = vld [vmem:[#allocation2 + $0x58] sm:$0xf]  ;;  %1632 = vrot.lane.b32.xlu0 %v1461_v52, %s8605_s15  ;;  %v3214_v42 = vor.u32 %v3213_v44, %v3209_v3  ;;  %v3221_v27 = vshrl.u32 %v9329_v6, 16  ;;  %v3223_v30 = vshll.u32 %v9329_v6, 16  ;;  %v1255_v8 = vld [vmem:[#allocation2 + $0x3c] sm:$0xf] }
 0x16a   : > { %v9338_v46 = vld [vmem:[#allocation2 + $0x40] sm:$0xf]  ;;  %v9340_v25 = vld [vmem:[#allocation2 + $0x44] ss:$0 sps:$4 sm:$0x11]   ;;  %3368 = vrot.lane.b32.xlu1 %v3207_v50, %s8605_s15  ;;  %v1479_v48 = vrot.slane %v1477_v28, 1  ;;  %v9347_v33 = vcombine.low %v2990_v20, %v2991_v24  ;;  %v1473_v2 = vsel %vm1437_vm12, %v1468_v61, %v1472_v63 }
 0x16b   : > { %v1484_v47 = vrot.slane %v1482_v57, 1  ;;  %v1494_v53 = vshll.u32 %v9322_v10, 16  ;;  %v2992_v35 = vld [vmem:[#allocation2 + $0x60] sm:$0xf]  ;;  %v2993_v34 = vld [vmem:[#allocation2 + $0x64] sm:$0xf]  ;;  %v3219_v37 = vsel %vm1437_vm12, %v3214_v42, %v3218_v45 }
 0x16c   : > { %v3225_v3 = vrot.slane %v3223_v30, 1  ;;  %v3230_v62 = vrot.slane %v3228_v39, 1  ;;  %11381 = vst [vmem:[#allocation15_spill] sm:$0xff] %v9347_v33  ;;  %v3240_v44 = vshll.u32 %v8183_v51, 16  ;;  %v1480_v11 = vor.u32 %v1479_v48, %v1475_v59  ;;  %v1257_v51 = vld [vmem:[#allocation2 + $0x48] sm:$0xf] }
 0x16d   : > { %v8188_v52 = vld [vmem:[#allocation2 + $0x68] ss:$0 sps:$4 sm:$0x11]   ;;  %v1487_v50 = vshrl.u32 %v9344_v29, 16  ;;  %v1489_v57 = vshll.u32 %v9344_v29, 16  ;;  %1634 = vrot.lane.b32.xlu0 %v1473_v2, %s8605_s15  ;;  %v3233_v39 = vshrl.u32 %v9347_v33, 16  ;;  %v9362_v59 = vcombine.low %v1255_v8, %v9338_v46 }
 0x16e   : > { %v9352_v28 = vld [vmem:[#allocation2 + $0x50] ss:$0 sps:$4 sm:$0x11]   ;;  %v3226_v4 = vor.u32 %v3225_v3, %v3221_v27  ;;  %v3235_v20 = vshll.u32 %v9347_v33, 16  ;;  %v9358_v24 = vld [vmem:[#allocation2 + $0x4c] sm:$0xf]  ;;  %3370 = vrot.lane.b32.xlu1 %v3219_v37, %s8605_s15  ;;  %v9365_v42 = vcombine.low %v2992_v35, %v2993_v34  ;;  %v1485_v58 = vsel %vm1437_vm12, %v1480_v11, %v1484_v47 }
 0x16f   : > { %v1491_v63 = vrot.slane %v1489_v57, 1  ;;  %v1496_v61 = vrot.slane %v1494_v53, 1  ;;  %v1506_v30 = vshll.u32 %v9340_v25, 16  ;;  %v2994_v2 = vld [vmem:[#allocation2 + $0x6c] sm:$0xf]  ;;  %v3242_v45 = vrot.slane %v3240_v44, 1 }
 0x170   : > { %v3237_v48 = vrot.slane %v3235_v20, 1  ;;  %11382 = vst [vmem:[#allocation16_spill] sm:$0xff] %v9365_v42  ;;  %v3252_v27 = vshll.u32 %v8188_v52, 16  ;;  %v8193_v3 = vld [vmem:[#allocation2 + $0x74] ss:$0 sps:$4 sm:$0x11]   ;;  %v3231_v8 = vsel %vm1437_vm12, %v3226_v4, %v3230_v62 }
 0x171   : > { %v1492_v33 = vor.u32 %v1491_v63, %v1487_v50  ;;  %v1499_v6 = vshrl.u32 %v9362_v59, 16  ;;  %v1501_v57 = vshll.u32 %v9362_v59, 16  ;;  %v2995_v53 = vld [vmem:[#allocation2 + $0x70] sm:$0xf]  ;;  %1636 = vrot.lane.b32.xlu0 %v1485_v58, %s8605_s15  ;;  %v3245_v20 = vshrl.u32 %v9365_v42, 16 }
 0x172   : > { %v3238_v37 = vor.u32 %v3237_v48, %v3233_v39  ;;  %v3247_v35 = vshll.u32 %v9365_v42, 16  ;;  %v1259_v34 = vld [vmem:[#allocation2 + $0x54] sm:$0xf]  ;;  %v9374_v44 = vld [vmem:[#allocation2 + $0x58] sm:$0xf]  ;;  %3372 = vrot.lane.b32.xlu1 %v3231_v8, %s8605_s15  ;;  %v1508_v47 = vrot.slane %v1506_v30, 1  ;;  %v9380_v50 = vcombine.low %v1257_v51, %v9358_v24 }
 0x173   : > { %v9376_v52 = vld [vmem:[#allocation2 + $0x5c] ss:$0 sps:$4 sm:$0x11]   ;;  %v1503_v11 = vrot.slane %v1501_v57, 1  ;;  %v1518_v58 = vshll.u32 %v9352_v28, 16  ;;  %v3254_v39 = vrot.slane %v3252_v27, 1  ;;  %v9383_v63 = vcombine.low %v2994_v2, %v2995_v53 }
 0x174   : > { %11383 = vst [vmem:[#allocation17_spill] sm:$0xff] %v9380_v50  ;;  %v8198_v4 = vld [vmem:[#allocation2 + $0x80] ss:$0 sps:$4 sm:$0x11]   ;;  %v3249_v62 = vrot.slane %v3247_v35, 1  ;;  %v3264_v48 = vshll.u32 %v8193_v3, 16  ;;  %v1497_v42 = vsel %vm1437_vm12, %v1492_v33, %v1496_v61  ;;  %v3243_v51 = vsel %vm1437_vm12, %v3238_v37, %v3242_v45 }
 0x175   : > { %11384 = vst [vmem:[#allocation18_spill] sm:$0xff] %v9383_v63  ;;  %v1504_v22 = vor.u32 %v1503_v11, %v1499_v6  ;;  %v1511_v55 = vshrl.u32 %v9380_v50, 16  ;;  %v1513_v8 = vshll.u32 %v9380_v50, 16  ;;  %v2996_v57 = vld [vmem:[#allocation2 + $0x78] sm:$0xf]  ;;  %1638 = vrot.lane.b32.xlu0 %v1497_v42, %s8605_s15  ;;  %v3257_v35 = vshrl.u32 %v9383_v63, 16 }
 0x176   : > { %v2997_v30 = vld [vmem:[#allocation2 + $0x7c] sm:$0xf]  ;;  %v3250_v38 = vor.u32 %v3249_v62, %v3245_v20  ;;  %v3259_v2 = vshll.u32 %v9383_v63, 16  ;;  %v1261_v27 = vld [vmem:[#allocation2 + $0x60] sm:$0xf]  ;;  %3374 = vrot.lane.b32.xlu1 %v3243_v51, %s8605_s15  ;;  %v1520_v61 = vrot.slane %v1518_v58, 1  ;;  %v9398_v53 = vcombine.low %v1259_v34, %v9374_v44 }
 0x177   : > { %v9392_v3 = vld [vmem:[#allocation2 + $0x64] sm:$0xf]  ;;  %v9394_v33 = vld [vmem:[#allocation2 + $0x68] ss:$0 sps:$4 sm:$0x11]   ;;  %v1515_v6 = vrot.slane %v1513_v8, 1  ;;  %v9401_v62 = vcombine.low %v2996_v57, %v2997_v30  ;;  %v1509_v32 = vsel %vm1437_vm12, %v1504_v22, %v1508_v47 }
 0x178   : > { %11385 = vst [vmem:[#allocation19_spill] sm:$0xff] %v9394_v33  ;;  %11386 = vst [vmem:[#allocation20_spill] sm:$0xff] %v9398_v53  ;;  %v1530_v42 = vshll.u32 %v9376_v52, 16  ;;  %v2998_v45 = vld [vmem:[#allocation2 + $0x84] sm:$0xf]  ;;  %v3261_v20 = vrot.slane %v3259_v2, 1  ;;  %v3255_v34 = vsel %vm1437_vm12, %v3250_v38, %v3254_v39  ;;  %v9416_v47 = vcombine.low %v1261_v27, %v9392_v3 }
 0x179   : > { %v2999_v37 = vld [vmem:[#allocation2 + $0x88] sm:$0xf]  ;;  %v3266_v11 = vrot.slane %v3264_v48, 1  ;;  %11387 = vst [vmem:[#allocation21_spill] sm:$0xff] %v9401_v62  ;;  %v3276_v63 = vshll.u32 %v8198_v4, 16  ;;  %v1516_v1 = vor.u32 %v1515_v6, %v1511_v55  ;;  %v1523_v51 = vshrl.u32 %v9398_v53, 16  ;;  %1640 = vrot.lane.b32.xlu0 %v1509_v32, %s8605_s15 }
 0x17a   : > { %v8203_v5 = vld [vmem:[#allocation2 + $0x8c] ss:$0 sps:$4 sm:$0x11]   ;;  %v1525_v58 = vshll.u32 %v9398_v53, 16  ;;  %v3262_v50 = vor.u32 %v3261_v20, %v3257_v35  ;;  %v3269_v48 = vshrl.u32 %v9401_v62, 16  ;;  %v3271_v57 = vshll.u32 %v9401_v62, 16  ;;  %3376 = vrot.lane.b32.xlu1 %v3255_v34, %s8605_s15 }
 0x17b   : > { %v9406_v8 = vld [vmem:[#allocation2 + $0x74] ss:$0 sps:$4 sm:$0x11]   ;;  %v1263_v4 = vld [vmem:[#allocation2 + $0x6c] sm:$0xf]  ;;  %v1532_v22 = vrot.slane %v1530_v42, 1  ;;  %v9419_v39 = vcombine.low %v2998_v45, %v2999_v37  ;;  %v1521_v62 = vsel %vm1437_vm12, %v1516_v1, %v1520_v61 }
 0x17c   : > { %11388 = vst [vmem:[#allocation22_spill] sm:$0xff] %v9406_v8  ;;  %v9412_v30 = vld [vmem:[#allocation2 + $0x70] sm:$0xf]  ;;  %v1527_v55 = vrot.slane %v1525_v58, 1  ;;  %11390 = vst [vmem:[#allocation24_spill] sm:$0xff] %v9416_v47  ;;  %v1542_v2 = vshll.u32 %v9394_v33, 16  ;;  %v3267_v27 = vsel %vm1437_vm12, %v3262_v50, %v3266_v11 }
 0x17d   : > { %11389 = vst [vmem:[#allocation23_spill] sm:$0xff] %v9412_v30  ;;  %v3000_v32 = vld [vmem:[#allocation2 + $0x90] sm:$0xf]  ;;  %v3273_v6 = vrot.slane %v3271_v57, 1  ;;  %v3278_v38 = vrot.slane %v3276_v63, 1  ;;  %11391 = vst [vmem:[#allocation25_spill] sm:$0xff] %v9419_v39  ;;  %1642 = vrot.lane.b32.xlu0 %v1521_v62, %s8605_s15 }
 0x17e   : > { %v3288_v35 = vshll.u32 %v8203_v5, 16  ;;  %v8208_v20 = vld [vmem:[#allocation2 + $0x98] ss:$0 sps:$4 sm:$0x11]   ;;  %v1528_v53 = vor.u32 %v1527_v55, %v1523_v51  ;;  %v1535_v56 = vshrl.u32 %v9416_v47, 16  ;;  %v1537_v58 = vshll.u32 %v9416_v47, 16  ;;  %3378 = vrot.lane.b32.xlu1 %v3267_v27, %s8605_s15 }
 0x17f   : > { %v3001_v42 = vld [vmem:[#allocation2 + $0x94] sm:$0xf]  ;;  %v3274_v34 = vor.u32 %v3273_v6, %v3269_v48  ;;  %v3281_v57 = vshrl.u32 %v9419_v39, 16  ;;  %v3283_v63 = vshll.u32 %v9419_v39, 16  ;;  %v1265_v45 = vld [vmem:[#allocation2 + $0x78] sm:$0xf]  ;;  %v9434_v51 = vcombine.low %v1263_v4, %v9412_v30 }
 0x180   : > { %v9428_v5 = vld [vmem:[#allocation2 + $0x7c] sm:$0xf]  ;;  %v9430_v37 = vld [vmem:[#allocation2 + $0x80] ss:$0 sps:$4 sm:$0x11]   ;;  %v1539_v1 = vrot.slane %v1537_v58, 1  ;;  %v9437_v55 = vcombine.low %v3000_v32, %v3001_v42  ;;  %v1533_v39 = vsel %vm1437_vm12, %v1528_v53, %v1532_v22 }
 0x181   : > { %11392 = vst [vmem:[#allocation26_spill] sm:$0xff] %v9430_v37  ;;  %v1544_v61 = vrot.slane %v1542_v2, 1  ;;  %11393 = vst [vmem:[#allocation27_spill] sm:$0xff] %v9434_v51  ;;  %v1554_v62 = vshll.u32 %v9406_v8, 16  ;;  %v3285_v11 = vrot.slane %v3283_v63, 1  ;;  %v3290_v48 = vrot.slane %v3288_v35, 1  ;;  %1644 = vrot.lane.b32.xlu0 %v1533_v39, %s8605_s15 }
 0x182   : > { %v8213_v50 = vld [vmem:[#allocation2 + $0xa4] ss:$0 sps:$4 sm:$0x11]   ;;  %11394 = vst [vmem:[#allocation28_spill] sm:$0xff] %v9437_v55  ;;  %v3300_v6 = vshll.u32 %v8208_v20, 16  ;;  %v1540_v47 = vor.u32 %v1539_v1, %v1535_v56  ;;  %v1547_v33 = vshrl.u32 %v9434_v51, 16  ;;  %v3279_v4 = vsel %vm1437_vm12, %v3274_v34, %v3278_v38 }
 0x183   : > { %v1549_v27 = vshll.u32 %v9434_v51, 16  ;;  %v3002_v58 = vld [vmem:[#allocation2 + $0x9c] sm:$0xf]  ;;  %v3003_v2 = vld [vmem:[#allocation2 + $0xa0] sm:$0xf]  ;;  %v3286_v8 = vor.u32 %v3285_v11, %v3281_v57  ;;  %v3293_v63 = vshrl.u32 %v9437_v55, 16  ;;  %3380 = vrot.lane.b32.xlu1 %v3279_v4, %s8605_s15  ;;  %v9452_v42 = vcombine.low %v1265_v45, %v9428_v5 }
 0x184   : > { %v3295_v32 = vshll.u32 %v9437_v55, 16  ;;  %v1267_v35 = vld [vmem:[#allocation2 + $0x84] sm:$0xf]  ;;  %v9446_v20 = vld [vmem:[#allocation2 + $0x88] sm:$0xf]  ;;  %v1556_v22 = vrot.slane %v1554_v62, 1  ;;  %v9455_v57 = vcombine.low %v3002_v58, %v3003_v2  ;;  %v1545_v55 = vsel %vm1437_vm12, %v1540_v47, %v1544_v61 }
 0x185   : > { %11395 = vst [vmem:[#allocation29_spill] sm:$0xff] %v9446_v20  ;;  %v9448_v53 = vld [vmem:[#allocation2 + $0x8c] ss:$0 sps:$4 sm:$0x11]   ;;  %v1551_v56 = vrot.slane %v1549_v27, 1  ;;  %11397 = vst [vmem:[#allocation31_spill] sm:$0xff] %v9452_v42  ;;  %1646 = vrot.lane.b32.xlu0 %v1545_v55, %s8605_s15  ;;  %v3291_v45 = vsel %vm1437_vm12, %v3286_v8, %v3290_v48  ;;  %v9468_v61 = vcombine.low %v1267_v35, %v9446_v20 }
 0x186   : > { %11396 = vst [vmem:[#allocation30_spill] sm:$0xff] %v9448_v53  ;;  %v1566_v39 = vshll.u32 %v9430_v37, 16  ;;  %v3297_v38 = vrot.slane %v3295_v32, 1  ;;  %v3302_v34 = vrot.slane %v3300_v6, 1  ;;  %11398 = vst [vmem:[#allocation32_spill] sm:$0xff] %v9455_v57  ;;  %v3312_v1 = vshll.u32 %v8213_v50, 16 }
 0x187   : > { %v8218_v11 = vld [vmem:[#allocation2 + $0xb0] ss:$0 sps:$4 sm:$0x11]   ;;  %v1552_v51 = vor.u32 %v1551_v56, %v1547_v33  ;;  %v1559_v30 = vshrl.u32 %v9452_v42, 16  ;;  %v1561_v4 = vshll.u32 %v9452_v42, 16  ;;  %v3305_v6 = vshrl.u32 %v9455_v57, 16  ;;  %3382 = vrot.lane.b32.xlu1 %v3291_v45, %s8605_s15 }
 0x188   : > { %v3004_v27 = vld [vmem:[#allocation2 + $0xa8] sm:$0xf]  ;;  %v3005_v62 = vld [vmem:[#allocation2 + $0xac] sm:$0xf]  ;;  %v3298_v37 = vor.u32 %v3297_v38, %v3293_v63  ;;  %v3307_v58 = vshll.u32 %v9455_v57, 16  ;;  %v1568_v47 = vrot.slane %v1566_v39, 1 }
 0x189   : > { %v1269_v50 = vld [vmem:[#allocation2 + $0x90] sm:$0xf]  ;;  %v9464_v2 = vld [vmem:[#allocation2 + $0x94] sm:$0xf]  ;;  %v1563_v33 = vrot.slane %v1561_v4, 1  ;;  %11399 = vst [vmem:[#allocation33_spill] sm:$0xff] %v9468_v61  ;;  %v9473_v63 = vcombine.low %v3004_v27, %v3005_v62  ;;  %v1557_v57 = vsel %vm1437_vm12, %v1552_v51, %v1556_v22 }
 0x18a   : > { %v1578_v32 = vshll.u32 %v9448_v53, 16  ;;  %v9471_v55 = vld [vmem:[#allocation2 + $0x98] ss:$0 sps:$4 sm:$0x11]   ;;  %v3309_v8 = vrot.slane %v3307_v58, 1  ;;  %v3314_v48 = vrot.slane %v3312_v1, 1  ;;  %1648 = vrot.lane.b32.xlu0 %v1557_v57, %s8605_s15  ;;  %v3303_v53 = vsel %vm1437_vm12, %v3298_v37, %v3302_v34 }
 0x18b   : > { %11400 = vst [vmem:[#allocation34_spill] sm:$0xff] %v9473_v63  ;;  %v3324_v56 = vshll.u32 %v8218_v11, 16  ;;  %v8223_v38 = vld [vmem:[#allocation2 + $0xbc] ss:$0 sps:$4 sm:$0x11]   ;;  %v1564_v42 = vor.u32 %v1563_v33, %v1559_v30  ;;  %v1571_v45 = vshrl.u32 %v9468_v61, 16  ;;  %3384 = vrot.lane.b32.xlu1 %v3303_v53, %s8605_s15  ;;  %v9484_v22 = vcombine.low %v1269_v50, %v9464_v2 }
 0x18c   : > { %v1573_v39 = vshll.u32 %v9468_v61, 16  ;;  %v3006_v4 = vld [vmem:[#allocation2 + $0xb4] sm:$0xf]  ;;  %v3007_v35 = vld [vmem:[#allocation2 + $0xb8] sm:$0xf]  ;;  %v3310_v20 = vor.u32 %v3309_v8, %v3305_v6  ;;  %v3317_v1 = vshrl.u32 %v9473_v63, 16 }
 0x18d   : > { %v3319_v27 = vshll.u32 %v9473_v63, 16  ;;  %v1271_v11 = vld [vmem:[#allocation2 + $0x9c] sm:$0xf]  ;;  %v1580_v30 = vrot.slane %v1578_v32, 1  ;;  %11401 = vst [vmem:[#allocation35_spill] sm:$0xff] %v9484_v22  ;;  %v1590_v62 = vshll.u32 %v9471_v55, 16  ;;  %v9489_v37 = vcombine.low %v3006_v4, %v3007_v35 }
 0x18e   : > { %v1575_v51 = vrot.slane %v1573_v39, 1  ;;  %v9487_v58 = vld [vmem:[#allocation2 + $0xa4] ss:$0 sps:$4 sm:$0x11]   ;;  %v3326_v33 = vrot.slane %v3324_v56, 1  ;;  %v3336_v34 = vshll.u32 %v8223_v38, 16  ;;  %v1569_v8 = vsel %vm1437_vm12, %v1564_v42, %v1568_v47 }
 0x18f   : > { %11402 = vst [vmem:[#allocation36_spill] sm:$0xff] %v9487_v58  ;;  %v3321_v57 = vrot.slane %v3319_v27, 1  ;;  %11403 = vst [vmem:[#allocation37_spill] sm:$0xff] %v9489_v37  ;;  %v9491_v6 = vld [vmem:[#allocation2 + $0xa0] sm:$0xf]  ;;  %v1583_v53 = vshrl.u32 %v9484_v22, 16  ;;  %1650 = vrot.lane.b32.xlu0 %v1569_v8, %s8605_s15  ;;  %v3315_v61 = vsel %vm1437_vm12, %v3310_v20, %v3314_v48 }
 0x190   : > { %11404 = vst [vmem:[#allocation38_spill] sm:$0xff] %v9491_v6  ;;  %v1576_v63 = vor.u32 %v1575_v51, %v1571_v45  ;;  %v1585_v32 = vshll.u32 %v9484_v22, 16  ;;  %v3008_v50 = vld [vmem:[#allocation2 + $0xc0] sm:$0xf]  ;;  %v3009_v39 = vld [vmem:[#allocation2 + $0xc4] sm:$0xf]  ;;  %3386 = vrot.lane.b32.xlu1 %v3315_v61, %s8605_s15  ;;  %v9502_v45 = vcombine.low %v1271_v11, %v9491_v6 }
 0x191   : > { %v3322_v27 = vor.u32 %v3321_v57, %v3317_v1  ;;  %v3329_v56 = vshrl.u32 %v9489_v37, 16  ;;  %v3331_v38 = vshll.u32 %v9489_v37, 16  ;;  %v8228_v4 = vld [vmem:[#allocation2 + $0xc8] ss:$0 sps:$4 sm:$0x11]   ;;  %v1592_v47 = vrot.slane %v1590_v62, 1 }
 0x192   : > { %v1273_v35 = vld [vmem:[#allocation2 + $0xa8] sm:$0xf]  ;;  %v1587_v42 = vrot.slane %v1585_v32, 1  ;;  %11405 = vst [vmem:[#allocation39_spill] sm:$0xff] %v9502_v45  ;;  %v1602_v51 = vshll.u32 %v9487_v58, 16  ;;  %v1581_v20 = vsel %vm1437_vm12, %v1576_v63, %v1580_v30  ;;  %v3338_v1 = vrot.slane %v3336_v34, 1 }
 0x193   : > { %v9505_v22 = vld [vmem:[#allocation2 + $0xac] sm:$0xf]  ;;  %v3333_v48 = vrot.slane %v3331_v38, 1  ;;  %v9508_v57 = vcombine.low %v3008_v50, %v3009_v39  ;;  %v9510_v8 = vld [vmem:[#allocation2 + $0xb0] ss:$0 sps:$4 sm:$0x11]   ;;  %v3327_v37 = vsel %vm1437_vm12, %v3322_v27, %v3326_v33  ;;  %1652 = vrot.lane.b32.xlu0 %v1581_v20, %s8605_s15  ;;  %v2217_v20 = vpop.permute.xlu0 %2216 }
 0x194   : > { %11407 = vst [vmem:[#allocation41_spill] sm:$0xff] %v9510_v8  ;;  %v1588_v61 = vor.u32 %v1587_v42, %v1583_v53  ;;  %v1595_v62 = vshrl.u32 %v9502_v45, 16  ;;  %v1597_v11 = vshll.u32 %v9502_v45, 16  ;;  %v1275_v32 = vld [vmem:[#allocation2 + $0xb4] sm:$0xf]  ;;  %v3348_v34 = vshll.u32 %v8228_v4, 16  ;;  %3388 = vrot.lane.b32.xlu1 %v3327_v37, %s8605_s15 }
 0x195   : > { %11406 = vst [vmem:[#allocation40_spill] sm:$0xff] %v9508_v57  ;;  %v9515_v6 = vld [vmem:[#allocation2 + $0xb8] sm:$0xf]  ;;  %v3334_v58 = vor.u32 %v3333_v48, %v3329_v56  ;;  %v3341_v63 = vshrl.u32 %v9508_v57, 16  ;;  %v3343_v30 = vshll.u32 %v9508_v57, 16  ;;  %v1604_v33 = vrot.slane %v1602_v51, 1 }
 0x196   : > { %11408 = vst [vmem:[#allocation42_spill] sm:$0xff] %v9515_v6  ;;  %v1599_v50 = vrot.slane %v1597_v11, 1  ;;  %v9522_v53 = vcombine.low %v1273_v35, %v9505_v22  ;;  %v9524_v39 = vld [vmem:[#allocation2 + $0xbc] ss:$0 sps:$4 sm:$0x11]   ;;  %v1614_v42 = vshll.u32 %v9510_v8, 16  ;;  %v9529_v56 = vcombine.low %v1275_v32, %v9515_v6 }
 0x197   : > { %v3339_v27 = vsel %vm1437_vm12, %v3334_v58, %v3338_v1  ;;  %v3345_v38 = vrot.slane %v3343_v30, 1  ;;  %v1593_v4 = vsel %vm1437_vm12, %v1588_v61, %v1592_v47  ;;  %v8235_v35 = vld [vmem:[%s11279_s3 + $0xc0] sm:$0xff]   ;;  %v3350_v1 = vrot.slane %v3348_v34, 1  ;;  %v1881_v30 = vld [vmem:[#allocation2 + $0x18] sm:$0xe] }
 0x198   : > { %11409 = vst [vmem:[#allocation43_spill] sm:$0xff] %v9522_v53  ;;  %v1600_v48 = vor.u32 %v1599_v50, %v1595_v62  ;;  %v1607_v37 = vshrl.u32 %v9522_v53, 16  ;;  %v1609_v51 = vshll.u32 %v9522_v53, 16  ;;  %v1882_v11 = vld [vmem:[#allocation2 + $0x24] sm:$0xe]  ;;  %1654 = vrot.lane.b32.xlu0 %v1593_v4, %s8605_s15  ;;  %v1621_v32 = vshll.u32 %v9529_v56, 16  ;;  %3390 = vrot.lane.b32.xlu1 %v3339_v27, %s8605_s15 }
 0x199   : > { %v3346_v58 = vor.u32 %v3345_v38, %v3341_v63  ;;  %v1626_v61 = vshll.u32 %v9524_v39, 16  ;;  %v2345_v62 = vsel %vm1759_vm11, %v9008_v19, %v2217_v20  ;;  %v8474_v50 = vld [vmem:[#allocation2 + $0x1c] sm:$0xf]  ;;  %v1616_v53 = vrot.slane %v1614_v42, 1  ;;  %v8476_v34 = vld [vmem:[#allocation2 + $0x28] sm:$0xf] }
 0x19a   : > { %v1611_v47 = vrot.slane %v1609_v51, 1  ;;  %v7474_v57 = vcombine.low %v1881_v30, %v8474_v50  ;;  %v1619_v6 = vshrl.u32 %v9529_v56, 16  ;;  %2570 = vmatmul.mubr.bf16.vlgmr.msra.gmra.mrb[8].mxu1 %v2345_v62  ;;  %v8475_v4 = vld [vmem:[#allocation2 + $0x20] ss:$0 sps:$4 sm:$0x11]   ;;  %v7475_v38 = vcombine.low %v1882_v11, %v8476_v34  ;;  %v8238_v19 = vld [vmem:[%s11279_s3 + $0xc8] sm:$0xff]  }
 0x19b   : > { %v2300_v63 = vrot.slane %v8475_v4, 1  ;;  %v1605_v45 = vsel %vm1437_vm12, %v1600_v48, %v1604_v33  ;;  %v1623_v27 = vrot.slane %v1621_v32, 1  ;;  %3686 = vmatpush1.bf16.msra.mxu1 %v8235_v35  ;;  %v3351_v42 = vsel %vm1437_vm12, %v3346_v58, %v3350_v1  ;;  %v2219_v33 = vpop.permute.xlu0 %2218  ;;  %v1293_v35 = vld [vmem:[#allocation2] sm:$0xe]  ;;  %v8242_v58 = vld [vmem:[%s11279_s3 + $0xd0] sm:$0xff]   ;;  %v8245_v34 = vld [vmem:[%s11279_s3 + $0xd8] sm:$0xff]  }
 0x19c   : > { %v1612_v8 = vor.u32 %v1611_v47, %v1607_v37  ;;  %v2299_v51 = vrot.slane %v7474_v57, 1  ;;  %1656 = vrot.lane.b32.xlu0 %v1605_v45, %s8605_s15  ;;  %v11410_v20 = vmov 0   ;;  %3392 = vrot.lane.b32.xlu1 %v3351_v42, %s8605_s15  ;;  %v2302_v48 = vrot.slane %v7475_v38, 1  ;;  %v8477_v37 = vld [vmem:[#allocation2 + $0x2c] ss:$0 sps:$4 sm:$0x11]  }
 0x19d   : > { %3687 = vmatprep.subr.bf16.mxu1 %v11410_v20  ;;  %v2303_v57 = vrot.slane %v8477_v37, 1  ;;  %v1624_v30 = vor.u32 %v1623_v27, %v1619_v6  ;;  %v1628_v47 = vrot.slane %v1626_v61, 1  ;;  %v1883_v45 = vld [vmem:[#allocation2 + $0x30] sm:$0xe]  ;;  %v2348_v1 = vsel %vm1759_vm11, %v9032_v9, %v2219_v33  ;;  %v8478_v62 = vld [vmem:[#allocation2 + $0x4] sm:$0xf]  ;;  %v2221_v27 = vpop.permute.xlu1 %2220 }
 0x19e   : > { %v2301_v11 = vsel %vm1710_vm10, %v2299_v51, %v2300_v63  ;;  %v1617_v32 = vsel %vm1437_vm12, %v1612_v8, %v1616_v53  ;;  %v7425_v50 = vcombine.low %v1293_v35, %v8478_v62  ;;  %v8479_v4 = vld [vmem:[#allocation2 + $0x8] ss:$0 sps:$4 sm:$0x11]   ;;  %v8480_v8 = vld [vmem:[#allocation2 + $0x34] sm:$0xf] }
 0x19f   : > { %7526 = vmatprep.mubr.msk.bf16.mxu1 %vm1759_vm11, %v2301_v11  ;;  %3688 = vmatpush1.bf16.msra.mxu1 %v8238_v19  ;;  %v1712_v63 = vrot.slane %v8479_v4, 1  ;;  %v2304_v6 = vsel %vm1710_vm10, %v2302_v48, %v2303_v57  ;;  %v7476_v53 = vcombine.low %v1883_v45, %v8480_v8  ;;  %v1629_v61 = vsel %vm1437_vm12, %v1624_v30, %v1628_v47  ;;  %v8481_v19 = vld [vmem:[#allocation2 + $0x38] ss:$0 sps:$4 sm:$0x11]   ;;  %v8250_v11 = vld [vmem:[%s11279_s3 + $0xe0] sm:$0xff]  }
 0x1a0   : > { %1658 = vrot.lane.b32.xlu0 %v1617_v32, %s8605_s15  ;;  %3689 = vmatprep.subr.bf16.mxu1 %v11410_v20  ;;  %v1711_v38 = vrot.slane %v7425_v50, 1  ;;  %v2306_v42 = vrot.slane %v8481_v19, 1  ;;  %v1884_v33 = vld [vmem:[#allocation2 + $0x3c] sm:$0xe]  ;;  %v2351_v48 = vsel %vm1759_vm11, %v9061_v12, %v2221_v27  ;;  %v8482_v57 = vld [vmem:[#allocation2 + $0x40] sm:$0xf] }
 0x1a1   : > { %v2305_v51 = vrot.slane %v7476_v53, 1  ;;  %v7477_v35 = vcombine.low %v1884_v33, %v8482_v57  ;;  %v8256_v32 = vld [vmem:[%s11279_s3 + $0xe8] sm:$0xff]   ;;  %v8483_v47 = vld [vmem:[#allocation2 + $0x44] ss:$0 sps:$4 sm:$0x11]   ;;  %v8259_v12 = vld [vmem:[%s11279_s3 + $0xf0] sm:$0xff]  }
 0x1a2   : > { %2578 = vmatmul.mubr.bf16.gmra.mrb[12].mxu1 %v2348_v1  ;;  %v1713_v9 = vsel %vm1710_vm10, %v1711_v38, %v1712_v63  ;;  %v2309_v45 = vrot.slane %v8483_v47, 1  ;;  %v3010_v62 = vld [vmem:[#allocation2 + $0xcc] sm:$0xf]  ;;  %v9591_v4 = vld [vmem:[#allocation2 + $0xd0] sm:$0xf] }
 0x1a3   : > { %7527 = vmatprep.mubr.msk.bf16.mxu1 %vm1759_vm11, %v2304_v6  ;;  %3690 = vmatpush1.bf16.msra.mxu1 %v8242_v58  ;;  %v2307_v37 = vsel %vm1710_vm10, %v2305_v51, %v2306_v42  ;;  %v2308_v30 = vrot.slane %v7477_v35, 1  ;;  %v9593_v63 = vld [vmem:[#allocation2 + $0xd4] ss:$0 sps:$4 sm:$0x11]   ;;  %v8263_v6 = vld [vmem:[%s11279_s3 + $0xf8] sm:$0xff]   ;;  %v9601_v8 = vcombine.low %v3010_v62, %v9591_v4  ;;  %v8270_v42 = vld [vmem:[%s11279_s3 + $0x108] sm:$0xff]  }
 0x1a4   : > { %1660 = vrot.lane.b32.xlu0 %v1629_v61, %s8605_s15  ;;  %3691 = vmatprep.subr.bf16.mxu1 %v11410_v20  ;;  %v3360_v53 = vshll.u32 %v9593_v63, 16  ;;  %v8267_v61 = vld [vmem:[%s11279_s3 + $0x100] sm:$0xff]   ;;  %v1886_v57 = vld [vmem:[#allocation2 + $0x54] sm:$0xe] }
 0x1a5   : > { %7553 = vmatprep.mubr.msk.bf16.mxu0 %vm1759_vm11, %v1713_v9  ;;  %v2310_v50 = vsel %vm1710_vm10, %v2308_v30, %v2309_v45  ;;  %v3355_v38 = vshll.u32 %v9601_v8, 16  ;;  %v8484_v9 = vld [vmem:[#allocation2 + $0x4c] sm:$0xf]  ;;  %v8274_v30 = vld [vmem:[%s11279_s3 + $0x110] sm:$0xff]  }
 0x1a6   : > { %v3362_v19 = vrot.slane %v3360_v53, 1  ;;  %v1887_v53 = vld [vmem:[#allocation2 + $0x60] sm:$0xe] }
 0x1a7   : > { %3692 = vmatpush1.bf16.msra.mxu1 %v8245_v34  ;;  %v3353_v34 = vshrl.u32 %v9601_v8, 16  ;;  %v3357_v51 = vrot.slane %v3355_v38, 1 }
 0x1a8   : > { %3693 = vmatprep.subr.bf16.mxu1 %v11410_v20 }
 0x1aa   : > { %2586 = vmatmul.mubr.bf16.gmra.mrb[16].mxu1 %v2351_v48  ;;  %v8485_v48 = vld [vmem:[#allocation2 + $0x50] ss:$0 sps:$4 sm:$0x11]  }
 0x1ab   : > { %7528 = vmatprep.mubr.msk.bf16.mxu1 %vm1759_vm11, %v2307_v37  ;;  %3694 = vmatpush1.bf16.msra.mxu1 %v8250_v11  ;;  %v3358_v11 = vor.u32 %v3357_v51, %v3353_v34  ;;  %v2312_v37 = vrot.slane %v8485_v48, 1 }
 0x1ac   : > { %3695 = vmatprep.subr.bf16.mxu1 %v11410_v20  ;;  %v2223_v58 = vpop.permute.xlu1 %2222 }
 0x1ad   : > { %v2354_v1 = vsel %vm1759_vm11, %v9098_v36, %v2223_v58  ;;  %v1885_v36 = vld [vmem:[#allocation2 + $0x48] sm:$0xe]  ;;  %v3363_v35 = vsel %vm1437_vm12, %v3358_v11, %v3362_v19 }
 0x1ae   : > { %v7478_v27 = vcombine.low %v1885_v36, %v8484_v9  ;;  %3394 = vrot.lane.b32.xlu1 %v3363_v35, %s8605_s15  ;;  %v8488_v9 = vld [vmem:[#allocation2 + $0x64] sm:$0xf] }
 0x1af   : > { %3696 = vmatpush1.bf16.msra.mxu1 %v8256_v32 }
 0x1b0   : > { %3697 = vmatprep.subr.bf16.mxu1 %v11410_v20  ;;  %v2311_v33 = vrot.slane %v7478_v27, 1  ;;  %v7480_v27 = vcombine.low %v1887_v53, %v8488_v9 }
 0x1b2   : > { %2594 = vmatmul.mubr.bf16.gmra.mrb[20].mxu1 %v2354_v1  ;;  %v2313_v45 = vsel %vm1710_vm10, %v2311_v33, %v2312_v37  ;;  %v8278_v1 = vld [vmem:[%s11279_s3 + $0x118] sm:$0xff]   ;;  %v2227_v62 = vpop.permute.xlu1 %2226  ;;  %v2317_v19 = vrot.slane %v7480_v27, 1  ;;  %v1888_v33 = vld [vmem:[#allocation2 + $0x6c] sm:$0xe] }
 0x1b3   : > { %7529 = vmatprep.mubr.msk.bf16.mxu1 %vm1759_vm11, %v2310_v50  ;;  %3698 = vmatpush1.bf16.msra.mxu1 %v8259_v12  ;;  %v8486_v12 = vld [vmem:[#allocation2 + $0x58] sm:$0xf] }
 0x1b4   : > { %3699 = vmatprep.subr.bf16.mxu1 %v11410_v20  ;;  %v7479_v58 = vcombine.low %v1886_v57, %v8486_v12  ;;  %v8490_v57 = vld [vmem:[#allocation2 + $0x70] sm:$0xf]  ;;  %v1295_v27 = vld [vmem:[#allocation2 + $0x18] sm:$0xe] }
 0x1b5   : > { %v7481_v35 = vcombine.low %v1888_v33, %v8490_v57  ;;  %v1890_v33 = vld [vmem:[#allocation2 + $0x84] sm:$0xe]  ;;  %v8495_v57 = vld [vmem:[#allocation2 + $0x20] ss:$0 sps:$4 sm:$0x11]  }
 0x1b7   : > { %3700 = vmatpush1.bf16.msra.mxu1 %v8263_v6  ;;  %v2314_v6 = vrot.slane %v7479_v58, 1  ;;  %v2320_v58 = vrot.slane %v7481_v35, 1  ;;  %v1718_v35 = vrot.slane %v8495_v57, 1  ;;  %v8500_v57 = vld [vmem:[#allocation2 + $0xa0] sm:$0xf] }
 0x1b8   : > { %3701 = vmatprep.subr.bf16.mxu1 %v11410_v20 }
 0x1ba   : > { %v2225_v32 = vpop.permute.xlu0 %2224 }
 0x1bb   : > { %3702 = vmatpush1.bf16.msra.mxu1 %v8267_v61  ;;  %v2357_v47 = vsel %vm1759_vm11, %v9160_v0, %v2225_v32  ;;  %v8487_v0 = vld [vmem:[#allocation2 + $0x5c] ss:$0 sps:$4 sm:$0x11]   ;;  %v2360_v61 = vsel %vm1759_vm11, %v9127_v18, %v2227_v62  ;;  %v1294_v32 = vld [vmem:[#allocation2 + $0xc] sm:$0xe] }
 0x1bc   : > { %3703 = vmatprep.subr.bf16.mxu1 %v11410_v20  ;;  %2602 = vmatmul.mubr.bf16.gmra.mrb[24].mxu1 %v2357_v47  ;;  %v2315_v36 = vrot.slane %v8487_v0, 1 }
 0x1bd   : > { %7530 = vmatprep.mubr.msk.bf16.mxu1 %vm1759_vm11, %v2313_v45  ;;  %v2231_v45 = vpop.permute.xlu1 %2230 }
 0x1be   : > { %v2316_v38 = vsel %vm1710_vm10, %v2314_v6, %v2315_v36  ;;  %v1889_v6 = vld [vmem:[#allocation2 + $0x78] sm:$0xe]  ;;  %v2366_v0 = vsel %vm1759_vm11, %v9168_v14, %v2231_v45 }
 0x1bf   : > { %3704 = vmatpush1.bf16.msra.mxu1 %v8270_v42  ;;  %v8489_v42 = vld [vmem:[#allocation2 + $0x68] ss:$0 sps:$4 sm:$0x11]  }
 0x1c0   : > { %3705 = vmatprep.subr.bf16.mxu1 %v11410_v20  ;;  %v2229_v50 = vpop.permute.xlu0 %2228  ;;  %v2318_v11 = vrot.slane %v8489_v42, 1  ;;  %v8494_v42 = vld [vmem:[#allocation2 + $0x80] ss:$0 sps:$4 sm:$0x11]  }
 0x1c1   : > { %v2363_v48 = vsel %vm1759_vm11, %v9180_v41, %v2229_v50  ;;  %v1715_v50 = vrot.slane %v9272_v17, 1  ;;  %v7427_v17 = vcombine.low %v1295_v27, %v9291_v60 }
 0x1c2   : > { %v2319_v37 = vsel %vm1710_vm10, %v2317_v19, %v2318_v11  ;;  %v2324_v11 = vrot.slane %v8494_v42, 1 }
 0x1c3   : > { %3706 = vmatpush1.bf16.msra.mxu1 %v8274_v30  ;;  %v8491_v30 = vld [vmem:[#allocation2 + $0x10] sm:$0xf] }
 0x1c4   : > { %3707 = vmatprep.subr.bf16.mxu1 %v11410_v20  ;;  %v2233_v34 = vpop.permute.xlu0 %2232  ;;  %2610 = vmatmul.mubr.bf16.gmra.mrb[28].mxu1 %v2360_v61  ;;  %v7426_v47 = vcombine.low %v1294_v32, %v8491_v30  ;;  %v8493_v61 = vld [vmem:[#allocation2 + $0x7c] sm:$0xf]  ;;  %v1296_v32 = vld [vmem:[#allocation2 + $0x24] sm:$0xe] }
 0x1c5   : > { %7531 = vmatprep.mubr.msk.bf16.mxu1 %vm1759_vm11, %v2316_v38  ;;  %v7482_v38 = vcombine.low %v1889_v6, %v8493_v61 }
 0x1c6   : > { %v1714_v41 = vrot.slane %v7426_v47, 1  ;;  %v8496_v47 = vld [vmem:[#allocation2 + $0x88] sm:$0xf] }
 0x1c7   : > { %3708 = vmatpush1.bf16.msra.mxu1 %v8278_v1  ;;  %v8492_v1 = vld [vmem:[#allocation2 + $0x74] ss:$0 sps:$4 sm:$0x11]   ;;  %v2323_v14 = vrot.slane %v7482_v38, 1  ;;  %v7483_v45 = vcombine.low %v1890_v33, %v8496_v47  ;;  %v1724_v33 = vrot.slane %v9322_v10, 1 }
 0x1c8   : > { %6046 = vmatprep.subr.bf16.mxu1 %v11410_v20  ;;  %v2321_v62 = vrot.slane %v8492_v1, 1  ;;  %v1716_v19 = vsel %vm1710_vm10, %v1714_v41, %v1715_v50  ;;  %v7428_v1 = vcombine.low %v1296_v32, %v9301_v13  ;;  %v1891_v41 = vld [vmem:[#allocation2 + $0x90] sm:$0xe]  ;;  %v8498_v38 = vld [vmem:[#allocation2 + $0x94] sm:$0xf] }
 0x1c9   : > { %v2325_v30 = vsel %vm1710_vm10, %v2323_v14, %v2324_v11  ;;  %v7484_v13 = vcombine.low %v1891_v41, %v8498_v38  ;;  %v1892_v14 = vld [vmem:[#allocation2 + $0x9c] sm:$0xe]  ;;  %v1893_v47 = vld [vmem:[#allocation2 + $0xa8] sm:$0xe] }
 0x1ca   : > { %v9633_v51 = vpop.permute.xlu0 %2236  ;;  %v2322_v53 = vsel %vm1710_vm10, %v2320_v58, %v2321_v62  ;;  %v2235_v62 = vpop.permute.xlu1 %2234 }
 0x1cc   : > { %2618 = vmatmul.mubr.bf16.gmra.mrb[32].mxu1 %v2363_v48 }
 0x1cd   : > { %7532 = vmatprep.mubr.msk.bf16.mxu1 %vm1759_vm11, %v2319_v37  ;;  %v1717_v37 = vrot.slane %v7427_v17, 1 }
 0x1ce   : > { %v9637_v18 = vpop.permute.xlu0 %2240  ;;  %v2239_v32 = vpop.permute.xlu1 %2238 }
 0x1cf   : > { %v1719_v58 = vsel %vm1710_vm10, %v1717_v37, %v1718_v35 }
 0x1d3   : > { %v9641_v12 = vpop.permute.xlu0 %2244 }
 0x1d4   : > { %2626 = vmatmul.mubr.bf16.gmra.mrb[36].mxu1 %v2366_v0  ;;  %v1720_v0 = vrot.slane %v7428_v1, 1  ;;  %v1299_v1 = vld [vmem:[#allocation2 + $0x48] sm:$0xe] }
 0x1d5   : > { %7533 = vmatprep.mubr.msk.bf16.mxu1 %vm1759_vm11, %v2322_v53  ;;  %v1297_v53 = vld [vmem:[#allocation2 + $0x30] sm:$0xe]  ;;  %v7431_v41 = vcombine.low %v1299_v1, %v9358_v24  ;;  %v8508_v1 = vld [vmem:[#allocation2 + $0x1c] sm:$0xf] }
 0x1d7   : > { %v1631_v36 = vpop.permute.xlu0 %1630 }
 0x1d8   : > { %v1761_v9 = vsel %vm1759_vm11, %v8817_v21, %v1631_v36  ;;  %v2369_v21 = vsel %vm1759_vm11, %v9198_v16, %v2233_v34  ;;  %v2326_v16 = vrot.slane %v7483_v45, 1  ;;  %v8497_v34 = vld [vmem:[#allocation2 + $0x8c] ss:$0 sps:$4 sm:$0x11]   ;;  %v1721_v36 = vrot.slane %v9303_v15, 1 }
 0x1d9   : > { %2851 = vmatmul.mubr.bf16.vlgmr.msra.gmra.mrb[24].mxu0 %v1761_v9  ;;  %v2327_v6 = vrot.slane %v8497_v34, 1  ;;  %v2329_v15 = vrot.slane %v7484_v13, 1  ;;  %v8504_v13 = vld [vmem:[#allocation2 + $0xb8] sm:$0xf] }
 0x1da   : > { %7554 = vmatprep.mubr.msk.bf16.mxu0 %vm1759_vm11, %v1716_v19  ;;  %v1722_v27 = vsel %vm1710_vm10, %v1720_v0, %v1721_v36  ;;  %v7429_v19 = vcombine.low %v1297_v53, %v9320_v49  ;;  %v7485_v49 = vcombine.low %v1892_v14, %v8500_v57  ;;  %v1894_v0 = vld [vmem:[#allocation2 + $0xb4] sm:$0xe]  ;;  %v1730_v53 = vrot.slane %v9352_v28, 1 }
 0x1db   : > { %v1633_v48 = vpop.permute.xlu0 %1632  ;;  %v2328_v61 = vsel %vm1710_vm10, %v2326_v16, %v2327_v6  ;;  %v8502_v16 = vld [vmem:[#allocation2 + $0xac] sm:$0xf]  ;;  %v7487_v24 = vcombine.low %v1894_v0, %v8504_v13 }
 0x1dc   : > { %2634 = vmatmul.mubr.bf16.gmra.mrb[40].mxu1 %v2369_v21  ;;  %v1764_v60 = vsel %vm1759_vm11, %v9287_v31, %v1633_v48  ;;  %v2372_v31 = vsel %vm1759_vm11, %v9182_v7, %v2235_v62  ;;  %v8499_v7 = vld [vmem:[#allocation2 + $0x98] ss:$0 sps:$4 sm:$0x11]   ;;  %v1723_v11 = vrot.slane %v7429_v19, 1  ;;  %v1298_v48 = vld [vmem:[#allocation2 + $0x3c] sm:$0xe]  ;;  %v2243_v19 = vpop.permute.xlu1 %2242 }
 0x1dd   : > { %7534 = vmatprep.mubr.msk.bf16.mxu1 %vm1759_vm11, %v2325_v30  ;;  %v2330_v17 = vrot.slane %v8499_v7, 1  ;;  %v7430_v10 = vcombine.low %v1298_v48, %v9338_v46  ;;  %v7486_v46 = vcombine.low %v1893_v47, %v8502_v16  ;;  %v1895_v7 = vld [vmem:[#allocation2 + $0xc0] sm:$0xe]  ;;  %v8506_v48 = vld [vmem:[#allocation2 + $0xc4] sm:$0xf] }
 0x1de   : > { %v1725_v21 = vsel %vm1710_vm10, %v1723_v11, %v1724_v33  ;;  %v11411_v11 = vld [vmem:[#allocation7_spill] sm:$0xff]  ;;  %v1301_v33 = vld [vmem:[#allocation2 + $0x60] sm:$0xe] }
 0x1df   : > { %v1635_v50 = vpop.permute.xlu0 %1634  ;;  %v2331_v37 = vsel %vm1710_vm10, %v2329_v15, %v2330_v17  ;;  %v11414_v47 = vld [vmem:[#allocation9_spill] sm:$0xff] }
 0x1e0   : > { %v1767_v9 = vsel %vm1759_vm11, %v9308_v23, %v1635_v50  ;;  %v2375_v23 = vsel %vm1759_vm11, %v9221_v40, %v9633_v51  ;;  %v2332_v40 = vrot.slane %v7485_v49, 1  ;;  %v8501_v51 = vld [vmem:[#allocation2 + $0xa4] ss:$0 sps:$4 sm:$0x11]  }
 0x1e1   : > { %2859 = vmatmul.mubr.bf16.gmra.mrb[28].mxu0 %v1764_v60  ;;  %v2333_v30 = vrot.slane %v8501_v51, 1  ;;  %v1726_v60 = vrot.slane %v7430_v10, 1  ;;  %v11413_v51 = vld [vmem:[#allocation19_spill] sm:$0xff] }
 0x1e2   : > { %7555 = vmatprep.mubr.msk.bf16.mxu0 %vm1759_vm11, %v1719_v58  ;;  %v1727_v58 = vrot.slane %v9340_v25, 1  ;;  %v2335_v25 = vrot.slane %v7486_v46, 1 }
 0x1e3   : > { %v1637_v42 = vpop.permute.xlu0 %1636  ;;  %v2334_v62 = vsel %vm1710_vm10, %v2332_v40, %v2333_v30  ;;  %v1736_v30 = vrot.slane %v11413_v51, 1  ;;  %v8513_v51 = vld [vmem:[#allocation2 + $0x38] ss:$0 sps:$4 sm:$0x11]  }
 0x1e4   : > { %2642 = vmatmul.mubr.bf16.gmra.mrb[44].mxu1 %v2372_v31  ;;  %v1770_v35 = vsel %vm1759_vm11, %v9326_v54, %v1637_v42  ;;  %v2378_v54 = vsel %vm1759_vm11, %v9203_v43, %v2239_v32  ;;  %v1728_v6 = vsel %vm1710_vm10, %v1726_v60, %v1727_v58  ;;  %v8503_v43 = vld [vmem:[#allocation2 + $0xb0] ss:$0 sps:$4 sm:$0x11]   ;;  %v1729_v31 = vrot.slane %v7431_v41, 1  ;;  %v1302_v60 = vld [vmem:[#allocation2 + $0x6c] sm:$0xe] }
 0x1e5   : > { %7535 = vmatprep.mubr.msk.bf16.mxu1 %vm1759_vm11, %v2328_v61  ;;  %v2336_v50 = vrot.slane %v8503_v43, 1  ;;  %v1300_v61 = vld [vmem:[#allocation2 + $0x54] sm:$0xe]  ;;  %v1733_v42 = vrot.slane %v9376_v52, 1  ;;  %v3028_v58 = vld [vmem:[#allocation2 + $0x18] sm:$0xe] }
 0x1e6   : > { %v7432_v28 = vcombine.low %v1300_v61, %v9374_v44  ;;  %v7488_v44 = vcombine.low %v1895_v7, %v8506_v48  ;;  %v8511_v7 = vld [vmem:[#allocation2 + $0x2c] ss:$0 sps:$4 sm:$0x11]  }
 0x1e7   : > { %v1639_v45 = vpop.permute.xlu0 %1638  ;;  %v2337_v38 = vsel %vm1710_vm10, %v2335_v25, %v2336_v50  ;;  %v8509_v25 = vld [vmem:[#allocation2 + $0x20] ss:$0 sps:$4 sm:$0x11]   ;;  %v3029_v50 = vld [vmem:[#allocation2 + $0x24] sm:$0xe] }
 0x1e8   : > { %v1773_v34 = vsel %vm1759_vm11, %v9344_v29, %v1639_v45  ;;  %v2381_v29 = vsel %vm1759_vm11, %v9236_v26, %v9637_v18  ;;  %v2338_v26 = vrot.slane %v7487_v24, 1  ;;  %v8505_v18 = vld [vmem:[#allocation2 + $0xbc] ss:$0 sps:$4 sm:$0x11]   ;;  %v1732_v14 = vrot.slane %v7432_v28, 1 }
 0x1e9   : > { %2867 = vmatmul.mubr.bf16.gmra.mrb[32].mxu0 %v1767_v9  ;;  %v2339_v15 = vrot.slane %v8505_v18, 1  ;;  %v2341_v52 = vrot.slane %v7488_v44, 1  ;;  %v2387_v45 = vsel %vm1759_vm11, %v11414_v47, %v9641_v12  ;;  %v2247_v12 = vpop.permute.xlu1 %2246  ;;  %v3445_v43 = vrot.slane %v8509_v25, 1  ;;  %v8510_v24 = vld [vmem:[#allocation2 + $0x28] sm:$0xf] }
 0x1ea   : > { %7556 = vmatprep.mubr.msk.bf16.mxu0 %vm1759_vm11, %v1722_v27  ;;  %v1731_v27 = vsel %vm1710_vm10, %v1729_v31, %v1730_v53  ;;  %v1734_v49 = vsel %vm1710_vm10, %v1732_v14, %v1733_v42  ;;  %v11417_v31 = vld [vmem:[#allocation22_spill] sm:$0xff]  ;;  %v3030_v14 = vld [vmem:[#allocation2 + $0x30] sm:$0xe]  ;;  %v1304_v44 = vld [vmem:[#allocation2 + $0x84] sm:$0xe] }
 0x1eb   : > { %v1641_v36 = vpop.permute.xlu0 %1640  ;;  %v1739_v53 = vrot.slane %v11417_v31, 1  ;;  %v3031_v47 = vld [vmem:[#allocation2 + $0x3c] sm:$0xe]  ;;  %v3032_v31 = vld [vmem:[#allocation2 + $0x48] sm:$0xe] }
 0x1ec   : > { %2650 = vmatmul.mubr.bf16.gmra.mrb[48].mxu1 %v2375_v23  ;;  %v1776_v9 = vsel %vm1759_vm11, %v9362_v59, %v1641_v36  ;;  %v2384_v59 = vsel %vm1759_vm11, %v11411_v11, %v2243_v19  ;;  %v2340_v23 = vsel %vm1710_vm10, %v2338_v26, %v2339_v15 }
 0x1ed   : > { %7536 = vmatprep.mubr.msk.bf16.mxu1 %vm1759_vm11, %v2331_v37  ;;  %v11412_v37 = vld [vmem:[#allocation17_spill] sm:$0xff]  ;;  %v3365_v18 = vpop.permute.xlu1 %3364 }
 0x1ef   : > { %v1643_v17 = vpop.permute.xlu0 %1642 }
 0x1f0   : > { %v1779_v57 = vsel %vm1759_vm11, %v11412_v37, %v1643_v17  ;;  %v3448_v17 = vrot.slane %v8511_v7, 1 }
 0x1f1   : > { %2875 = vmatmul.mubr.bf16.gmra.mrb[36].mxu0 %v1770_v35  ;;  %v7433_v35 = vcombine.low %v1301_v33, %v9392_v3  ;;  %v7601_v3 = vcombine.low %v3028_v58, %v8508_v1  ;;  %v11424_v58 = vld [vmem:[#allocation30_spill] sm:$0xff]  ;;  %v11425_v1 = vld [vmem:[#allocation11_spill] sm:$0xff] }
 0x1f2   : > { %7557 = vmatprep.mubr.msk.bf16.mxu0 %vm1759_vm11, %v1725_v21  ;;  %v8507_v21 = vld [vmem:[#allocation2 + $0xc8] ss:$0 sps:$4 sm:$0x11]  }
 0x1f3   : > { %v2342_v10 = vrot.slane %v8507_v21, 1  ;;  %v1645_v32 = vpop.permute.xlu0 %1644  ;;  %v1735_v40 = vrot.slane %v7433_v35, 1  ;;  %v3444_v41 = vrot.slane %v7601_v3, 1  ;;  %v11423_v21 = vld [vmem:[#allocation29_spill] sm:$0xff] }
 0x1f4   : > { %2658 = vmatmul.mubr.bf16.gmra.mrb[52].mxu1 %v2378_v54 }
 0x1f5   : > { %7537 = vmatprep.mubr.msk.bf16.mxu1 %vm1759_vm11, %v2334_v62  ;;  %v2343_v54 = vsel %vm1710_vm10, %v2341_v52, %v2342_v10  ;;  %v11415_v62 = vld [vmem:[#allocation20_spill] sm:$0xff]  ;;  %v1737_v46 = vsel %vm1710_vm10, %v1735_v40, %v1736_v30  ;;  %v3446_v13 = vsel %vm1710_vm10, %v3444_v41, %v3445_v43  ;;  %v7436_v10 = vcombine.low %v1304_v44, %v11423_v21 }
 0x1f6   : > { %v1782_v16 = vsel %vm1759_vm11, %v11415_v62, %v1645_v32  ;;  %v3367_v32 = vpop.permute.xlu1 %3366  ;;  %v3451_v30 = vrot.slane %v8513_v51, 1  ;;  %v1305_v62 = vld [vmem:[#allocation2 + $0x90] sm:$0xe]  ;;  %v8519_v51 = vld [vmem:[#allocation2 + $0x5c] ss:$0 sps:$4 sm:$0x11]  }
 0x1f7   : > { %v1647_v0 = vpop.permute.xlu0 %1646  ;;  %v3496_v3 = vsel %vm1759_vm11, %v11425_v1, %v3367_v32  ;;  %v7437_v25 = vcombine.low %v1305_v62, %v9464_v2  ;;  %v11434_v1 = vld [vmem:[#allocation14_spill] sm:$0xff]  ;;  %v1308_v62 = vld [vmem:[#allocation2 + $0xb4] sm:$0xe] }
 0x1f9   : > { %2883 = vmatmul.mubr.bf16.gmra.mrb[40].mxu0 %v1773_v34  ;;  %v11416_v34 = vld [vmem:[#allocation23_spill] sm:$0xff] }
 0x1fa   : > { %7558 = vmatprep.mubr.msk.bf16.mxu0 %vm1759_vm11, %v1728_v6  ;;  %v7434_v6 = vcombine.low %v1302_v60, %v11416_v34  ;;  %v1744_v60 = vrot.slane %v7436_v10, 1  ;;  %v3369_v43 = vpop.permute.xlu1 %3368 }
 0x1fc   : > { %2666 = vmatmul.mubr.bf16.gmra.mrb[56].mxu1 %v2381_v29  ;;  %v1738_v36 = vrot.slane %v7434_v6, 1  ;;  %v11418_v29 = vld [vmem:[#allocation8_spill] sm:$0xff]  ;;  %v1649_v42 = vpop.permute.xlu0 %1648  ;;  %v11426_v6 = vld [vmem:[#allocation31_spill] sm:$0xff] }
 0x1fd   : > { %7538 = vmatprep.mubr.msk.bf16.mxu1 %vm1759_vm11, %v2337_v38  ;;  %v2390_v61 = vsel %vm1759_vm11, %v11418_v29, %v2247_v12  ;;  %v1303_v38 = vld [vmem:[#allocation2 + $0x78] sm:$0xe]  ;;  %v1747_v29 = vrot.slane %v7437_v25, 1 }
 0x1fe   : > { %v1740_v19 = vsel %vm1710_vm10, %v1738_v36, %v1739_v53  ;;  %v7435_v26 = vcombine.low %v1303_v38, %v9428_v5  ;;  %v11427_v38 = vld [vmem:[#allocation12_spill] sm:$0xff] }
 0x200   : > { %v1741_v11 = vrot.slane %v7435_v26, 1 }
 0x201   : > { %2891 = vmatmul.mubr.bf16.gmra.mrb[44].mxu0 %v1776_v9  ;;  %v7602_v9 = vcombine.low %v3029_v50, %v8510_v24  ;;  %v1306_v24 = vld [vmem:[#allocation2 + $0x9c] sm:$0xe] }
 0x202   : > { %7559 = vmatprep.mubr.msk.bf16.mxu0 %vm1759_vm11, %v1731_v27  ;;  %v11419_v27 = vld [vmem:[#allocation24_spill] sm:$0xff] }
 0x203   : > { %v1785_v28 = vsel %vm1759_vm11, %v11419_v27, %v1647_v0  ;;  %v3447_v15 = vrot.slane %v7602_v9, 1  ;;  %v8515_v0 = vld [vmem:[#allocation2 + $0x44] ss:$0 sps:$4 sm:$0x11]   ;;  %v8516_v27 = vld [vmem:[#allocation2 + $0x4c] sm:$0xf] }
 0x204   : > { %2674 = vmatmul.mubr.bf16.gmra.mrb[60].mxu1 %v2384_v59  ;;  %v11420_v59 = vld [vmem:[#allocation26_spill] sm:$0xff]  ;;  %v3454_v36 = vrot.slane %v8515_v0, 1  ;;  %v7605_v2 = vcombine.low %v3032_v31, %v8516_v27 }
 0x205   : > { %7539 = vmatprep.mubr.msk.bf16.mxu1 %vm1759_vm11, %v2340_v23  ;;  %v1742_v33 = vrot.slane %v11420_v59, 1  ;;  %v11421_v23 = vld [vmem:[#allocation10_spill] sm:$0xff]  ;;  %v3449_v37 = vsel %vm1710_vm10, %v3447_v15, %v3448_v17  ;;  %v8517_v17 = vld [vmem:[#allocation2 + $0x50] ss:$0 sps:$4 sm:$0x11]  }
 0x206   : > { %v3493_v48 = vsel %vm1759_vm11, %v11421_v23, %v3365_v18  ;;  %v11429_v18 = vld [vmem:[#allocation38_spill] sm:$0xff]  ;;  %v3456_v7 = vrot.slane %v7605_v2, 1  ;;  %v11438_v2 = vld [vmem:[#allocation43_spill] sm:$0xff] }
 0x207   : > { %v1743_v52 = vsel %vm1710_vm10, %v1741_v11, %v1742_v33  ;;  %v7438_v15 = vcombine.low %v1306_v24, %v11429_v18  ;;  %v11430_v33 = vld [vmem:[#allocation36_spill] sm:$0xff]  ;;  %v8521_v0 = vld [vmem:[#allocation2 + $0x68] ss:$0 sps:$4 sm:$0x11]   ;;  %v3035_v31 = vld [vmem:[#allocation2 + $0x6c] sm:$0xe] }
 0x208   : > { %v1751_v23 = vrot.slane %v11430_v33, 1  ;;  %v8523_v18 = vld [vmem:[#allocation2 + $0x74] ss:$0 sps:$4 sm:$0x11]  }
 0x209   : > { %2899 = vmatmul.mubr.bf16.gmra.mrb[48].mxu0 %v1779_v57  ;;  %v8512_v57 = vld [vmem:[#allocation2 + $0x34] sm:$0xf]  ;;  %v1750_v59 = vrot.slane %v7438_v15, 1  ;;  %v3466_v15 = vrot.slane %v8523_v18, 1 }
 0x20a   : > { %7560 = vmatprep.mubr.msk.bf16.mxu0 %vm1759_vm11, %v1734_v49  ;;  %v7603_v5 = vcombine.low %v3030_v14, %v8512_v57  ;;  %v11422_v49 = vld [vmem:[#allocation27_spill] sm:$0xff]  ;;  %v3457_v14 = vrot.slane %v8517_v17, 1  ;;  %v11439_v17 = vld [vmem:[#allocation16_spill] sm:$0xff] }
 0x20b   : > { %v1788_v35 = vsel %vm1759_vm11, %v11422_v49, %v1649_v42  ;;  %v3033_v42 = vld [vmem:[#allocation2 + $0x54] sm:$0xe]  ;;  %v1752_v21 = vsel %vm1710_vm10, %v1750_v59, %v1751_v23 }
 0x20c   : > { %2682 = vmatmul.mubr.bf16.gmra.mrb[64].mxu1 %v2387_v45  ;;  %v3450_v40 = vrot.slane %v7603_v5, 1  ;;  %v1651_v45 = vpop.permute.xlu0 %1650  ;;  %v3458_v57 = vsel %vm1710_vm10, %v3456_v7, %v3457_v14  ;;  %v8518_v5 = vld [vmem:[#allocation2 + $0x58] sm:$0xf] }
 0x20d   : > { %7540 = vmatprep.mubr.msk.bf16.mxu1 %vm1759_vm11, %v2343_v54  ;;  %v1745_v54 = vrot.slane %v11424_v58, 1  ;;  %v1791_v12 = vsel %vm1759_vm11, %v11426_v6, %v1651_v45  ;;  %v7606_v49 = vcombine.low %v3033_v42, %v8518_v5  ;;  %v11433_v58 = vld [vmem:[#allocation41_spill] sm:$0xff]  ;;  %v11440_v5 = vld [vmem:[#allocation18_spill] sm:$0xff] }
 0x20f   : > { %v1746_v41 = vsel %vm1710_vm10, %v1744_v60, %v1745_v54  ;;  %v1754_v54 = vrot.slane %v11433_v58, 1 }
 0x210   : > { %v1653_v53 = vpop.permute.xlu0 %1652 }
 0x211   : > { %2907 = vmatmul.mubr.bf16.gmra.mrb[52].mxu0 %v1782_v16  ;;  %v3452_v16 = vsel %vm1710_vm10, %v3450_v40, %v3451_v30  ;;  %v3459_v40 = vrot.slane %v7606_v49, 1  ;;  %v3460_v30 = vrot.slane %v8519_v51, 1  ;;  %v3038_v51 = vld [vmem:[#allocation2 + $0x90] sm:$0xe] }
 0x212   : > { %7561 = vmatprep.mubr.msk.bf16.mxu0 %vm1759_vm11, %v1737_v46  ;;  %v8514_v46 = vld [vmem:[#allocation2 + $0x40] sm:$0xf] }
 0x213   : > { %v7604_v34 = vcombine.low %v3031_v47, %v8514_v46  ;;  %v3034_v47 = vld [vmem:[#allocation2 + $0x60] sm:$0xe]  ;;  %v8520_v46 = vld [vmem:[#allocation2 + $0x64] sm:$0xf] }
 0x214   : > { %2690 = vmatmul.mubr.bf16.gmra.mrb[68].mxu1 %v2390_v61  ;;  %v1748_v61 = vrot.slane %v9471_v55, 1  ;;  %v3371_v55 = vpop.permute.xlu1 %3370  ;;  %v1655_v11 = vpop.permute.xlu0 %1654 }
 0x215   : > { %7653 = vmatprep.mubr.msk.bf16.mxu1 %vm1759_vm11, %v3446_v13  ;;  %v3453_v50 = vrot.slane %v7604_v34, 1  ;;  %v3499_v13 = vsel %vm1759_vm11, %v11427_v38, %v3369_v43  ;;  %v11435_v34 = vld [vmem:[#allocation39_spill] sm:$0xff] }
 0x216   : > { %v1749_v26 = vsel %vm1710_vm10, %v1747_v29, %v1748_v61  ;;  %v1757_v61 = vrot.slane %v9524_v39, 1  ;;  %v11437_v38 = vld [vmem:[#allocation15_spill] sm:$0xff] }
 0x217   : > { %v3455_v9 = vsel %vm1710_vm10, %v3453_v50, %v3454_v36  ;;  %v3463_v36 = vrot.slane %v8521_v0, 1 }
 0x218   : > { %v3373_v32 = vpop.permute.xlu1 %3372  ;;  %v1657_v45 = vpop.permute.xlu0 %1656 }
 0x219   : > { %2915 = vmatmul.mubr.bf16.gmra.mrb[56].mxu0 %v1785_v28  ;;  %v11428_v28 = vld [vmem:[#allocation33_spill] sm:$0xff]  ;;  %v1800_v6 = vsel %vm1759_vm11, %v11435_v34, %v1657_v45 }
 0x21a   : > { %7562 = vmatprep.mubr.msk.bf16.mxu0 %vm1759_vm11, %v1740_v19  ;;  %v1794_v19 = vsel %vm1759_vm11, %v11428_v28, %v1653_v53 }
 0x21c   : > { %3718 = vmatmul.mubr.bf16.vlgmr.msra.gmra.mrb[72].mxu1 %v3493_v48  ;;  %v11431_v48 = vld [vmem:[#allocation13_spill] sm:$0xff]  ;;  %v3375_v43 = vpop.permute.xlu1 %3374  ;;  %v1659_v53 = vpop.permute.xlu0 %1658 }
 0x21d   : > { %7654 = vmatprep.mubr.msk.bf16.mxu1 %vm1759_vm11, %v3449_v37  ;;  %v3502_v44 = vsel %vm1759_vm11, %v11431_v48, %v3371_v55  ;;  %v1307_v37 = vld [vmem:[#allocation2 + $0xa8] sm:$0xe]  ;;  %v1803_v28 = vsel %vm1759_vm11, %v11438_v2, %v1659_v53  ;;  %v3036_v55 = vld [vmem:[#allocation2 + $0x78] sm:$0xe] }
 0x21e   : > { %v7439_v10 = vcombine.low %v1307_v37, %v9505_v22  ;;  %v7607_v22 = vcombine.low %v3034_v47, %v8520_v46  ;;  %v11442_v46 = vld [vmem:[#allocation25_spill] sm:$0xff]  ;;  %v3040_v53 = vld [vmem:[#allocation2 + $0xa8] sm:$0xe] }
 0x220   : > { %v1753_v60 = vrot.slane %v7439_v10, 1  ;;  %v3462_v50 = vrot.slane %v7607_v22, 1  ;;  %v1661_v7 = vpop.permute.xlu0 %1660 }
 0x221   : > { %2923 = vmatmul.mubr.bf16.gmra.mrb[60].mxu0 %v1788_v35  ;;  %v11432_v35 = vld [vmem:[#allocation35_spill] sm:$0xff]  ;;  %v1806_v33 = vsel %vm1759_vm11, %v9529_v56, %v1661_v7  ;;  %v11444_v7 = vld [vmem:[#allocation32_spill] sm:$0xff] }
 0x222   : > { %7563 = vmatprep.mubr.msk.bf16.mxu0 %vm1759_vm11, %v1743_v52  ;;  %v1797_v52 = vsel %vm1759_vm11, %v11432_v35, %v1655_v11  ;;  %v3464_v24 = vsel %vm1710_vm10, %v3462_v50, %v3463_v36  ;;  %v8524_v11 = vld [vmem:[#allocation2 + $0x7c] sm:$0xf]  ;;  %v8531_v50 = vld [vmem:[#allocation2 + $0xa4] ss:$0 sps:$4 sm:$0x11]  }
 0x223   : > { %v7609_v59 = vcombine.low %v3036_v55, %v8524_v11  ;;  %v3478_v0 = vrot.slane %v8531_v50, 1 }
 0x224   : > { %3726 = vmatmul.mubr.bf16.gmra.mrb[76].mxu1 %v3496_v3  ;;  %v3505_v3 = vsel %vm1759_vm11, %v11434_v1, %v3373_v32  ;;  %v8527_v32 = vld [vmem:[#allocation2 + $0x8c] ss:$0 sps:$4 sm:$0x11]  }
 0x225   : > { %7655 = vmatprep.mubr.msk.bf16.mxu1 %vm1759_vm11, %v3452_v16  ;;  %v3461_v16 = vsel %vm1710_vm10, %v3459_v40, %v3460_v30  ;;  %v3468_v48 = vrot.slane %v7609_v59, 1  ;;  %v3472_v40 = vrot.slane %v8527_v32, 1  ;;  %v11441_v30 = vld [vmem:[#allocation21_spill] sm:$0xff]  ;;  %v3043_v32 = vld [vmem:[#allocation2 + $0xcc] sm:$0xe] }
 0x229   : > { %2931 = vmatmul.mubr.bf16.gmra.mrb[64].mxu0 %v1791_v12  ;;  %v1755_v12 = vsel %vm1710_vm10, %v1753_v60, %v1754_v54  ;;  %v8528_v60 = vld [vmem:[#allocation2 + $0x94] sm:$0xf] }
 0x22a   : > { %7564 = vmatprep.mubr.msk.bf16.mxu0 %vm1759_vm11, %v1746_v41  ;;  %v11436_v41 = vld [vmem:[#allocation42_spill] sm:$0xff]  ;;  %v7611_v58 = vcombine.low %v3038_v51, %v8528_v60 }
 0x22b   : > { %v7440_v25 = vcombine.low %v1308_v62, %v11436_v41 }
 0x22c   : > { %3734 = vmatmul.mubr.bf16.gmra.mrb[80].mxu1 %v3499_v13  ;;  %v3508_v13 = vsel %vm1759_vm11, %v11437_v38, %v3375_v43  ;;  %v3474_v1 = vrot.slane %v7611_v58, 1 }
 0x22d   : > { %7656 = vmatprep.mubr.msk.bf16.mxu1 %vm1759_vm11, %v3455_v9  ;;  %v1756_v29 = vrot.slane %v7440_v25, 1  ;;  %v8522_v9 = vld [vmem:[#allocation2 + $0x70] sm:$0xf] }
 0x22e   : > { %v7608_v27 = vcombine.low %v3035_v31, %v8522_v9 }
 0x230   : > { %v3465_v39 = vrot.slane %v7608_v27, 1 }
 0x231   : > { %2939 = vmatmul.mubr.bf16.gmra.mrb[68].mxu0 %v1794_v19  ;;  %v1758_v19 = vsel %vm1710_vm10, %v1756_v29, %v1757_v61  ;;  %v11443_v61 = vld [vmem:[#allocation28_spill] sm:$0xff] }
 0x232   : > { %7565 = vmatprep.mubr.msk.bf16.mxu0 %vm1759_vm11, %v1749_v26  ;;  %v3377_v26 = vpop.permute.xlu1 %3376  ;;  %v3467_v42 = vsel %vm1710_vm10, %v3465_v39, %v3466_v15  ;;  %v3041_v15 = vld [vmem:[#allocation2 + $0xb4] sm:$0xe] }
 0x233   : > { %v3511_v14 = vsel %vm1759_vm11, %v11439_v17, %v3377_v26 }
 0x234   : > { %3742 = vmatmul.mubr.bf16.gmra.mrb[84].mxu1 %v3502_v44  ;;  %v8525_v44 = vld [vmem:[#allocation2 + $0x80] ss:$0 sps:$4 sm:$0x11]  }
 0x235   : > { %7657 = vmatprep.mubr.msk.bf16.mxu1 %vm1759_vm11, %v3458_v57  ;;  %v3469_v37 = vrot.slane %v8525_v44, 1  ;;  %v3037_v57 = vld [vmem:[#allocation2 + $0x84] sm:$0xe] }
 0x236   : > { %v3379_v23 = vpop.permute.xlu1 %3378 }
 0x237   : > { %v3514_v49 = vsel %vm1759_vm11, %v11440_v5, %v3379_v23  ;;  %v3470_v35 = vsel %vm1710_vm10, %v3468_v48, %v3469_v37  ;;  %v8535_v48 = vld [vmem:[#allocation2 + $0xbc] ss:$0 sps:$4 sm:$0x11]   ;;  %v3042_v5 = vld [vmem:[#allocation2 + $0xc0] sm:$0xe] }
 0x238   : > { %v3484_v44 = vrot.slane %v8535_v48, 1 }
 0x239   : > { %2947 = vmatmul.mubr.bf16.gmra.mrb[72].mxu0 %v1797_v52  ;;  %v8526_v52 = vld [vmem:[#allocation2 + $0x88] sm:$0xf] }
 0x23a   : > { %7566 = vmatprep.mubr.msk.bf16.mxu0 %vm1759_vm11, %v1752_v21  ;;  %v7610_v21 = vcombine.low %v3037_v57, %v8526_v52  ;;  %v3381_v10 = vpop.permute.xlu1 %3380 }
 0x23b   : > { %v3517_v47 = vsel %vm1759_vm11, %v11441_v30, %v3381_v10  ;;  %v8536_v10 = vld [vmem:[#allocation2 + $0xc4] sm:$0xf]  ;;  %v8537_v30 = vld [vmem:[#allocation2 + $0xc8] ss:$0 sps:$4 sm:$0x11]  }
 0x23c   : > { %3750 = vmatmul.mubr.bf16.gmra.mrb[88].mxu1 %v3505_v3  ;;  %v3471_v56 = vrot.slane %v7610_v21, 1  ;;  %v8529_v3 = vld [vmem:[#allocation2 + $0x98] ss:$0 sps:$4 sm:$0x11]  }
 0x23d   : > { %7658 = vmatprep.mubr.msk.bf16.mxu1 %vm1759_vm11, %v3461_v16  ;;  %v3475_v62 = vrot.slane %v8529_v3, 1  ;;  %v3039_v16 = vld [vmem:[#allocation2 + $0x9c] sm:$0xe] }
 0x23e   : > { %v3473_v45 = vsel %vm1710_vm10, %v3471_v56, %v3472_v40  ;;  %v3383_v54 = vpop.permute.xlu1 %3382  ;;  %v7615_v56 = vcombine.low %v3042_v5, %v8536_v10 }
 0x23f   : > { %v3520_v22 = vsel %vm1759_vm11, %v11442_v46, %v3383_v54  ;;  %v3476_v34 = vsel %vm1710_vm10, %v3474_v1, %v3475_v62  ;;  %v7616_v54 = vcombine.low %v3043_v32, %v9591_v4  ;;  %v11446_v1 = vld [vmem:[#allocation37_spill] sm:$0xff] }
 0x240   : > { %v3486_v51 = vrot.slane %v7615_v56, 1 }
 0x241   : > { %2955 = vmatmul.mubr.bf16.gmra.mrb[76].mxu0 %v1800_v6  ;;  %v8530_v6 = vld [vmem:[#allocation2 + $0xa0] sm:$0xf]  ;;  %v3489_v46 = vrot.slane %v7616_v54, 1 }
 0x242   : > { %7567 = vmatprep.mubr.msk.bf16.mxu0 %vm1759_vm11, %v1755_v12  ;;  %v7612_v12 = vcombine.low %v3039_v16, %v8530_v6  ;;  %v3385_v25 = vpop.permute.xlu1 %3384 }
 0x243   : > { %v3523_v38 = vsel %vm1759_vm11, %v11443_v61, %v3385_v25 }
 0x244   : > { %3758 = vmatmul.mubr.bf16.gmra.mrb[92].mxu1 %v3508_v13  ;;  %v3477_v43 = vrot.slane %v7612_v12, 1  ;;  %v11447_v12 = vld [vmem:[#allocation40_spill] sm:$0xff] }
 0x245   : > { %7659 = vmatprep.mubr.msk.bf16.mxu1 %vm1759_vm11, %v3464_v24  ;;  %v8532_v24 = vld [vmem:[#allocation2 + $0xac] sm:$0xf] }
 0x246   : > { %v3479_v13 = vsel %vm1710_vm10, %v3477_v43, %v3478_v0  ;;  %v7613_v9 = vcombine.low %v3040_v53, %v8532_v24  ;;  %v3387_v2 = vpop.permute.xlu1 %3386 }
 0x247   : > { %v3526_v17 = vsel %vm1759_vm11, %v11444_v7, %v3387_v2 }
 0x249   : > { %2963 = vmatmul.mubr.bf16.gmra.mrb[80].mxu0 %v1803_v28  ;;  %v3480_v28 = vrot.slane %v7613_v9, 1 }
 0x24a   : > { %7568 = vmatprep.mubr.msk.bf16.mxu0 %vm1759_vm11, %v1758_v19  ;;  %v8533_v19 = vld [vmem:[#allocation2 + $0xb0] ss:$0 sps:$4 sm:$0x11]  }
 0x24b   : > { %v3481_v26 = vrot.slane %v8533_v19, 1 }
 0x24c   : > { %3766 = vmatmul.mubr.bf16.gmra.mrb[96].mxu1 %v3511_v14 }
 0x24d   : > { %7660 = vmatprep.mubr.msk.bf16.mxu1 %vm1759_vm11, %v3467_v42  ;;  %v3482_v14 = vsel %vm1710_vm10, %v3480_v28, %v3481_v26  ;;  %v8534_v42 = vld [vmem:[#allocation2 + $0xb8] sm:$0xf] }
 0x24e   : > { %v7614_v11 = vcombine.low %v3041_v15, %v8534_v42 }
 0x250   : > { %v3483_v23 = vrot.slane %v7614_v11, 1 }
 0x251   : > { %2971 = vmatmul.mubr.bf16.gmra.mrb[84].mxu0 %v1806_v33  ;;  %v3389_v33 = vpop.permute.xlu1 %3388 }
 0x252   : > { %v3485_v21 = vsel %vm1710_vm10, %v3483_v23, %v3484_v44 }
 0x254   : > { %3774 = vmatmul.mubr.bf16.gmra.mrb[100].mxu1 %v3514_v49 }
 0x255   : > { %7661 = vmatprep.mubr.msk.bf16.mxu1 %vm1759_vm11, %v3470_v35  ;;  %v11445_v35 = vld [vmem:[#allocation34_spill] sm:$0xff]  ;;  %v3391_v40 = vpop.permute.xlu1 %3390 }
 0x256   : > { %v3529_v52 = vsel %vm1759_vm11, %v11445_v35, %v3389_v33  ;;  %v3532_v3 = vsel %vm1759_vm11, %v11446_v1, %v3391_v40 }
 0x25c   : > { %3782 = vmatmul.mubr.bf16.gmra.mrb[104].mxu1 %v3517_v47  ;;  %v3487_v47 = vrot.slane %v8537_v30, 1 }
 0x25d   : > { %7662 = vmatprep.mubr.msk.bf16.mxu1 %vm1759_vm11, %v3473_v45 }
 0x25e   : > { %v3488_v16 = vsel %vm1710_vm10, %v3486_v51, %v3487_v47 }
 0x264   : > { %3790 = vmatmul.mubr.bf16.gmra.mrb[108].mxu1 %v3520_v22  ;;  %v3490_v22 = vrot.slane %v9593_v63, 1  ;;  %v8303_v63 = vld [vmem:[%s11281_s5 + $0x60] sm:$0xff]  }
 0x265   : > { %7663 = vmatprep.mubr.msk.bf16.mxu1 %vm1759_vm11, %v3476_v34  ;;  %v3393_v34 = vpop.permute.xlu1 %3392  ;;  %5766 = vmatpush1.bf16.msra.mxu0 %v8303_v63 }
 0x266   : > { %v3491_v6 = vsel %vm1710_vm10, %v3489_v46, %v3490_v22  ;;  %v3535_v25 = vsel %vm1759_vm11, %v11447_v12, %v3393_v34  ;;  %5767 = vmatprep.subr.bf16.mxu0 %v11410_v20 }
 0x269   : > { %v3395_v4 = vpop.permute.xlu1 %3394 }
 0x26c   : > { %3798 = vmatmul.mubr.bf16.gmra.mrb[112].mxu1 %v3523_v38 }
 0x26d   : > { %v9812_v41 = vpop.f32.mrb[8].mxu1  ;;  %7664 = vmatprep.mubr.msk.bf16.mxu1 %vm1759_vm11, %v3479_v13 }
 0x26e   : > { %v2573_v36 = vpop.f32.mrb[9].mxu1 }
 0x26f   : > { %v9814_v31 = vpop.f32.mrb[10].mxu1  ;;  %v3538_v36 = vsel %vm1759_vm11, %v9601_v8, %v3395_v4  ;;  %v8307_v8 = vld [vmem:[%s11281_s5 + $0x68] sm:$0xff]  }
 0x270   : > { %v2576_v29 = vpop.f32.mrb[11].mxu1  ;;  %5768 = vmatpush1.bf16.msra.mxu0 %v8307_v8 }
 0x271   : > { %5769 = vmatprep.subr.bf16.mxu0 %v11410_v20 }
 0x274   : > { %3806 = vmatmul.mubr.bf16.gmra.mrb[116].mxu1 %v3526_v17 }
 0x275   : > { %v9820_v27 = vpop.f32.mrb[12].mxu1  ;;  %7665 = vmatprep.mubr.msk.bf16.mxu1 %vm1759_vm11, %v3482_v14  ;;  %v8310_v14 = vld [vmem:[%s11281_s5 + $0x70] sm:$0xff]  }
 0x276   : > { %v2581_v39 = vpop.f32.mrb[13].mxu1  ;;  %5770 = vmatpush1.bf16.msra.mxu0 %v8310_v14 }
 0x277   : > { %v9822_v18 = vpop.f32.mrb[14].mxu1  ;;  %5771 = vmatprep.subr.bf16.mxu0 %v11410_v20 }
 0x278   : > { %v2584_v55 = vpop.f32.mrb[15].mxu1 }
 0x27c   : > { %3814 = vmatmul.mubr.bf16.gmra.mrb[120].mxu1 %v3529_v52 }
 0x27d   : > { %v9828_v59 = vpop.f32.mrb[16].mxu1  ;;  %7666 = vmatprep.mubr.msk.bf16.mxu1 %vm1759_vm11, %v3485_v21 }
 0x27e   : > { %v2589_v37 = vpop.f32.mrb[17].mxu1 }
 0x27f   : > { %v9830_v57 = vpop.f32.mrb[18].mxu1  ;;  %v8313_v37 = vld [vmem:[%s11281_s5 + $0x78] sm:$0xff]  }
 0x280   : > { %v2592_v49 = vpop.f32.mrb[19].mxu1  ;;  %5772 = vmatpush1.bf16.msra.mxu0 %v8313_v37 }
 0x281   : > { %5773 = vmatprep.subr.bf16.mxu0 %v11410_v20 }
 0x284   : > { %3822 = vmatmul.mubr.bf16.gmra.mrb[124].mxu1 %v3532_v3 }
 0x285   : > { %v9836_v45 = vpop.f32.mrb[20].mxu1  ;;  %7667 = vmatprep.mubr.msk.bf16.mxu1 %vm1759_vm11, %v3488_v16  ;;  %v8316_v16 = vld [vmem:[%s11281_s5 + $0x80] sm:$0xff]  }
 0x286   : > { %v2597_v60 = vpop.f32.mrb[21].mxu1  ;;  %5774 = vmatpush1.bf16.msra.mxu0 %v8316_v16 }
 0x287   : > { %v9838_v58 = vpop.f32.mrb[22].mxu1  ;;  %5775 = vmatprep.subr.bf16.mxu0 %v11410_v20 }
 0x288   : > { %v2600_v62 = vpop.f32.mrb[23].mxu1 }
 0x28c   : > { %3830 = vmatmul.mubr.bf16.gmra.mrb[128].mxu1 %v3535_v25 }
 0x28d   : > { %7668 = vmatprep.mubr.msk.bf16.mxu1 %vm1759_vm11, %v3491_v6 }
 0x28f   : > { %v9850_v43 = vpop.f32.mrb[24].mxu1 }
 0x290   : > { %v2605_v50 = vpop.f32.mrb[25].mxu1 }
 0x291   : > { %v9852_v0 = vpop.f32.mrb[26].mxu1 }
 0x292   : > { %v2608_v53 = vpop.f32.mrb[27].mxu1 }
 0x293   : > { %v8321_v53 = vld [vmem:[%s11281_s5 + $0x88] sm:$0xff]  }
 0x294   : > { %3838 = vmatmul.mubr.bf16.gmra.mrb[132].mxu1 %v3538_v36  ;;  %5776 = vmatpush1.bf16.msra.mxu0 %v8321_v53 }
 0x295   : > { %5777 = vmatprep.subr.bf16.mxu0 %v11410_v20 }
 0x297   : > { %v9860_v29 = vpop.f32.mrb[28].mxu1 }
 0x298   : > { %v2613_v61 = vpop.f32.mrb[29].mxu1 }
 0x299   : > { %v9862_v38 = vpop.f32.mrb[30].mxu1 }
 0x29a   : > { %v2616_v13 = vpop.f32.mrb[31].mxu1 }
 0x29f   : > { %v9864_v24 = vpop.f32.mrb[32].mxu1 }
 0x2a0   : > { %v2621_v9 = vpop.f32.mrb[33].mxu1 }
 0x2a1   : > { %v9866_v2 = vpop.f32.mrb[34].mxu1 }
 0x2a2   : > { %v2624_v28 = vpop.f32.mrb[35].mxu1 }
 0x2a7   : > { %v9872_v19 = vpop.f32.mrb[36].mxu1 }
 0x2a8   : > { %v2629_v26 = vpop.f32.mrb[37].mxu1 }
 0x2a9   : > { %v9874_v15 = vpop.f32.mrb[38].mxu1  ;;  %v8324_v26 = vld [vmem:[%s11281_s5 + $0x90] sm:$0xff]  }
 0x2aa   : > { %v2632_v17 = vpop.f32.mrb[39].mxu1  ;;  %5778 = vmatpush1.bf16.msra.mxu0 %v8324_v26 }
 0x2ab   : > { %5779 = vmatprep.subr.bf16.mxu0 %v11410_v20 }
 0x2ac   : > { %v2852_v39 = vpop.f32.mrb[24].mxu0 }
 0x2ad   : > { %v9877_v55 = vadd.f32 %v2852_v39, %v9812_v41  ;;  %v2854_v7 = vpop.f32.mrb[25].mxu0 }
 0x2ae   : > { %v2855_v42 = vpop.f32.mrb[26].mxu0 }
 0x2af   : > { %v9883_v11 = vadd.f32 %v2855_v42, %v9814_v31  ;;  %v2857_v33 = vpop.f32.mrb[27].mxu0  ;;  %v9886_v23 = vpop.f32.mrb[40].mxu1 }
 0x2b0   : > { %v2637_v48 = vpop.f32.mrb[41].mxu1 }
 0x2b1   : > { %v9888_v41 = vpop.f32.mrb[42].mxu1 }
 0x2b2   : > { %v2640_v31 = vpop.f32.mrb[43].mxu1 }
 0x2b4   : > { %v2860_v44 = vpop.f32.mrb[28].mxu0 }
 0x2b5   : > { %v9894_v5 = vadd.f32 %v2860_v44, %v9820_v27  ;;  %v2862_v49 = vpop.f32.mrb[29].mxu0 }
 0x2b6   : > { %v2863_v35 = vpop.f32.mrb[30].mxu0 }
 0x2b7   : > { %v9897_v52 = vadd.f32 %v2863_v35, %v9822_v18  ;;  %v2865_v21 = vpop.f32.mrb[31].mxu0  ;;  %v9900_v10 = vpop.f32.mrb[44].mxu1 }
 0x2b8   : > { %v2645_v56 = vpop.f32.mrb[45].mxu1 }
 0x2b9   : > { %v9902_v40 = vpop.f32.mrb[46].mxu1 }
 0x2ba   : > { %v2648_v30 = vpop.f32.mrb[47].mxu1 }
 0x2bc   : > { %v2868_v32 = vpop.f32.mrb[32].mxu0 }
 0x2bd   : > { %v9905_v51 = vadd.f32 %v2868_v32, %v9828_v59  ;;  %v2870_v27 = vpop.f32.mrb[33].mxu0 }
 0x2be   : > { %v2871_v47 = vpop.f32.mrb[34].mxu0 }
 0x2bf   : > { %v9908_v60 = vadd.f32 %v2871_v47, %v9830_v57  ;;  %v2873_v18 = vpop.f32.mrb[35].mxu0  ;;  %v9910_v54 = vpop.f32.mrb[48].mxu1  ;;  %v8327_v47 = vld [vmem:[%s11281_s5 + $0x98] sm:$0xff]  }
 0x2c0   : > { %v2653_v1 = vpop.f32.mrb[49].mxu1  ;;  %5780 = vmatpush1.bf16.msra.mxu0 %v8327_v47 }
 0x2c1   : > { %v9912_v62 = vpop.f32.mrb[50].mxu1  ;;  %5781 = vmatprep.subr.bf16.mxu0 %v11410_v20 }
 0x2c2   : > { %v2656_v22 = vpop.f32.mrb[51].mxu1 }
 0x2c4   : > { %v2876_v3 = vpop.f32.mrb[36].mxu0 }
 0x2c5   : > { %v9918_v59 = vadd.f32 %v2876_v3, %v9836_v45  ;;  %v2878_v46 = vpop.f32.mrb[37].mxu0 }
 0x2c6   : > { %v2879_v34 = vpop.f32.mrb[38].mxu0 }
 0x2c7   : > { %v9921_v57 = vadd.f32 %v2879_v34, %v9838_v58  ;;  %v2881_v6 = vpop.f32.mrb[39].mxu0  ;;  %v9924_v12 = vpop.f32.mrb[52].mxu1 }
 0x2c8   : > { %v2661_v25 = vpop.f32.mrb[53].mxu1 }
 0x2c9   : > { %v9926_v50 = vpop.f32.mrb[54].mxu1 }
 0x2ca   : > { %v2664_v63 = vpop.f32.mrb[55].mxu1 }
 0x2cc   : > { %v2884_v4 = vpop.f32.mrb[40].mxu0 }
 0x2cd   : > { %v9929_v36 = vadd.f32 %v2884_v4, %v9850_v43  ;;  %v2886_v45 = vpop.f32.mrb[41].mxu0 }
 0x2ce   : > { %v2887_v58 = vpop.f32.mrb[42].mxu0  ;;  %v8332_v45 = vld [vmem:[%s11281_s5 + $0xa0] sm:$0xff]  }
 0x2cf   : > { %v9935_v61 = vadd.f32 %v2887_v58, %v9852_v0  ;;  %v2889_v13 = vpop.f32.mrb[43].mxu0  ;;  %v9938_v9 = vpop.f32.mrb[56].mxu1  ;;  %5782 = vmatpush1.bf16.msra.mxu0 %v8332_v45  ;;  %v8338_v45 = vld [vmem:[%s11281_s5 + $0xb0] sm:$0xff]  }
 0x2d0   : > { %v2669_v8 = vpop.f32.mrb[57].mxu1  ;;  %5783 = vmatprep.subr.bf16.mxu0 %v11410_v20 }
 0x2d1   : > { %v9940_v43 = vpop.f32.mrb[58].mxu1 }
 0x2d2   : > { %v2672_v0 = vpop.f32.mrb[59].mxu1 }
 0x2d4   : > { %v2892_v28 = vpop.f32.mrb[44].mxu0 }
 0x2d5   : > { %v9946_v39 = vadd.f32 %v2892_v28, %v9860_v29  ;;  %v2894_v7 = vpop.f32.mrb[45].mxu0 }
 0x2d6   : > { %v2895_v17 = vpop.f32.mrb[46].mxu0 }
 0x2d7   : > { %v9949_v14 = vadd.f32 %v2895_v17, %v9862_v38  ;;  %v2897_v42 = vpop.f32.mrb[47].mxu0  ;;  %v9952_v33 = vpop.f32.mrb[60].mxu1 }
 0x2d8   : > { %v2677_v48 = vpop.f32.mrb[61].mxu1 }
 0x2d9   : > { %v9954_v37 = vpop.f32.mrb[62].mxu1 }
 0x2da   : > { %v2680_v31 = vpop.f32.mrb[63].mxu1 }
 0x2dc   : > { %v2900_v44 = vpop.f32.mrb[48].mxu0 }
 0x2dd   : > { %v9957_v49 = vadd.f32 %v2900_v44, %v9864_v24  ;;  %v2902_v29 = vpop.f32.mrb[49].mxu0 }
 0x2de   : > { %v2903_v35 = vpop.f32.mrb[50].mxu0 }
 0x2df   : > { %v9960_v21 = vadd.f32 %v2903_v35, %v9866_v2  ;;  %v2905_v38 = vpop.f32.mrb[51].mxu0  ;;  %v9962_v56 = vpop.f32.mrb[64].mxu1 }
 0x2e0   : > { %v2685_v32 = vpop.f32.mrb[65].mxu1 }
 0x2e1   : > { %v9964_v30 = vpop.f32.mrb[66].mxu1 }
 0x2e2   : > { %v2688_v1 = vpop.f32.mrb[67].mxu1 }
 0x2e4   : > { %v2908_v27 = vpop.f32.mrb[52].mxu0 }
 0x2e5   : > { %v9970_v24 = vadd.f32 %v2908_v27, %v9872_v19  ;;  %v2910_v18 = vpop.f32.mrb[53].mxu0 }
 0x2e6   : > { %v2911_v3 = vpop.f32.mrb[54].mxu0 }
 0x2e7   : > { %v9973_v2 = vadd.f32 %v2911_v3, %v9874_v15  ;;  %v2913_v16 = vpop.f32.mrb[55].mxu0  ;;  %v9976_v46 = vpop.f32.mrb[68].mxu1 }
 0x2e8   : > { %v2693_v22 = vpop.f32.mrb[69].mxu1 }
 0x2e9   : > { %v9978_v6 = vpop.f32.mrb[70].mxu1 }
 0x2ea   : > { %v2696_v4 = vpop.f32.mrb[71].mxu1 }
 0x2ec   : > { %v2916_v34 = vpop.f32.mrb[56].mxu0 }
 0x2ed   : > { %v9981_v25 = vadd.f32 %v2916_v34, %v9886_v23  ;;  %v2918_v19 = vpop.f32.mrb[57].mxu0  ;;  %v9993_v23 = vld [vmem:[%s11280_s4] ss:$0 sm:$0xff] }
 0x2ee   : > { %v2919_v15 = vpop.f32.mrb[58].mxu0 }
 0x2ef   : > { %v9987_v63 = vadd.f32 %v2919_v15, %v9888_v41  ;;  %v2921_v53 = vpop.f32.mrb[59].mxu0  ;;  %v3719_v58 = vpop.f32.mrb[72].mxu1  ;;  %v8335_v41 = vld [vmem:[%s11281_s5 + $0xa8] sm:$0xff]  }
 0x2f0   : > { %v3846_v13 = vadd.f32 %v3719_v58, %v9877_v55  ;;  %v3721_v8 = vpop.f32.mrb[73].mxu1  ;;  %5784 = vmatpush1.bf16.msra.mxu0 %v8335_v41 }
 0x2f1   : > { %v3722_v26 = vpop.f32.mrb[74].mxu1  ;;  %5785 = vmatprep.subr.bf16.mxu0 %v11410_v20 }
 0x2f2   : > { %v3885_v17 = vadd.f32 %v9993_v23, %v3846_v13  ;;  %v3847_v42 = vadd.f32 %v3722_v26, %v9883_v11  ;;  %v3724_v48 = vpop.f32.mrb[75].mxu1 }
 0x2f4   : > { %v2924_v28 = vpop.f32.mrb[60].mxu0  ;;  %v3917_v31 = vmax.f32 %v3885_v17, 0.0  ;;  %v3886_v35 = vadd.f32 %v9993_v23, %v3847_v42  ;;  %5786 = vmatpush1.bf16.msra.mxu0 %v8338_v45  ;;  %v8538_v42 = vld [vmem:[#allocation2 + $0xc] sm:$0xf] }
 0x2f5   : > { %v10000_v7 = vadd.f32 %v2924_v28, %v9900_v10  ;;  %v2926_v0 = vpop.f32.mrb[61].mxu0  ;;  %5787 = vmatprep.subr.bf16.mxu0 %v11410_v20 }
 0x2f6   : > { %v2927_v44 = vpop.f32.mrb[62].mxu0  ;;  %v8015_v38 = vpack.c.bf16 %v3917_v31, %v3917_v31  ;;  %v3918_v10 = vmax.f32 %v3886_v35, 0.0 }
 0x2f7   : > { %v10005_v55 = vadd.f32 %v2927_v44, %v9902_v40  ;;  %v2929_v29 = vpop.f32.mrb[63].mxu0  ;;  %v3727_v32 = vpop.f32.mrb[76].mxu1 }
 0x2f8   : > { %v4046_v27 = vshrl.u32 %v8015_v38, 16  ;;  %v8016_v47 = vpack.c.bf16 %v3918_v10, %v3918_v10  ;;  %v3848_v18 = vadd.f32 %v3727_v32, %v9894_v5  ;;  %v3729_v11 = vpop.f32.mrb[77].mxu1  ;;  %v4049_v22 = vshll.u32 %v8015_v38, 16 }
 0x2f9   : > { %v3730_v3 = vpop.f32.mrb[78].mxu1 }
 0x2fa   : > { %v4048_v16 = vrot.slane %v4046_v27, 7  ;;  %v4054_v40 = vshrl.u32 %v8016_v47, 16  ;;  %v3732_v4 = vpop.f32.mrb[79].mxu1  ;;  %v3887_v53 = vadd.f32 %v9993_v23, %v3848_v18  ;;  %v3849_v5 = vadd.f32 %v3730_v3, %v9897_v52 }
 0x2fb   : > { %v4057_v8 = vshll.u32 %v8016_v47, 16 }
 0x2fc   : > { %v2932_v1 = vpop.f32.mrb[64].mxu0  ;;  %v4051_v58 = vor.u32 %v4049_v22, %v4048_v16  ;;  %v4056_v13 = vrot.slane %v4054_v40, 7  ;;  %v3919_v41 = vmax.f32 %v3887_v53, 0.0  ;;  %v3888_v0 = vadd.f32 %v9993_v23, %v3849_v5 }
 0x2fd   : > { %v10011_v34 = vadd.f32 %v2932_v1, %v9910_v54  ;;  %v2934_v19 = vpop.f32.mrb[65].mxu0  ;;  %v8343_v54 = vld [vmem:[%s11281_s5 + $0xb8] sm:$0xff]   ;;  %v4052_v17 = vrot.slane %v4048_v16, 4 }
 0x2fe   : > { %v2935_v15 = vpop.f32.mrb[66].mxu0  ;;  %v4365_v48 = vsel %vm8840_vm7, %v4051_v58, %v8538_v42  ;;  %v4059_v44 = vor.u32 %v4057_v8, %v4056_v13  ;;  %v4061_v29 = vrot.slane %v4056_v13, 4  ;;  %v8017_v31 = vpack.c.bf16 %v3919_v41, %v3919_v41  ;;  %5788 = vmatpush1.bf16.msra.mxu0 %v8343_v54  ;;  %v4371_v42 = vld [vmem:[#allocation2 + $0x18] sm:$0xf] }
 0x2ff   : > { %v10019_v28 = vadd.f32 %v2935_v15, %v9912_v62  ;;  %v2937_v26 = vpop.f32.mrb[67].mxu0  ;;  %4366 = vst [vmem:[#allocation2 + $0xc] sm:$0xf] %v4365_v48  ;;  %v4368_v62 = vld [vmem:[#allocation2 + $0x14] sm:$0x1]  ;;  %v3920_v35 = vmax.f32 %v3888_v0, 0.0  ;;  %6912 = vmatprep.subr.bf16.mxu0 %v11410_v20 }
 0x300   : > { %v3735_v38 = vpop.f32.mrb[80].mxu1  ;;  %v4060_v32 = vsel %vm8847_vm8, %v4052_v17, %v4059_v44  ;;  %v4369_v47 = vsel %vm8854_vm9, %v4061_v29, %v4368_v62  ;;  %v4063_v1 = vshrl.u32 %v8017_v31, 16  ;;  %v8346_v15 = vld [vmem:[%s11281_s5] sm:$0xff]   ;;  %v4066_v5 = vshll.u32 %v8017_v31, 16 }
 0x301   : > { %v3850_v18 = vadd.f32 %v3735_v38, %v9905_v51  ;;  %v3737_v11 = vpop.f32.mrb[81].mxu1  ;;  %4367 = vst.msk [vmem:[#allocation2 + $0x10] sm:$0xf] %vm280_vm1, %v4060_v32  ;;  %4370 = vst [vmem:[#allocation2 + $0x14] sm:$0x1] %v4369_v47  ;;  %v8018_v3 = vpack.c.bf16 %v3920_v35, %v3920_v35  ;;  %6047 = vmatpush1.bf16.msra.mxu1 %v8346_v15 }
 0x302   : > { %v3738_v22 = vpop.f32.mrb[82].mxu1  ;;  %v4065_v53 = vrot.slane %v4063_v1, 7  ;;  %6048 = vmatprep.subr.bf16.mxu1 %v11410_v20  ;;  %v4375_v48 = vld [vmem:[#allocation2 + $0x20] sm:$0x1] }
 0x303   : > { %v3889_v4 = vadd.f32 %v9993_v23, %v3850_v18  ;;  %v3851_v45 = vadd.f32 %v3738_v22, %v9908_v60  ;;  %v3740_v51 = vpop.f32.mrb[83].mxu1  ;;  %v4071_v58 = vshrl.u32 %v8018_v3, 16  ;;  %v4074_v60 = vshll.u32 %v8018_v3, 16 }
 0x304   : > { %v2940_v16 = vpop.f32.mrb[68].mxu0  ;;  %v4068_v41 = vor.u32 %v4066_v5, %v4065_v53  ;;  %v4069_v17 = vrot.slane %v4065_v53, 4 }
 0x305   : > { %v10036_v40 = vadd.f32 %v2940_v16, %v9924_v12  ;;  %v2942_v19 = vpop.f32.mrb[69].mxu0  ;;  %v3921_v12 = vmax.f32 %v3889_v4, 0.0  ;;  %v3890_v54 = vadd.f32 %v9993_v23, %v3851_v45  ;;  %v4073_v0 = vrot.slane %v4071_v58, 7 }
 0x306   : > { %v2943_v13 = vpop.f32.mrb[70].mxu0  ;;  %v4372_v62 = vsel %vm8840_vm7, %v4068_v41, %v4371_v42  ;;  %v5060_v38 = vld [vmem:[#allocation2 + $0xc] sm:$0xf] }
 0x307   : > { %v10044_v8 = vadd.f32 %v2943_v13, %v9926_v50  ;;  %v2945_v26 = vpop.f32.mrb[71].mxu0  ;;  %v8019_v44 = vpack.c.bf16 %v3921_v12, %v3921_v12  ;;  %v3922_v29 = vmax.f32 %v3890_v54, 0.0  ;;  %v4076_v50 = vor.u32 %v4074_v60, %v4073_v0  ;;  %v3743_v35 = vpop.f32.mrb[84].mxu1  ;;  %v5108_v32 = vld [vmem:[#allocation2 + $0xc] sm:$0xe] }
 0x308   : > { %v4078_v31 = vrot.slane %v4073_v0, 4  ;;  %4373 = vst [vmem:[#allocation2 + $0x18] sm:$0xf] %v4372_v62  ;;  %v3852_v1 = vadd.f32 %v3743_v35, %v9918_v59  ;;  %v3745_v3 = vpop.f32.mrb[85].mxu1  ;;  %v5061_v16 = vld [vmem:[#allocation2 + $0x10] sm:$0xf] }
 0x309   : > { %v4080_v47 = vshrl.u32 %v8019_v44, 16  ;;  %v4083_v18 = vshll.u32 %v8019_v44, 16  ;;  %v8020_v11 = vpack.c.bf16 %v3922_v29, %v3922_v29  ;;  %v4077_v22 = vsel %vm8847_vm8, %v4069_v17, %v4076_v50  ;;  %v3746_v45 = vpop.f32.mrb[86].mxu1  ;;  %v8305_v0 = vld [vmem:[#allocation2 + $0x14] ss:$0 sps:$4 sm:$0x11]  }
 0x30a   : > { %v4376_v19 = vsel %vm8854_vm9, %v4078_v31, %v4375_v48  ;;  %v10055_v51 = vcombine.low %v5060_v38, %v5061_v16  ;;  %v7782_v15 = vcombine.low %v5108_v32, %v5061_v16  ;;  %4374 = vst.msk [vmem:[#allocation2 + $0x1c] sm:$0xf] %vm280_vm1, %v4077_v22  ;;  %v3748_v26 = vpop.f32.mrb[87].mxu1  ;;  %v3891_v54 = vadd.f32 %v9993_v23, %v3852_v1 }
 0x30b   : > { %4377 = vst [vmem:[#allocation2 + $0x20] sm:$0x1] %v4376_v19  ;;  %v4082_v53 = vrot.slane %v4080_v47, 7  ;;  %v4088_v5 = vshrl.u32 %v8020_v11, 16  ;;  %v4091_v58 = vshll.u32 %v8020_v11, 16  ;;  %v3853_v41 = vadd.f32 %v3746_v45, %v9921_v57 }
 0x30c   : > { %v2948_v4 = vpop.f32.mrb[72].mxu0  ;;  %v5524_v60 = vrot.slane %v7782_v15, 1  ;;  %v5253_v17 = vshrl.u32 %v10055_v51, 16  ;;  %v3923_v50 = vmax.f32 %v3891_v54, 0.0  ;;  %v5525_v35 = vrot.slane %v8305_v0, 1 }
 0x30d   : > { %v10059_v59 = vadd.f32 %v2948_v4, %v9938_v9  ;;  %v2950_v13 = vpop.f32.mrb[73].mxu0  ;;  %v4085_v42 = vor.u32 %v4083_v18, %v4082_v53  ;;  %v4086_v48 = vrot.slane %v4082_v53, 4  ;;  %v4090_v44 = vrot.slane %v4088_v5, 7  ;;  %v4378_v9 = vld [vmem:[#allocation2 + $0x24] sm:$0xf] }
 0x30e   : > { %v2951_v12 = vpop.f32.mrb[74].mxu0  ;;  %v3892_v31 = vadd.f32 %v9993_v23, %v3853_v41  ;;  %v5255_v38 = vshll.u32 %v10055_v51, 16  ;;  %v5260_v11 = vshll.u32 %v8305_v0, 16  ;;  %v4382_v18 = vld [vmem:[#allocation2 + $0x2c] sm:$0x1]  ;;  %v8021_v1 = vpack.c.bf16 %v3923_v50, %v3923_v50 }
 0x30f   : > { %v10065_v29 = vadd.f32 %v2951_v12, %v9940_v43  ;;  %v2953_v62 = vpop.f32.mrb[75].mxu0  ;;  %v4379_v57 = vsel %vm8840_vm7, %v4085_v42, %v4378_v9  ;;  %v4093_v32 = vor.u32 %v4091_v58, %v4090_v44  ;;  %v4095_v47 = vrot.slane %v4090_v44, 4  ;;  %v3751_v16 = vpop.f32.mrb[88].mxu1  ;;  %v5062_v53 = vld [vmem:[#allocation2 + $0x18] sm:$0xf] }
 0x310   : > { %4380 = vst [vmem:[#allocation2 + $0x24] sm:$0xf] %v4379_v57  ;;  %v3924_v3 = vmax.f32 %v3892_v31, 0.0  ;;  %v5526_v43 = vsel %vm1710_vm10, %v5524_v60, %v5525_v35  ;;  %v5257_v22 = vrot.slane %v5255_v38, 1  ;;  %v3854_v45 = vadd.f32 %v3751_v16, %v9929_v36  ;;  %v3753_v15 = vpop.f32.mrb[89].mxu1 }
 0x311   : > { %v4094_v19 = vsel %vm8847_vm8, %v4086_v48, %v4093_v32  ;;  %v4383_v4 = vsel %vm8854_vm9, %v4095_v47, %v4382_v18  ;;  %7834 = vmatprep.mubr.msk.bf16.mxu0 %vm1759_vm11, %v5526_v43  ;;  %v4097_v5 = vshrl.u32 %v8021_v1, 16  ;;  %v3754_v26 = vpop.f32.mrb[90].mxu1  ;;  %v5262_v54 = vrot.slane %v5260_v11, 1  ;;  %v10079_v41 = vld [vmem:[#allocation2 + $0x1c] sm:$0xf] }
 0x312   : > { %4381 = vst.msk [vmem:[#allocation2 + $0x28] sm:$0xf] %vm280_vm1, %v4094_v19  ;;  %4384 = vst [vmem:[#allocation2 + $0x2c] sm:$0x1] %v4383_v4  ;;  %v8022_v58 = vpack.c.bf16 %v3924_v3, %v3924_v3  ;;  %v5258_v12 = vor.u32 %v5257_v22, %v5253_v17  ;;  %v3893_v42 = vadd.f32 %v9993_v23, %v3854_v45  ;;  %v3756_v48 = vpop.f32.mrb[91].mxu1  ;;  %v4100_v9 = vshll.u32 %v8021_v1, 16 }
 0x313   : > { %v3855_v36 = vadd.f32 %v3754_v26, %v9935_v61  ;;  %v10087_v44 = vcombine.low %v5062_v53, %v10079_v41  ;;  %v4099_v62 = vrot.slane %v4097_v5, 7  ;;  %v10095_v61 = vld [vmem:[#allocation2 + $0x20] ss:$0 sps:$4 sm:$0x11]   ;;  %v4385_v43 = vld [vmem:[#allocation2 + $0x30] sm:$0xf] }
 0x314   : > { %v2956_v13 = vpop.f32.mrb[76].mxu0  ;;  %v4105_v50 = vshrl.u32 %v8022_v58, 16  ;;  %v5263_v17 = vsel %vm1437_vm12, %v5258_v12, %v5262_v54  ;;  %v4108_v35 = vshll.u32 %v8022_v58, 16  ;;  %v3925_v57 = vmax.f32 %v3893_v42, 0.0  ;;  %v4389_v15 = vld [vmem:[#allocation2 + $0x38] sm:$0x1] }
 0x315   : > { %v10082_v0 = vadd.f32 %v2956_v13, %v9952_v33  ;;  %v2958_v60 = vpop.f32.mrb[77].mxu0  ;;  %v3894_v32 = vadd.f32 %v9993_v23, %v3855_v36  ;;  %5444 = vrot.lane.b32.xlu0 %v5263_v17, %s8605_s15  ;;  %v4102_v47 = vor.u32 %v4100_v9, %v4099_v62  ;;  %v5265_v18 = vshrl.u32 %v10087_v44, 16  ;;  %v8358_v42 = vld [vmem:[%s11281_s5 + $0x8] sm:$0xff]  }
 0x316   : > { %v2959_v31 = vpop.f32.mrb[78].mxu0  ;;  %v4107_v11 = vrot.slane %v4105_v50, 7  ;;  %v5267_v1 = vshll.u32 %v10087_v44, 16  ;;  %v4103_v3 = vrot.slane %v4099_v62, 4  ;;  %v8023_v16 = vpack.c.bf16 %v3925_v57, %v3925_v57  ;;  %6049 = vmatpush1.bf16.msra.mxu1 %v8358_v42 }
 0x317   : > { %v10091_v38 = vadd.f32 %v2959_v31, %v9954_v37  ;;  %v2961_v33 = vpop.f32.mrb[79].mxu0  ;;  %v3926_v22 = vmax.f32 %v3894_v32, 0.0  ;;  %v5272_v37 = vshll.u32 %v10095_v61, 16  ;;  %v4386_v19 = vsel %vm8840_vm7, %v4102_v47, %v4385_v43  ;;  %v3759_v53 = vpop.f32.mrb[92].mxu1  ;;  %v5064_v54 = vld [vmem:[#allocation2 + $0x24] sm:$0xf]  ;;  %6050 = vmatprep.subr.bf16.mxu1 %v11410_v20 }
 0x318   : > { %v4110_v4 = vor.u32 %v4108_v35, %v4107_v11  ;;  %v4112_v45 = vrot.slane %v4107_v11, 4  ;;  %v5269_v5 = vrot.slane %v5267_v1, 1  ;;  %4387 = vst [vmem:[#allocation2 + $0x30] sm:$0xf] %v4386_v19  ;;  %v4114_v58 = vshrl.u32 %v8023_v16, 16  ;;  %v3761_v12 = vpop.f32.mrb[93].mxu1 }
 0x319   : > { %v8024_v13 = vpack.c.bf16 %v3926_v22, %v3926_v22  ;;  %v3856_v26 = vadd.f32 %v3759_v53, %v9946_v39  ;;  %v5065_v60 = vld [vmem:[#allocation2 + $0x28] sm:$0xf]  ;;  %v3762_v9 = vpop.f32.mrb[94].mxu1  ;;  %v5274_v31 = vrot.slane %v5272_v37, 1  ;;  %v4117_v17 = vshll.u32 %v8023_v16, 16  ;;  %v8368_v47 = vld [vmem:[%s11281_s5 + $0x10] sm:$0xff]  }
 0x31a   : > { %v4111_v36 = vsel %vm8847_vm8, %v4103_v3, %v4110_v4  ;;  %v4390_v48 = vsel %vm8854_vm9, %v4112_v45, %v4389_v15  ;;  %v5270_v50 = vor.u32 %v5269_v5, %v5265_v18  ;;  %v4116_v39 = vrot.slane %v4114_v58, 7  ;;  %v3764_v32 = vpop.f32.mrb[95].mxu1  ;;  %v8312_v16 = vld [vmem:[#allocation2 + $0x2c] ss:$0 sps:$4 sm:$0x11]   ;;  %6051 = vmatpush1.bf16.msra.mxu1 %v8368_v47 }
 0x31b   : > { %4388 = vst.msk [vmem:[#allocation2 + $0x34] sm:$0xf] %vm280_vm1, %v4111_v36  ;;  %4391 = vst [vmem:[#allocation2 + $0x38] sm:$0x1] %v4390_v48  ;;  %v4122_v35 = vshrl.u32 %v8024_v13, 16  ;;  %v3895_v18 = vadd.f32 %v9993_v23, %v3856_v26  ;;  %v3857_v1 = vadd.f32 %v3762_v9, %v9949_v14  ;;  %v10120_v43 = vcombine.low %v5064_v54, %v5065_v60 }
 0x31c   : > { %v2964_v62 = vpop.f32.mrb[80].mxu0  ;;  %v5275_v3 = vsel %vm1437_vm12, %v5270_v50, %v5274_v31  ;;  %v4125_v37 = vshll.u32 %v8024_v13, 16  ;;  %v4120_v45 = vrot.slane %v4116_v39, 4  ;;  %v4392_v15 = vld [vmem:[#allocation2 + $0x3c] sm:$0xf]  ;;  %v5284_v54 = vshll.u32 %v8312_v16, 16  ;;  %6052 = vmatprep.subr.bf16.mxu1 %v11410_v20 }
 0x31d   : > { %v10112_v33 = vadd.f32 %v2964_v62, %v9962_v56  ;;  %v2966_v57 = vpop.f32.mrb[81].mxu0  ;;  %v4119_v56 = vor.u32 %v4117_v17, %v4116_v39  ;;  %v4124_v22 = vrot.slane %v4122_v35, 7  ;;  %5446 = vrot.lane.b32.xlu1 %v5275_v3, %s8605_s15  ;;  %v3927_v53 = vmax.f32 %v3895_v18, 0.0 }
 0x31e   : > { %v2967_v11 = vpop.f32.mrb[82].mxu0  ;;  %v3896_v14 = vadd.f32 %v9993_v23, %v3857_v1  ;;  %v5279_v5 = vshll.u32 %v10120_v43, 16  ;;  %v5277_v36 = vshrl.u32 %v10120_v43, 16 }
 0x31f   : > { %v10124_v19 = vadd.f32 %v2967_v11, %v9964_v30  ;;  %v2969_v4 = vpop.f32.mrb[83].mxu0  ;;  %v4393_v58 = vsel %vm8840_vm7, %v4119_v56, %v4392_v15  ;;  %v4127_v26 = vor.u32 %v4125_v37, %v4124_v22  ;;  %v4129_v12 = vrot.slane %v4124_v22, 4  ;;  %v4396_v30 = vld [vmem:[#allocation2 + $0x44] sm:$0x1]  ;;  %v3767_v42 = vpop.f32.mrb[96].mxu1 }
 0x320   : > { %4394 = vst [vmem:[#allocation2 + $0x3c] sm:$0xf] %v4393_v58  ;;  %v8025_v13 = vpack.c.bf16 %v3927_v53, %v3927_v53  ;;  %v3928_v60 = vmax.f32 %v3896_v14, 0.0  ;;  %v5281_v48 = vrot.slane %v5279_v5, 1  ;;  %v3858_v50 = vadd.f32 %v3767_v42, %v9957_v49  ;;  %v3769_v31 = vpop.f32.mrb[97].mxu1 }
 0x321   : > { %v4128_v62 = vsel %vm8847_vm8, %v4120_v45, %v4127_v26  ;;  %v4397_v9 = vsel %vm8854_vm9, %v4129_v12, %v4396_v30  ;;  %v5066_v39 = vld [vmem:[#allocation2 + $0x30] sm:$0xf]  ;;  %v3770_v32 = vpop.f32.mrb[98].mxu1  ;;  %v5286_v11 = vrot.slane %v5284_v54, 1  ;;  %v4399_v42 = vld [vmem:[#allocation2 + $0x48] sm:$0xf] }
 0x322   : > { %4395 = vst.msk [vmem:[#allocation2 + $0x40] sm:$0xf] %vm280_vm1, %v4128_v62  ;;  %4398 = vst [vmem:[#allocation2 + $0x44] sm:$0x1] %v4397_v9  ;;  %v4131_v17 = vshrl.u32 %v8025_v13, 16  ;;  %v8026_v35 = vpack.c.bf16 %v3928_v60, %v3928_v60  ;;  %v5282_v47 = vor.u32 %v5281_v48, %v5277_v36  ;;  %v3897_v16 = vadd.f32 %v9993_v23, %v3858_v50  ;;  %v3772_v56 = vpop.f32.mrb[99].mxu1 }
 0x323   : > { %v5067_v18 = vld [vmem:[#allocation2 + $0x34] sm:$0xf]  ;;  %v3859_v49 = vadd.f32 %v3770_v32, %v9960_v21  ;;  %v4134_v4 = vshll.u32 %v8025_v13, 16  ;;  %v8315_v21 = vld [vmem:[#allocation2 + $0x38] ss:$0 sps:$4 sm:$0x11]  }
 0x324   : > { %v2972_v57 = vpop.f32.mrb[84].mxu0  ;;  %v10144_v22 = vcombine.low %v5066_v39, %v5067_v18  ;;  %v4133_v37 = vrot.slane %v4131_v17, 7  ;;  %v4139_v45 = vshrl.u32 %v8026_v35, 16  ;;  %v5287_v53 = vsel %vm1437_vm12, %v5282_v47, %v5286_v11  ;;  %v8382_v17 = vld [vmem:[%s11281_s5 + $0x18] sm:$0xff]  }
 0x325   : > { %v10140_v1 = vadd.f32 %v2972_v57, %v9976_v46  ;;  %v2974_v3 = vpop.f32.mrb[85].mxu0  ;;  %v4142_v14 = vshll.u32 %v8026_v35, 16  ;;  %v3929_v58 = vmax.f32 %v3897_v16, 0.0  ;;  %v3898_v26 = vadd.f32 %v9993_v23, %v3859_v49  ;;  %5448 = vrot.lane.b32.xlu0 %v5287_v53, %s8605_s15  ;;  %v4403_v35 = vld [vmem:[#allocation2 + $0x50] sm:$0x1]  ;;  %6053 = vmatpush1.bf16.msra.mxu1 %v8382_v17 }
 0x326   : > { %v2975_v15 = vpop.f32.mrb[86].mxu0  ;;  %v4136_v12 = vor.u32 %v4134_v4, %v4133_v37  ;;  %v4141_v54 = vrot.slane %v4139_v45, 7  ;;  %v5289_v30 = vshrl.u32 %v10144_v22, 16  ;;  %v5291_v13 = vshll.u32 %v10144_v22, 16  ;;  %6054 = vmatprep.subr.bf16.mxu1 %v11410_v20 }
 0x327   : > { %v10148_v5 = vadd.f32 %v2975_v15, %v9978_v6  ;;  %v2977_v46 = vpop.f32.mrb[87].mxu0  ;;  %v4137_v60 = vrot.slane %v4133_v37, 4  ;;  %v8027_v36 = vpack.c.bf16 %v3929_v58, %v3929_v58  ;;  %v3930_v48 = vmax.f32 %v3898_v26, 0.0  ;;  %v3775_v31 = vpop.f32.mrb[100].mxu1 }
 0x328   : > { %v5296_v62 = vshll.u32 %v8315_v21, 16  ;;  %v4400_v6 = vsel %vm8840_vm7, %v4136_v12, %v4399_v42  ;;  %v4144_v9 = vor.u32 %v4142_v14, %v4141_v54  ;;  %v4146_v50 = vrot.slane %v4141_v54, 4  ;;  %v3777_v11 = vpop.f32.mrb[101].mxu1  ;;  %v5068_v14 = vld [vmem:[#allocation2 + $0x3c] sm:$0xf] }
 0x329   : > { %v5293_v39 = vrot.slane %v5291_v13, 1  ;;  %4401 = vst [vmem:[#allocation2 + $0x48] sm:$0xf] %v4400_v6  ;;  %v4148_v57 = vshrl.u32 %v8027_v36, 16  ;;  %v8028_v32 = vpack.c.bf16 %v3930_v48, %v3930_v48  ;;  %v3860_v47 = vadd.f32 %v3775_v31, %v9970_v24  ;;  %v5069_v18 = vld [vmem:[#allocation2 + $0x40] sm:$0xf] }
 0x32a   : > { %v4145_v3 = vsel %vm8847_vm8, %v4137_v60, %v4144_v9  ;;  %v4404_v16 = vsel %vm8854_vm9, %v4146_v50, %v4403_v35  ;;  %v3778_v49 = vpop.f32.mrb[102].mxu1  ;;  %v5298_v37 = vrot.slane %v5296_v62, 1  ;;  %v4151_v45 = vshll.u32 %v8027_v36, 16  ;;  %v8318_v21 = vld [vmem:[#allocation2 + $0x44] ss:$0 sps:$4 sm:$0x11]  }
 0x32b   : > { %v5294_v56 = vor.u32 %v5293_v39, %v5289_v30  ;;  %4402 = vst.msk [vmem:[#allocation2 + $0x4c] sm:$0xf] %vm280_vm1, %v4145_v3  ;;  %4405 = vst [vmem:[#allocation2 + $0x50] sm:$0x1] %v4404_v16  ;;  %v4150_v4 = vrot.slane %v4148_v57, 7  ;;  %v4156_v15 = vshrl.u32 %v8028_v32, 16  ;;  %v3899_v24 = vadd.f32 %v9993_v23, %v3860_v47 }
 0x32c   : > { %v3780_v53 = vpop.f32.mrb[103].mxu1  ;;  %v3861_v46 = vadd.f32 %v3778_v49, %v9973_v2  ;;  %v10169_v26 = vcombine.low %v5068_v14, %v5069_v18  ;;  %v4159_v30 = vshll.u32 %v8028_v32, 16  ;;  %v4406_v42 = vld [vmem:[#allocation2 + $0x54] sm:$0xf]  ;;  %v5308_v62 = vshll.u32 %v8318_v21, 16 }
 0x32d   : > { %v5299_v58 = vsel %vm1437_vm12, %v5294_v56, %v5298_v37  ;;  %v4153_v12 = vor.u32 %v4151_v45, %v4150_v4  ;;  %v4158_v54 = vrot.slane %v4156_v15, 7  ;;  %v3931_v13 = vmax.f32 %v3899_v24, 0.0  ;;  %v4410_v31 = vld [vmem:[#allocation2 + $0x5c] sm:$0x1] }
 0x32e   : > { %5450 = vrot.lane.b32.xlu1 %v5299_v58, %s8605_s15  ;;  %v4154_v60 = vrot.slane %v4150_v4, 4  ;;  %v3900_v36 = vadd.f32 %v9993_v23, %v3861_v46  ;;  %v5303_v48 = vshll.u32 %v10169_v26, 16  ;;  %v5301_v35 = vshrl.u32 %v10169_v26, 16 }
 0x32f   : > { %v4407_v2 = vsel %vm8840_vm7, %v4153_v12, %v4406_v42  ;;  %v4161_v6 = vor.u32 %v4159_v30, %v4158_v54  ;;  %v4163_v9 = vrot.slane %v4158_v54, 4  ;;  %v8029_v50 = vpack.c.bf16 %v3931_v13, %v3931_v13  ;;  %v3783_v17 = vpop.f32.mrb[104].mxu1  ;;  %v5109_v30 = vld [vmem:[#allocation2 + $0x18] sm:$0xe] }
 0x330   : > { %4408 = vst [vmem:[#allocation2 + $0x54] sm:$0xf] %v4407_v2  ;;  %v3932_v39 = vmax.f32 %v3900_v36, 0.0  ;;  %v5305_v57 = vrot.slane %v5303_v48, 1  ;;  %v3785_v18 = vpop.f32.mrb[105].mxu1  ;;  %v3862_v49 = vadd.f32 %v3783_v17, %v9981_v25  ;;  %v5310_v4 = vrot.slane %v5308_v62, 1 }
 0x331   : > { %v4162_v32 = vsel %vm8847_vm8, %v4154_v60, %v4161_v6  ;;  %v4411_v47 = vsel %vm8854_vm9, %v4163_v9, %v4410_v31  ;;  %v4165_v11 = vshrl.u32 %v8029_v50, 16  ;;  %v5070_v3 = vld [vmem:[#allocation2 + $0x48] sm:$0xf]  ;;  %v3786_v56 = vpop.f32.mrb[106].mxu1  ;;  %v4168_v24 = vshll.u32 %v8029_v50, 16  ;;  %v8396_v25 = vld [vmem:[%s11281_s5 + $0x20] sm:$0xff]  }
 0x332   : > { %4409 = vst.msk [vmem:[#allocation2 + $0x58] sm:$0xf] %vm280_vm1, %v4162_v32  ;;  %4412 = vst [vmem:[#allocation2 + $0x5c] sm:$0x1] %v4411_v47  ;;  %v8030_v16 = vpack.c.bf16 %v3932_v39, %v3932_v39  ;;  %v5306_v37 = vor.u32 %v5305_v57, %v5301_v35  ;;  %v5071_v45 = vld [vmem:[#allocation2 + $0x4c] sm:$0xf]  ;;  %v3863_v53 = vadd.f32 %v3786_v56, %v9987_v63  ;;  %6055 = vmatpush1.bf16.msra.mxu1 %v8396_v25 }
 0x333   : > { %v4167_v15 = vrot.slane %v4165_v11, 7  ;;  %v3788_v14 = vpop.f32.mrb[107].mxu1  ;;  %v10184_v46 = vcombine.low %v5070_v3, %v5071_v45  ;;  %v8320_v58 = vld [vmem:[#allocation2 + $0x50] ss:$0 sps:$4 sm:$0x11]   ;;  %v3901_v12 = vadd.f32 %v9993_v23, %v3862_v49  ;;  %v7783_v63 = vcombine.low %v5109_v30, %v10079_v41  ;;  %6056 = vmatprep.subr.bf16.mxu1 %v11410_v20 }
 0x334   : > { %v4173_v21 = vshrl.u32 %v8030_v16, 16  ;;  %v5311_v54 = vsel %vm1437_vm12, %v5306_v37, %v5310_v4  ;;  %v4176_v60 = vshll.u32 %v8030_v16, 16  ;;  %v3902_v42 = vadd.f32 %v9993_v23, %v3863_v53  ;;  %v4413_v36 = vld [vmem:[#allocation2 + $0x60] sm:$0xf]  ;;  %v4417_v31 = vld [vmem:[#allocation2 + $0x68] sm:$0x1] }
 0x335   : > { %v4170_v13 = vor.u32 %v4168_v24, %v4167_v15  ;;  %5452 = vrot.lane.b32.xlu0 %v5311_v54, %s8605_s15  ;;  %v3933_v62 = vmax.f32 %v3901_v12, 0.0  ;;  %v5315_v2 = vshll.u32 %v10184_v46, 16  ;;  %v5320_v6 = vshll.u32 %v8320_v58, 16 }
 0x336   : > { %v4175_v48 = vrot.slane %v4173_v21, 7  ;;  %v4171_v9 = vrot.slane %v4167_v15, 4  ;;  %v3934_v39 = vmax.f32 %v3902_v42, 0.0  ;;  %v5313_v17 = vshrl.u32 %v10184_v46, 16 }
 0x337   : > { %v4414_v50 = vsel %vm8840_vm7, %v4170_v13, %v4413_v36  ;;  %v8031_v57 = vpack.c.bf16 %v3933_v62, %v3933_v62  ;;  %v3791_v32 = vpop.f32.mrb[108].mxu1  ;;  %v5317_v47 = vrot.slane %v5315_v2, 1  ;;  %v5527_v49 = vrot.slane %v7783_v63, 1  ;;  %v5072_v12 = vld [vmem:[#allocation2 + $0x54] sm:$0xf] }
 0x338   : > { %4415 = vst [vmem:[#allocation2 + $0x60] sm:$0xf] %v4414_v50  ;;  %v4178_v35 = vor.u32 %v4176_v60, %v4175_v48  ;;  %v4180_v41 = vrot.slane %v4175_v48, 4  ;;  %v8032_v11 = vpack.c.bf16 %v3934_v39, %v3934_v39  ;;  %v3864_v18 = vadd.f32 %v3791_v32, %v10000_v7  ;;  %v3793_v3 = vpop.f32.mrb[109].mxu1  ;;  %v8406_v48 = vld [vmem:[%s11281_s5 + $0x28] sm:$0xff]  }
 0x339   : > { %v5073_v16 = vld [vmem:[#allocation2 + $0x58] sm:$0xf]  ;;  %v4182_v4 = vshrl.u32 %v8031_v57, 16  ;;  %v3794_v45 = vpop.f32.mrb[110].mxu1  ;;  %v5322_v15 = vrot.slane %v5320_v6, 1  ;;  %v4185_v53 = vshll.u32 %v8031_v57, 16  ;;  %v5318_v25 = vor.u32 %v5317_v47, %v5313_v17  ;;  %6057 = vmatpush1.bf16.msra.mxu1 %v8406_v48 }
 0x33a   : > { %v4179_v56 = vsel %vm8847_vm8, %v4171_v9, %v4178_v35  ;;  %v4418_v37 = vsel %vm8854_vm9, %v4180_v41, %v4417_v31  ;;  %v8323_v24 = vld [vmem:[#allocation2 + $0x5c] ss:$0 sps:$4 sm:$0x11]   ;;  %v4190_v14 = vshrl.u32 %v8032_v11, 16  ;;  %v3903_v7 = vadd.f32 %v9993_v23, %v3864_v18  ;;  %v3796_v21 = vpop.f32.mrb[111].mxu1  ;;  %6058 = vmatprep.subr.bf16.mxu1 %v11410_v20 }
 0x33b   : > { %4416 = vst.msk [vmem:[#allocation2 + $0x64] sm:$0xf] %vm280_vm1, %v4179_v56  ;;  %4419 = vst [vmem:[#allocation2 + $0x68] sm:$0x1] %v4418_v37  ;;  %v3865_v58 = vadd.f32 %v3794_v45, %v10005_v55  ;;  %v4184_v54 = vrot.slane %v4182_v4, 7  ;;  %v4193_v30 = vshll.u32 %v8032_v11, 16  ;;  %v10207_v13 = vcombine.low %v5072_v12, %v5073_v16 }
 0x33c   : > { %v4192_v60 = vrot.slane %v4190_v14, 7  ;;  %v3935_v42 = vmax.f32 %v3903_v7, 0.0  ;;  %v5528_v36 = vrot.slane %v10095_v61, 1  ;;  %v5323_v55 = vsel %vm1437_vm12, %v5318_v25, %v5322_v15  ;;  %v4420_v9 = vld [vmem:[#allocation2 + $0x6c] sm:$0xf] }
 0x33d   : > { %v3904_v63 = vadd.f32 %v9993_v23, %v3865_v58  ;;  %v4187_v62 = vor.u32 %v4185_v53, %v4184_v54  ;;  %v4188_v2 = vrot.slane %v4184_v54, 4  ;;  %v5332_v6 = vshll.u32 %v8323_v24, 16  ;;  %5454 = vrot.lane.b32.xlu1 %v5323_v55, %s8605_s15  ;;  %v4424_v35 = vld [vmem:[#allocation2 + $0x74] sm:$0x1]  ;;  %v4427_v12 = vld [vmem:[#allocation2 + $0x78] sm:$0xf] }
 0x33e   : > { %v4195_v50 = vor.u32 %v4193_v30, %v4192_v60  ;;  %v4197_v31 = vrot.slane %v4192_v60, 4  ;;  %v8033_v39 = vpack.c.bf16 %v3935_v42, %v3935_v42  ;;  %v5325_v57 = vshrl.u32 %v10207_v13, 16  ;;  %v4476_v48 = vld [vmem:[#allocation2] sm:$0xf] }
 0x33f   : > { %v3936_v17 = vmax.f32 %v3904_v63, 0.0  ;;  %v4421_v61 = vsel %vm8840_vm7, %v4187_v62, %v4420_v9  ;;  %v3799_v41 = vpop.f32.mrb[112].mxu1  ;;  %v5327_v32 = vshll.u32 %v10207_v13, 16  ;;  %v10221_v47 = vsel %vm1710_vm10, %v5527_v49, %v5528_v36  ;;  %v5074_v56 = vld [vmem:[#allocation2 + $0x60] sm:$0xf] }
 0x340   : > { %4422 = vst [vmem:[#allocation2 + $0x6c] sm:$0xf] %v4421_v61  ;;  %v4196_v11 = vsel %vm8847_vm8, %v4188_v2, %v4195_v50  ;;  %v4425_v18 = vsel %vm8854_vm9, %v4197_v31, %v4424_v35  ;;  %v4199_v3 = vshrl.u32 %v8033_v39, 16  ;;  %v3801_v16 = vpop.f32.mrb[113].mxu1  ;;  %v3866_v4 = vadd.f32 %v3799_v41, %v10011_v34  ;;  %v8420_v34 = vld [vmem:[%s11281_s5 + $0x30] sm:$0xff]  }
 0x341   : > { %4423 = vst.msk [vmem:[#allocation2 + $0x70] sm:$0xf] %vm280_vm1, %v4196_v11  ;;  %4426 = vst [vmem:[#allocation2 + $0x74] sm:$0x1] %v4425_v18  ;;  %v8034_v37 = vpack.c.bf16 %v3936_v17, %v3936_v17  ;;  %v3802_v49 = vpop.f32.mrb[114].mxu1  ;;  %v5329_v45 = vrot.slane %v5327_v32, 1  ;;  %6059 = vmatpush1.bf16.msra.mxu1 %v8420_v34 }
 0x342   : > { %v5075_v15 = vld [vmem:[#allocation2 + $0x64] sm:$0xf]  ;;  %v4201_v24 = vrot.slane %v4199_v3, 7  ;;  %v4202_v53 = vshll.u32 %v8033_v39, 16  ;;  %v3867_v14 = vadd.f32 %v3802_v49, %v10019_v28  ;;  %v3804_v7 = vpop.f32.mrb[115].mxu1  ;;  %v3905_v30 = vadd.f32 %v9993_v23, %v3866_v4  ;;  %6060 = vmatprep.subr.bf16.mxu1 %v11410_v20 }
 0x343   : > { %v10231_v58 = vcombine.low %v5074_v56, %v5075_v15  ;;  %v8326_v21 = vld [vmem:[#allocation2 + $0x68] ss:$0 sps:$4 sm:$0x11]   ;;  %v4207_v54 = vshrl.u32 %v8034_v37, 16  ;;  %v5330_v25 = vor.u32 %v5329_v45, %v5325_v57  ;;  %v5334_v60 = vrot.slane %v5332_v6, 1 }
 0x344   : > { %v4204_v42 = vor.u32 %v4202_v53, %v4201_v24  ;;  %v4210_v63 = vshll.u32 %v8034_v37, 16  ;;  %v3906_v36 = vadd.f32 %v9993_v23, %v3867_v14  ;;  %v4477_v28 = vld [vmem:[#allocation2 + $0x4] sm:$0xf]  ;;  %v3937_v2 = vmax.f32 %v3905_v30, 0.0  ;;  %v4431_v61 = vld [vmem:[#allocation2 + $0x80] sm:$0x1] }
 0x345   : > { %v4209_v62 = vrot.slane %v4207_v54, 7  ;;  %v5335_v55 = vsel %vm1437_vm12, %v5330_v25, %v5334_v60  ;;  %v5339_v9 = vshll.u32 %v10231_v58, 16  ;;  %v4205_v50 = vrot.slane %v4201_v24, 4 }
 0x346   : > { %v4428_v6 = vsel %vm8840_vm7, %v4204_v42, %v4427_v12  ;;  %v3938_v31 = vmax.f32 %v3906_v36, 0.0  ;;  %5456 = vrot.lane.b32.xlu0 %v5335_v55, %s8605_s15  ;;  %v5344_v39 = vshll.u32 %v8326_v21, 16  ;;  %v8035_v35 = vpack.c.bf16 %v3937_v2, %v3937_v2  ;;  %v4434_v2 = vld [vmem:[#allocation2 + $0x84] sm:$0xf] }
 0x347   : > { %4429 = vst [vmem:[#allocation2 + $0x78] sm:$0xf] %v4428_v6  ;;  %v4212_v23 = vor.u32 %v4210_v63, %v4209_v62  ;;  %v4214_v17 = vrot.slane %v4209_v62, 4  ;;  %v3807_v41 = vpop.f32.mrb[116].mxu1  ;;  %v5341_v57 = vrot.slane %v5339_v9, 1  ;;  %v10245_v16 = vcombine.low %v4476_v48, %v4477_v28 }
 0x348   : > { %v8036_v32 = vpack.c.bf16 %v3938_v31, %v3938_v31  ;;  %v3868_v11 = vadd.f32 %v3807_v41, %v10036_v40  ;;  %v3809_v18 = vpop.f32.mrb[117].mxu1  ;;  %v5077_v3 = vld [vmem:[#allocation2 + $0x70] sm:$0xf]  ;;  %v4216_v4 = vshrl.u32 %v8035_v35, 16  ;;  %v5337_v45 = vshrl.u32 %v10231_v58, 16 }
 0x349   : > { %11451 = vst [vmem:[#allocation7_spill] sm:$0xff] %v10245_v16  ;;  %v4213_v56 = vsel %vm8847_vm8, %v4205_v50, %v4212_v23  ;;  %v4432_v37 = vsel %vm8854_vm9, %v4214_v17, %v4431_v61  ;;  %v3810_v49 = vpop.f32.mrb[118].mxu1  ;;  %v10256_v40 = vld [vmem:[%s11280_s4] ss:$0 sm:$0xff]  ;;  %v5346_v7 = vrot.slane %v5344_v39, 1  ;;  %v4219_v54 = vshll.u32 %v8035_v35, 16 }
 0x34a   : > { %4430 = vst.msk [vmem:[#allocation2 + $0x7c] sm:$0xf] %vm280_vm1, %v4213_v56  ;;  %4433 = vst [vmem:[#allocation2 + $0x80] sm:$0x1] %v4432_v37  ;;  %v4224_v15 = vshrl.u32 %v8036_v32, 16  ;;  %v3907_v24 = vadd.f32 %v10256_v40, %v3868_v11  ;;  %v3869_v53 = vadd.f32 %v3810_v49, %v10044_v8  ;;  %v3812_v14 = vpop.f32.mrb[119].mxu1  ;;  %v5342_v30 = vor.u32 %v5341_v57, %v5337_v45 }
 0x34b   : > { %v5076_v21 = vld [vmem:[#allocation2 + $0x6c] sm:$0xf]  ;;  %v4218_v12 = vrot.slane %v4216_v4, 7  ;;  %v8329_v60 = vld [vmem:[#allocation2 + $0x74] ss:$0 sps:$4 sm:$0x11]  }
 0x34c   : > { %v10260_v25 = vcombine.low %v5076_v21, %v5077_v3  ;;  %v4226_v34 = vrot.slane %v4224_v15, 7  ;;  %v4227_v42 = vshll.u32 %v8036_v32, 16  ;;  %v3939_v63 = vmax.f32 %v3907_v24, 0.0  ;;  %v4438_v39 = vld [vmem:[#allocation2 + $0x8c] sm:$0x1] }
 0x34d   : > { %v3908_v36 = vadd.f32 %v10256_v40, %v3869_v53  ;;  %v4221_v48 = vor.u32 %v4219_v54, %v4218_v12  ;;  %v4222_v28 = vrot.slane %v4218_v12, 4  ;;  %v5347_v62 = vsel %vm1437_vm12, %v5342_v30, %v5346_v7 }
 0x34e   : > { %v4669_v8 = vshrl.u32 %v10245_v16, 16  ;;  %v4229_v55 = vor.u32 %v4227_v42, %v4226_v34  ;;  %v4231_v9 = vrot.slane %v4226_v34, 4  ;;  %v8037_v50 = vpack.c.bf16 %v3939_v63, %v3939_v63  ;;  %5458 = vrot.lane.b32.xlu1 %v5347_v62, %s8605_s15  ;;  %v5078_v18 = vld [vmem:[#allocation2 + $0x78] sm:$0xf]  ;;  %v4441_v34 = vld [vmem:[#allocation2 + $0x90] sm:$0xf] }
 0x34f   : > { %v3940_v6 = vmax.f32 %v3908_v36, 0.0  ;;  %v4435_v31 = vsel %vm8840_vm7, %v4221_v48, %v4434_v2  ;;  %v3815_v23 = vpop.f32.mrb[120].mxu1  ;;  %v5349_v17 = vshrl.u32 %v10260_v25, 16  ;;  %v5351_v61 = vshll.u32 %v10260_v25, 16 }
 0x350   : > { %v5356_v35 = vshll.u32 %v8329_v60, 16  ;;  %4436 = vst [vmem:[#allocation2 + $0x84] sm:$0xf] %v4435_v31  ;;  %v4230_v41 = vsel %vm8847_vm8, %v4222_v28, %v4229_v55  ;;  %v4439_v57 = vsel %vm8854_vm9, %v4231_v9, %v4438_v39  ;;  %v4233_v32 = vshrl.u32 %v8037_v50, 16  ;;  %v3817_v11 = vpop.f32.mrb[121].mxu1 }
 0x351   : > { %4437 = vst.msk [vmem:[#allocation2 + $0x88] sm:$0xf] %vm280_vm1, %v4230_v41  ;;  %4440 = vst [vmem:[#allocation2 + $0x8c] sm:$0x1] %v4439_v57  ;;  %v8038_v3 = vpack.c.bf16 %v3940_v6, %v3940_v6  ;;  %v3870_v56 = vadd.f32 %v3815_v23, %v10059_v59  ;;  %v3818_v37 = vpop.f32.mrb[122].mxu1  ;;  %v5353_v4 = vrot.slane %v5351_v61, 1 }
 0x352   : > { %v5079_v49 = vld [vmem:[#allocation2 + $0x7c] sm:$0xf]  ;;  %v4235_v45 = vrot.slane %v4233_v32, 7  ;;  %v4236_v15 = vshll.u32 %v8037_v50, 16  ;;  %v3871_v24 = vadd.f32 %v3818_v37, %v10065_v29  ;;  %v3820_v53 = vpop.f32.mrb[123].mxu1  ;;  %v5358_v30 = vrot.slane %v5356_v35, 1 }
 0x353   : > { %v10277_v14 = vcombine.low %v5078_v18, %v5079_v49  ;;  %v8331_v7 = vld [vmem:[#allocation2 + $0x80] ss:$0 sps:$4 sm:$0x11]   ;;  %v4241_v21 = vshrl.u32 %v8038_v3, 16  ;;  %v3909_v12 = vadd.f32 %v10256_v40, %v3870_v56  ;;  %v5354_v54 = vor.u32 %v5353_v4, %v5349_v17  ;;  %v8424_v59 = vld [vmem:[%s11281_s5 + $0x38] sm:$0xff]  }
 0x354   : > { %v4238_v60 = vor.u32 %v4236_v15, %v4235_v45  ;;  %v4244_v42 = vshll.u32 %v8038_v3, 16  ;;  %v3910_v63 = vadd.f32 %v10256_v40, %v3871_v24  ;;  %v4671_v29 = vshll.u32 %v10245_v16, 16  ;;  %6061 = vmatpush1.bf16.msra.mxu1 %v8424_v59  ;;  %v4445_v39 = vld [vmem:[#allocation2 + $0x98] sm:$0x1]  ;;  %v4448_v59 = vld [vmem:[#allocation2 + $0x9c] sm:$0xf] }
 0x355   : > { %v4243_v36 = vrot.slane %v4241_v21, 7  ;;  %v3941_v48 = vmax.f32 %v3909_v12, 0.0  ;;  %v5359_v28 = vsel %vm1437_vm12, %v5354_v54, %v5358_v30  ;;  %v5363_v62 = vshll.u32 %v10277_v14, 16  ;;  %6062 = vmatprep.subr.bf16.mxu1 %v11410_v20  ;;  %v10297_v49 = vld [vmem:[#allocation2 + $0x8] ss:$0 sps:$4 sm:$0x11]  }
 0x356   : > { %v4239_v2 = vrot.slane %v4235_v45, 4  ;;  %v4442_v55 = vsel %vm8840_vm7, %v4238_v60, %v4441_v34  ;;  %v3942_v9 = vmax.f32 %v3910_v63, 0.0  ;;  %5460 = vrot.lane.b32.xlu0 %v5359_v28, %s8605_s15  ;;  %v5368_v50 = vshll.u32 %v8331_v7, 16  ;;  %v4452_v28 = vld [vmem:[#allocation2 + $0xa4] sm:$0x1] }
 0x357   : > { %4443 = vst [vmem:[#allocation2 + $0x90] sm:$0xf] %v4442_v55  ;;  %v4246_v6 = vor.u32 %v4244_v42, %v4243_v36  ;;  %v4248_v31 = vrot.slane %v4243_v36, 4  ;;  %v8039_v23 = vpack.c.bf16 %v3941_v48, %v3941_v48  ;;  %v3823_v17 = vpop.f32.mrb[124].mxu1  ;;  %v5365_v61 = vrot.slane %v5363_v62, 1 }
 0x358   : > { %v8040_v35 = vpack.c.bf16 %v3942_v9, %v3942_v9  ;;  %v3872_v41 = vadd.f32 %v3823_v17, %v10082_v0  ;;  %v3825_v57 = vpop.f32.mrb[125].mxu1  ;;  %v5361_v32 = vshrl.u32 %v10277_v14, 16  ;;  %v5081_v11 = vld [vmem:[#allocation2 + $0x88] sm:$0xf]  ;;  %v5370_v4 = vrot.slane %v5368_v50, 1 }
 0x359   : > { %v4247_v18 = vsel %vm8847_vm8, %v4239_v2, %v4246_v6  ;;  %v4446_v3 = vsel %vm8854_vm9, %v4248_v31, %v4445_v39  ;;  %v4250_v56 = vshrl.u32 %v8039_v23, 16  ;;  %v3826_v37 = vpop.f32.mrb[126].mxu1  ;;  %v4253_v45 = vshll.u32 %v8039_v23, 16  ;;  %v5080_v7 = vld [vmem:[#allocation2 + $0x84] sm:$0xf] }
 0x35a   : > { %4444 = vst.msk [vmem:[#allocation2 + $0x94] sm:$0xf] %vm280_vm1, %v4247_v18  ;;  %4447 = vst [vmem:[#allocation2 + $0x98] sm:$0x1] %v4446_v3  ;;  %v4258_v0 = vshrl.u32 %v8040_v35, 16  ;;  %v3911_v15 = vadd.f32 %v10256_v40, %v3872_v41  ;;  %v3873_v24 = vadd.f32 %v3826_v37, %v10091_v38  ;;  %v3828_v53 = vpop.f32.mrb[127].mxu1  ;;  %v5366_v12 = vor.u32 %v5365_v61, %v5361_v32 }
 0x35b   : > { %v4252_v21 = vrot.slane %v4250_v56, 7  ;;  %v10302_v54 = vcombine.low %v5080_v7, %v5081_v11  ;;  %v8334_v30 = vld [vmem:[#allocation2 + $0x8c] ss:$0 sps:$4 sm:$0x11]   ;;  %v4261_v34 = vshll.u32 %v8040_v35, 16  ;;  %v10306_v2 = vrot.slane %v4671_v29, 1 }
 0x35c   : > { %v4260_v60 = vrot.slane %v4258_v0, 7  ;;  %v3943_v42 = vmax.f32 %v3911_v15, 0.0  ;;  %v3912_v63 = vadd.f32 %v10256_v40, %v3873_v24  ;;  %v5371_v62 = vsel %vm1437_vm12, %v5366_v12, %v5370_v4  ;;  %v4479_v38 = vld [vmem:[#allocation2 + $0x10] sm:$0xf]  ;;  %v4478_v31 = vld [vmem:[#allocation2 + $0xc] sm:$0xf] }
 0x35d   : > { %v4255_v36 = vor.u32 %v4253_v45, %v4252_v21  ;;  %v4256_v48 = vrot.slane %v4252_v21, 4  ;;  %5462 = vrot.lane.b32.xlu1 %v5371_v62, %s8605_s15  ;;  %v10309_v39 = vld [vmem:[#allocation2 + $0x14] ss:$0 sps:$4 sm:$0x11]   ;;  %v5375_v61 = vshll.u32 %v10302_v54, 16  ;;  %v5380_v35 = vshll.u32 %v8334_v30, 16 }
 0x35e   : > { %v4263_v55 = vor.u32 %v4261_v34, %v4260_v60  ;;  %v4265_v9 = vrot.slane %v4260_v60, 4  ;;  %v8041_v50 = vpack.c.bf16 %v3943_v42, %v3943_v42  ;;  %v3944_v6 = vmax.f32 %v3912_v63, 0.0  ;;  %v5082_v3 = vld [vmem:[#allocation2 + $0x90] sm:$0xf] }
 0x35f   : > { %v4449_v23 = vsel %vm8840_vm7, %v4255_v36, %v4448_v59  ;;  %v3831_v17 = vpop.f32.mrb[128].mxu1  ;;  %v4676_v29 = vshll.u32 %v10297_v49, 16  ;;  %v5373_v18 = vshrl.u32 %v10302_v54, 16  ;;  %v5377_v45 = vrot.slane %v5375_v61, 1 }
 0x360   : > { %4450 = vst [vmem:[#allocation2 + $0x9c] sm:$0xf] %v4449_v23  ;;  %v4264_v41 = vsel %vm8847_vm8, %v4256_v48, %v4263_v55  ;;  %v4453_v57 = vsel %vm8854_vm9, %v4265_v9, %v4452_v28  ;;  %v4267_v32 = vshrl.u32 %v8041_v50, 16  ;;  %v3833_v11 = vpop.f32.mrb[129].mxu1  ;;  %v8042_v56 = vpack.c.bf16 %v3944_v6, %v3944_v6  ;;  %v4481_v9 = vld [vmem:[#allocation2 + $0x1c] sm:$0xf] }
 0x361   : > { %4451 = vst.msk [vmem:[#allocation2 + $0xa0] sm:$0xf] %vm280_vm1, %v4264_v41  ;;  %4454 = vst [vmem:[#allocation2 + $0xa4] sm:$0x1] %v4453_v57  ;;  %v3874_v37 = vadd.f32 %v3831_v17, %v10112_v33  ;;  %v3834_v4 = vpop.f32.mrb[130].mxu1  ;;  %v10322_v15 = vcombine.low %v4478_v31, %v4479_v38  ;;  %v4270_v53 = vshll.u32 %v8041_v50, 16  ;;  %v5378_v34 = vor.u32 %v5377_v45, %v5373_v18 }
 0x362   : > { %v5083_v0 = vld [vmem:[#allocation2 + $0x94] sm:$0xf]  ;;  %v4269_v24 = vrot.slane %v4267_v32, 7  ;;  %v3875_v7 = vadd.f32 %v3834_v4, %v10124_v19  ;;  %v3836_v21 = vpop.f32.mrb[131].mxu1  ;;  %v4275_v59 = vshrl.u32 %v8042_v56, 16  ;;  %v5382_v42 = vrot.slane %v5380_v35, 1 }
 0x363   : > { %11452 = vst [vmem:[#allocation17_spill] sm:$0xff] %v10322_v15  ;;  %v10325_v12 = vcombine.low %v5082_v3, %v5083_v0  ;;  %v8337_v30 = vld [vmem:[#allocation2 + $0x98] ss:$0 sps:$4 sm:$0x11]   ;;  %v3913_v60 = vadd.f32 %v10256_v40, %v3874_v37  ;;  %v4455_v33 = vld [vmem:[#allocation2 + $0xa8] sm:$0xf] }
 0x364   : > { %v4272_v63 = vor.u32 %v4270_v53, %v4269_v24  ;;  %v4278_v36 = vshll.u32 %v8042_v56, 16  ;;  %v3914_v48 = vadd.f32 %v10256_v40, %v3875_v7  ;;  %v4688_v28 = vshll.u32 %v10309_v39, 16  ;;  %v4459_v31 = vld [vmem:[#allocation2 + $0xb0] sm:$0x1]  ;;  %v4480_v11 = vld [vmem:[#allocation2 + $0x18] sm:$0xf] }
 0x365   : > { %11453 = vst [vmem:[#allocation19_spill] sm:$0xff] %v10325_v12  ;;  %v4277_v62 = vrot.slane %v4275_v59, 7  ;;  %v3945_v38 = vmax.f32 %v3913_v60, 0.0  ;;  %v5383_v19 = vsel %vm1437_vm12, %v5378_v34, %v5382_v42  ;;  %v5387_v55 = vshll.u32 %v10325_v12, 16  ;;  %v8427_v18 = vld [vmem:[%s11281_s5 + $0x40] sm:$0xff]  }
 0x366   : > { %v4273_v50 = vrot.slane %v4269_v24, 4  ;;  %v4456_v6 = vsel %vm8840_vm7, %v4272_v63, %v4455_v33  ;;  %v3946_v23 = vmax.f32 %v3914_v48, 0.0  ;;  %5464 = vrot.lane.b32.xlu0 %v5383_v19, %s8605_s15  ;;  %v5392_v17 = vshll.u32 %v8337_v30, 16  ;;  %6063 = vmatpush1.bf16.msra.mxu1 %v8427_v18  ;;  %v6208_v18 = vld [vmem:[#allocation2 + $0x1c] sm:$0xf] }
 0x367   : > { %4457 = vst [vmem:[#allocation2 + $0xa8] sm:$0xf] %v4456_v6  ;;  %v4280_v61 = vor.u32 %v4278_v36, %v4277_v62  ;;  %v4282_v35 = vrot.slane %v4277_v62, 4  ;;  %v8043_v41 = vpack.c.bf16 %v3945_v38, %v3945_v38  ;;  %v3839_v57 = vpop.f32.mrb[132].mxu1  ;;  %v5389_v32 = vrot.slane %v5387_v55, 1  ;;  %6064 = vmatprep.subr.bf16.mxu1 %v11410_v20 }
 0x368   : > { %v8044_v3 = vpack.c.bf16 %v3946_v23, %v3946_v23  ;;  %v3876_v56 = vadd.f32 %v3839_v57, %v10140_v1  ;;  %v3841_v37 = vpop.f32.mrb[133].mxu1  ;;  %v5085_v4 = vld [vmem:[#allocation2 + $0xa0] sm:$0xf]  ;;  %v4683_v45 = vshll.u32 %v10322_v15, 16  ;;  %v10340_v0 = vcombine.low %v4480_v11, %v4481_v9  ;;  %v5084_v63 = vld [vmem:[#allocation2 + $0x9c] sm:$0xf] }
 0x369   : > { %v4281_v24 = vsel %vm8847_vm8, %v4273_v50, %v4280_v61  ;;  %v4460_v53 = vsel %vm8854_vm9, %v4282_v35, %v4459_v31  ;;  %v4284_v7 = vshrl.u32 %v8043_v41, 16  ;;  %v3842_v21 = vpop.f32.mrb[134].mxu1  ;;  %v5385_v30 = vshrl.u32 %v10325_v12, 16  ;;  %v8340_v38 = vld [vmem:[#allocation2 + $0xa4] ss:$0 sps:$4 sm:$0x11]  }
 0x36a   : > { %11454 = vst [vmem:[#allocation9_spill] sm:$0xff] %v10340_v0  ;;  %4458 = vst.msk [vmem:[#allocation2 + $0xac] sm:$0xf] %vm280_vm1, %v4281_v24  ;;  %v4292_v1 = vshrl.u32 %v8044_v3, 16  ;;  %v3915_v59 = vadd.f32 %v10256_v40, %v3876_v56  ;;  %v3877_v60 = vadd.f32 %v3842_v21, %v10148_v5  ;;  %v3844_v34 = vpop.f32.mrb[135].mxu1  ;;  %v5394_v42 = vrot.slane %v5392_v17, 1 }
 0x36b   : > { %4461 = vst [vmem:[#allocation2 + $0xb0] sm:$0x1] %v4460_v53  ;;  %v4286_v33 = vrot.slane %v4284_v7, 7  ;;  %v4287_v36 = vshll.u32 %v8043_v41, 16  ;;  %v5390_v48 = vor.u32 %v5389_v32, %v5385_v30  ;;  %v10351_v62 = vcombine.low %v5084_v63, %v5085_v4  ;;  %v4462_v23 = vld [vmem:[#allocation2 + $0xb4] sm:$0xf] }
 0x36c   : > { %v4294_v19 = vrot.slane %v4292_v1, 7  ;;  %v4295_v55 = vshll.u32 %v8044_v3, 16  ;;  %v3947_v9 = vmax.f32 %v3915_v59, 0.0  ;;  %v3916_v50 = vadd.f32 %v10256_v40, %v3877_v60  ;;  %v8430_v61 = vld [vmem:[%s11281_s5 + $0x48] sm:$0xff]   ;;  %v4466_v57 = vld [vmem:[#allocation2 + $0xbc] sm:$0x1] }
 0x36d   : > { %11455 = vst [vmem:[#allocation20_spill] sm:$0xff] %v10351_v62  ;;  %v4289_v6 = vor.u32 %v4287_v36, %v4286_v33  ;;  %v4290_v31 = vrot.slane %v4286_v33, 4  ;;  %v5395_v5 = vsel %vm1437_vm12, %v5390_v48, %v5394_v42  ;;  %v4681_v17 = vshrl.u32 %v10322_v15, 16  ;;  %v6207_v4 = vld [vmem:[#allocation2 + $0x18] sm:$0xf]  ;;  %6065 = vmatpush1.bf16.msra.mxu1 %v8430_v61 }
 0x36e   : > { %v4297_v35 = vor.u32 %v4295_v55, %v4294_v19  ;;  %v4299_v41 = vrot.slane %v4294_v19, 4  ;;  %v8045_v32 = vpack.c.bf16 %v3947_v9, %v3947_v9  ;;  %v3948_v11 = vmax.f32 %v3916_v50, 0.0  ;;  %5466 = vrot.lane.b32.xlu1 %v5395_v5, %s8605_s15  ;;  %v4483_v24 = vld [vmem:[#allocation2 + $0x28] sm:$0xf]  ;;  %6066 = vmatprep.subr.bf16.mxu1 %v11410_v20 }
 0x36f   : > { %v4463_v40 = vsel %vm8840_vm7, %v4289_v6, %v4462_v23  ;;  %v5399_v3 = vshll.u32 %v10351_v62, 16  ;;  %v5404_v56 = vshll.u32 %v8340_v38, 16  ;;  %v10363_v37 = vrot.slane %v4683_v45, 1  ;;  %v5086_v30 = vld [vmem:[#allocation2 + $0xa8] sm:$0xf] }
 0x370   : > { %4464 = vst [vmem:[#allocation2 + $0xb4] sm:$0xf] %v4463_v40  ;;  %v4298_v53 = vsel %vm8847_vm8, %v4290_v31, %v4297_v35  ;;  %v4467_v7 = vsel %vm8854_vm9, %v4299_v41, %v4466_v57  ;;  %v4301_v21 = vshrl.u32 %v8045_v32, 16  ;;  %v10369_v1 = vld [vmem:[#allocation2 + $0x20] ss:$0 sps:$4 sm:$0x11]   ;;  %v8046_v45 = vpack.c.bf16 %v3948_v11, %v3948_v11 }
 0x371   : > { %v4695_v59 = vshll.u32 %v10340_v0, 16  ;;  %4465 = vst.msk [vmem:[#allocation2 + $0xb8] sm:$0xf] %vm280_vm1, %v4298_v53  ;;  %4468 = vst [vmem:[#allocation2 + $0xbc] sm:$0x1] %v4467_v7  ;;  %v5397_v60 = vshrl.u32 %v10351_v62, 16  ;;  %v10377_v38 = vcombine.low %v6207_v4, %v6208_v18 }
 0x372   : > { %v5401_v34 = vrot.slane %v5399_v3, 1  ;;  %v5087_v42 = vld [vmem:[#allocation2 + $0xac] sm:$0xf]  ;;  %v4303_v63 = vrot.slane %v4301_v21, 7  ;;  %v4304_v33 = vshll.u32 %v8045_v32, 16  ;;  %v4309_v19 = vshrl.u32 %v8046_v45, 16 }
 0x373   : > { %v10375_v36 = vcombine.low %v5086_v30, %v5087_v42  ;;  %v8342_v48 = vld [vmem:[#allocation2 + $0xb0] ss:$0 sps:$4 sm:$0x11]   ;;  %11457 = vst [vmem:[#allocation22_spill] sm:$0xff] %v10377_v38  ;;  %v5406_v9 = vrot.slane %v5404_v56, 1  ;;  %v4693_v50 = vshrl.u32 %v10340_v0, 16 }
 0x374   : > { %v5402_v55 = vor.u32 %v5401_v34, %v5397_v60  ;;  %v4482_v6 = vld [vmem:[#allocation2 + $0x24] sm:$0xf]  ;;  %v4306_v31 = vor.u32 %v4304_v33, %v4303_v63  ;;  %v4697_v5 = vrot.slane %v4695_v59, 1  ;;  %v8434_v35 = vld [vmem:[%s11281_s5 + $0x50] sm:$0xff]   ;;  %v4469_v41 = vld [vmem:[#allocation2 + $0xc0] sm:$0xf] }
 0x375   : > { %11456 = vst [vmem:[#allocation23_spill] sm:$0xff] %v10375_v36  ;;  %v5411_v23 = vshll.u32 %v10375_v36, 16  ;;  %v10381_v61 = vcombine.low %v4482_v6, %v4483_v24  ;;  %v4311_v57 = vrot.slane %v4309_v19, 7  ;;  %v4312_v32 = vshll.u32 %v8046_v45, 16  ;;  %v4473_v3 = vld [vmem:[#allocation2 + $0xc8] sm:$0x1]  ;;  %6067 = vmatpush1.bf16.msra.mxu1 %v8434_v35 }
 0x376   : > { %v5407_v11 = vsel %vm1437_vm12, %v5402_v55, %v5406_v9  ;;  %v5416_v18 = vshll.u32 %v8342_v48, 16  ;;  %v4470_v40 = vsel %vm8840_vm7, %v4306_v31, %v4469_v41  ;;  %v5409_v56 = vshrl.u32 %v10375_v36, 16  ;;  %v8357_v53 = vld [vmem:[#allocation2 + $0x20] ss:$0 sps:$4 sm:$0x11]   ;;  %6068 = vmatprep.subr.bf16.mxu1 %v11410_v20 }
 0x377   : > { %11458 = vst [vmem:[#allocation8_spill] sm:$0xff] %v10381_v61  ;;  %5468 = vrot.lane.b32.xlu0 %v5407_v11, %s8605_s15  ;;  %v5413_v4 = vrot.slane %v5411_v23, 1  ;;  %v4700_v24 = vshll.u32 %v10369_v1, 16  ;;  %v5110_v7 = vld [vmem:[#allocation2 + $0x24] sm:$0xe]  ;;  %v4307_v21 = vrot.slane %v4303_v63, 4  ;;  %v4314_v30 = vor.u32 %v4312_v32, %v4311_v57 }
 0x378   : > { %4471 = vst [vmem:[#allocation2 + $0xc0] sm:$0xf] %v4470_v40  ;;  %v4316_v59 = vrot.slane %v4311_v57, 4  ;;  %v5418_v45 = vrot.slane %v5416_v18, 1  ;;  %v6209_v60 = vld [vmem:[#allocation2 + $0x24] sm:$0xf]  ;;  %v4674_v48 = vor.u32 %v10306_v2, %v4669_v8  ;;  %v4686_v32 = vor.u32 %v10363_v37, %v4681_v17 }
 0x379   : > { %v6210_v34 = vld [vmem:[#allocation2 + $0x28] sm:$0xf]  ;;  %v5414_v52 = vor.u32 %v5413_v4, %v5409_v56  ;;  %v5088_v42 = vld [vmem:[#allocation2 + $0xb4] sm:$0xf]  ;;  %v5089_v33 = vld [vmem:[#allocation2 + $0xb8] sm:$0xf]  ;;  %v4315_v1 = vsel %vm8847_vm8, %v4307_v21, %v4314_v30  ;;  %v4698_v40 = vor.u32 %v4697_v5, %v4693_v50 }
 0x37a   : > { %v4474_v63 = vsel %vm8854_vm9, %v4316_v59, %v4473_v3  ;;  %v10400_v19 = vcombine.low %v5088_v42, %v5089_v33  ;;  %v8345_v55 = vld [vmem:[#allocation2 + $0xbc] ss:$0 sps:$4 sm:$0x11]   ;;  %v8540_v9 = vld [vmem:[#allocation2 + $0x28] sm:$0xf]  ;;  %v6402_v35 = vshll.u32 %v10377_v38, 16  ;;  %v10406_v10 = vcombine.low %v6209_v60, %v6210_v34 }
 0x37b   : > { %v7784_v6 = vcombine.low %v5110_v7, %v8540_v9  ;;  %v8361_v31 = vld [vmem:[#allocation2 + $0x2c] ss:$0 sps:$4 sm:$0x11]   ;;  %4472 = vst.msk [vmem:[#allocation2 + $0xc4] sm:$0xf] %vm280_vm1, %v4315_v1  ;;  %v5419_v23 = vsel %vm1437_vm12, %v5414_v52, %v5418_v45  ;;  %v4707_v8 = vshll.u32 %v10381_v61, 16 }
 0x37c   : > { %11459 = vst [vmem:[#allocation24_spill] sm:$0xff] %v10400_v19  ;;  %4475 = vst [vmem:[#allocation2 + $0xc8] sm:$0x1] %v4474_v63  ;;  %v4485_v2 = vld [vmem:[#allocation2 + $0x34] sm:$0xf]  ;;  %5470 = vrot.lane.b32.xlu1 %v5419_v23, %s8605_s15  ;;  %v5423_v27 = vshll.u32 %v10400_v19, 16 }
 0x37d   : > { %11460 = vst [vmem:[#allocation26_spill] sm:$0xff] %v10406_v10  ;;  %v5428_v41 = vshll.u32 %v8345_v55, 16  ;;  %v4678_v57 = vrot.slane %v4676_v29, 1  ;;  %v4484_v11 = vld [vmem:[#allocation2 + $0x30] sm:$0xf]  ;;  %v4690_v18 = vrot.slane %v4688_v28, 1 }
 0x37e   : > { %v4702_v3 = vrot.slane %v4700_v24, 1  ;;  %v6407_v56 = vshll.u32 %v8357_v53, 16  ;;  %v6212_v4 = vld [vmem:[#allocation2 + $0x34] sm:$0xf]  ;;  %v5421_v7 = vshrl.u32 %v10400_v19, 16  ;;  %v5425_v21 = vrot.slane %v5423_v27, 1 }
 0x37f   : > { %v5530_v30 = vrot.slane %v7784_v6, 1  ;;  %v10418_v59 = vld [vmem:[#allocation2 + $0x2c] ss:$0 sps:$4 sm:$0x11]   ;;  %v10420_v49 = vcombine.low %v4484_v11, %v4485_v2  ;;  %v6211_v29 = vld [vmem:[#allocation2 + $0x30] sm:$0xf]  ;;  %v4679_v52 = vsel %vm1437_vm12, %v4674_v48, %v4678_v57  ;;  %v10432_v42 = vsel %vm1437_vm12, %v4686_v32, %v4690_v18 }
 0x380   : > { %v8437_v17 = vld [vmem:[%s11281_s5 + $0x58] sm:$0xff]   ;;  %v6404_v37 = vrot.slane %v6402_v35, 1  ;;  %v8541_v39 = vld [vmem:[#allocation2 + $0x2c] ss:$0 sps:$4 sm:$0x11]   ;;  %v4709_v50 = vrot.slane %v4707_v8, 1  ;;  %v5426_v24 = vor.u32 %v5425_v21, %v5421_v7  ;;  %v10428_v34 = vcombine.low %v6211_v29, %v6212_v4 }
 0x381   : > { %11461 = vst [vmem:[#allocation10_spill] sm:$0xff] %v10420_v49  ;;  %v5531_v28 = vrot.slane %v8541_v39, 1  ;;  %v6414_v5 = vshll.u32 %v10406_v10, 16  ;;  %v5430_v53 = vrot.slane %v5428_v41, 1  ;;  %v4712_v45 = vshll.u32 %v8361_v31, 16  ;;  %6069 = vmatpush1.bf16.msra.mxu1 %v8437_v17 }
 0x382   : > { %v10426_v60 = vld [vmem:[#allocation2 + $0x38] ss:$0 sps:$4 sm:$0x11]   ;;  %11462 = vst [vmem:[#allocation27_spill] sm:$0xff] %v10428_v34  ;;  %v5090_v33 = vld [vmem:[#allocation2 + $0xc0] sm:$0xf]  ;;  %v10443_v23 = vsel %vm1437_vm12, %v4698_v40, %v4702_v3 }
 0x383   : > { %v6400_v1 = vshrl.u32 %v10377_v38, 16  ;;  %v10435_v63 = vrot.slane %v6407_v56, 1  ;;  %v10437_v55 = vld [vmem:[#allocation2 + $0x38] ss:$0 sps:$4 sm:$0x11]   ;;  %v5431_v6 = vsel %vm1437_vm12, %v5426_v24, %v5430_v53  ;;  %v4705_v48 = vshrl.u32 %v10381_v61, 16 }
 0x384   : > { %v4487_v9 = vld [vmem:[#allocation2 + $0x40] sm:$0xf]  ;;  %v10440_v31 = vld [vmem:[#allocation2 + $0xc4] sm:$0xf]  ;;  %v4719_v35 = vshll.u32 %v10420_v49, 16  ;;  %5472 = vrot.lane.b32.xlu0 %v5431_v6, %s8605_s15  ;;  %v10454_v41 = vsel %vm1710_vm10, %v5530_v30, %v5531_v28  ;;  %v6416_v57 = vrot.slane %v6414_v5, 1 }
 0x385   : > { %v10449_v8 = vcombine.low %v5090_v33, %v10440_v31  ;;  %v10451_v2 = vld [vmem:[#allocation2 + $0xc8] ss:$0 sps:$4 sm:$0x11]   ;;  %v6405_v27 = vor.u32 %v6404_v37, %v6400_v1  ;;  %v5111_v32 = vld [vmem:[#allocation2 + $0x30] sm:$0xe]  ;;  %v4710_v18 = vor.u32 %v4709_v50, %v4705_v48  ;;  %v4714_v40 = vrot.slane %v4712_v45, 1 }
 0x386   : > { %v4486_v11 = vld [vmem:[#allocation2 + $0x3c] sm:$0xf]  ;;  %v6419_v3 = vshll.u32 %v10418_v59, 16  ;;  %v6426_v56 = vshll.u32 %v10428_v34, 16  ;;  %v6214_v4 = vld [vmem:[#allocation2 + $0x40] sm:$0xf] }
 0x387   : > { %11463 = vst [vmem:[#allocation29_spill] sm:$0xff] %v10449_v8  ;;  %v5435_v7 = vshll.u32 %v10449_v8, 16  ;;  %v5440_v21 = vshll.u32 %v10451_v2, 16  ;;  %v6412_v29 = vshrl.u32 %v10406_v10, 16  ;;  %v10461_v17 = vcombine.low %v4486_v11, %v4487_v9  ;;  %v6213_v30 = vld [vmem:[#allocation2 + $0x3c] sm:$0xf]  ;;  %v5445_v53 = vpop.permute.xlu0 %5444 }
 0x388   : > { %v8349_v37 = vld [vmem:[%s11281_s5 + $0xc0] sm:$0xff]   ;;  %v4717_v39 = vshrl.u32 %v10420_v49, 16  ;;  %v4721_v28 = vrot.slane %v4719_v35, 1  ;;  %v4724_v59 = vshll.u32 %v10426_v60, 16  ;;  %v8542_v50 = vld [vmem:[#allocation2 + $0x34] sm:$0xf]  ;;  %4860 = vrot.lane.b32.xlu0 %v4679_v52, %s8605_s15  ;;  %v5573_v35 = vsel %vm1759_vm11, %v10055_v51, %v5445_v53 }
 0x389   : > { %11464 = vst [vmem:[#allocation30_spill] sm:$0xff] %v10461_v17  ;;  %v7785_v5 = vcombine.low %v5111_v32, %v8542_v50  ;;  %v4489_v24 = vld [vmem:[#allocation2 + $0x4c] sm:$0xf]  ;;  %v5433_v45 = vshrl.u32 %v10449_v8, 16  ;;  %v5437_v33 = vrot.slane %v5435_v7, 1  ;;  %v6417_v1 = vor.u32 %v6416_v57, %v6412_v29  ;;  %5798 = vmatmul.mubr.bf16.vlgmr.msra.gmra.mrb[88].mxu0 %v5573_v35 }
 0x38a   : > { %v6431_v9 = vshll.u32 %v10437_v55, 16  ;;  %v10471_v6 = vld [vmem:[#allocation2 + $0x44] ss:$0 sps:$4 sm:$0x11]   ;;  %v6216_v48 = vld [vmem:[#allocation2 + $0x4c] sm:$0xf]  ;;  %v10475_v32 = vcombine.low %v6213_v30, %v6214_v4  ;;  %6913 = vmatpush1.bf16.msra.mxu0 %v8349_v37  ;;  %7835 = vmatprep.mubr.msk.bf16.mxu0 %vm1759_vm11, %v10221_v47  ;;  %v6410_v47 = vsel %vm1437_vm12, %v6405_v27, %v10435_v63 }
 0x38b   : > { %v6428_v11 = vrot.slane %v6426_v56, 1  ;;  %v8543_v60 = vld [vmem:[#allocation2 + $0x38] ss:$0 sps:$4 sm:$0x11]   ;;  %v4488_v50 = vld [vmem:[#allocation2 + $0x48] sm:$0xf]  ;;  %v5438_v52 = vor.u32 %v5437_v33, %v5433_v45  ;;  %v4722_v56 = vor.u32 %v4721_v28, %v4717_v39  ;;  %6914 = vmatprep.subr.bf16.mxu0 %v11410_v20 }
 0x38c   : > { %v5534_v49 = vrot.slane %v8543_v60, 1  ;;  %11465 = vst [vmem:[#allocation11_spill] sm:$0xff] %v10475_v32  ;;  %v5442_v61 = vrot.slane %v5440_v21, 1  ;;  %v4731_v7 = vshll.u32 %v10461_v17, 16  ;;  %v10480_v55 = vcombine.low %v4488_v50, %v4489_v24  ;;  %v6215_v29 = vld [vmem:[#allocation2 + $0x48] sm:$0xf]  ;;  %4862 = vrot.lane.b32.xlu0 %v10432_v42, %s8605_s15 }
 0x38d   : > { %v10478_v57 = vld [vmem:[#allocation2 + $0x44] ss:$0 sps:$4 sm:$0x11]   ;;  %v8359_v51 = vld [vmem:[%s11281_s5 + $0xc8] sm:$0xff]   ;;  %v5533_v4 = vrot.slane %v7785_v5, 1  ;;  %v6438_v30 = vshll.u32 %v10475_v32, 16  ;;  %v10490_v53 = vcombine.low %v6215_v29, %v6216_v48  ;;  %v4715_v5 = vsel %vm1437_vm12, %v4710_v18, %v4714_v40 }
 0x38e   : > { %11466 = vst [vmem:[#allocation31_spill] sm:$0xff] %v10480_v55  ;;  %v10488_v21 = vld [vmem:[#allocation2 + $0x50] ss:$0 sps:$4 sm:$0x11]   ;;  %v5443_v37 = vsel %vm1437_vm12, %v5438_v52, %v5442_v61  ;;  %v6421_v24 = vrot.slane %v6419_v3, 1  ;;  %v6424_v39 = vshrl.u32 %v10428_v34, 16  ;;  %6915 = vmatpush1.bf16.msra.mxu0 %v8359_v51 }
 0x38f   : > { %11467 = vst [vmem:[#allocation12_spill] sm:$0xff] %v10490_v53  ;;  %v4491_v28 = vld [vmem:[#allocation2 + $0x58] sm:$0xf]  ;;  %5474 = vrot.lane.b32.xlu1 %v5443_v37, %s8605_s15  ;;  %v4726_v45 = vrot.slane %v4724_v59, 1  ;;  %v6433_v33 = vrot.slane %v6431_v9, 1  ;;  %v4743_v48 = vshll.u32 %v10480_v55, 16  ;;  %v10513_v40 = vsel %vm1710_vm10, %v5533_v4, %v5534_v49  ;;  %6916 = vmatprep.subr.bf16.mxu0 %v11410_v20 }
 0x390   : > { %v10502_v42 = vld [vmem:[#allocation2 + $0x50] ss:$0 sps:$4 sm:$0x11]   ;;  %v6218_v61 = vld [vmem:[#allocation2 + $0x58] sm:$0xf]  ;;  %v6422_v35 = vsel %vm1437_vm12, %v6417_v1, %v6421_v24  ;;  %v6429_v63 = vor.u32 %v6428_v11, %v6424_v39  ;;  %v4733_v27 = vrot.slane %v4731_v7, 1  ;;  %v5447_v11 = vpop.permute.xlu1 %5446  ;;  %4864 = vrot.lane.b32.xlu0 %v10443_v23, %s8605_s15 }
 0x391   : > { %v4736_v3 = vshll.u32 %v10471_v6, 16  ;;  %v8373_v60 = vld [vmem:[%s11281_s5 + $0xd0] sm:$0xff]   ;;  %v10510_v18 = vsel %vm1437_vm12, %v4722_v56, %v4726_v45  ;;  %v6440_v59 = vrot.slane %v6438_v30, 1  ;;  %v6450_v9 = vshll.u32 %v10490_v53, 16  ;;  %v5112_v7 = vld [vmem:[#allocation2 + $0x3c] sm:$0xe] }
 0x392   : > { %v4490_v50 = vld [vmem:[#allocation2 + $0x54] sm:$0xf]  ;;  %v4729_v6 = vshrl.u32 %v10461_v17, 16  ;;  %v6443_v52 = vshll.u32 %v10478_v57, 16  ;;  %v5576_v56 = vsel %vm1759_vm11, %v10087_v44, %v5447_v11  ;;  %v6436_v23 = vshrl.u32 %v10475_v32, 16  ;;  %6917 = vmatpush1.bf16.msra.mxu0 %v8373_v60 }
 0x393   : > { %v6217_v1 = vld [vmem:[#allocation2 + $0x54] sm:$0xf]  ;;  %v10521_v29 = vcombine.low %v4490_v50, %v4491_v28  ;;  %v10523_v51 = vld [vmem:[#allocation2 + $0x5c] ss:$0 sps:$4 sm:$0x11]   ;;  %6591 = vrot.lane.b32.xlu1 %v6410_v47, %s8605_s15  ;;  %v4745_v4 = vrot.slane %v4743_v48, 1  ;;  %5806 = vmatmul.mubr.bf16.gmra.mrb[92].mxu0 %v5576_v56  ;;  %v6434_v37 = vsel %vm1437_vm12, %v6429_v63, %v6433_v33 }
 0x394   : > { %v10525_v49 = vcombine.low %v6217_v1, %v6218_v61  ;;  %v4748_v30 = vshll.u32 %v10488_v21, 16  ;;  %v4493_v57 = vld [vmem:[#allocation2 + $0x64] sm:$0xf]  ;;  %v4734_v24 = vor.u32 %v4733_v27, %v4729_v6  ;;  %v4738_v39 = vrot.slane %v4736_v3, 1  ;;  %7836 = vmatprep.mubr.msk.bf16.mxu0 %vm1759_vm11, %v10454_v41  ;;  %v8544_v61 = vld [vmem:[#allocation2 + $0x40] sm:$0xf]  ;;  %4866 = vrot.lane.b32.xlu0 %v4715_v5, %s8605_s15 }
 0x395   : > { %11468 = vst [vmem:[#allocation33_spill] sm:$0xff] %v10521_v29  ;;  %v4741_v28 = vshrl.u32 %v10480_v55, 16  ;;  %v10534_v45 = vld [vmem:[#allocation2 + $0x64] sm:$0xf]  ;;  %v6441_v47 = vor.u32 %v6440_v59, %v6436_v23  ;;  %v6452_v44 = vrot.slane %v6450_v9, 1  ;;  %v6455_v48 = vshll.u32 %v10502_v42, 16  ;;  %6918 = vmatprep.subr.bf16.mxu0 %v11410_v20 }
 0x396   : > { %11469 = vst [vmem:[#allocation38_spill] sm:$0xff] %v10525_v49  ;;  %v7786_v21 = vcombine.low %v5112_v7, %v8544_v61  ;;  %v4492_v50 = vld [vmem:[#allocation2 + $0x60] sm:$0xf]  ;;  %v8387_v33 = vld [vmem:[%s11281_s5 + $0xd8] sm:$0xff]   ;;  %v6445_v63 = vrot.slane %v6443_v52, 1  ;;  %v4755_v27 = vshll.u32 %v10521_v29, 16  ;;  %v4739_v52 = vsel %vm1437_vm12, %v4734_v24, %v4738_v39 }
 0x397   : > { %v10544_v3 = vld [vmem:[#allocation2 + $0x5c] ss:$0 sps:$4 sm:$0x11]   ;;  %v6462_v41 = vshll.u32 %v10525_v49, 16  ;;  %v10548_v60 = vcombine.low %v4492_v50, %v4493_v57  ;;  %v6219_v42 = vld [vmem:[#allocation2 + $0x60] sm:$0xf]  ;;  %6593 = vrot.lane.b32.xlu1 %v6422_v35, %s8605_s15  ;;  %v4746_v59 = vor.u32 %v4745_v4, %v4741_v28  ;;  %6919 = vmatpush1.bf16.msra.mxu0 %v8387_v33  ;;  %v5449_v39 = vpop.permute.xlu0 %5448 }
 0x398   : > { %v4750_v9 = vrot.slane %v4748_v30, 1  ;;  %v6448_v1 = vshrl.u32 %v10490_v53, 16  ;;  %v10552_v11 = vld [vmem:[#allocation2 + $0x68] ss:$0 sps:$4 sm:$0x11]   ;;  %v10555_v5 = vcombine.low %v6219_v42, %v10534_v45  ;;  %v4760_v23 = vshll.u32 %v10523_v51, 16  ;;  %4868 = vrot.lane.b32.xlu0 %v10510_v18, %s8605_s15  ;;  %6920 = vmatprep.subr.bf16.mxu0 %v11410_v20 }
 0x399   : > { %11470 = vst [vmem:[#allocation36_spill] sm:$0xff] %v10548_v60  ;;  %v10557_v6 = vld [vmem:[#allocation2 + $0x68] ss:$0 sps:$4 sm:$0x11]   ;;  %v4767_v57 = vshll.u32 %v10548_v60, 16  ;;  %v8397_v4 = vld [vmem:[%s11281_s5 + $0xe0] sm:$0xff]   ;;  %v6446_v30 = vsel %vm1437_vm12, %v6441_v47, %v6445_v63  ;;  %v5579_v47 = vsel %vm1759_vm11, %v10120_v43, %v5449_v39 }
 0x39a   : > { %11471 = vst [vmem:[#allocation13_spill] sm:$0xff] %v10555_v5  ;;  %v8545_v7 = vld [vmem:[#allocation2 + $0x44] ss:$0 sps:$4 sm:$0x11]   ;;  %v10562_v35 = vld [vmem:[#allocation2 + $0x70] sm:$0xf]  ;;  %v6453_v28 = vor.u32 %v6452_v44, %v6448_v1  ;;  %v4751_v44 = vsel %vm1437_vm12, %v4746_v59, %v4750_v9 }
 0x39b   : > { %v5537_v56 = vrot.slane %v8545_v7, 1  ;;  %v6457_v61 = vrot.slane %v6455_v48, 1  ;;  %v5536_v50 = vrot.slane %v7786_v21, 1  ;;  %v5113_v42 = vld [vmem:[#allocation2 + $0x48] sm:$0xe]  ;;  %v4753_v51 = vshrl.u32 %v10521_v29, 16  ;;  %6595 = vrot.lane.b32.xlu1 %v6434_v37, %s8605_s15  ;;  %5814 = vmatmul.mubr.bf16.gmra.mrb[96].mxu0 %v5579_v47 }
 0x39c   : > { %v10568_v24 = vld [vmem:[#allocation2 + $0x70] sm:$0xf]  ;;  %v4757_v7 = vrot.slane %v4755_v27, 1  ;;  %v6464_v55 = vrot.slane %v6462_v41, 1  ;;  %v8546_v53 = vld [vmem:[#allocation2 + $0x4c] sm:$0xf]  ;;  %7837 = vmatprep.mubr.msk.bf16.mxu0 %vm1759_vm11, %v10513_v40  ;;  %6921 = vmatpush1.bf16.msra.mxu0 %v8397_v4 }
 0x39d   : > { %v7787_v17 = vcombine.low %v5113_v42, %v8546_v53  ;;  %v4494_v32 = vld [vmem:[#allocation2 + $0x6c] sm:$0xf]  ;;  %v6474_v48 = vshll.u32 %v10555_v5, 16  ;;  %v6460_v33 = vshrl.u32 %v10525_v49, 16  ;;  %v6467_v53 = vshll.u32 %v10544_v3, 16  ;;  %4870 = vrot.lane.b32.xlu0 %v4739_v52, %s8605_s15  ;;  %6922 = vmatprep.subr.bf16.mxu0 %v11410_v20 }
 0x39e   : > { %v10580_v18 = vcombine.low %v4494_v32, %v10562_v35  ;;  %v6221_v21 = vld [vmem:[#allocation2 + $0x6c] sm:$0xf]  ;;  %v4769_v63 = vrot.slane %v4767_v57, 1  ;;  %v10587_v37 = vld [vmem:[#allocation2 + $0x7c] sm:$0xf]  ;;  %v5538_v32 = vsel %vm1710_vm10, %v5536_v50, %v5537_v56  ;;  %v4762_v41 = vrot.slane %v4760_v23, 1 }
 0x39f   : > { %v10585_v27 = vcombine.low %v6221_v21, %v10568_v24  ;;  %v8411_v43 = vld [vmem:[%s11281_s5 + $0xe8] sm:$0xff]   ;;  %v4772_v59 = vshll.u32 %v10552_v11, 16  ;;  %v6479_v3 = vshll.u32 %v10557_v6, 16  ;;  %v10597_v9 = vld [vmem:[#allocation2 + $0x74] ss:$0 sps:$4 sm:$0x11]   ;;  %v4758_v1 = vor.u32 %v4757_v7, %v4753_v51  ;;  %6597 = vrot.lane.b32.xlu1 %v6446_v30, %s8605_s15 }
 0x3a0   : > { %11472 = vst [vmem:[#allocation35_spill] sm:$0xff] %v10580_v18  ;;  %v6465_v57 = vor.u32 %v6464_v55, %v6460_v33  ;;  %v4765_v42 = vshrl.u32 %v10548_v60, 16  ;;  %v5539_v39 = vrot.slane %v7787_v17, 1  ;;  %v4496_v47 = vld [vmem:[#allocation2 + $0x78] sm:$0xf]  ;;  %v6476_v40 = vrot.slane %v6474_v48, 1  ;;  %6923 = vmatpush1.bf16.msra.mxu0 %v8411_v43 }
 0x3a1   : > { %11473 = vst [vmem:[#allocation41_spill] sm:$0xff] %v10585_v27  ;;  %v10601_v21 = vld [vmem:[#allocation2 + $0x7c] sm:$0xf]  ;;  %v8547_v11 = vld [vmem:[#allocation2 + $0x50] ss:$0 sps:$4 sm:$0x11]   ;;  %v10609_v52 = vcombine.low %v4496_v47, %v10587_v37  ;;  %v6458_v55 = vsel %vm1437_vm12, %v6453_v28, %v6457_v61  ;;  %v5451_v28 = vpop.permute.xlu1 %5450  ;;  %4872 = vrot.lane.b32.xlu0 %v4751_v44, %s8605_s15  ;;  %v4763_v61 = vsel %vm1437_vm12, %v4758_v1, %v4762_v41 }
 0x3a2   : > { %v5540_v56 = vrot.slane %v8547_v11, 1  ;;  %v4779_v23 = vshll.u32 %v10580_v18, 16  ;;  %v10606_v4 = vld [vmem:[#allocation2 + $0x74] ss:$0 sps:$4 sm:$0x11]   ;;  %v6469_v17 = vrot.slane %v6467_v53, 1  ;;  %v4770_v50 = vor.u32 %v4769_v63, %v4765_v42  ;;  %6924 = vmatprep.subr.bf16.mxu0 %v11410_v20 }
 0x3a3   : > { %11474 = vst [vmem:[#allocation14_spill] sm:$0xff] %v10609_v52  ;;  %v6486_v51 = vshll.u32 %v10585_v27, 16  ;;  %v6223_v7 = vld [vmem:[#allocation2 + $0x78] sm:$0xf]  ;;  %v8423_v30 = vld [vmem:[%s11281_s5 + $0xf0] sm:$0xff]   ;;  %v4774_v48 = vrot.slane %v4772_v59, 1  ;;  %6599 = vrot.lane.b32.xlu1 %v6458_v55, %s8605_s15  ;;  %v5582_v44 = vsel %vm1759_vm11, %v10144_v22, %v5451_v28 }
 0x3a4   : > { %v6472_v33 = vshrl.u32 %v10555_v5, 16  ;;  %v6481_v11 = vrot.slane %v6479_v3, 1  ;;  %v10617_v60 = vld [vmem:[#allocation2 + $0x80] ss:$0 sps:$4 sm:$0x11]   ;;  %v10620_v47 = vcombine.low %v6223_v7, %v10601_v21  ;;  %v6470_v53 = vsel %vm1437_vm12, %v6465_v57, %v6469_v17  ;;  %5822 = vmatmul.mubr.bf16.gmra.mrb[100].mxu0 %v5582_v44  ;;  %v8425_v55 = vld [vmem:[%s11281_s5 + $0xf8] sm:$0xff]  }
 0x3a5   : > { %v4784_v63 = vshll.u32 %v10597_v9, 16  ;;  %v4791_v59 = vshll.u32 %v10609_v52, 16  ;;  %v10627_v42 = vld [vmem:[#allocation2 + $0x80] ss:$0 sps:$4 sm:$0x11]   ;;  %v10638_v41 = vsel %vm1710_vm10, %v5539_v39, %v5540_v56  ;;  %v4781_v1 = vrot.slane %v4779_v23, 1  ;;  %7838 = vmatprep.mubr.msk.bf16.mxu0 %vm1759_vm11, %v5538_v32  ;;  %6925 = vmatpush1.bf16.msra.mxu0 %v8423_v30 }
 0x3a6   : > { %11475 = vst [vmem:[#allocation39_spill] sm:$0xff] %v10620_v47  ;;  %v5114_v3 = vld [vmem:[#allocation2 + $0x54] sm:$0xe]  ;;  %v10629_v5 = vld [vmem:[#allocation2 + $0x88] sm:$0xf]  ;;  %v6477_v43 = vor.u32 %v6476_v40, %v6472_v33  ;;  %v4775_v7 = vsel %vm1437_vm12, %v4770_v50, %v4774_v48  ;;  %v4777_v49 = vshrl.u32 %v10580_v18, 16  ;;  %4874 = vrot.lane.b32.xlu0 %v4763_v61, %s8605_s15  ;;  %6926 = vmatprep.subr.bf16.mxu0 %v11410_v20 }
 0x3a7   : > { %v10631_v29 = vld [vmem:[#allocation2 + $0x88] sm:$0xf]  ;;  %v4498_v57 = vld [vmem:[#allocation2 + $0x84] sm:$0xf]  ;;  %v6488_v34 = vrot.slane %v6486_v51, 1  ;;  %v6491_v10 = vshll.u32 %v10606_v4, 16  ;;  %6601 = vrot.lane.b32.xlu1 %v6470_v53, %s8605_s15  ;;  %v5453_v38 = vpop.permute.xlu0 %5452 }
 0x3a8   : > { %v6225_v17 = vld [vmem:[#allocation2 + $0x84] sm:$0xf]  ;;  %v10643_v0 = vld [vmem:[#allocation2 + $0x94] sm:$0xf]  ;;  %v6498_v22 = vshll.u32 %v10620_v47, 16  ;;  %v10648_v56 = vcombine.low %v4498_v57, %v10629_v5  ;;  %v4786_v50 = vrot.slane %v4784_v63, 1  ;;  %v6482_v28 = vsel %vm1437_vm12, %v6477_v43, %v6481_v11 }
 0x3a9   : > { %v8548_v40 = vld [vmem:[#allocation2 + $0x58] sm:$0xf]  ;;  %v10651_v23 = vcombine.low %v6225_v17, %v10631_v29  ;;  %v6484_v32 = vshrl.u32 %v10585_v27, 16  ;;  %v4793_v51 = vrot.slane %v4791_v59, 1  ;;  %v4796_v48 = vshll.u32 %v10617_v60, 16  ;;  %v8428_v59 = vld [vmem:[%s11281_s5 + $0x100] sm:$0xff]   ;;  %6927 = vmatpush1.bf16.msra.mxu0 %v8425_v55 }
 0x3aa   : > { %v7788_v39 = vcombine.low %v5114_v3, %v8548_v40  ;;  %11476 = vst [vmem:[#allocation42_spill] sm:$0xff] %v10648_v56  ;;  %v4500_v33 = vld [vmem:[#allocation2 + $0x90] sm:$0xf]  ;;  %v4782_v30 = vor.u32 %v4781_v1, %v4777_v49  ;;  %v10662_v3 = vld [vmem:[#allocation2 + $0x8c] ss:$0 sps:$4 sm:$0x11]   ;;  %4876 = vrot.lane.b32.xlu0 %v4775_v7, %s8605_s15  ;;  %6928 = vmatprep.subr.bf16.mxu0 %v11410_v20 }
 0x3ab   : > { %11477 = vst [vmem:[#allocation15_spill] sm:$0xff] %v10651_v23  ;;  %v4803_v44 = vshll.u32 %v10648_v56, 16  ;;  %v10666_v61 = vcombine.low %v4500_v33, %v10643_v0  ;;  %v10668_v63 = vld [vmem:[#allocation2 + $0x94] sm:$0xf]  ;;  %v6489_v57 = vor.u32 %v6488_v34, %v6484_v32  ;;  %v4789_v17 = vshrl.u32 %v10609_v52, 16  ;;  %6603 = vrot.lane.b32.xlu1 %v6482_v28, %s8605_s15 }
 0x3ac   : > { %v6503_v53 = vshll.u32 %v10627_v42, 16  ;;  %v10675_v11 = vld [vmem:[#allocation2 + $0x8c] ss:$0 sps:$4 sm:$0x11]   ;;  %v6510_v49 = vshll.u32 %v10651_v23, 16  ;;  %v6493_v43 = vrot.slane %v6491_v10, 1  ;;  %v5585_v10 = vsel %vm1759_vm11, %v10169_v26, %v5453_v38 }
 0x3ad   : > { %11478 = vst [vmem:[#allocation43_spill] sm:$0xff] %v10666_v61  ;;  %v6500_v1 = vrot.slane %v6498_v22, 1  ;;  %v5542_v40 = vrot.slane %v7788_v39, 1  ;;  %v8549_v33 = vld [vmem:[#allocation2 + $0x5c] ss:$0 sps:$4 sm:$0x11]   ;;  %v4794_v15 = vor.u32 %v4793_v51, %v4789_v17  ;;  %v4787_v22 = vsel %vm1437_vm12, %v4782_v30, %v4786_v50  ;;  %5830 = vmatmul.mubr.bf16.gmra.mrb[104].mxu0 %v5585_v10 }
 0x3ae   : > { %v5543_v18 = vrot.slane %v8549_v33, 1  ;;  %v6227_v27 = vld [vmem:[#allocation2 + $0x90] sm:$0xf]  ;;  %v4798_v34 = vrot.slane %v4796_v48, 1  ;;  %v6496_v32 = vshrl.u32 %v10620_v47, 16  ;;  %v4805_v39 = vrot.slane %v4803_v44, 1  ;;  %7839 = vmatprep.mubr.msk.bf16.mxu0 %vm1759_vm11, %v10638_v41  ;;  %6929 = vmatpush1.bf16.msra.mxu0 %v8428_v59 }
 0x3af   : > { %v10680_v52 = vld [vmem:[#allocation2 + $0x98] ss:$0 sps:$4 sm:$0x11]   ;;  %v10683_v8 = vcombine.low %v6227_v27, %v10668_v63  ;;  %v4815_v7 = vshll.u32 %v10666_v61, 16  ;;  %v10691_v55 = vld [vmem:[#allocation2 + $0xa0] sm:$0xf]  ;;  %v6494_v51 = vsel %vm1437_vm12, %v6489_v57, %v6493_v43  ;;  %4878 = vrot.lane.b32.xlu0 %v4787_v22, %s8605_s15  ;;  %6930 = vmatprep.subr.bf16.mxu0 %v11410_v20 }
 0x3b0   : > { %v6505_v48 = vrot.slane %v6503_v53, 1  ;;  %v4808_v27 = vshll.u32 %v10662_v3, 16  ;;  %v6512_v17 = vrot.slane %v6510_v49, 1  ;;  %v10695_v33 = vld [vmem:[#allocation2 + $0x98] ss:$0 sps:$4 sm:$0x11]   ;;  %v6501_v26 = vor.u32 %v6500_v1, %v6496_v32  ;;  %6605 = vrot.lane.b32.xlu1 %v6494_v51, %s8605_s15 }
 0x3b1   : > { %11479 = vst [vmem:[#allocation16_spill] sm:$0xff] %v10683_v8  ;;  %v10697_v28 = vld [vmem:[#allocation2 + $0xa0] sm:$0xf]  ;;  %v10702_v38 = vsel %vm1710_vm10, %v5542_v40, %v5543_v18  ;;  %v4801_v50 = vshrl.u32 %v10648_v56, 16  ;;  %v6515_v30 = vshll.u32 %v10675_v11, 16  ;;  %v8431_v57 = vld [vmem:[%s11281_s5 + $0x108] sm:$0xff]   ;;  %v4799_v53 = vsel %vm1437_vm12, %v4794_v15, %v4798_v34 }
 0x3b2   : > { %v4502_v44 = vld [vmem:[#allocation2 + $0x9c] sm:$0xf]  ;;  %v6508_v41 = vshrl.u32 %v10651_v23, 16  ;;  %v6522_v49 = vshll.u32 %v10683_v8, 16  ;;  %v10716_v1 = vld [vmem:[#allocation2 + $0xac] sm:$0xf]  ;;  %6931 = vmatpush1.bf16.msra.mxu0 %v8431_v57 }
 0x3b3   : > { %v10714_v18 = vcombine.low %v4502_v44, %v10691_v55  ;;  %v6229_v43 = vld [vmem:[#allocation2 + $0x9c] sm:$0xf]  ;;  %11481 = vst [vmem:[#allocation21_spill] sm:$0xff] %v10716_v1  ;;  %v4806_v59 = vor.u32 %v4805_v39, %v4801_v50  ;;  %v4817_v40 = vrot.slane %v4815_v7, 1  ;;  %v4820_v32 = vshll.u32 %v10680_v52, 16  ;;  %4880 = vrot.lane.b32.xlu0 %v4799_v53, %s8605_s15  ;;  %6932 = vmatprep.subr.bf16.mxu0 %v11410_v20  ;;  %v5455_v53 = vpop.permute.xlu1 %5454 }
 0x3b4   : > { %v5115_v10 = vld [vmem:[#allocation2 + $0x60] sm:$0xe]  ;;  %v10721_v15 = vld [vmem:[#allocation2 + $0xa4] ss:$0 sps:$4 sm:$0x11]   ;;  %v10724_v34 = vcombine.low %v6229_v43, %v10697_v28  ;;  %v4810_v44 = vrot.slane %v4808_v27, 1  ;;  %v6513_v56 = vor.u32 %v6512_v17, %v6508_v41  ;;  %v6506_v39 = vsel %vm1437_vm12, %v6501_v26, %v6505_v48 }
 0x3b5   : > { %11480 = vst [vmem:[#allocation18_spill] sm:$0xff] %v10714_v18  ;;  %v10726_v22 = vld [vmem:[#allocation2 + $0xac] sm:$0xf]  ;;  %v8550_v23 = vld [vmem:[#allocation2 + $0x64] sm:$0xf]  ;;  %v4827_v16 = vshll.u32 %v10714_v18, 16  ;;  %6607 = vrot.lane.b32.xlu1 %v6506_v39, %s8605_s15 }
 0x3b6   : > { %11482 = vst [vmem:[#allocation25_spill] sm:$0xff] %v10724_v34  ;;  %11483 = vst [vmem:[#allocation28_spill] sm:$0xff] %v10726_v22  ;;  %v7789_v47 = vcombine.low %v5115_v10, %v8550_v23  ;;  %v4504_v19 = vld [vmem:[#allocation2 + $0xa8] sm:$0xf]  ;;  %v4813_v7 = vshrl.u32 %v10666_v61, 16  ;;  %v6534_v51 = vshll.u32 %v10724_v34, 16 }
 0x3b7   : > { %v10733_v50 = vcombine.low %v4504_v19, %v10716_v1  ;;  %v6231_v43 = vld [vmem:[#allocation2 + $0xa8] sm:$0xf]  ;;  %v8435_v27 = vld [vmem:[%s11281_s5 + $0x110] sm:$0xff]   ;;  %v6517_v23 = vrot.slane %v6515_v30, 1  ;;  %v6524_v17 = vrot.slane %v6522_v49, 1  ;;  %v6527_v41 = vshll.u32 %v10695_v33, 16 }
 0x3b8   : > { %v10740_v48 = vld [vmem:[#allocation2 + $0xa4] ss:$0 sps:$4 sm:$0x11]   ;;  %v10743_v26 = vcombine.low %v6231_v43, %v10726_v22  ;;  %v4811_v19 = vsel %vm1437_vm12, %v4806_v59, %v4810_v44  ;;  %v4818_v57 = vor.u32 %v4817_v40, %v4813_v7  ;;  %v4822_v10 = vrot.slane %v4820_v32, 1  ;;  %v10750_v1 = vld [vmem:[#allocation2 + $0xb8] sm:$0xf]  ;;  %6933 = vmatpush1.bf16.msra.mxu0 %v8435_v27 }
 0x3b9   : > { %v6520_v61 = vshrl.u32 %v10683_v8, 16  ;;  %v6518_v30 = vsel %vm1437_vm12, %v6513_v56, %v6517_v23  ;;  %v5545_v49 = vrot.slane %v7789_v47, 1  ;;  %v8551_v36 = vld [vmem:[#allocation2 + $0x68] ss:$0 sps:$4 sm:$0x11]   ;;  %v4829_v12 = vrot.slane %v4827_v16, 1  ;;  %4882 = vrot.lane.b32.xlu0 %v4811_v19, %s8605_s15  ;;  %6934 = vmatprep.subr.bf16.mxu0 %v11410_v20 }
 0x3ba   : > { %v5546_v62 = vrot.slane %v8551_v36, 1  ;;  %v5588_v43 = vsel %vm1759_vm11, %v10184_v46, %v5455_v53  ;;  %v4832_v39 = vshll.u32 %v10721_v15, 16  ;;  %v6536_v22 = vrot.slane %v6534_v51, 1  ;;  %v10755_v59 = vld [vmem:[#allocation2 + $0xb0] ss:$0 sps:$4 sm:$0x11]   ;;  %6609 = vrot.lane.b32.xlu1 %v6518_v30, %s8605_s15 }
 0x3bb   : > { %v4839_v40 = vshll.u32 %v10733_v50, 16  ;;  %v10758_v32 = vld [vmem:[#allocation2 + $0xb8] sm:$0xf]  ;;  %5838 = vmatmul.mubr.bf16.gmra.mrb[108].mxu0 %v5588_v43  ;;  %v6525_v16 = vor.u32 %v6524_v17, %v6520_v61  ;;  %v4825_v46 = vshrl.u32 %v10714_v18, 16  ;;  %v6539_v47 = vshll.u32 %v10740_v48, 16 }
 0x3bc   : > { %v8440_v36 = vld [vmem:[%s11281_s5 + $0x118] sm:$0xff]   ;;  %v10766_v56 = vld [vmem:[#allocation2 + $0xb0] ss:$0 sps:$4 sm:$0x11]   ;;  %v6546_v44 = vshll.u32 %v10743_v26, 16  ;;  %7840 = vmatprep.mubr.msk.bf16.mxu0 %vm1759_vm11, %v10702_v38  ;;  %v6529_v51 = vrot.slane %v6527_v41, 1  ;;  %v4823_v17 = vsel %vm1437_vm12, %v4818_v57, %v4822_v10  ;;  %v5547_v19 = vsel %vm1710_vm10, %v5545_v49, %v5546_v62 }
 0x3bd   : > { %v4506_v7 = vld [vmem:[#allocation2 + $0xb4] sm:$0xf]  ;;  %v6532_v27 = vshrl.u32 %v10724_v34, 16  ;;  %v4830_v53 = vor.u32 %v4829_v12, %v4825_v46  ;;  %v5116_v43 = vld [vmem:[#allocation2 + $0x6c] sm:$0xe]  ;;  %v4834_v38 = vrot.slane %v4832_v39, 1  ;;  %6935 = vmatpush1.bf16.msra.mxu0 %v8440_v36  ;;  %4884 = vrot.lane.b32.xlu0 %v4823_v17, %s8605_s15 }
 0x3be   : > { %v10774_v23 = vcombine.low %v4506_v7, %v10750_v1  ;;  %v6233_v61 = vld [vmem:[#allocation2 + $0xb4] sm:$0xf]  ;;  %v10781_v8 = vld [vmem:[#allocation2 + $0xc4] sm:$0xf]  ;;  %v4841_v30 = vrot.slane %v4839_v40, 1  ;;  %v6530_v12 = vsel %vm1437_vm12, %v6525_v16, %v6529_v51  ;;  %v6541_v62 = vrot.slane %v6539_v47, 1 }
 0x3bf   : > { %v10779_v18 = vcombine.low %v6233_v61, %v10758_v32  ;;  %v6537_v41 = vor.u32 %v6536_v22, %v6532_v27  ;;  %v10784_v34 = vld [vmem:[#allocation2 + $0xbc] ss:$0 sps:$4 sm:$0x11]   ;;  %v6548_v57 = vrot.slane %v6546_v44, 1  ;;  %v6235_v49 = vld [vmem:[#allocation2 + $0xc0] sm:$0xf]  ;;  %6611 = vrot.lane.b32.xlu1 %v6530_v12, %s8605_s15  ;;  %v5457_v27 = vpop.permute.xlu0 %5456  ;;  %v4835_v16 = vsel %vm1437_vm12, %v4830_v53, %v4834_v38 }
 0x3c0   : > { %11484 = vst [vmem:[#allocation32_spill] sm:$0xff] %v10774_v23  ;;  %v4851_v7 = vshll.u32 %v10774_v23, 16  ;;  %v4837_v20 = vshrl.u32 %v10733_v50, 16  ;;  %v4844_v22 = vshll.u32 %v10755_v59, 16  ;;  %v8552_v39 = vld [vmem:[#allocation2 + $0x70] sm:$0xf]  ;;  %v10796_v36 = vcombine.low %v6235_v49, %v10781_v8 }
 0x3c1   : > { %v6558_v10 = vshll.u32 %v10779_v18, 16  ;;  %v7790_v40 = vcombine.low %v5116_v43, %v8552_v39  ;;  %v10793_v46 = vld [vmem:[#allocation2 + $0xbc] ss:$0 sps:$4 sm:$0x11]   ;;  %v6544_v47 = vshrl.u32 %v10743_v26, 16  ;;  %v6551_v44 = vshll.u32 %v10766_v56, 16  ;;  %4886 = vrot.lane.b32.xlu0 %v4835_v16, %s8605_s15 }
 0x3c2   : > { %v4853_v51 = vrot.slane %v4851_v7, 1  ;;  %v5591_v61 = vsel %vm1759_vm11, %v10207_v13, %v5457_v27  ;;  %v6542_v17 = vsel %vm1437_vm12, %v6537_v41, %v6541_v62  ;;  %v4842_v12 = vor.u32 %v4841_v30, %v4837_v20  ;;  %v8553_v27 = vld [vmem:[#allocation2 + $0x74] ss:$0 sps:$4 sm:$0x11]  }
 0x3c3   : > { %v4856_v43 = vshll.u32 %v10784_v34, 16  ;;  %5846 = vmatmul.mubr.bf16.gmra.mrb[112].mxu0 %v5591_v61  ;;  %v6549_v49 = vor.u32 %v6548_v57, %v6544_v47  ;;  %v4849_v39 = vshrl.u32 %v10774_v23, 16  ;;  %v6560_v53 = vrot.slane %v6558_v10, 1  ;;  %6613 = vrot.lane.b32.xlu1 %v6542_v17, %s8605_s15  ;;  %v10812_v57 = vld [vmem:[#allocation2 + $0xc8] ss:$0 sps:$4 sm:$0x11]  }
 0x3c4   : > { %v6570_v38 = vshll.u32 %v10796_v36, 16  ;;  %7841 = vmatprep.mubr.msk.bf16.mxu0 %vm1759_vm11, %v5547_v19  ;;  %v4846_v7 = vrot.slane %v4844_v22, 1  ;;  %v5548_v13 = vrot.slane %v7790_v40, 1  ;;  %v5549_v41 = vrot.slane %v8553_v27, 1  ;;  %v5123_v40 = vld [vmem:[#allocation2 + $0xc0] sm:$0xe]  ;;  %v5459_v27 = vpop.permute.xlu1 %5458 }
 0x3c5   : > { %v6563_v30 = vshll.u32 %v10793_v46, 16  ;;  %v6553_v62 = vrot.slane %v6551_v44, 1  ;;  %v4854_v20 = vor.u32 %v4853_v51, %v4849_v39  ;;  %v6556_v16 = vshrl.u32 %v10779_v18, 16  ;;  %v4524_v17 = vld [vmem:[#allocation2] sm:$0xe] }
 0x3c6   : > { %v4847_v10 = vsel %vm1437_vm12, %v4842_v12, %v4846_v7  ;;  %v4858_v47 = vrot.slane %v4856_v43, 1  ;;  %v6572_v22 = vrot.slane %v6570_v38, 1  ;;  %v5550_v44 = vsel %vm1710_vm10, %v5548_v13, %v5549_v41  ;;  %v8555_v13 = vld [vmem:[#allocation2 + $0x8] ss:$0 sps:$4 sm:$0x11]  }
 0x3c7   : > { %4888 = vrot.lane.b32.xlu0 %v4847_v10, %s8605_s15  ;;  %v6554_v19 = vsel %vm1437_vm12, %v6549_v49, %v6553_v62  ;;  %v6561_v61 = vor.u32 %v6560_v53, %v6556_v16  ;;  %v6565_v51 = vrot.slane %v6563_v30, 1  ;;  %v7797_v39 = vcombine.low %v5123_v40, %v10440_v31  ;;  %v5117_v53 = vld [vmem:[#allocation2 + $0x78] sm:$0xe]  ;;  %v8554_v62 = vld [vmem:[#allocation2 + $0x4] sm:$0xf] }
 0x3c8   : > { %6615 = vrot.lane.b32.xlu1 %v6554_v19, %s8605_s15  ;;  %v4859_v23 = vsel %vm1437_vm12, %v4854_v20, %v4858_v47  ;;  %v6568_v12 = vshrl.u32 %v10796_v36, 16  ;;  %v6575_v7 = vshll.u32 %v10812_v57, 16  ;;  %v5570_v43 = vrot.slane %v10451_v2, 1  ;;  %v6237_v30 = vld [vmem:[#allocation2 + $0xcc] sm:$0xf] }
 0x3c9   : > { %v5594_v49 = vsel %vm1759_vm11, %v10231_v58, %v5459_v27  ;;  %v5569_v38 = vrot.slane %v7797_v39, 1  ;;  %v7734_v16 = vcombine.low %v4524_v17, %v8554_v62  ;;  %v4941_v41 = vrot.slane %v8555_v13, 1  ;;  %v8556_v10 = vld [vmem:[#allocation2 + $0x7c] sm:$0xf]  ;;  %v10828_v47 = vld [vmem:[#allocation2 + $0xd0] sm:$0xf] }
 0x3ca   : > { %v6566_v31 = vsel %vm1437_vm12, %v6561_v61, %v6565_v51  ;;  %v6573_v20 = vor.u32 %v6572_v22, %v6568_v12  ;;  %v7791_v19 = vcombine.low %v5117_v53, %v8556_v10  ;;  %v10830_v2 = vld [vmem:[#allocation2 + $0xd4] ss:$0 sps:$4 sm:$0x11]   ;;  %v6577_v17 = vrot.slane %v6575_v7, 1  ;;  %v5118_v53 = vld [vmem:[#allocation2 + $0x84] sm:$0xe] }
 0x3cb   : > { %5854 = vmatmul.mubr.bf16.gmra.mrb[116].mxu0 %v5594_v49  ;;  %4890 = vrot.lane.b32.xlu0 %v4859_v23, %s8605_s15  ;;  %v10835_v58 = vsel %vm1710_vm10, %v5569_v38, %v5570_v43  ;;  %v4940_v40 = vrot.slane %v7734_v16, 1  ;;  %v10839_v61 = vcombine.low %v6237_v30, %v10828_v47  ;;  %v8557_v39 = vld [vmem:[#allocation2 + $0x80] ss:$0 sps:$4 sm:$0x11]   ;;  %v5461_v43 = vpop.permute.xlu0 %5460  ;;  %v8558_v13 = vld [vmem:[#allocation2 + $0x88] sm:$0xf] }
 0x3cc   : > { %7842 = vmatprep.mubr.msk.bf16.mxu0 %vm1759_vm11, %v5550_v44  ;;  %6617 = vrot.lane.b32.xlu1 %v6566_v31, %s8605_s15  ;;  %v6578_v22 = vsel %vm1437_vm12, %v6573_v20, %v6577_v17  ;;  %v5551_v51 = vrot.slane %v7791_v19, 1  ;;  %v5552_v27 = vrot.slane %v8557_v39, 1  ;;  %v6587_v44 = vshll.u32 %v10830_v2, 16  ;;  %v5119_v30 = vld [vmem:[#allocation2 + $0x90] sm:$0xe] }
 0x3cd   : > { %v4942_v23 = vsel %vm1710_vm10, %v4940_v40, %v4941_v41  ;;  %v6580_v12 = vshrl.u32 %v10839_v61, 16  ;;  %v6582_v7 = vshll.u32 %v10839_v61, 16  ;;  %v5597_v49 = vsel %vm1759_vm11, %v10260_v25, %v5461_v43  ;;  %v8559_v20 = vld [vmem:[#allocation2 + $0x94] sm:$0xf]  ;;  %v5120_v19 = vld [vmem:[#allocation2 + $0x9c] sm:$0xe] }
 0x3ce   : > { %7862 = vmatprep.mubr.msk.bf16.mxu1 %vm1759_vm11, %v4942_v23  ;;  %v6589_v62 = vrot.slane %v6587_v44, 1  ;;  %v5553_v16 = vsel %vm1710_vm10, %v5551_v51, %v5552_v27  ;;  %v7792_v41 = vcombine.low %v5118_v53, %v8558_v13  ;;  %v7793_v10 = vcombine.low %v5119_v30, %v8559_v20  ;;  %v8560_v23 = vld [vmem:[#allocation2 + $0x8c] ss:$0 sps:$4 sm:$0x11]   ;;  %v6261_v43 = vld [vmem:[#allocation2 + $0x60] sm:$0xe] }
 0x3cf   : > { %v6584_v38 = vrot.slane %v6582_v7, 1  ;;  %v5555_v25 = vrot.slane %v8560_v23, 1  ;;  %v5463_v44 = vpop.permute.xlu1 %5462  ;;  %v8562_v27 = vld [vmem:[#allocation2 + $0x98] ss:$0 sps:$4 sm:$0x11]   ;;  %v6690_v13 = vrot.slane %v10557_v6, 1 }
 0x3d0   : > { %6619 = vrot.lane.b32.xlu1 %v6578_v22, %s8605_s15  ;;  %v5554_v17 = vrot.slane %v7792_v41, 1  ;;  %v8561_v22 = vld [vmem:[#allocation2 + $0xa0] sm:$0xf]  ;;  %v5557_v51 = vrot.slane %v7793_v10, 1  ;;  %v5558_v7 = vrot.slane %v8562_v27, 1  ;;  %v6696_v27 = vrot.slane %v10627_v42, 1 }
 0x3d1   : > { %v6585_v31 = vor.u32 %v6584_v38, %v6580_v12  ;;  %v7794_v39 = vcombine.low %v5120_v19, %v8561_v22  ;;  %v5600_v12 = vsel %vm1759_vm11, %v10277_v14, %v5463_v44  ;;  %v6262_v41 = vld [vmem:[#allocation2 + $0x6c] sm:$0xe]  ;;  %v10859_v30 = vld [vmem:[#allocation2 + $0xa8] sm:$0xe]  ;;  %v4968_v22 = vrot.slane %v10597_v9, 1 }
 0x3d2   : > { %v5556_v53 = vsel %vm1710_vm10, %v5554_v17, %v5555_v25  ;;  %v7917_v20 = vcombine.low %v6262_v41, %v10568_v24  ;;  %v4533_v10 = vld [vmem:[#allocation2 + $0x6c] sm:$0xe]  ;;  %v5559_v14 = vsel %vm1710_vm10, %v5557_v51, %v5558_v7  ;;  %v6263_v17 = vld [vmem:[#allocation2 + $0x78] sm:$0xe]  ;;  %v6264_v7 = vld [vmem:[#allocation2 + $0x84] sm:$0xe] }
 0x3d3   : > { %5862 = vmatmul.mubr.bf16.gmra.mrb[120].mxu0 %v5597_v49  ;;  %v6590_v40 = vsel %vm1437_vm12, %v6585_v31, %v6589_v62  ;;  %v7916_v49 = vcombine.low %v6261_v43, %v10534_v45  ;;  %v5560_v38 = vrot.slane %v7794_v39, 1  ;;  %v8563_v62 = vld [vmem:[#allocation2 + $0xa4] ss:$0 sps:$4 sm:$0x11]   ;;  %v10863_v45 = vld [vmem:[#allocation2 + $0xac] sm:$0xf]  ;;  %v7743_v6 = vcombine.low %v4533_v10, %v10562_v35 }
 0x3d4   : > { %7843 = vmatprep.mubr.msk.bf16.mxu0 %vm1759_vm11, %v5553_v16  ;;  %6621 = vrot.lane.b32.xlu1 %v6590_v40, %s8605_s15  ;;  %v5561_v16 = vrot.slane %v8563_v62, 1  ;;  %v7795_v19 = vcombine.low %v10859_v30, %v10863_v45  ;;  %v6693_v40 = vrot.slane %v10606_v4, 1  ;;  %v6692_v25 = vrot.slane %v7917_v20, 1  ;;  %v4534_v39 = vld [vmem:[#allocation2 + $0x78] sm:$0xe] }
 0x3d5   : > { %v6689_v31 = vrot.slane %v7916_v49, 1  ;;  %v7918_v24 = vcombine.low %v6263_v17, %v10601_v21  ;;  %v4967_v51 = vrot.slane %v7743_v6, 1  ;;  %v7744_v4 = vcombine.low %v4534_v39, %v10587_v37  ;;  %v4535_v49 = vld [vmem:[#allocation2 + $0x84] sm:$0xe]  ;;  %v6266_v10 = vld [vmem:[#allocation2 + $0x9c] sm:$0xe] }
 0x3d6   : > { %v10875_v44 = vsel %vm1710_vm10, %v5560_v38, %v5561_v16  ;;  %v10880_v35 = vsel %vm1710_vm10, %v6692_v25, %v6693_v40  ;;  %v7919_v9 = vcombine.low %v6264_v7, %v10631_v29  ;;  %v6699_v62 = vrot.slane %v10675_v11, 1  ;;  %v6265_v29 = vld [vmem:[#allocation2 + $0x90] sm:$0xe]  ;;  %v4537_v17 = vld [vmem:[#allocation2 + $0x9c] sm:$0xe] }
 0x3d7   : > { %v10870_v23 = vsel %vm1710_vm10, %v6689_v31, %v6690_v13  ;;  %v6695_v43 = vrot.slane %v7918_v24, 1  ;;  %v4970_v38 = vrot.slane %v7744_v4, 1  ;;  %v7745_v42 = vcombine.low %v4535_v49, %v10629_v5  ;;  %v4536_v5 = vld [vmem:[#allocation2 + $0x90] sm:$0xe]  ;;  %v6267_v24 = vld [vmem:[#allocation2 + $0xa8] sm:$0xe] }
 0x3d8   : > { %v5465_v21 = vpop.permute.xlu0 %5464  ;;  %v6698_v13 = vrot.slane %v7919_v9, 1  ;;  %v7920_v20 = vcombine.low %v6265_v29, %v10668_v63  ;;  %v6702_v11 = vrot.slane %v10695_v33, 1  ;;  %v7746_v40 = vcombine.low %v4536_v5, %v10643_v0  ;;  %v4538_v4 = vld [vmem:[#allocation2 + $0xa8] sm:$0xe]  ;;  %v6268_v49 = vld [vmem:[#allocation2 + $0xb4] sm:$0xe] }
 0x3d9   : > { %v5603_v37 = vsel %vm1759_vm11, %v10302_v54, %v5465_v21  ;;  %v10892_v16 = vsel %vm1710_vm10, %v6695_v43, %v6696_v27  ;;  %v4973_v31 = vrot.slane %v7745_v42, 1  ;;  %v7921_v6 = vcombine.low %v6266_v10, %v10697_v28  ;;  %v11485_v27 = vld [vmem:[#allocation28_spill] sm:$0xff]  ;;  %v11486_v43 = vld [vmem:[#allocation21_spill] sm:$0xff] }
 0x3da   : > { %v10902_v54 = vsel %vm1710_vm10, %v6698_v13, %v6699_v62  ;;  %v6701_v63 = vrot.slane %v7920_v20, 1  ;;  %v6705_v33 = vrot.slane %v10740_v48, 1  ;;  %v7922_v0 = vcombine.low %v6267_v24, %v11485_v27  ;;  %v11487_v13 = vld [vmem:[#allocation19_spill] sm:$0xff]  ;;  %v6269_v20 = vld [vmem:[#allocation2 + $0xc0] sm:$0xe] }
 0x3db   : > { %5870 = vmatmul.mubr.bf16.gmra.mrb[124].mxu0 %v5600_v12  ;;  %v4971_v12 = vrot.slane %v10617_v60, 1  ;;  %v4974_v60 = vrot.slane %v10662_v3, 1  ;;  %v4977_v3 = vrot.slane %v10680_v52, 1  ;;  %v6704_v39 = vrot.slane %v7921_v6, 1  ;;  %v8566_v24 = vld [vmem:[#allocation2 + $0xb8] sm:$0xf] }
 0x3dc   : > { %7844 = vmatprep.mubr.msk.bf16.mxu0 %vm1759_vm11, %v5556_v53  ;;  %v10885_v53 = vsel %vm1710_vm10, %v4967_v51, %v4968_v22  ;;  %v7747_v22 = vcombine.low %v4537_v17, %v10691_v55  ;;  %v4980_v51 = vrot.slane %v10721_v15, 1  ;;  %v10915_v52 = vsel %vm1710_vm10, %v6701_v63, %v6702_v11  ;;  %v8565_v6 = vld [vmem:[#allocation2 + $0xb0] ss:$0 sps:$4 sm:$0x11]   ;;  %v11488_v63 = vld [vmem:[#allocation20_spill] sm:$0xff] }
 0x3dd   : > { %v10896_v41 = vsel %vm1710_vm10, %v4970_v38, %v4971_v12  ;;  %v10908_v25 = vsel %vm1710_vm10, %v4973_v31, %v4974_v60  ;;  %v6708_v7 = vrot.slane %v10766_v56, 1  ;;  %v7748_v12 = vcombine.low %v4538_v4, %v11486_v43  ;;  %v8567_v45 = vld [vmem:[#allocation2 + $0xbc] ss:$0 sps:$4 sm:$0x11]  }
 0x3de   : > { %v4979_v28 = vrot.slane %v7747_v22, 1  ;;  %v10923_v55 = vsel %vm1710_vm10, %v6704_v39, %v6705_v33  ;;  %v6707_v9 = vrot.slane %v7922_v0, 1  ;;  %v4983_v15 = vrot.slane %v10755_v59, 1  ;;  %v5122_v33 = vld [vmem:[#allocation2 + $0xb4] sm:$0xe] }
 0x3df   : > { %v4982_v62 = vrot.slane %v7748_v12, 1  ;;  %v7923_v42 = vcombine.low %v6268_v49, %v10758_v32  ;;  %v6711_v56 = vrot.slane %v10793_v46, 1  ;;  %v4986_v59 = vrot.slane %v10784_v34, 1  ;;  %v4525_v0 = vld [vmem:[#allocation2 + $0xc] sm:$0xe]  ;;  %v11490_v49 = vld [vmem:[#allocation24_spill] sm:$0xff] }
 0x3e0   : > { %v5467_v21 = vpop.permute.xlu1 %5466  ;;  %v10927_v38 = vsel %vm1710_vm10, %v4979_v28, %v4980_v51  ;;  %v10934_v29 = vsel %vm1710_vm10, %v6707_v9, %v6708_v7  ;;  %v7924_v32 = vcombine.low %v6269_v20, %v10781_v8  ;;  %v6714_v46 = vrot.slane %v10812_v57, 1  ;;  %v11489_v51 = vld [vmem:[#allocation23_spill] sm:$0xff]  ;;  %v8571_v20 = vld [vmem:[#allocation2 + $0x1c] sm:$0xf] }
 0x3e1   : > { %v5606_v60 = vsel %vm1759_vm11, %v11487_v13, %v5467_v21  ;;  %v10939_v11 = vsel %vm1710_vm10, %v4982_v62, %v4983_v15  ;;  %v6710_v5 = vrot.slane %v7923_v42, 1  ;;  %v5564_v17 = vrot.slane %v8565_v6, 1  ;;  %v8568_v28 = vld [vmem:[#allocation2 + $0x10] sm:$0xf]  ;;  %v4526_v13 = vld [vmem:[#allocation2 + $0x18] sm:$0xe] }
 0x3e2   : > { %v7735_v7 = vcombine.low %v4525_v0, %v8568_v28  ;;  %v8569_v9 = vld [vmem:[#allocation2 + $0x14] ss:$0 sps:$4 sm:$0x11]  }
 0x3e3   : > { %5878 = vmatmul.mubr.bf16.gmra.mrb[128].mxu0 %v5603_v37  ;;  %v4539_v37 = vld [vmem:[#allocation2 + $0xb4] sm:$0xe]  ;;  %v4944_v15 = vrot.slane %v8569_v9, 1 }
 0x3e4   : > { %7845 = vmatprep.mubr.msk.bf16.mxu0 %vm1759_vm11, %v5559_v14  ;;  %v4976_v14 = vrot.slane %v7746_v40, 1  ;;  %v7749_v31 = vcombine.low %v4539_v37, %v10750_v1  ;;  %v10946_v40 = vsel %vm1710_vm10, %v6710_v5, %v6711_v56  ;;  %v6713_v1 = vrot.slane %v7924_v32, 1  ;;  %v11491_v42 = vld [vmem:[#allocation7_spill] sm:$0xff]  ;;  %v6255_v37 = vld [vmem:[#allocation2 + $0x18] sm:$0xe] }
 0x3e5   : > { %v4943_v12 = vrot.slane %v7735_v7, 1  ;;  %v7736_v5 = vcombine.low %v4526_v13, %v8571_v20  ;;  %v8576_v7 = vld [vmem:[#allocation2 + $0x2c] ss:$0 sps:$4 sm:$0x11]   ;;  %v8578_v20 = vld [vmem:[#allocation2 + $0x34] sm:$0xf] }
 0x3e6   : > { %v10920_v48 = vsel %vm1710_vm10, %v4976_v14, %v4977_v3  ;;  %v4985_v10 = vrot.slane %v7749_v31, 1  ;;  %v5563_v3 = vrot.slane %v7795_v19, 1  ;;  %v10955_v8 = vsel %vm1710_vm10, %v6713_v1, %v6714_v46  ;;  %v8570_v31 = vld [vmem:[#allocation2 + $0x1c] sm:$0xf] }
 0x3e7   : > { %v7796_v14 = vcombine.low %v5122_v33, %v8566_v24  ;;  %v5567_v19 = vrot.slane %v8567_v45, 1  ;;  %v8572_v1 = vld [vmem:[#allocation2 + $0x20] ss:$0 sps:$4 sm:$0x11]   ;;  %v4946_v6 = vrot.slane %v7736_v5, 1  ;;  %v6717_v24 = vrot.slane %v10830_v2, 1 }
 0x3e8   : > { %v10949_v34 = vsel %vm1710_vm10, %v4985_v10, %v4986_v59  ;;  %v5565_v22 = vsel %vm1710_vm10, %v5563_v3, %v5564_v17  ;;  %v7910_v59 = vcombine.low %v6255_v37, %v8570_v31  ;;  %v6672_v3 = vrot.slane %v8572_v1, 1  ;;  %v8573_v17 = vld [vmem:[#allocation2 + $0x20] ss:$0 sps:$4 sm:$0x11]   ;;  %v4528_v31 = vld [vmem:[#allocation2 + $0x30] sm:$0xe] }
 0x3e9   : > { %v5469_v57 = vpop.permute.xlu0 %5468  ;;  %v5566_v30 = vrot.slane %v7796_v14, 1  ;;  %v6256_v14 = vld [vmem:[#allocation2 + $0x24] sm:$0xe] }
 0x3ea   : > { %v6671_v10 = vrot.slane %v7910_v59, 1  ;;  %v11495_v37 = vld [vmem:[#allocation9_spill] sm:$0xff] }
 0x3eb   : > { %5886 = vmatmul.mubr.bf16.gmra.mrb[132].mxu0 %v5606_v60  ;;  %v5568_v4 = vsel %vm1710_vm10, %v5566_v30, %v5567_v19  ;;  %v4945_v60 = vsel %vm1710_vm10, %v4943_v12, %v4944_v15  ;;  %v8574_v30 = vld [vmem:[#allocation2 + $0x28] sm:$0xf]  ;;  %v4527_v19 = vld [vmem:[#allocation2 + $0x24] sm:$0xe] }
 0x3ec   : > { %7846 = vmatprep.mubr.msk.bf16.mxu0 %vm1759_vm11, %v10875_v44  ;;  %v5609_v44 = vsel %vm1759_vm11, %v11488_v63, %v5469_v57  ;;  %v4947_v57 = vrot.slane %v8573_v17, 1  ;;  %v6270_v63 = vld [vmem:[#allocation2 + $0xcc] sm:$0xe]  ;;  %v7911_v45 = vcombine.low %v6256_v14, %v8574_v30  ;;  %v11497_v14 = vld [vmem:[#allocation8_spill] sm:$0xff] }
 0x3ee   : > { %v5471_v39 = vpop.permute.xlu1 %5470  ;;  %v4948_v0 = vsel %vm1710_vm10, %v4946_v6, %v4947_v57  ;;  %v6674_v2 = vrot.slane %v7911_v45, 1  ;;  %v8580_v6 = vld [vmem:[#allocation2 + $0x38] ss:$0 sps:$4 sm:$0x11]   ;;  %v4529_v45 = vld [vmem:[#allocation2 + $0x3c] sm:$0xe] }
 0x3ef   : > { %v5612_v27 = vsel %vm1759_vm11, %v11489_v51, %v5471_v39  ;;  %v6678_v17 = vrot.slane %v8580_v6, 1 }
 0x3f3   : > { %5894 = vmatmul.mubr.bf16.gmra.mrb[136].mxu0 %v5609_v44  ;;  %v11492_v44 = vld [vmem:[#allocation29_spill] sm:$0xff] }
 0x3f4   : > { %7847 = vmatprep.mubr.msk.bf16.mxu0 %vm1759_vm11, %v5565_v22  ;;  %v7925_v22 = vcombine.low %v6270_v63, %v10828_v47  ;;  %v8581_v63 = vld [vmem:[#allocation2 + $0x38] ss:$0 sps:$4 sm:$0x11]  }
 0x3f6   : > { %v5473_v43 = vpop.permute.xlu0 %5472  ;;  %v6716_v51 = vrot.slane %v7925_v22, 1  ;;  %v11496_v22 = vld [vmem:[#allocation26_spill] sm:$0xff] }
 0x3f7   : > { %v5615_v21 = vsel %vm1759_vm11, %v11490_v49, %v5473_v43  ;;  %v6675_v43 = vrot.slane %v8576_v7, 1  ;;  %v8577_v49 = vld [vmem:[#allocation2 + $0x2c] ss:$0 sps:$4 sm:$0x11]  }
 0x3f8   : > { %v10984_v47 = vsel %vm1710_vm10, %v6716_v51, %v6717_v24  ;;  %v8584_v7 = vld [vmem:[#allocation2 + $0x44] ss:$0 sps:$4 sm:$0x11]  }
 0x3fa   : > { %v4861_v62 = vpop.permute.xlu0 %4860 }
 0x3fb   : > { %5902 = vmatmul.mubr.bf16.gmra.mrb[140].mxu0 %v5612_v27  ;;  %v4989_v56 = vsel %vm1759_vm11, %v11491_v42, %v4861_v62  ;;  %v6673_v27 = vsel %vm1710_vm10, %v6671_v10, %v6672_v3  ;;  %v11494_v62 = vld [vmem:[#allocation22_spill] sm:$0xff] }
 0x3fc   : > { %7848 = vmatprep.mubr.msk.bf16.mxu0 %vm1759_vm11, %v5568_v4  ;;  %6079 = vmatmul.mubr.bf16.vlgmr.msra.gmra.mrb[136].mxu1 %v4989_v56  ;;  %v8575_v4 = vld [vmem:[#allocation2 + $0x28] sm:$0xf]  ;;  %v6676_v56 = vsel %vm1710_vm10, %v6674_v2, %v6675_v43  ;;  %v6681_v43 = vrot.slane %v8584_v7, 1 }
 0x3fd   : > { %7863 = vmatprep.mubr.msk.bf16.mxu1 %vm1759_vm11, %v4945_v60  ;;  %v7737_v28 = vcombine.low %v4527_v19, %v8575_v4  ;;  %v6257_v60 = vld [vmem:[#allocation2 + $0x30] sm:$0xe] }
 0x3fe   : > { %v4863_v46 = vpop.permute.xlu0 %4862  ;;  %v7912_v5 = vcombine.low %v6257_v60, %v8578_v20  ;;  %v4530_v60 = vld [vmem:[#allocation2 + $0x48] sm:$0xe]  ;;  %v8587_v20 = vld [vmem:[#allocation2 + $0x4c] sm:$0xf] }
 0x3ff   : > { %v4949_v15 = vrot.slane %v7737_v28, 1 }
 0x400   : > { %v6677_v3 = vrot.slane %v7912_v5, 1  ;;  %v7740_v5 = vcombine.low %v4530_v60, %v8587_v20  ;;  %v8595_v20 = vld [vmem:[#allocation2 + $0x68] ss:$0 sps:$4 sm:$0x11]  }
 0x401   : > { %v5475_v32 = vpop.permute.xlu1 %5474 }
 0x402   : > { %v5618_v33 = vsel %vm1759_vm11, %v11492_v44, %v5475_v32  ;;  %v4865_v9 = vpop.permute.xlu0 %4864  ;;  %v8579_v32 = vld [vmem:[#allocation2 + $0x34] sm:$0xf]  ;;  %v4953_v44 = vrot.slane %v8581_v63, 1  ;;  %v6679_v19 = vsel %vm1710_vm10, %v6677_v3, %v6678_v17  ;;  %v4958_v6 = vrot.slane %v7740_v5, 1 }
 0x403   : > { %5910 = vmatmul.mubr.bf16.gmra.mrb[144].mxu0 %v5615_v21  ;;  %v4950_v21 = vrot.slane %v8577_v49, 1  ;;  %v4995_v13 = vsel %vm1759_vm11, %v11495_v37, %v4865_v9  ;;  %v8585_v9 = vld [vmem:[#allocation2 + $0x44] ss:$0 sps:$4 sm:$0x11]   ;;  %v6259_v49 = vld [vmem:[#allocation2 + $0x48] sm:$0xe] }
 0x404   : > { %7849 = vmatprep.mubr.msk.bf16.mxu0 %vm1759_vm11, %v10835_v58  ;;  %v11493_v58 = vld [vmem:[#allocation17_spill] sm:$0xff]  ;;  %v8586_v37 = vld [vmem:[#allocation2 + $0x4c] sm:$0xf]  ;;  %v8589_v17 = vld [vmem:[#allocation2 + $0x50] ss:$0 sps:$4 sm:$0x11]  }
 0x405   : > { %v4992_v39 = vsel %vm1759_vm11, %v11493_v58, %v4863_v46  ;;  %v6592_v12 = vpop.permute.xlu1 %6591  ;;  %v4951_v59 = vsel %vm1710_vm10, %v4949_v15, %v4950_v21  ;;  %v7738_v46 = vcombine.low %v4528_v31, %v8579_v32  ;;  %v4956_v15 = vrot.slane %v8585_v9, 1  ;;  %v11498_v21 = vld [vmem:[#allocation27_spill] sm:$0xff]  ;;  %v11502_v9 = vld [vmem:[#allocation12_spill] sm:$0xff] }
 0x406   : > { %6087 = vmatmul.mubr.bf16.gmra.mrb[140].mxu1 %v4992_v39  ;;  %v6720_v42 = vsel %vm1759_vm11, %v11494_v62, %v6592_v12  ;;  %v4867_v1 = vpop.permute.xlu0 %4866  ;;  %v8582_v39 = vld [vmem:[#allocation2 + $0x40] sm:$0xf]  ;;  %v6260_v63 = vld [vmem:[#allocation2 + $0x54] sm:$0xe]  ;;  %v4965_v5 = vrot.slane %v8595_v20, 1 }
 0x407   : > { %7864 = vmatprep.mubr.msk.bf16.mxu1 %vm1759_vm11, %v4948_v0  ;;  %v4952_v57 = vrot.slane %v7738_v46, 1  ;;  %v4998_v58 = vsel %vm1759_vm11, %v11497_v14, %v4867_v1  ;;  %v8588_v1 = vld [vmem:[#allocation2 + $0x50] ss:$0 sps:$4 sm:$0x11]   ;;  %v8590_v14 = vld [vmem:[#allocation2 + $0x58] sm:$0xf] }
 0x408   : > { %v6684_v3 = vrot.slane %v8588_v1, 1 }
 0x409   : > { %v6594_v10 = vpop.permute.xlu1 %6593  ;;  %v4954_v51 = vsel %vm1710_vm10, %v4952_v57, %v4953_v44  ;;  %v4959_v57 = vrot.slane %v8589_v17, 1  ;;  %v11500_v44 = vld [vmem:[#allocation11_spill] sm:$0xff] }
 0x40a   : > { %v6723_v24 = vsel %vm1759_vm11, %v11496_v22, %v6594_v10  ;;  %v4869_v28 = vpop.permute.xlu0 %4868  ;;  %v11501_v22 = vld [vmem:[#allocation30_spill] sm:$0xff] }
 0x40b   : > { %5918 = vmatmul.mubr.bf16.gmra.mrb[148].mxu0 %v5618_v33  ;;  %v6258_v33 = vld [vmem:[#allocation2 + $0x3c] sm:$0xe] }
 0x40c   : > { %7962 = vmatprep.mubr.msk.bf16.mxu0 %vm1759_vm11, %v6673_v27  ;;  %v7913_v30 = vcombine.low %v6258_v33, %v8582_v39  ;;  %v8583_v27 = vld [vmem:[#allocation2 + $0x40] sm:$0xf]  ;;  %v4531_v39 = vld [vmem:[#allocation2 + $0x54] sm:$0xe] }
 0x40d   : > { %v7739_v0 = vcombine.low %v4529_v45, %v8583_v27  ;;  %v6596_v4 = vpop.permute.xlu1 %6595  ;;  %v4960_v45 = vsel %vm1710_vm10, %v4958_v6, %v4959_v57  ;;  %v11506_v57 = vld [vmem:[#allocation13_spill] sm:$0xff] }
 0x40e   : > { %6095 = vmatmul.mubr.bf16.gmra.mrb[144].mxu1 %v4995_v13  ;;  %v6680_v2 = vrot.slane %v7913_v30, 1  ;;  %v6726_v62 = vsel %vm1759_vm11, %v11498_v21, %v6596_v4  ;;  %v7914_v13 = vcombine.low %v6259_v49, %v8586_v37  ;;  %v11503_v49 = vld [vmem:[#allocation31_spill] sm:$0xff]  ;;  %v8594_v37 = vld [vmem:[#allocation2 + $0x64] sm:$0xf] }
 0x40f   : > { %7865 = vmatprep.mubr.msk.bf16.mxu1 %vm1759_vm11, %v4951_v59  ;;  %v4955_v12 = vrot.slane %v7739_v0, 1  ;;  %v4871_v46 = vpop.permute.xlu0 %4870 }
 0x410   : > { %v6682_v31 = vsel %vm1710_vm10, %v6680_v2, %v6681_v43  ;;  %v6683_v10 = vrot.slane %v7914_v13, 1  ;;  %v8593_v43 = vld [vmem:[#allocation2 + $0x5c] ss:$0 sps:$4 sm:$0x11]  }
 0x411   : > { %v4957_v59 = vsel %vm1710_vm10, %v4955_v12, %v4956_v15  ;;  %v6598_v32 = vpop.permute.xlu1 %6597  ;;  %v4962_v12 = vrot.slane %v8593_v43, 1  ;;  %v11515_v43 = vld [vmem:[#allocation43_spill] sm:$0xff] }
 0x412   : > { %v6729_v33 = vsel %vm1759_vm11, %v11500_v44, %v6598_v32  ;;  %v6685_v30 = vsel %vm1710_vm10, %v6683_v10, %v6684_v3  ;;  %v11504_v32 = vld [vmem:[#allocation38_spill] sm:$0xff]  ;;  %v11505_v10 = vld [vmem:[#allocation33_spill] sm:$0xff]  ;;  %v11507_v44 = vld [vmem:[#allocation36_spill] sm:$0xff] }
 0x413   : > { %6945 = vmatmul.mubr.bf16.vlgmr.msra.gmra.mrb[152].mxu0 %v6720_v42  ;;  %v11499_v42 = vld [vmem:[#allocation10_spill] sm:$0xff]  ;;  %v4873_v0 = vpop.permute.xlu0 %4872 }
 0x414   : > { %7963 = vmatprep.mubr.msk.bf16.mxu0 %vm1759_vm11, %v6676_v56  ;;  %v5001_v56 = vsel %vm1759_vm11, %v11499_v42, %v4869_v28  ;;  %v8592_v28 = vld [vmem:[#allocation2 + $0x5c] ss:$0 sps:$4 sm:$0x11]   ;;  %v5007_v21 = vsel %vm1759_vm11, %v11503_v49, %v4873_v0  ;;  %v11512_v0 = vld [vmem:[#allocation15_spill] sm:$0xff] }
 0x415   : > { %v6600_v27 = vpop.permute.xlu1 %6599  ;;  %v6687_v2 = vrot.slane %v8592_v28, 1 }
 0x416   : > { %6103 = vmatmul.mubr.bf16.gmra.mrb[148].mxu1 %v4998_v58  ;;  %v7915_v58 = vcombine.low %v6260_v63, %v8590_v14  ;;  %v6732_v15 = vsel %vm1759_vm11, %v11502_v9, %v6600_v27 }
 0x417   : > { %7866 = vmatprep.mubr.msk.bf16.mxu1 %vm1759_vm11, %v4954_v51 }
 0x418   : > { %v6686_v4 = vrot.slane %v7915_v58, 1  ;;  %v11509_v58 = vld [vmem:[#allocation35_spill] sm:$0xff] }
 0x419   : > { %v6602_v60 = vpop.permute.xlu1 %6601 }
 0x41a   : > { %v6688_v42 = vsel %vm1710_vm10, %v6686_v4, %v6687_v2  ;;  %v11513_v4 = vld [vmem:[#allocation42_spill] sm:$0xff] }
 0x41b   : > { %6953 = vmatmul.mubr.bf16.gmra.mrb[156].mxu0 %v6723_v24  ;;  %v5004_v24 = vsel %vm1759_vm11, %v11501_v22, %v4871_v46  ;;  %v6735_v46 = vsel %vm1759_vm11, %v11504_v32, %v6602_v60 }
 0x41c   : > { %7964 = vmatprep.mubr.msk.bf16.mxu0 %vm1759_vm11, %v6679_v19  ;;  %v8591_v19 = vld [vmem:[#allocation2 + $0x58] sm:$0xf] }
 0x41d   : > { %v7741_v51 = vcombine.low %v4531_v39, %v8591_v19  ;;  %v6604_v6 = vpop.permute.xlu1 %6603  ;;  %v11511_v19 = vld [vmem:[#allocation14_spill] sm:$0xff] }
 0x41e   : > { %6111 = vmatmul.mubr.bf16.gmra.mrb[152].mxu1 %v5001_v56  ;;  %v6738_v63 = vsel %vm1759_vm11, %v11506_v57, %v6604_v6 }
 0x41f   : > { %7867 = vmatprep.mubr.msk.bf16.mxu1 %vm1759_vm11, %v4957_v59  ;;  %v4961_v7 = vrot.slane %v7741_v51, 1 }
 0x421   : > { %v4963_v56 = vsel %vm1710_vm10, %v4961_v7, %v4962_v12  ;;  %v11514_v7 = vld [vmem:[#allocation16_spill] sm:$0xff] }
 0x422   : > { %v6606_v22 = vpop.permute.xlu1 %6605 }
 0x423   : > { %6961 = vmatmul.mubr.bf16.gmra.mrb[160].mxu0 %v6726_v62  ;;  %v4532_v62 = vld [vmem:[#allocation2 + $0x60] sm:$0xe] }
 0x424   : > { %7965 = vmatprep.mubr.msk.bf16.mxu0 %vm1759_vm11, %v6682_v31  ;;  %v7742_v13 = vcombine.low %v4532_v62, %v8594_v37  ;;  %v4875_v31 = vpop.permute.xlu0 %4874  ;;  %v11516_v62 = vld [vmem:[#allocation25_spill] sm:$0xff] }
 0x425   : > { %v5010_v1 = vsel %vm1759_vm11, %v11505_v10, %v4875_v31 }
 0x426   : > { %6119 = vmatmul.mubr.bf16.gmra.mrb[156].mxu1 %v5004_v24  ;;  %v4964_v59 = vrot.slane %v7742_v13, 1  ;;  %v11508_v24 = vld [vmem:[#allocation41_spill] sm:$0xff] }
 0x427   : > { %7868 = vmatprep.mubr.msk.bf16.mxu1 %vm1759_vm11, %v4960_v45  ;;  %v6741_v14 = vsel %vm1759_vm11, %v11508_v24, %v6606_v22  ;;  %v11510_v45 = vld [vmem:[#allocation39_spill] sm:$0xff] }
 0x428   : > { %v4966_v3 = vsel %vm1710_vm10, %v4964_v59, %v4965_v5  ;;  %v4877_v17 = vpop.permute.xlu0 %4876 }
 0x42b   : > { %6969 = vmatmul.mubr.bf16.gmra.mrb[164].mxu0 %v6729_v33  ;;  %v5013_v33 = vsel %vm1759_vm11, %v11507_v44, %v4877_v17 }
 0x42c   : > { %7966 = vmatprep.mubr.msk.bf16.mxu0 %vm1759_vm11, %v6685_v30 }
 0x42e   : > { %6127 = vmatmul.mubr.bf16.gmra.mrb[160].mxu1 %v5007_v21 }
 0x42f   : > { %7869 = vmatprep.mubr.msk.bf16.mxu1 %vm1759_vm11, %v4963_v56  ;;  %v11517_v56 = vld [vmem:[#allocation18_spill] sm:$0xff] }
 0x433   : > { %6977 = vmatmul.mubr.bf16.gmra.mrb[168].mxu0 %v6732_v15 }
 0x434   : > { %7967 = vmatprep.mubr.msk.bf16.mxu0 %vm1759_vm11, %v6688_v42 }
 0x436   : > { %6135 = vmatmul.mubr.bf16.gmra.mrb[164].mxu1 %v5010_v1 }
 0x437   : > { %7870 = vmatprep.mubr.msk.bf16.mxu1 %vm1759_vm11, %v4966_v3 }
 0x43b   : > { %6985 = vmatmul.mubr.bf16.gmra.mrb[172].mxu0 %v6735_v46 }
 0x43c   : > { %7968 = vmatprep.mubr.msk.bf16.mxu0 %vm1759_vm11, %v10870_v23  ;;  %v4879_v23 = vpop.permute.xlu0 %4878 }
 0x43d   : > { %v5016_v39 = vsel %vm1759_vm11, %v11509_v58, %v4879_v23 }
 0x43e   : > { %6143 = vmatmul.mubr.bf16.gmra.mrb[168].mxu1 %v5013_v33 }
 0x43f   : > { %7871 = vmatprep.mubr.msk.bf16.mxu1 %vm1759_vm11, %v10885_v53 }
 0x440   : > { %v4881_v30 = vpop.permute.xlu0 %4880 }
 0x441   : > { %v5019_v51 = vsel %vm1759_vm11, %v11511_v19, %v4881_v30 }
 0x443   : > { %6993 = vmatmul.mubr.bf16.gmra.mrb[176].mxu0 %v6738_v63 }
 0x444   : > { %7969 = vmatprep.mubr.msk.bf16.mxu0 %vm1759_vm11, %v10880_v35  ;;  %v6608_v35 = vpop.permute.xlu1 %6607  ;;  %v4883_v27 = vpop.permute.xlu0 %4882 }
 0x445   : > { %v6744_v53 = vsel %vm1759_vm11, %v11510_v45, %v6608_v35  ;;  %v5022_v28 = vsel %vm1759_vm11, %v11513_v4, %v4883_v27 }
 0x446   : > { %6151 = vmatmul.mubr.bf16.gmra.mrb[172].mxu1 %v5016_v39 }
 0x447   : > { %7872 = vmatprep.mubr.msk.bf16.mxu1 %vm1759_vm11, %v10896_v41 }
 0x448   : > { %v4885_v2 = vpop.permute.xlu0 %4884 }
 0x449   : > { %v5025_v12 = vsel %vm1759_vm11, %v11515_v43, %v4885_v2 }
 0x44b   : > { %7001 = vmatmul.mubr.bf16.gmra.mrb[180].mxu0 %v6741_v14 }
 0x44c   : > { %7970 = vmatprep.mubr.msk.bf16.mxu0 %vm1759_vm11, %v10892_v16  ;;  %v6610_v16 = vpop.permute.xlu1 %6609 }
 0x44d   : > { %v6747_v41 = vsel %vm1759_vm11, %v11512_v0, %v6610_v16 }
 0x44e   : > { %6159 = vmatmul.mubr.bf16.gmra.mrb[176].mxu1 %v5019_v51 }
 0x44f   : > { %7873 = vmatprep.mubr.msk.bf16.mxu1 %vm1759_vm11, %v10908_v25 }
 0x453   : > { %7009 = vmatmul.mubr.bf16.gmra.mrb[184].mxu0 %v6744_v53 }
 0x454   : > { %7971 = vmatprep.mubr.msk.bf16.mxu0 %vm1759_vm11, %v10902_v54  ;;  %v6612_v54 = vpop.permute.xlu1 %6611 }
 0x455   : > { %v6750_v25 = vsel %vm1759_vm11, %v11514_v7, %v6612_v54 }
 0x456   : > { %6167 = vmatmul.mubr.bf16.gmra.mrb[180].mxu1 %v5022_v28 }
 0x457   : > { %7874 = vmatprep.mubr.msk.bf16.mxu1 %vm1759_vm11, %v10920_v48  ;;  %v4887_v48 = vpop.permute.xlu0 %4886 }
 0x458   : > { %v6614_v49 = vpop.permute.xlu1 %6613  ;;  %v5028_v37 = vsel %vm1759_vm11, %v11517_v56, %v4887_v48 }
 0x459   : > { %v6753_v42 = vsel %vm1759_vm11, %v11516_v62, %v6614_v49 }
 0x45b   : > { %7017 = vmatmul.mubr.bf16.gmra.mrb[188].mxu0 %v6747_v41  ;;  %v4889_v13 = vpop.permute.xlu0 %4888 }
 0x45c   : > { %7972 = vmatprep.mubr.msk.bf16.mxu0 %vm1759_vm11, %v10915_v52  ;;  %v11072_v9 = vpop.f32.mrb[88].mxu0  ;;  %v6616_v31 = vpop.permute.xlu1 %6615  ;;  %v5031_v5 = vsel %vm1759_vm11, %v10733_v50, %v4889_v13  ;;  %v11518_v50 = vld [vmem:[#allocation32_spill] sm:$0xff] }
 0x45d   : > { %v5801_v52 = vpop.f32.mrb[89].mxu0  ;;  %v6756_v20 = vsel %vm1759_vm11, %v10743_v26, %v6616_v31 }
 0x45e   : > { %6175 = vmatmul.mubr.bf16.gmra.mrb[184].mxu1 %v5025_v12  ;;  %v11076_v15 = vpop.f32.mrb[90].mxu0 }
 0x45f   : > { %7875 = vmatprep.mubr.msk.bf16.mxu1 %vm1759_vm11, %v10927_v38  ;;  %v5804_v21 = vpop.f32.mrb[91].mxu0  ;;  %v4891_v32 = vpop.permute.xlu0 %4890 }
 0x460   : > { %v6618_v10 = vpop.permute.xlu1 %6617  ;;  %v5034_v3 = vsel %vm1759_vm11, %v11518_v50, %v4891_v32 }
 0x461   : > { %v6759_v26 = vsel %vm1759_vm11, %v10779_v18, %v6618_v10 }
 0x463   : > { %7025 = vmatmul.mubr.bf16.gmra.mrb[192].mxu0 %v6750_v25 }
 0x464   : > { %7973 = vmatprep.mubr.msk.bf16.mxu0 %vm1759_vm11, %v10923_v55  ;;  %v6620_v17 = vpop.permute.xlu1 %6619 }
 0x465   : > { %v6762_v63 = vsel %vm1759_vm11, %v10796_v36, %v6620_v17 }
 0x466   : > { %6183 = vmatmul.mubr.bf16.gmra.mrb[188].mxu1 %v5028_v37  ;;  %v11084_v55 = vpop.f32.mrb[92].mxu0 }
 0x467   : > { %7876 = vmatprep.mubr.msk.bf16.mxu1 %vm1759_vm11, %v10939_v11  ;;  %v5809_v38 = vpop.f32.mrb[93].mxu0 }
 0x468   : > { %v11088_v60 = vpop.f32.mrb[94].mxu0  ;;  %v6622_v33 = vpop.permute.xlu1 %6621 }
 0x469   : > { %v5812_v59 = vpop.f32.mrb[95].mxu0  ;;  %v6765_v23 = vsel %vm1759_vm11, %v10839_v61, %v6622_v33 }
 0x46b   : > { %7033 = vmatmul.mubr.bf16.gmra.mrb[196].mxu0 %v6753_v42 }
 0x46c   : > { %7974 = vmatprep.mubr.msk.bf16.mxu0 %vm1759_vm11, %v10934_v29 }
 0x46e   : > { %6191 = vmatmul.mubr.bf16.gmra.mrb[192].mxu1 %v5031_v5  ;;  %v11096_v29 = vpop.f32.mrb[96].mxu0 }
 0x46f   : > { %7877 = vmatprep.mubr.msk.bf16.mxu1 %vm1759_vm11, %v10949_v34  ;;  %v5817_v11 = vpop.f32.mrb[97].mxu0 }
 0x470   : > { %v11100_v46 = vpop.f32.mrb[98].mxu0 }
 0x471   : > { %v5820_v1 = vpop.f32.mrb[99].mxu0 }
 0x473   : > { %7041 = vmatmul.mubr.bf16.gmra.mrb[200].mxu0 %v6756_v20 }
 0x474   : > { %7975 = vmatprep.mubr.msk.bf16.mxu0 %vm1759_vm11, %v10946_v40 }
 0x476   : > { %6199 = vmatmul.mubr.bf16.gmra.mrb[196].mxu1 %v5034_v3 }
 0x477   : > { %v11108_v40 = vpop.f32.mrb[100].mxu0 }
 0x478   : > { %v5825_v34 = vpop.f32.mrb[101].mxu0 }
 0x479   : > { %v11110_v6 = vpop.f32.mrb[102].mxu0 }
 0x47a   : > { %v5828_v57 = vpop.f32.mrb[103].mxu0 }
 0x47b   : > { %7049 = vmatmul.mubr.bf16.gmra.mrb[204].mxu0 %v6759_v26 }
 0x47c   : > { %7976 = vmatprep.mubr.msk.bf16.mxu0 %vm1759_vm11, %v10955_v8 }
 0x480   : > { %v11114_v18 = vpop.f32.mrb[104].mxu0 }
 0x481   : > { %v5833_v44 = vpop.f32.mrb[105].mxu0 }
 0x482   : > { %v11118_v22 = vpop.f32.mrb[106].mxu0 }
 0x483   : > { %7057 = vmatmul.mubr.bf16.gmra.mrb[208].mxu0 %v6762_v63  ;;  %v5836_v8 = vpop.f32.mrb[107].mxu0 }
 0x484   : > { %7977 = vmatprep.mubr.msk.bf16.mxu0 %vm1759_vm11, %v10984_v47 }
 0x48b   : > { %7065 = vmatmul.mubr.bf16.gmra.mrb[212].mxu0 %v6765_v23 }
 0x48e   : > { %v11122_v24 = vpop.f32.mrb[108].mxu0 }
 0x48f   : > { %v5841_v14 = vpop.f32.mrb[109].mxu0 }
 0x490   : > { %v11124_v58 = vpop.f32.mrb[110].mxu0 }
 0x491   : > { %v5844_v36 = vpop.f32.mrb[111].mxu0 }
 0x496   : > { %v11126_v39 = vpop.f32.mrb[112].mxu0 }
 0x497   : > { %v5849_v35 = vpop.f32.mrb[113].mxu0 }
 0x498   : > { %v11128_v30 = vpop.f32.mrb[114].mxu0 }
 0x499   : > { %v5852_v47 = vpop.f32.mrb[115].mxu0 }
 0x49e   : > { %v11130_v45 = vpop.f32.mrb[116].mxu0 }
 0x49f   : > { %v5857_v53 = vpop.f32.mrb[117].mxu0 }
 0x4a0   : > { %v11132_v19 = vpop.f32.mrb[118].mxu0 }
 0x4a1   : > { %v5860_v51 = vpop.f32.mrb[119].mxu0 }
 0x4a6   : > { %v11134_v61 = vpop.f32.mrb[120].mxu0 }
 0x4a7   : > { %v5865_v16 = vpop.f32.mrb[121].mxu0 }
 0x4a8   : > { %v11136_v27 = vpop.f32.mrb[122].mxu0 }
 0x4a9   : > { %v5868_v0 = vpop.f32.mrb[123].mxu0 }
 0x4ae   : > { %v11138_v41 = vpop.f32.mrb[124].mxu0 }
 0x4af   : > { %v5873_v4 = vpop.f32.mrb[125].mxu0 }
 0x4b0   : > { %v11140_v28 = vpop.f32.mrb[126].mxu0 }
 0x4b1   : > { %v5876_v54 = vpop.f32.mrb[127].mxu0 }
 0x4b6   : > { %v11142_v2 = vpop.f32.mrb[128].mxu0 }
 0x4b7   : > { %v5881_v7 = vpop.f32.mrb[129].mxu0 }
 0x4b8   : > { %v11144_v25 = vpop.f32.mrb[130].mxu0 }
 0x4b9   : > { %v5884_v43 = vpop.f32.mrb[131].mxu0 }
 0x4ba   : > { %v11175_v43 = vld [vmem:[%s11282_s6] ss:$0 sm:$0xff] }
 0x4be   : > { %v11146_v12 = vpop.f32.mrb[132].mxu0 }
 0x4bf   : > { %v5889_v52 = vpop.f32.mrb[133].mxu0 }
 0x4c0   : > { %v11148_v48 = vpop.f32.mrb[134].mxu0 }
 0x4c1   : > { %v5892_v49 = vpop.f32.mrb[135].mxu0 }
 0x4c6   : > { %v11150_v21 = vpop.f32.mrb[136].mxu0 }
 0x4c7   : > { %v5897_v62 = vpop.f32.mrb[137].mxu0 }
 0x4c8   : > { %v11152_v42 = vpop.f32.mrb[138].mxu0 }
 0x4c9   : > { %v5900_v56 = vpop.f32.mrb[139].mxu0 }
 0x4ce   : > { %v11154_v37 = vpop.f32.mrb[140].mxu0 }
 0x4cf   : > { %v5905_v38 = vpop.f32.mrb[141].mxu0  ;;  %v6080_v20 = vpop.f32.mrb[136].mxu1 }
 0x4d0   : > { %v11156_v13 = vpop.f32.mrb[142].mxu0  ;;  %v6081_v11 = vadd.f32 %v6080_v20, %v11072_v9  ;;  %v6082_v32 = vpop.f32.mrb[137].mxu1 }
 0x4d1   : > { %v5908_v31 = vpop.f32.mrb[143].mxu0  ;;  %v6083_v1 = vpop.f32.mrb[138].mxu1 }
 0x4d2   : > { %v6084_v50 = vadd.f32 %v6083_v1, %v11076_v15  ;;  %v6085_v3 = vpop.f32.mrb[139].mxu1 }
 0x4d6   : > { %v11158_v59 = vpop.f32.mrb[144].mxu0 }
 0x4d7   : > { %v5913_v5 = vpop.f32.mrb[145].mxu0 }
 0x4d8   : > { %v11161_v10 = vpop.f32.mrb[146].mxu0 }
 0x4d9   : > { %v5916_v26 = vpop.f32.mrb[147].mxu0  ;;  %v6088_v17 = vpop.f32.mrb[140].mxu1 }
 0x4da   : > { %v6089_v63 = vadd.f32 %v6088_v17, %v11084_v55  ;;  %v6090_v44 = vpop.f32.mrb[141].mxu1 }
 0x4db   : > { %v6091_v8 = vpop.f32.mrb[142].mxu1 }
 0x4dc   : > { %v6092_v9 = vadd.f32 %v6091_v8, %v11088_v60  ;;  %v6093_v14 = vpop.f32.mrb[143].mxu1 }
 0x4de   : > { %v11164_v34 = vpop.f32.mrb[148].mxu0 }
 0x4df   : > { %v5921_v57 = vpop.f32.mrb[149].mxu0 }
 0x4e0   : > { %v11167_v33 = vpop.f32.mrb[150].mxu0 }
 0x4e1   : > { %v5924_v23 = vpop.f32.mrb[151].mxu0  ;;  %v6096_v35 = vpop.f32.mrb[144].mxu1 }
 0x4e2   : > { %v6097_v15 = vadd.f32 %v6096_v35, %v11096_v29  ;;  %v6098_v51 = vpop.f32.mrb[145].mxu1 }
 0x4e3   : > { %v6099_v0 = vpop.f32.mrb[146].mxu1 }
 0x4e4   : > { %v6100_v55 = vadd.f32 %v6099_v0, %v11100_v46  ;;  %v6101_v7 = vpop.f32.mrb[147].mxu1 }
 0x4e6   : > { %v6946_v36 = vpop.f32.mrb[152].mxu0 }
 0x4e7   : > { %v7073_v47 = vadd.f32 %v6946_v36, %v6081_v11  ;;  %v6948_v53 = vpop.f32.mrb[153].mxu0 }
 0x4e8   : > { %v6949_v16 = vpop.f32.mrb[154].mxu0 }
 0x4e9   : > { %v7074_v4 = vadd.f32 %v6949_v16, %v6084_v50  ;;  %v6951_v54 = vpop.f32.mrb[155].mxu0  ;;  %v6104_v52 = vpop.f32.mrb[148].mxu1  ;;  %v7112_v49 = vadd.f32 %v11175_v43, %v7073_v47 }
 0x4ea   : > { %v6105_v29 = vadd.f32 %v6104_v52, %v11108_v40  ;;  %v6106_v38 = vpop.f32.mrb[149].mxu1 }
 0x4eb   : > { %v6107_v20 = vpop.f32.mrb[150].mxu1  ;;  %v7113_v5 = vadd.f32 %v11175_v43, %v7074_v4  ;;  %v7144_v50 = vmax.f32 %v7112_v49, 0.0 }
 0x4ec   : > { %v6108_v1 = vadd.f32 %v6107_v20, %v11110_v6  ;;  %v6109_v26 = vpop.f32.mrb[151].mxu1 }
 0x4ed   : > { %v7145_v57 = vmax.f32 %v7113_v5, 0.0 }
 0x4ee   : > { %v6954_v60 = vpop.f32.mrb[156].mxu0 }
 0x4ef   : > { %v7075_v62 = vadd.f32 %v6954_v60, %v6089_v63  ;;  %v6956_v56 = vpop.f32.mrb[157].mxu0 }
 0x4f0   : > { %v6957_v31 = vpop.f32.mrb[158].mxu0 }
 0x4f1   : > { %v7114_v46 = vadd.f32 %v11175_v43, %v7075_v62  ;;  %v7076_v11 = vadd.f32 %v6957_v31, %v6092_v9  ;;  %v6959_v32 = vpop.f32.mrb[159].mxu0  ;;  %v6112_v8 = vpop.f32.mrb[152].mxu1 }
 0x4f2   : > { %v6113_v9 = vadd.f32 %v6112_v8, %v11114_v18  ;;  %v6114_v35 = vpop.f32.mrb[153].mxu1 }
 0x4f3   : > { %v7146_v3 = vmax.f32 %v7114_v46, 0.0  ;;  %v7115_v17 = vadd.f32 %v11175_v43, %v7076_v11  ;;  %v6115_v47 = vpop.f32.mrb[154].mxu1 }
 0x4f4   : > { %v6116_v16 = vadd.f32 %v6115_v47, %v11118_v22  ;;  %v6117_v0 = vpop.f32.mrb[155].mxu1 }
 0x4f5   : > { %v7176_v63 = vmax.f32 %v7144_v50, %v7146_v3  ;;  %v7147_v44 = vmax.f32 %v7115_v17, 0.0 }
 0x4f6   : > { %v6962_v40 = vpop.f32.mrb[160].mxu0 }
 0x4f7   : > { %7192 = vst.msk [vmem:[#allocation3] sm:$0xff] %vm1759_vm11, %v7176_v63  ;;  %v7177_v23 = vmax.f32 %v7145_v57, %v7147_v44  ;;  %v7077_v14 = vadd.f32 %v6962_v40, %v6097_v15  ;;  %v6964_v36 = vpop.f32.mrb[161].mxu0 }
 0x4f8   : > { %v6965_v6 = vpop.f32.mrb[162].mxu0 }
 0x4f9   : > { %7193 = vst.msk [vmem:[#allocation3 + $0x8] sm:$0xff] %vm1759_vm11, %v7177_v23  ;;  %v7078_v53 = vadd.f32 %v6965_v6, %v6100_v55  ;;  %v6967_v51 = vpop.f32.mrb[163].mxu0  ;;  %v6120_v54 = vpop.f32.mrb[156].mxu1  ;;  %v7116_v7 = vadd.f32 %v11175_v43, %v7077_v14 }
 0x4fa   : > { %v6121_v52 = vadd.f32 %v6120_v54, %v11122_v24  ;;  %v6122_v18 = vpop.f32.mrb[157].mxu1 }
 0x4fb   : > { %v7117_v56 = vadd.f32 %v11175_v43, %v7078_v53  ;;  %v6123_v55 = vpop.f32.mrb[158].mxu1 }
 0x4fc   : > { %v6124_v46 = vadd.f32 %v6123_v55, %v11124_v58  ;;  %v6125_v11 = vpop.f32.mrb[159].mxu1 }
 0x4fd   : > { %v7149_v50 = vmax.f32 %v7117_v56, 0.0 }
 0x4fe   : > { %v6970_v4 = vpop.f32.mrb[164].mxu0 }
 0x4ff   : > { %v7079_v60 = vadd.f32 %v6970_v4, %v6105_v29  ;;  %v6972_v15 = vpop.f32.mrb[165].mxu0  ;;  %v7148_v29 = vmax.f32 %v7116_v7, 0.0 }
 0x500   : > { %v7208_v49 = vld [vmem:[#allocation3] ss:$2 sm:$0xff]  ;;  %v7224_v62 = vld [vmem:[#allocation3 + $0x1] ss:$2 sm:$0xff]  ;;  %v6973_v38 = vpop.f32.mrb[166].mxu0 }
 0x501   : > { %v7239_v31 = vmax.f32 %v7208_v49, %v7224_v62  ;;  %v7118_v22 = vadd.f32 %v11175_v43, %v7079_v60  ;;  %v7080_v20 = vadd.f32 %v6973_v38, %v6108_v1  ;;  %v6975_v5 = vpop.f32.mrb[167].mxu0  ;;  %v6128_v57 = vpop.f32.mrb[160].mxu1 }
 0x502   : > { %v6129_v40 = vadd.f32 %v6128_v57, %v11126_v39  ;;  %v6130_v8 = vpop.f32.mrb[161].mxu1 }
 0x503   : > { %v7247_v24 = vpack.c.bf16 %v7239_v31, %v7239_v31  ;;  %v7150_v32 = vmax.f32 %v7118_v22, 0.0  ;;  %v7119_v26 = vadd.f32 %v11175_v43, %v7080_v20  ;;  %v6131_v14 = vpop.f32.mrb[162].mxu1 }
 0x504   : > { %v6132_v6 = vadd.f32 %v6131_v14, %v11128_v30  ;;  %v6133_v47 = vpop.f32.mrb[163].mxu1 }
 0x505   : > { %7255 = vst.msk [vmem:[%s11196_s27] sm:$0xf] %vm280_vm1, %v7247_v24  ;;  %v7178_v3 = vmax.f32 %v7148_v29, %v7150_v32  ;;  %v7151_v1 = vmax.f32 %v7119_v26, 0.0 }
 0x506   : > { %v6978_v17 = vpop.f32.mrb[168].mxu0 }
 0x507   : > { %7194 = vst.msk [vmem:[#allocation3 + $0x10] sm:$0xff] %vm1759_vm11, %v7178_v3  ;;  %v7179_v58 = vmax.f32 %v7149_v50, %v7151_v1  ;;  %v7081_v63 = vadd.f32 %v6978_v17, %v6113_v9  ;;  %v6980_v44 = vpop.f32.mrb[169].mxu0 }
 0x508   : > { %v6981_v23 = vpop.f32.mrb[170].mxu0 }
 0x509   : > { %7195 = vst.msk [vmem:[#allocation3 + $0x18] sm:$0xff] %vm1759_vm11, %v7179_v58  ;;  %v7082_v36 = vadd.f32 %v6981_v23, %v6116_v16  ;;  %v6983_v35 = vpop.f32.mrb[171].mxu0  ;;  %v6136_v51 = vpop.f32.mrb[164].mxu1  ;;  %v7120_v0 = vadd.f32 %v11175_v43, %v7081_v63 }
 0x50a   : > { %v6137_v9 = vadd.f32 %v6136_v51, %v11130_v45  ;;  %v6138_v7 = vpop.f32.mrb[165].mxu1 }
 0x50b   : > { %v7121_v15 = vadd.f32 %v11175_v43, %v7082_v36  ;;  %v6139_v16 = vpop.f32.mrb[166].mxu1  ;;  %v7152_v31 = vmax.f32 %v7120_v0, 0.0 }
 0x50c   : > { %v6140_v38 = vadd.f32 %v6139_v16, %v11132_v19  ;;  %v6141_v55 = vpop.f32.mrb[167].mxu1 }
 0x50d   : > { %v7153_v20 = vmax.f32 %v7121_v15, 0.0 }
 0x50e   : > { %v6986_v53 = vpop.f32.mrb[172].mxu0 }
 0x50f   : > { %v7083_v4 = vadd.f32 %v6986_v53, %v6121_v52  ;;  %v6988_v54 = vpop.f32.mrb[173].mxu0 }
 0x510   : > { %v7210_v39 = vld [vmem:[#allocation3 + $0x10] ss:$2 sm:$0xff]  ;;  %v7226_v60 = vld [vmem:[#allocation3 + $0x11] ss:$2 sm:$0xff]  ;;  %v6989_v18 = vpop.f32.mrb[174].mxu0 }
 0x511   : > { %v7240_v49 = vmax.f32 %v7210_v39, %v7226_v60  ;;  %v7122_v30 = vadd.f32 %v11175_v43, %v7083_v4  ;;  %v7084_v62 = vadd.f32 %v6989_v18, %v6124_v46  ;;  %v6991_v56 = vpop.f32.mrb[175].mxu0  ;;  %v6144_v29 = vpop.f32.mrb[168].mxu1 }
 0x512   : > { %v6145_v19 = vadd.f32 %v6144_v29, %v11134_v61  ;;  %v6146_v50 = vpop.f32.mrb[169].mxu1 }
 0x513   : > { %v7248_v52 = vpack.c.bf16 %v7240_v49, %v7240_v49  ;;  %v7154_v22 = vmax.f32 %v7122_v30, 0.0  ;;  %v7123_v45 = vadd.f32 %v11175_v43, %v7084_v62  ;;  %v6147_v1 = vpop.f32.mrb[170].mxu1 }
 0x514   : > { %v6148_v58 = vadd.f32 %v6147_v1, %v11136_v27  ;;  %v6149_v63 = vpop.f32.mrb[171].mxu1 }
 0x515   : > { %7256 = vst.msk [vmem:[%s11196_s27 + $0x4] sm:$0xf] %vm280_vm1, %v7248_v52  ;;  %v7180_v5 = vmax.f32 %v7152_v31, %v7154_v22  ;;  %v7155_v11 = vmax.f32 %v7123_v45, 0.0 }
 0x516   : > { %v6994_v24 = vpop.f32.mrb[176].mxu0 }
 0x517   : > { %7196 = vst.msk [vmem:[#allocation3 + $0x20] sm:$0xff] %vm1759_vm11, %v7180_v5  ;;  %v7181_v32 = vmax.f32 %v7153_v20, %v7155_v11  ;;  %v7085_v46 = vadd.f32 %v6994_v24, %v6129_v40  ;;  %v6996_v26 = vpop.f32.mrb[177].mxu0 }
 0x518   : > { %v6997_v3 = vpop.f32.mrb[178].mxu0 }
 0x519   : > { %7197 = vst.msk [vmem:[#allocation3 + $0x28] sm:$0xff] %vm1759_vm11, %v7181_v32  ;;  %v7086_v17 = vadd.f32 %v6997_v3, %v6132_v6  ;;  %v6999_v57 = vpop.f32.mrb[179].mxu0  ;;  %v6152_v8 = vpop.f32.mrb[172].mxu1  ;;  %v7124_v23 = vadd.f32 %v11175_v43, %v7085_v46 }
 0x51a   : > { %v6153_v40 = vadd.f32 %v6152_v8, %v11138_v41  ;;  %v6154_v35 = vpop.f32.mrb[173].mxu1 }
 0x51b   : > { %v7125_v53 = vadd.f32 %v11175_v43, %v7086_v17  ;;  %v6155_v6 = vpop.f32.mrb[174].mxu1  ;;  %v7156_v60 = vmax.f32 %v7124_v23, 0.0 }
 0x51c   : > { %v6156_v7 = vadd.f32 %v6155_v6, %v11140_v28  ;;  %v6157_v39 = vpop.f32.mrb[175].mxu1 }
 0x51d   : > { %v7157_v18 = vmax.f32 %v7125_v53, 0.0 }
 0x51e   : > { %v7002_v44 = vpop.f32.mrb[180].mxu0 }
 0x51f   : > { %v7087_v14 = vadd.f32 %v7002_v44, %v6137_v9  ;;  %v7004_v36 = vpop.f32.mrb[181].mxu0 }
 0x520   : > { %v7212_v61 = vld [vmem:[#allocation3 + $0x20] ss:$2 sm:$0xff]  ;;  %v7228_v47 = vld [vmem:[#allocation3 + $0x21] ss:$2 sm:$0xff]  ;;  %v7005_v51 = vpop.f32.mrb[182].mxu0 }
 0x521   : > { %v7241_v0 = vmax.f32 %v7212_v61, %v7228_v47  ;;  %v7126_v27 = vadd.f32 %v11175_v43, %v7087_v14  ;;  %v7088_v4 = vadd.f32 %v7005_v51, %v6140_v38  ;;  %v7007_v54 = vpop.f32.mrb[183].mxu0  ;;  %v6160_v62 = vpop.f32.mrb[176].mxu1 }
 0x522   : > { %v6161_v28 = vadd.f32 %v6160_v62, %v11142_v2  ;;  %v6162_v52 = vpop.f32.mrb[177].mxu1 }
 0x523   : > { %v7249_v9 = vpack.c.bf16 %v7241_v0, %v7241_v0  ;;  %v7158_v15 = vmax.f32 %v7126_v27, 0.0  ;;  %v7127_v41 = vadd.f32 %v11175_v43, %v7088_v4  ;;  %v6163_v22 = vpop.f32.mrb[178].mxu1 }
 0x524   : > { %v6164_v5 = vadd.f32 %v6163_v22, %v11144_v25  ;;  %v6165_v11 = vpop.f32.mrb[179].mxu1 }
 0x525   : > { %7257 = vst.msk [vmem:[%s11196_s27 + $0x8] sm:$0xf] %vm280_vm1, %v7249_v9  ;;  %v7182_v16 = vmax.f32 %v7156_v60, %v7158_v15  ;;  %v7159_v49 = vmax.f32 %v7127_v41, 0.0 }
 0x526   : > { %v7010_v30 = vpop.f32.mrb[184].mxu0 }
 0x527   : > { %7198 = vst.msk [vmem:[#allocation3 + $0x30] sm:$0xff] %vm1759_vm11, %v7182_v16  ;;  %v7183_v56 = vmax.f32 %v7157_v18, %v7159_v49  ;;  %v7089_v38 = vadd.f32 %v7010_v30, %v6145_v19  ;;  %v7012_v55 = vpop.f32.mrb[185].mxu0 }
 0x528   : > { %v7013_v31 = vpop.f32.mrb[186].mxu0 }
 0x529   : > { %7199 = vst.msk [vmem:[#allocation3 + $0x38] sm:$0xff] %vm1759_vm11, %v7183_v56  ;;  %v7090_v45 = vadd.f32 %v7013_v31, %v6148_v58  ;;  %v7015_v20 = vpop.f32.mrb[187].mxu0  ;;  %v6168_v29 = vpop.f32.mrb[180].mxu1  ;;  %v7128_v32 = vadd.f32 %v11175_v43, %v7089_v38 }
 0x52a   : > { %v6169_v19 = vadd.f32 %v6168_v29, %v11146_v12  ;;  %v6170_v50 = vpop.f32.mrb[181].mxu1 }
 0x52b   : > { %v7129_v1 = vadd.f32 %v11175_v43, %v7090_v45  ;;  %v6171_v57 = vpop.f32.mrb[182].mxu1  ;;  %v7160_v36 = vmax.f32 %v7128_v32, 0.0 }
 0x52c   : > { %v6172_v8 = vadd.f32 %v6171_v57, %v11148_v48  ;;  %v6173_v23 = vpop.f32.mrb[183].mxu1 }
 0x52d   : > { %v7161_v35 = vmax.f32 %v7129_v1, 0.0 }
 0x52e   : > { %v7018_v24 = vpop.f32.mrb[188].mxu0 }
 0x52f   : > { %v7091_v46 = vadd.f32 %v7018_v24, %v6153_v40  ;;  %v7020_v26 = vpop.f32.mrb[189].mxu0 }
 0x530   : > { %v7214_v2 = vld [vmem:[#allocation3 + $0x30] ss:$2 sm:$0xff]  ;;  %v7230_v3 = vld [vmem:[#allocation3 + $0x31] ss:$2 sm:$0xff]  ;;  %v7021_v17 = vpop.f32.mrb[190].mxu0 }
 0x531   : > { %v7242_v58 = vmax.f32 %v7214_v2, %v7230_v3  ;;  %v7130_v25 = vadd.f32 %v11175_v43, %v7091_v46  ;;  %v7092_v63 = vadd.f32 %v7021_v17, %v6156_v7  ;;  %v7023_v44 = vpop.f32.mrb[191].mxu0  ;;  %v6176_v51 = vpop.f32.mrb[184].mxu1 }
 0x532   : > { %v6177_v48 = vadd.f32 %v6176_v51, %v11150_v21  ;;  %v6178_v4 = vpop.f32.mrb[185].mxu1 }
 0x533   : > { %v7250_v14 = vpack.c.bf16 %v7242_v58, %v7242_v58  ;;  %v7162_v40 = vmax.f32 %v7130_v25, 0.0  ;;  %v7131_v12 = vadd.f32 %v11175_v43, %v7092_v63  ;;  %v6179_v7 = vpop.f32.mrb[186].mxu1 }
 0x534   : > { %v6180_v60 = vadd.f32 %v6179_v7, %v11152_v42  ;;  %v6181_v15 = vpop.f32.mrb[187].mxu1 }
 0x535   : > { %7258 = vst.msk [vmem:[%s11196_s27 + $0xc] sm:$0xf] %vm280_vm1, %v7250_v14  ;;  %v7184_v61 = vmax.f32 %v7160_v36, %v7162_v40  ;;  %v7163_v47 = vmax.f32 %v7131_v12, 0.0 }
 0x536   : > { %v7026_v53 = vpop.f32.mrb[192].mxu0 }
 0x537   : > { %7200 = vst.msk [vmem:[#allocation3 + $0x40] sm:$0xff] %vm1759_vm11, %v7184_v61  ;;  %v7185_v6 = vmax.f32 %v7161_v35, %v7163_v47  ;;  %v7093_v0 = vadd.f32 %v7026_v53, %v6161_v28  ;;  %v7028_v27 = vpop.f32.mrb[193].mxu0 }
 0x538   : > { %v7029_v54 = vpop.f32.mrb[194].mxu0 }
 0x539   : > { %7201 = vst.msk [vmem:[#allocation3 + $0x48] sm:$0xff] %vm1759_vm11, %v7185_v6  ;;  %v7094_v39 = vadd.f32 %v7029_v54, %v6164_v5  ;;  %v7031_v9 = vpop.f32.mrb[195].mxu0  ;;  %v6184_v18 = vpop.f32.mrb[188].mxu1  ;;  %v7132_v16 = vadd.f32 %v11175_v43, %v7093_v0 }
 0x53a   : > { %v6185_v62 = vadd.f32 %v6184_v18, %v11154_v37  ;;  %v6186_v56 = vpop.f32.mrb[189].mxu1 }
 0x53b   : > { %v7133_v55 = vadd.f32 %v11175_v43, %v7094_v39  ;;  %v6187_v52 = vpop.f32.mrb[190].mxu1  ;;  %v7164_v24 = vmax.f32 %v7132_v16, 0.0 }
 0x53c   : > { %v6188_v20 = vadd.f32 %v6187_v52, %v11156_v13  ;;  %v6189_v5 = vpop.f32.mrb[191].mxu1 }
 0x53d   : > { %v7165_v32 = vmax.f32 %v7133_v55, 0.0 }
 0x53e   : > { %v7034_v41 = vpop.f32.mrb[196].mxu0 }
 0x53f   : > { %v7095_v49 = vadd.f32 %v7034_v41, %v6169_v19  ;;  %v7036_v30 = vpop.f32.mrb[197].mxu0 }
 0x540   : > { %v7216_v21 = vld [vmem:[#allocation3 + $0x40] ss:$2 sm:$0xff]  ;;  %v7232_v38 = vld [vmem:[#allocation3 + $0x41] ss:$2 sm:$0xff]  ;;  %v7037_v28 = vpop.f32.mrb[198].mxu0 }
 0x541   : > { %v7243_v31 = vmax.f32 %v7216_v21, %v7232_v38  ;;  %v7134_v42 = vadd.f32 %v11175_v43, %v7095_v49  ;;  %v7096_v22 = vadd.f32 %v7037_v28, %v6172_v8  ;;  %v7039_v45 = vpop.f32.mrb[199].mxu0  ;;  %v6192_v50 = vpop.f32.mrb[192].mxu1 }
 0x542   : > { %v6193_v13 = vadd.f32 %v6192_v50, %v11158_v59  ;;  %v6194_v17 = vpop.f32.mrb[193].mxu1 }
 0x543   : > { %v7251_v11 = vpack.c.bf16 %v7243_v31, %v7243_v31  ;;  %v7166_v29 = vmax.f32 %v7134_v42, 0.0  ;;  %v7135_v37 = vadd.f32 %v11175_v43, %v7096_v22  ;;  %v6195_v58 = vpop.f32.mrb[194].mxu1 }
 0x544   : > { %v6196_v44 = vadd.f32 %v6195_v58, %v11161_v10  ;;  %v6197_v8 = vpop.f32.mrb[195].mxu1 }
 0x545   : > { %7259 = vst.msk [vmem:[%s11196_s27 + $0x10] sm:$0xf] %vm280_vm1, %v7251_v11  ;;  %v7186_v46 = vmax.f32 %v7164_v24, %v7166_v29  ;;  %v7167_v26 = vmax.f32 %v7135_v37, 0.0 }
 0x546   : > { %v7042_v19 = vpop.f32.mrb[200].mxu0 }
 0x547   : > { %7202 = vst.msk [vmem:[#allocation3 + $0x50] sm:$0xff] %vm1759_vm11, %v7186_v46  ;;  %v7187_v2 = vmax.f32 %v7165_v32, %v7167_v26  ;;  %v7097_v3 = vadd.f32 %v7042_v19, %v6177_v48  ;;  %v7044_v1 = vpop.f32.mrb[201].mxu0 }
 0x548   : > { %v7045_v57 = vpop.f32.mrb[202].mxu0 }
 0x549   : > { %7203 = vst.msk [vmem:[#allocation3 + $0x58] sm:$0xff] %vm1759_vm11, %v7187_v2  ;;  %v7098_v25 = vadd.f32 %v7045_v57, %v6180_v60  ;;  %v7047_v63 = vpop.f32.mrb[203].mxu0  ;;  %v6200_v14 = vpop.f32.mrb[196].mxu1  ;;  %v7136_v36 = vadd.f32 %v11175_v43, %v7097_v3 }
 0x54a   : > { %v6201_v35 = vadd.f32 %v6200_v14, %v11164_v34  ;;  %v6202_v61 = vpop.f32.mrb[197].mxu1 }
 0x54b   : > { %v7137_v53 = vadd.f32 %v11175_v43, %v7098_v25  ;;  %v6203_v6 = vpop.f32.mrb[198].mxu1  ;;  %v7168_v39 = vmax.f32 %v7136_v36, 0.0 }
 0x54c   : > { %v6204_v4 = vadd.f32 %v6203_v6, %v11167_v33  ;;  %v6205_v54 = vpop.f32.mrb[199].mxu1 }
 0x54d   : > { %v7169_v60 = vmax.f32 %v7137_v53, 0.0 }
 0x54e   : > { %v7050_v23 = vpop.f32.mrb[204].mxu0 }
 0x54f   : > { %v7099_v40 = vadd.f32 %v7050_v23, %v6185_v62  ;;  %v7052_v12 = vpop.f32.mrb[205].mxu0 }
 0x550   : > { %v7218_v59 = vld [vmem:[#allocation3 + $0x50] ss:$2 sm:$0xff]  ;;  %v7234_v47 = vld [vmem:[#allocation3 + $0x51] ss:$2 sm:$0xff]  ;;  %v7053_v51 = vpop.f32.mrb[206].mxu0 }
 0x551   : > { %v7244_v0 = vmax.f32 %v7218_v59, %v7234_v47  ;;  %v7138_v10 = vadd.f32 %v11175_v43, %v7099_v40  ;;  %v7100_v27 = vadd.f32 %v7053_v51, %v6188_v20  ;;  %v7055_v48 = vpop.f32.mrb[207].mxu0 }
 0x553   : > { %v7252_v7 = vpack.c.bf16 %v7244_v0, %v7244_v0  ;;  %v7170_v9 = vmax.f32 %v7138_v10, 0.0  ;;  %v7139_v34 = vadd.f32 %v11175_v43, %v7100_v27 }
 0x555   : > { %7260 = vst.msk [vmem:[%s11196_s27 + $0x14] sm:$0xf] %vm280_vm1, %v7252_v7  ;;  %v7188_v15 = vmax.f32 %v7168_v39, %v7170_v9  ;;  %v7171_v41 = vmax.f32 %v7139_v34, 0.0 }
 0x556   : > { %v7058_v18 = vpop.f32.mrb[208].mxu0 }
 0x557   : > { %7204 = vst.msk [vmem:[#allocation3 + $0x60] sm:$0xff] %vm1759_vm11, %v7188_v15  ;;  %v7189_v16 = vmax.f32 %v7169_v60, %v7171_v41  ;;  %v7101_v49 = vadd.f32 %v7058_v18, %v6193_v13  ;;  %v7060_v30 = vpop.f32.mrb[209].mxu0 }
 0x558   : > { %v7061_v62 = vpop.f32.mrb[210].mxu0 }
 0x559   : > { %7205 = vst.msk [vmem:[#allocation3 + $0x68] sm:$0xff] %vm1759_vm11, %v7189_v16  ;;  %v7102_v33 = vadd.f32 %v7061_v62, %v6196_v44  ;;  %v7063_v56 = vpop.f32.mrb[211].mxu0  ;;  %v7140_v38 = vadd.f32 %v11175_v43, %v7101_v49 }
 0x55b   : > { %v7141_v45 = vadd.f32 %v11175_v43, %v7102_v33  ;;  %v7172_v29 = vmax.f32 %v7140_v38, 0.0 }
 0x55d   : > { %v7173_v46 = vmax.f32 %v7141_v45, 0.0 }
 0x55e   : > { %v7066_v21 = vpop.f32.mrb[212].mxu0 }
 0x55f   : > { %v7103_v55 = vadd.f32 %v7066_v21, %v6201_v35  ;;  %v7068_v28 = vpop.f32.mrb[213].mxu0 }
 0x560   : > { %v7220_v52 = vld [vmem:[#allocation3 + $0x60] ss:$2 sm:$0xff]  ;;  %v7236_v31 = vld [vmem:[#allocation3 + $0x61] ss:$2 sm:$0xff]  ;;  %v7069_v42 = vpop.f32.mrb[214].mxu0 }
 0x561   : > { %v7245_v22 = vmax.f32 %v7220_v52, %v7236_v31  ;;  %v7142_v20 = vadd.f32 %v11175_v43, %v7103_v55  ;;  %v7104_v5 = vadd.f32 %v7069_v42, %v6204_v4  ;;  %v7071_v11 = vpop.f32.mrb[215].mxu0 }
 0x563   : > { %v7253_v24 = vpack.c.bf16 %v7245_v22, %v7245_v22  ;;  %v7174_v37 = vmax.f32 %v7142_v20, 0.0  ;;  %v7143_v32 = vadd.f32 %v11175_v43, %v7104_v5 }
 0x565   : > { %7261 = vst.msk [vmem:[%s11196_s27 + $0x18] sm:$0xf] %vm280_vm1, %v7253_v24  ;;  %v7190_v26 = vmax.f32 %v7172_v29, %v7174_v37  ;;  %v7175_v19 = vmax.f32 %v7143_v32, 0.0 }
 0x567   : > { %7206 = vst.msk [vmem:[#allocation3 + $0x70] sm:$0xff] %vm1759_vm11, %v7190_v26  ;;  %v7191_v50 = vmax.f32 %v7173_v46, %v7175_v19 }
 0x569   : > { %7207 = vst.msk [vmem:[#allocation3 + $0x78] sm:$0xff] %vm1759_vm11, %v7191_v50 }
 0x570   : > { %v7222_v2 = vld [vmem:[#allocation3 + $0x70] ss:$2 sm:$0xff]  ;;  %v7238_v3 = vld [vmem:[#allocation3 + $0x71] ss:$2 sm:$0xff] }
 0x571   : > { %v7246_v1 = vmax.f32 %v7222_v2, %v7238_v3 }
 0x573   : > { %v7254_v13 = vpack.c.bf16 %v7246_v1, %v7246_v1 }
 0x575   : > { %7262 = vst.msk [vmem:[%s11196_s27 + $0x1c] sm:$0xf] %vm280_vm1, %v7254_v13 }
 0x576 PF: > { %s17_s24 = sadd.s32 1, %s8602_s24  }
 0x577   : > { %p14_p4 = scmp.ge.s32.totalorder %s17_s24, 4  }
 0x579   :  { %16 = sbr.rel (!%p14_p4) target bundleno = 1 (0x1), region = 99 }

</bundles_post_ra>
